<compile_context>
chip_gen: v7x
topology: tpu7x:2x2x1
jax: 0.10.0
libtpu: 0.0.40
codegen_flags: <defaults>
</compile_context>

<pallas_src>
import jax
import jax.numpy as jnp
from jax import lax
from jax.experimental import pallas as pl
from jax.experimental.pallas import tpu as pltpu

NEG_SLOPE = 0.1
EPS = 1e-5


def _leaky(v):
    return jnp.where(v > 0, v, NEG_SLOPE * v)


def _residual_block_kernel(xpad_ref, w1_ref, t1_ref, w2_ref, t2_ref,
                           o_ref, ypad_ref):
    # o_ref block: (NB, H, W, C); xpad_ref block: (NB, H+2, W+2, C)
    NB, H, W, C = o_ref.shape
    HP, WP = H + 2, W + 2
    M = NB * H * W

    # ---- conv1 (3x3 same, BN+bias folded into w1/t1) -----------------------
    # 9 shifted full-block matmuls: M = NB*H*W rows feed the MXU at once.
    acc = jnp.zeros((M, C), jnp.float32)
    for k in range(9):
        dy, dx = divmod(k, 3)
        patch = xpad_ref[:, dy:dy + H, dx:dx + W, :].reshape(M, C)
        acc = acc + jnp.dot(patch, w1_ref[k],
                            preferred_element_type=jnp.float32)
    y = _leaky(acc + t1_ref[...])
    # TODO(synk): Dropout2d is identity in eval mode; training-mode random
    # channel dropout is not implemented here.

    # ---- stage intermediate into padded scratch ----------------------------
    # Only the 1-pixel border must be zero; the interior is fully overwritten
    # every grid step, so we never re-zero the whole buffer.
    ypad_ref[:, 0:1, :, :] = jnp.zeros((NB, 1, WP, C), jnp.float32)
    ypad_ref[:, H + 1:H + 2, :, :] = jnp.zeros((NB, 1, WP, C), jnp.float32)
    ypad_ref[:, :, 0:1, :] = jnp.zeros((NB, HP, 1, C), jnp.float32)
    ypad_ref[:, :, W + 1:W + 2, :] = jnp.zeros((NB, HP, 1, C), jnp.float32)
    ypad_ref[:, 1:H + 1, 1:W + 1, :] = y.reshape(NB, H, W, C)

    # ---- conv2 (3x3 same, BN+bias folded) + residual + LeakyReLU -----------
    acc2 = jnp.zeros((M, C), jnp.float32)
    for k in range(9):
        dy, dx = divmod(k, 3)
        patch = ypad_ref[:, dy:dy + H, dx:dx + W, :].reshape(M, C)
        acc2 = acc2 + jnp.dot(patch, w2_ref[k],
                              preferred_element_type=jnp.float32)
    z = acc2 + t2_ref[...]

    res = xpad_ref[:, 1:H + 1, 1:W + 1, :].reshape(M, C) + z
    o_ref[...] = _leaky(res).reshape(NB, H, W, C).astype(o_ref.dtype)


def residual_cnn_block_pallas(x_nchw, params):
    """ResidualCNNBlock forward pass. Input/output are NCHW (PyTorch layout)."""
    N, C, H, W = x_nchw.shape
    x = jnp.transpose(x_nchw, (0, 2, 3, 1)).astype(jnp.float32)   # NHWC
    xpad = jnp.pad(x, ((0, 0), (1, 1), (1, 1), (0, 0)))           # (N, H+2, W+2, C)

    def taps(w_torch):  # (Cout, Cin, 3, 3) -> (9, Cin, Cout)
        return jnp.transpose(w_torch, (2, 3, 1, 0)).reshape(9, C, C)

    # Fold conv bias + BatchNorm (running stats) into the weights / one shift:
    #   BN(conv(x,w)+b) = conv(x, w*s) + ((b - mean)*s + beta),  s = gamma/sqrt(var+eps)
    def fold(w_torch, b, gamma, beta, mean, var):
        s = gamma / jnp.sqrt(var + EPS)                 # (C,)
        w = taps(w_torch) * s[None, None, :]            # scale output channels
        t = ((b - mean) * s + beta).reshape(1, C)
        return w.astype(jnp.float32), t.astype(jnp.float32)

    w1, t1 = fold(params["w1"], params["b1"], params["gamma1"],
                  params["beta1"], params["mean1"], params["var1"])
    w2, t2 = fold(params["w2"], params["b2"], params["gamma2"],
                  params["beta2"], params["mean2"], params["var2"])

    # Batch several images per grid step (largest divisor of N up to 8).
    nb = 1
    for d in range(1, min(N, 8) + 1):
        if N % d == 0:
            nb = d
    grid = (N // nb,)

    w_spec = pl.BlockSpec((9, C, C), lambda b: (0, 0, 0))
    t_spec = pl.BlockSpec((1, C), lambda b: (0, 0))

    out_nhwc = pl.pallas_call(
        _residual_block_kernel,
        out_shape=jax.ShapeDtypeStruct((N, H, W, C), jnp.float32),
        grid_spec=pltpu.PrefetchScalarGridSpec(
            num_scalar_prefetch=0,
            grid=grid,
            in_specs=[
                pl.BlockSpec((nb, H + 2, W + 2, C), lambda b: (b, 0, 0, 0)),
                w_spec, t_spec,
                w_spec, t_spec,
            ],
            out_specs=pl.BlockSpec((nb, H, W, C), lambda b: (b, 0, 0, 0)),
            scratch_shapes=[pltpu.VMEM((nb, H + 2, W + 2, C), jnp.float32)],
        ),
        compiler_params=pltpu.CompilerParams(
            dimension_semantics=("parallel",),        # batch blocks independent
            vmem_limit_bytes=32 * 1024 * 1024,
        ),
    )(xpad, w1, t1, w2, t2)

    return jnp.transpose(out_nhwc, (0, 3, 1, 2))   # back to NCHW


# ---------------- pure-JAX reference (for correctness check only) ------------
def residual_cnn_block_ref(x_nchw, params):
    x = jnp.transpose(x_nchw, (0, 2, 3, 1)).astype(jnp.float32)

    def conv(v, w_torch, b):
        w_hwio = jnp.transpose(w_torch, (2, 3, 1, 0))
        y = lax.conv_general_dilated(v, w_hwio, (1, 1), "SAME",
                                     dimension_numbers=("NHWC", "HWIO", "NHWC"))
        return y + b

    def bn(v, g, bta, m, var):
        return (v - m) / jnp.sqrt(var + EPS) * g + bta

    y = conv(x, params["w1"], params["b1"])
    y = bn(y, params["gamma1"], params["beta1"], params["mean1"], params["var1"])
    y = _leaky(y)
    z = conv(y, params["w2"], params["b2"])
    z = bn(z, params["gamma2"], params["beta2"], params["mean2"], params["var2"])
    out = _leaky(x + z)
    return jnp.transpose(out, (0, 3, 1, 2))


def make_params(key, channels):
    ks = jax.random.split(key, 12)
    C = channels
    return {
        "w1": 0.1 * jax.random.normal(ks[0], (C, C, 3, 3), jnp.float32),
        "b1": 0.1 * jax.random.normal(ks[1], (C,), jnp.float32),
        "gamma1": 1.0 + 0.1 * jax.random.normal(ks[2], (C,), jnp.float32),
        "beta1": 0.1 * jax.random.normal(ks[3], (C,), jnp.float32),
        "mean1": 0.1 * jax.random.normal(ks[4], (C,), jnp.float32),
        "var1": jax.random.uniform(ks[5], (C,), jnp.float32, 0.5, 1.5),
        "w2": 0.1 * jax.random.normal(ks[6], (C, C, 3, 3), jnp.float32),
        "b2": 0.1 * jax.random.normal(ks[7], (C,), jnp.float32),
        "gamma2": 1.0 + 0.1 * jax.random.normal(ks[8], (C,), jnp.float32),
        "beta2": 0.1 * jax.random.normal(ks[9], (C,), jnp.float32),
        "mean2": 0.1 * jax.random.normal(ks[10], (C,), jnp.float32),
        "var2": jax.random.uniform(ks[11], (C,), jnp.float32, 0.5, 1.5),
    }


if __name__ == "__main__":
    key = jax.random.PRNGKey(0)
    k_x, k_p = jax.random.split(key)

    N, C, H, W = 2, 4, 16, 16
    x = jax.random.normal(k_x, (N, C, H, W), jnp.float32)
    params = make_params(k_p, C)

    out = jax.jit(residual_cnn_block_pallas)(x, params)
    out = jax.block_until_ready(out)

    ref = residual_cnn_block_ref(x, params)
    assert out.shape == (N, C, H, W)
    assert jnp.allclose(out, ref, atol=2e-4, rtol=2e-4), (
        f"max abs err = {jnp.max(jnp.abs(out - ref))}")

    print("KERNEL_OK")
</pallas_src>

<mosaic_0001>
module attributes {stable_mosaic.version = 11 : i64} {
  func.func @_residual_block_kernel(%arg0: i32, %arg1: memref<2x18x18x4xf32, #tpu.memory_space<vmem>>, %arg2: memref<9x4x4xf32, #tpu.memory_space<vmem>>, %arg3: memref<1x4xf32, #tpu.memory_space<vmem>>, %arg4: memref<9x4x4xf32, #tpu.memory_space<vmem>>, %arg5: memref<1x4xf32, #tpu.memory_space<vmem>>, %arg6: memref<2x16x16x4xf32, #tpu.memory_space<vmem>>, %arg7: memref<2x18x18x4xf32, #tpu.memory_space<vmem>>) attributes {dimension_semantics = [#tpu.dimension_semantics<parallel>], iteration_bounds = array<i64: 1>, scalar_prefetch = 0 : i64, scratch_operands = 1 : i64, tpu.core_type = #tpu.core_type<tc>, window_params = [{transform_indices = @transform_0, window_bounds = array<i64: 2, 18, 18, 4>}, {pipeline_mode = #tpu.pipeline_mode<synchronous>, transform_indices = @transform_1, window_bounds = array<i64: 9, 4, 4>}, {pipeline_mode = #tpu.pipeline_mode<synchronous>, transform_indices = @transform_2, window_bounds = array<i64: 1, 4>}, {pipeline_mode = #tpu.pipeline_mode<synchronous>, transform_indices = @transform_3, window_bounds = array<i64: 9, 4, 4>}, {pipeline_mode = #tpu.pipeline_mode<synchronous>, transform_indices = @transform_4, window_bounds = array<i64: 1, 4>}, {transform_indices = @transform_5, window_bounds = array<i64: 2, 16, 16, 4>}]} {
    %cst = arith.constant 0.000000e+00 : f32
    %0 = vector.broadcast %cst : f32 to vector<512x4xf32>
    %c0 = arith.constant 0 : index
    %c0_0 = arith.constant 0 : index
    %c0_1 = arith.constant 0 : index
    %c0_2 = arith.constant 0 : index
    %1 = vector.load %arg1[%c0, %c0_0, %c0_1, %c0_2] : memref<2x18x18x4xf32, #tpu.memory_space<vmem>>, vector<2x16x16x4xf32>
    %2 = vector.shape_cast %1 : vector<2x16x16x4xf32> to vector<512x4xf32>
    %c0_3 = arith.constant 0 : index
    %c0_4 = arith.constant 0 : index
    %c0_5 = arith.constant 0 : index
    %3 = vector.load %arg2[%c0_3, %c0_4, %c0_5] : memref<9x4x4xf32, #tpu.memory_space<vmem>>, vector<1x4x4xf32>
    %4 = vector.shape_cast %3 : vector<1x4x4xf32> to vector<4x4xf32>
    %cst_6 = arith.constant dense<0.000000e+00> : vector<512x4xf32>
    %5 = tpu.matmul %2, %4, %cst_6 {dimension_numbers = #tpu.dot_dimension_numbers<[1], [0], [0], [1], [0, 0, 1, 1], [], []>} : vector<512x4xf32>, vector<4x4xf32>, vector<512x4xf32> -> vector<512x4xf32>
    %6 = arith.addf %0, %5 : vector<512x4xf32>
    %c0_7 = arith.constant 0 : index
    %c0_8 = arith.constant 0 : index
    %c1 = arith.constant 1 : index
    %c0_9 = arith.constant 0 : index
    %7 = vector.load %arg1[%c0_7, %c0_8, %c1, %c0_9] : memref<2x18x18x4xf32, #tpu.memory_space<vmem>>, vector<2x16x16x4xf32>
    %8 = vector.shape_cast %7 : vector<2x16x16x4xf32> to vector<512x4xf32>
    %c1_10 = arith.constant 1 : index
    %c0_11 = arith.constant 0 : index
    %c0_12 = arith.constant 0 : index
    %9 = vector.load %arg2[%c1_10, %c0_11, %c0_12] : memref<9x4x4xf32, #tpu.memory_space<vmem>>, vector<1x4x4xf32>
    %10 = vector.shape_cast %9 : vector<1x4x4xf32> to vector<4x4xf32>
    %cst_13 = arith.constant dense<0.000000e+00> : vector<512x4xf32>
    %11 = tpu.matmul %8, %10, %cst_13 {dimension_numbers = #tpu.dot_dimension_numbers<[1], [0], [0], [1], [0, 0, 1, 1], [], []>} : vector<512x4xf32>, vector<4x4xf32>, vector<512x4xf32> -> vector<512x4xf32>
    %12 = arith.addf %6, %11 : vector<512x4xf32>
    %c0_14 = arith.constant 0 : index
    %c0_15 = arith.constant 0 : index
    %c2 = arith.constant 2 : index
    %c0_16 = arith.constant 0 : index
    %13 = vector.load %arg1[%c0_14, %c0_15, %c2, %c0_16] : memref<2x18x18x4xf32, #tpu.memory_space<vmem>>, vector<2x16x16x4xf32>
    %14 = vector.shape_cast %13 : vector<2x16x16x4xf32> to vector<512x4xf32>
    %c2_17 = arith.constant 2 : index
    %c0_18 = arith.constant 0 : index
    %c0_19 = arith.constant 0 : index
    %15 = vector.load %arg2[%c2_17, %c0_18, %c0_19] : memref<9x4x4xf32, #tpu.memory_space<vmem>>, vector<1x4x4xf32>
    %16 = vector.shape_cast %15 : vector<1x4x4xf32> to vector<4x4xf32>
    %cst_20 = arith.constant dense<0.000000e+00> : vector<512x4xf32>
    %17 = tpu.matmul %14, %16, %cst_20 {dimension_numbers = #tpu.dot_dimension_numbers<[1], [0], [0], [1], [0, 0, 1, 1], [], []>} : vector<512x4xf32>, vector<4x4xf32>, vector<512x4xf32> -> vector<512x4xf32>
    %18 = arith.addf %12, %17 : vector<512x4xf32>
    %c0_21 = arith.constant 0 : index
    %c1_22 = arith.constant 1 : index
    %c0_23 = arith.constant 0 : index
    %c0_24 = arith.constant 0 : index
    %19 = vector.load %arg1[%c0_21, %c1_22, %c0_23, %c0_24] : memref<2x18x18x4xf32, #tpu.memory_space<vmem>>, vector<2x16x16x4xf32>
    %20 = vector.shape_cast %19 : vector<2x16x16x4xf32> to vector<512x4xf32>
    %c3 = arith.constant 3 : index
    %c0_25 = arith.constant 0 : index
    %c0_26 = arith.constant 0 : index
    %21 = vector.load %arg2[%c3, %c0_25, %c0_26] : memref<9x4x4xf32, #tpu.memory_space<vmem>>, vector<1x4x4xf32>
    %22 = vector.shape_cast %21 : vector<1x4x4xf32> to vector<4x4xf32>
    %cst_27 = arith.constant dense<0.000000e+00> : vector<512x4xf32>
    %23 = tpu.matmul %20, %22, %cst_27 {dimension_numbers = #tpu.dot_dimension_numbers<[1], [0], [0], [1], [0, 0, 1, 1], [], []>} : vector<512x4xf32>, vector<4x4xf32>, vector<512x4xf32> -> vector<512x4xf32>
    %24 = arith.addf %18, %23 : vector<512x4xf32>
    %c0_28 = arith.constant 0 : index
    %c1_29 = arith.constant 1 : index
    %c1_30 = arith.constant 1 : index
    %c0_31 = arith.constant 0 : index
    %25 = vector.load %arg1[%c0_28, %c1_29, %c1_30, %c0_31] : memref<2x18x18x4xf32, #tpu.memory_space<vmem>>, vector<2x16x16x4xf32>
    %26 = vector.shape_cast %25 : vector<2x16x16x4xf32> to vector<512x4xf32>
    %c4 = arith.constant 4 : index
    %c0_32 = arith.constant 0 : index
    %c0_33 = arith.constant 0 : index
    %27 = vector.load %arg2[%c4, %c0_32, %c0_33] : memref<9x4x4xf32, #tpu.memory_space<vmem>>, vector<1x4x4xf32>
    %28 = vector.shape_cast %27 : vector<1x4x4xf32> to vector<4x4xf32>
    %cst_34 = arith.constant dense<0.000000e+00> : vector<512x4xf32>
    %29 = tpu.matmul %26, %28, %cst_34 {dimension_numbers = #tpu.dot_dimension_numbers<[1], [0], [0], [1], [0, 0, 1, 1], [], []>} : vector<512x4xf32>, vector<4x4xf32>, vector<512x4xf32> -> vector<512x4xf32>
    %30 = arith.addf %24, %29 : vector<512x4xf32>
    %c0_35 = arith.constant 0 : index
    %c1_36 = arith.constant 1 : index
    %c2_37 = arith.constant 2 : index
    %c0_38 = arith.constant 0 : index
    %31 = vector.load %arg1[%c0_35, %c1_36, %c2_37, %c0_38] : memref<2x18x18x4xf32, #tpu.memory_space<vmem>>, vector<2x16x16x4xf32>
    %32 = vector.shape_cast %31 : vector<2x16x16x4xf32> to vector<512x4xf32>
    %c5 = arith.constant 5 : index
    %c0_39 = arith.constant 0 : index
    %c0_40 = arith.constant 0 : index
    %33 = vector.load %arg2[%c5, %c0_39, %c0_40] : memref<9x4x4xf32, #tpu.memory_space<vmem>>, vector<1x4x4xf32>
    %34 = vector.shape_cast %33 : vector<1x4x4xf32> to vector<4x4xf32>
    %cst_41 = arith.constant dense<0.000000e+00> : vector<512x4xf32>
    %35 = tpu.matmul %32, %34, %cst_41 {dimension_numbers = #tpu.dot_dimension_numbers<[1], [0], [0], [1], [0, 0, 1, 1], [], []>} : vector<512x4xf32>, vector<4x4xf32>, vector<512x4xf32> -> vector<512x4xf32>
    %36 = arith.addf %30, %35 : vector<512x4xf32>
    %c0_42 = arith.constant 0 : index
    %c2_43 = arith.constant 2 : index
    %c0_44 = arith.constant 0 : index
    %c0_45 = arith.constant 0 : index
    %37 = vector.load %arg1[%c0_42, %c2_43, %c0_44, %c0_45] : memref<2x18x18x4xf32, #tpu.memory_space<vmem>>, vector<2x16x16x4xf32>
    %38 = vector.shape_cast %37 : vector<2x16x16x4xf32> to vector<512x4xf32>
    %c6 = arith.constant 6 : index
    %c0_46 = arith.constant 0 : index
    %c0_47 = arith.constant 0 : index
    %39 = vector.load %arg2[%c6, %c0_46, %c0_47] : memref<9x4x4xf32, #tpu.memory_space<vmem>>, vector<1x4x4xf32>
    %40 = vector.shape_cast %39 : vector<1x4x4xf32> to vector<4x4xf32>
    %cst_48 = arith.constant dense<0.000000e+00> : vector<512x4xf32>
    %41 = tpu.matmul %38, %40, %cst_48 {dimension_numbers = #tpu.dot_dimension_numbers<[1], [0], [0], [1], [0, 0, 1, 1], [], []>} : vector<512x4xf32>, vector<4x4xf32>, vector<512x4xf32> -> vector<512x4xf32>
    %42 = arith.addf %36, %41 : vector<512x4xf32>
    %c0_49 = arith.constant 0 : index
    %c2_50 = arith.constant 2 : index
    %c1_51 = arith.constant 1 : index
    %c0_52 = arith.constant 0 : index
    %43 = vector.load %arg1[%c0_49, %c2_50, %c1_51, %c0_52] : memref<2x18x18x4xf32, #tpu.memory_space<vmem>>, vector<2x16x16x4xf32>
    %44 = vector.shape_cast %43 : vector<2x16x16x4xf32> to vector<512x4xf32>
    %c7 = arith.constant 7 : index
    %c0_53 = arith.constant 0 : index
    %c0_54 = arith.constant 0 : index
    %45 = vector.load %arg2[%c7, %c0_53, %c0_54] : memref<9x4x4xf32, #tpu.memory_space<vmem>>, vector<1x4x4xf32>
    %46 = vector.shape_cast %45 : vector<1x4x4xf32> to vector<4x4xf32>
    %cst_55 = arith.constant dense<0.000000e+00> : vector<512x4xf32>
    %47 = tpu.matmul %44, %46, %cst_55 {dimension_numbers = #tpu.dot_dimension_numbers<[1], [0], [0], [1], [0, 0, 1, 1], [], []>} : vector<512x4xf32>, vector<4x4xf32>, vector<512x4xf32> -> vector<512x4xf32>
    %48 = arith.addf %42, %47 : vector<512x4xf32>
    %c0_56 = arith.constant 0 : index
    %c2_57 = arith.constant 2 : index
    %c2_58 = arith.constant 2 : index
    %c0_59 = arith.constant 0 : index
    %49 = vector.load %arg1[%c0_56, %c2_57, %c2_58, %c0_59] : memref<2x18x18x4xf32, #tpu.memory_space<vmem>>, vector<2x16x16x4xf32>
    %50 = vector.shape_cast %49 : vector<2x16x16x4xf32> to vector<512x4xf32>
    %c8 = arith.constant 8 : index
    %c0_60 = arith.constant 0 : index
    %c0_61 = arith.constant 0 : index
    %51 = vector.load %arg2[%c8, %c0_60, %c0_61] : memref<9x4x4xf32, #tpu.memory_space<vmem>>, vector<1x4x4xf32>
    %52 = vector.shape_cast %51 : vector<1x4x4xf32> to vector<4x4xf32>
    %cst_62 = arith.constant dense<0.000000e+00> : vector<512x4xf32>
    %53 = tpu.matmul %50, %52, %cst_62 {dimension_numbers = #tpu.dot_dimension_numbers<[1], [0], [0], [1], [0, 0, 1, 1], [], []>} : vector<512x4xf32>, vector<4x4xf32>, vector<512x4xf32> -> vector<512x4xf32>
    %54 = arith.addf %48, %53 : vector<512x4xf32>
    %c0_63 = arith.constant 0 : index
    %c0_64 = arith.constant 0 : index
    %55 = vector.load %arg3[%c0_63, %c0_64] : memref<1x4xf32, #tpu.memory_space<vmem>>, vector<1x4xf32>
    %56 = vector.broadcast %55 : vector<1x4xf32> to vector<512x4xf32>
    %57 = arith.addf %54, %56 : vector<512x4xf32>
    %cst_65 = arith.constant 0.000000e+00 : f32
    %58 = vector.broadcast %cst_65 : f32 to vector<512x4xf32>
    %59 = arith.cmpf ogt, %57, %58 : vector<512x4xf32>
    %cst_66 = arith.constant 1.000000e-01 : f32
    %60 = vector.broadcast %cst_66 : f32 to vector<512x4xf32>
    %61 = arith.mulf %60, %57 : vector<512x4xf32>
    %62 = arith.select %59, %57, %61 : vector<512x4xi1>, vector<512x4xf32>
    %cst_67 = arith.constant 0.000000e+00 : f32
    %63 = vector.broadcast %cst_67 : f32 to vector<2x1x18x4xf32>
    %c0_68 = arith.constant 0 : index
    %c0_69 = arith.constant 0 : index
    %c0_70 = arith.constant 0 : index
    %c0_71 = arith.constant 0 : index
    %64 = vector.load %arg7[%c0_68, %c0_69, %c0_70, %c0_71] : memref<2x18x18x4xf32, #tpu.memory_space<vmem>>, vector<2x1x18x4xf32>
    tpu.vector_store %arg7[%c0_68, %c0_69, %c0_70, %c0_71], %63 {strides = array<i32>} : memref<2x18x18x4xf32, #tpu.memory_space<vmem>>, vector<2x1x18x4xf32>,
    %cst_72 = arith.constant 0.000000e+00 : f32
    %65 = vector.broadcast %cst_72 : f32 to vector<2x1x18x4xf32>
    %c0_73 = arith.constant 0 : index
    %c17 = arith.constant 17 : index
    %c0_74 = arith.constant 0 : index
    %c0_75 = arith.constant 0 : index
    %66 = vector.load %arg7[%c0_73, %c17, %c0_74, %c0_75] : memref<2x18x18x4xf32, #tpu.memory_space<vmem>>, vector<2x1x18x4xf32>
    tpu.vector_store %arg7[%c0_73, %c17, %c0_74, %c0_75], %65 {strides = array<i32>} : memref<2x18x18x4xf32, #tpu.memory_space<vmem>>, vector<2x1x18x4xf32>,
    %cst_76 = arith.constant 0.000000e+00 : f32
    %67 = vector.broadcast %cst_76 : f32 to vector<2x18x1x4xf32>
    %c0_77 = arith.constant 0 : index
    %c0_78 = arith.constant 0 : index
    %c0_79 = arith.constant 0 : index
    %c0_80 = arith.constant 0 : index
    %68 = vector.load %arg7[%c0_77, %c0_78, %c0_79, %c0_80] : memref<2x18x18x4xf32, #tpu.memory_space<vmem>>, vector<2x18x1x4xf32>
    tpu.vector_store %arg7[%c0_77, %c0_78, %c0_79, %c0_80], %67 {strides = array<i32>} : memref<2x18x18x4xf32, #tpu.memory_space<vmem>>, vector<2x18x1x4xf32>,
    %cst_81 = arith.constant 0.000000e+00 : f32
    %69 = vector.broadcast %cst_81 : f32 to vector<2x18x1x4xf32>
    %c0_82 = arith.constant 0 : index
    %c0_83 = arith.constant 0 : index
    %c17_84 = arith.constant 17 : index
    %c0_85 = arith.constant 0 : index
    %70 = vector.load %arg7[%c0_82, %c0_83, %c17_84, %c0_85] : memref<2x18x18x4xf32, #tpu.memory_space<vmem>>, vector<2x18x1x4xf32>
    tpu.vector_store %arg7[%c0_82, %c0_83, %c17_84, %c0_85], %69 {strides = array<i32>} : memref<2x18x18x4xf32, #tpu.memory_space<vmem>>, vector<2x18x1x4xf32>,
    %71 = vector.shape_cast %62 : vector<512x4xf32> to vector<2x16x16x4xf32>
    %c0_86 = arith.constant 0 : index
    %c1_87 = arith.constant 1 : index
    %c1_88 = arith.constant 1 : index
    %c0_89 = arith.constant 0 : index
    %72 = vector.load %arg7[%c0_86, %c1_87, %c1_88, %c0_89] : memref<2x18x18x4xf32, #tpu.memory_space<vmem>>, vector<2x16x16x4xf32>
    tpu.vector_store %arg7[%c0_86, %c1_87, %c1_88, %c0_89], %71 {strides = array<i32>} : memref<2x18x18x4xf32, #tpu.memory_space<vmem>>, vector<2x16x16x4xf32>,
    %cst_90 = arith.constant 0.000000e+00 : f32
    %73 = vector.broadcast %cst_90 : f32 to vector<512x4xf32>
    %c0_91 = arith.constant 0 : index
    %c0_92 = arith.constant 0 : index
    %c0_93 = arith.constant 0 : index
    %c0_94 = arith.constant 0 : index
    %74 = vector.load %arg7[%c0_91, %c0_92, %c0_93, %c0_94] : memref<2x18x18x4xf32, #tpu.memory_space<vmem>>, vector<2x16x16x4xf32>
    %75 = vector.shape_cast %74 : vector<2x16x16x4xf32> to vector<512x4xf32>
    %c0_95 = arith.constant 0 : index
    %c0_96 = arith.constant 0 : index
    %c0_97 = arith.constant 0 : index
    %76 = vector.load %arg4[%c0_95, %c0_96, %c0_97] : memref<9x4x4xf32, #tpu.memory_space<vmem>>, vector<1x4x4xf32>
    %77 = vector.shape_cast %76 : vector<1x4x4xf32> to vector<4x4xf32>
    %cst_98 = arith.constant dense<0.000000e+00> : vector<512x4xf32>
    %78 = tpu.matmul %75, %77, %cst_98 {dimension_numbers = #tpu.dot_dimension_numbers<[1], [0], [0], [1], [0, 0, 1, 1], [], []>} : vector<512x4xf32>, vector<4x4xf32>, vector<512x4xf32> -> vector<512x4xf32>
    %79 = arith.addf %73, %78 : vector<512x4xf32>
    %c0_99 = arith.constant 0 : index
    %c0_100 = arith.constant 0 : index
    %c1_101 = arith.constant 1 : index
    %c0_102 = arith.constant 0 : index
    %80 = vector.load %arg7[%c0_99, %c0_100, %c1_101, %c0_102] : memref<2x18x18x4xf32, #tpu.memory_space<vmem>>, vector<2x16x16x4xf32>
    %81 = vector.shape_cast %80 : vector<2x16x16x4xf32> to vector<512x4xf32>
    %c1_103 = arith.constant 1 : index
    %c0_104 = arith.constant 0 : index
    %c0_105 = arith.constant 0 : index
    %82 = vector.load %arg4[%c1_103, %c0_104, %c0_105] : memref<9x4x4xf32, #tpu.memory_space<vmem>>, vector<1x4x4xf32>
    %83 = vector.shape_cast %82 : vector<1x4x4xf32> to vector<4x4xf32>
    %cst_106 = arith.constant dense<0.000000e+00> : vector<512x4xf32>
    %84 = tpu.matmul %81, %83, %cst_106 {dimension_numbers = #tpu.dot_dimension_numbers<[1], [0], [0], [1], [0, 0, 1, 1], [], []>} : vector<512x4xf32>, vector<4x4xf32>, vector<512x4xf32> -> vector<512x4xf32>
    %85 = arith.addf %79, %84 : vector<512x4xf32>
    %c0_107 = arith.constant 0 : index
    %c0_108 = arith.constant 0 : index
    %c2_109 = arith.constant 2 : index
    %c0_110 = arith.constant 0 : index
    %86 = vector.load %arg7[%c0_107, %c0_108, %c2_109, %c0_110] : memref<2x18x18x4xf32, #tpu.memory_space<vmem>>, vector<2x16x16x4xf32>
    %87 = vector.shape_cast %86 : vector<2x16x16x4xf32> to vector<512x4xf32>
    %c2_111 = arith.constant 2 : index
    %c0_112 = arith.constant 0 : index
    %c0_113 = arith.constant 0 : index
    %88 = vector.load %arg4[%c2_111, %c0_112, %c0_113] : memref<9x4x4xf32, #tpu.memory_space<vmem>>, vector<1x4x4xf32>
    %89 = vector.shape_cast %88 : vector<1x4x4xf32> to vector<4x4xf32>
    %cst_114 = arith.constant dense<0.000000e+00> : vector<512x4xf32>
    %90 = tpu.matmul %87, %89, %cst_114 {dimension_numbers = #tpu.dot_dimension_numbers<[1], [0], [0], [1], [0, 0, 1, 1], [], []>} : vector<512x4xf32>, vector<4x4xf32>, vector<512x4xf32> -> vector<512x4xf32>
    %91 = arith.addf %85, %90 : vector<512x4xf32>
    %c0_115 = arith.constant 0 : index
    %c1_116 = arith.constant 1 : index
    %c0_117 = arith.constant 0 : index
    %c0_118 = arith.constant 0 : index
    %92 = vector.load %arg7[%c0_115, %c1_116, %c0_117, %c0_118] : memref<2x18x18x4xf32, #tpu.memory_space<vmem>>, vector<2x16x16x4xf32>
    %93 = vector.shape_cast %92 : vector<2x16x16x4xf32> to vector<512x4xf32>
    %c3_119 = arith.constant 3 : index
    %c0_120 = arith.constant 0 : index
    %c0_121 = arith.constant 0 : index
    %94 = vector.load %arg4[%c3_119, %c0_120, %c0_121] : memref<9x4x4xf32, #tpu.memory_space<vmem>>, vector<1x4x4xf32>
    %95 = vector.shape_cast %94 : vector<1x4x4xf32> to vector<4x4xf32>
    %cst_122 = arith.constant dense<0.000000e+00> : vector<512x4xf32>
    %96 = tpu.matmul %93, %95, %cst_122 {dimension_numbers = #tpu.dot_dimension_numbers<[1], [0], [0], [1], [0, 0, 1, 1], [], []>} : vector<512x4xf32>, vector<4x4xf32>, vector<512x4xf32> -> vector<512x4xf32>
    %97 = arith.addf %91, %96 : vector<512x4xf32>
    %c0_123 = arith.constant 0 : index
    %c1_124 = arith.constant 1 : index
    %c1_125 = arith.constant 1 : index
    %c0_126 = arith.constant 0 : index
    %98 = vector.load %arg7[%c0_123, %c1_124, %c1_125, %c0_126] : memref<2x18x18x4xf32, #tpu.memory_space<vmem>>, vector<2x16x16x4xf32>
    %99 = vector.shape_cast %98 : vector<2x16x16x4xf32> to vector<512x4xf32>
    %c4_127 = arith.constant 4 : index
    %c0_128 = arith.constant 0 : index
    %c0_129 = arith.constant 0 : index
    %100 = vector.load %arg4[%c4_127, %c0_128, %c0_129] : memref<9x4x4xf32, #tpu.memory_space<vmem>>, vector<1x4x4xf32>
    %101 = vector.shape_cast %100 : vector<1x4x4xf32> to vector<4x4xf32>
    %cst_130 = arith.constant dense<0.000000e+00> : vector<512x4xf32>
    %102 = tpu.matmul %99, %101, %cst_130 {dimension_numbers = #tpu.dot_dimension_numbers<[1], [0], [0], [1], [0, 0, 1, 1], [], []>} : vector<512x4xf32>, vector<4x4xf32>, vector<512x4xf32> -> vector<512x4xf32>
    %103 = arith.addf %97, %102 : vector<512x4xf32>
    %c0_131 = arith.constant 0 : index
    %c1_132 = arith.constant 1 : index
    %c2_133 = arith.constant 2 : index
    %c0_134 = arith.constant 0 : index
    %104 = vector.load %arg7[%c0_131, %c1_132, %c2_133, %c0_134] : memref<2x18x18x4xf32, #tpu.memory_space<vmem>>, vector<2x16x16x4xf32>
    %105 = vector.shape_cast %104 : vector<2x16x16x4xf32> to vector<512x4xf32>
    %c5_135 = arith.constant 5 : index
    %c0_136 = arith.constant 0 : index
    %c0_137 = arith.constant 0 : index
    %106 = vector.load %arg4[%c5_135, %c0_136, %c0_137] : memref<9x4x4xf32, #tpu.memory_space<vmem>>, vector<1x4x4xf32>
    %107 = vector.shape_cast %106 : vector<1x4x4xf32> to vector<4x4xf32>
    %cst_138 = arith.constant dense<0.000000e+00> : vector<512x4xf32>
    %108 = tpu.matmul %105, %107, %cst_138 {dimension_numbers = #tpu.dot_dimension_numbers<[1], [0], [0], [1], [0, 0, 1, 1], [], []>} : vector<512x4xf32>, vector<4x4xf32>, vector<512x4xf32> -> vector<512x4xf32>
    %109 = arith.addf %103, %108 : vector<512x4xf32>
    %c0_139 = arith.constant 0 : index
    %c2_140 = arith.constant 2 : index
    %c0_141 = arith.constant 0 : index
    %c0_142 = arith.constant 0 : index
    %110 = vector.load %arg7[%c0_139, %c2_140, %c0_141, %c0_142] : memref<2x18x18x4xf32, #tpu.memory_space<vmem>>, vector<2x16x16x4xf32>
    %111 = vector.shape_cast %110 : vector<2x16x16x4xf32> to vector<512x4xf32>
    %c6_143 = arith.constant 6 : index
    %c0_144 = arith.constant 0 : index
    %c0_145 = arith.constant 0 : index
    %112 = vector.load %arg4[%c6_143, %c0_144, %c0_145] : memref<9x4x4xf32, #tpu.memory_space<vmem>>, vector<1x4x4xf32>
    %113 = vector.shape_cast %112 : vector<1x4x4xf32> to vector<4x4xf32>
    %cst_146 = arith.constant dense<0.000000e+00> : vector<512x4xf32>
    %114 = tpu.matmul %111, %113, %cst_146 {dimension_numbers = #tpu.dot_dimension_numbers<[1], [0], [0], [1], [0, 0, 1, 1], [], []>} : vector<512x4xf32>, vector<4x4xf32>, vector<512x4xf32> -> vector<512x4xf32>
    %115 = arith.addf %109, %114 : vector<512x4xf32>
    %c0_147 = arith.constant 0 : index
    %c2_148 = arith.constant 2 : index
    %c1_149 = arith.constant 1 : index
    %c0_150 = arith.constant 0 : index
    %116 = vector.load %arg7[%c0_147, %c2_148, %c1_149, %c0_150] : memref<2x18x18x4xf32, #tpu.memory_space<vmem>>, vector<2x16x16x4xf32>
    %117 = vector.shape_cast %116 : vector<2x16x16x4xf32> to vector<512x4xf32>
    %c7_151 = arith.constant 7 : index
    %c0_152 = arith.constant 0 : index
    %c0_153 = arith.constant 0 : index
    %118 = vector.load %arg4[%c7_151, %c0_152, %c0_153] : memref<9x4x4xf32, #tpu.memory_space<vmem>>, vector<1x4x4xf32>
    %119 = vector.shape_cast %118 : vector<1x4x4xf32> to vector<4x4xf32>
    %cst_154 = arith.constant dense<0.000000e+00> : vector<512x4xf32>
    %120 = tpu.matmul %117, %119, %cst_154 {dimension_numbers = #tpu.dot_dimension_numbers<[1], [0], [0], [1], [0, 0, 1, 1], [], []>} : vector<512x4xf32>, vector<4x4xf32>, vector<512x4xf32> -> vector<512x4xf32>
    %121 = arith.addf %115, %120 : vector<512x4xf32>
    %c0_155 = arith.constant 0 : index
    %c2_156 = arith.constant 2 : index
    %c2_157 = arith.constant 2 : index
    %c0_158 = arith.constant 0 : index
    %122 = vector.load %arg7[%c0_155, %c2_156, %c2_157, %c0_158] : memref<2x18x18x4xf32, #tpu.memory_space<vmem>>, vector<2x16x16x4xf32>
    %123 = vector.shape_cast %122 : vector<2x16x16x4xf32> to vector<512x4xf32>
    %c8_159 = arith.constant 8 : index
    %c0_160 = arith.constant 0 : index
    %c0_161 = arith.constant 0 : index
    %124 = vector.load %arg4[%c8_159, %c0_160, %c0_161] : memref<9x4x4xf32, #tpu.memory_space<vmem>>, vector<1x4x4xf32>
    %125 = vector.shape_cast %124 : vector<1x4x4xf32> to vector<4x4xf32>
    %cst_162 = arith.constant dense<0.000000e+00> : vector<512x4xf32>
    %126 = tpu.matmul %123, %125, %cst_162 {dimension_numbers = #tpu.dot_dimension_numbers<[1], [0], [0], [1], [0, 0, 1, 1], [], []>} : vector<512x4xf32>, vector<4x4xf32>, vector<512x4xf32> -> vector<512x4xf32>
    %127 = arith.addf %121, %126 : vector<512x4xf32>
    %c0_163 = arith.constant 0 : index
    %c0_164 = arith.constant 0 : index
    %128 = vector.load %arg5[%c0_163, %c0_164] : memref<1x4xf32, #tpu.memory_space<vmem>>, vector<1x4xf32>
    %129 = vector.broadcast %128 : vector<1x4xf32> to vector<512x4xf32>
    %130 = arith.addf %127, %129 : vector<512x4xf32>
    %c0_165 = arith.constant 0 : index
    %c1_166 = arith.constant 1 : index
    %c1_167 = arith.constant 1 : index
    %c0_168 = arith.constant 0 : index
    %131 = vector.load %arg1[%c0_165, %c1_166, %c1_167, %c0_168] : memref<2x18x18x4xf32, #tpu.memory_space<vmem>>, vector<2x16x16x4xf32>
    %132 = vector.shape_cast %131 : vector<2x16x16x4xf32> to vector<512x4xf32>
    %133 = arith.addf %132, %130 : vector<512x4xf32>
    %cst_169 = arith.constant 0.000000e+00 : f32
    %134 = vector.broadcast %cst_169 : f32 to vector<512x4xf32>
    %135 = arith.cmpf ogt, %133, %134 : vector<512x4xf32>
    %cst_170 = arith.constant 1.000000e-01 : f32
    %136 = vector.broadcast %cst_170 : f32 to vector<512x4xf32>
    %137 = arith.mulf %136, %133 : vector<512x4xf32>
    %138 = arith.select %135, %133, %137 : vector<512x4xi1>, vector<512x4xf32>
    %139 = vector.shape_cast %138 : vector<512x4xf32> to vector<2x16x16x4xf32>
    %c0_171 = arith.constant 0 : index
    %c0_172 = arith.constant 0 : index
    %c0_173 = arith.constant 0 : index
    %c0_174 = arith.constant 0 : index
    %140 = vector.load %arg6[%c0_171, %c0_172, %c0_173, %c0_174] : memref<2x16x16x4xf32, #tpu.memory_space<vmem>>, vector<2x16x16x4xf32>
    tpu.vector_store %arg6[%c0_171, %c0_172, %c0_173, %c0_174], %139 {strides = array<i32>} : memref<2x16x16x4xf32, #tpu.memory_space<vmem>>, vector<2x16x16x4xf32>,
    return
  }
  func.func @transform_0(%arg0: i32) -> (i32, i32, i32, i32) {
    %c0_i32 = arith.constant 0 : i32
    %c0_i32_0 = arith.constant 0 : i32
    %c0_i32_1 = arith.constant 0 : i32
    %c0_i32_2 = arith.constant 0 : i32
    return %arg0, %c0_i32, %c0_i32_0, %c0_i32_1 : i32, i32, i32, i32
  }
  func.func @transform_1(%arg0: i32) -> (i32, i32, i32) {
    %c0_i32 = arith.constant 0 : i32
    %c0_i32_0 = arith.constant 0 : i32
    %c0_i32_1 = arith.constant 0 : i32
    %c0_i32_2 = arith.constant 0 : i32
    return %c0_i32, %c0_i32_0, %c0_i32_1 : i32, i32, i32
  }
  func.func @transform_2(%arg0: i32) -> (i32, i32) {
    %c0_i32 = arith.constant 0 : i32
    %c0_i32_0 = arith.constant 0 : i32
    %c0_i32_1 = arith.constant 0 : i32
    return %c0_i32, %c0_i32_0 : i32, i32
  }
  func.func @transform_3(%arg0: i32) -> (i32, i32, i32) {
    %c0_i32 = arith.constant 0 : i32
    %c0_i32_0 = arith.constant 0 : i32
    %c0_i32_1 = arith.constant 0 : i32
    %c0_i32_2 = arith.constant 0 : i32
    return %c0_i32, %c0_i32_0, %c0_i32_1 : i32, i32, i32
  }
  func.func @transform_4(%arg0: i32) -> (i32, i32) {
    %c0_i32 = arith.constant 0 : i32
    %c0_i32_0 = arith.constant 0 : i32
    %c0_i32_1 = arith.constant 0 : i32
    return %c0_i32, %c0_i32_0 : i32, i32
  }
  func.func @transform_5(%arg0: i32) -> (i32, i32, i32, i32) {
    %c0_i32 = arith.constant 0 : i32
    %c0_i32_0 = arith.constant 0 : i32
    %c0_i32_1 = arith.constant 0 : i32
    %c0_i32_2 = arith.constant 0 : i32
    return %arg0, %c0_i32, %c0_i32_0, %c0_i32_1 : i32, i32, i32, i32
  }
}

</mosaic_0001>

<bundles_post_ra>
// kernel: residual_cnn_block_pallas.1
= control target key start
LH: loop header
LB: loop body
LE: loop exit
PB: predicated region body
PF: predicated region fallthrough
CT: control target
= control target key end

     0   :  { %vm344_vm0 = vcmask 1043456   ;;  %vm151_vm1 = vcmask 31744   ;;  %vm6550_vm2 = vcmask 25600   ;;  %vm6562_vm3 = vcmask 24576   ;;  %s23830_s1 = inlined_call_operand.vmem [shape: f32[9,4,4], index: 1, kind: input, shape index: {}]   ;;  %s23831_s0 = inlined_call_operand.vmem [shape: f32[2,18,18,4], index: 0, kind: input, shape index: {}]   ;;  %s23832_s3 = inlined_call_operand.vmem [shape: f32[9,4,4], index: 3, kind: input, shape index: {}]   ;;  %s23833_s2 = inlined_call_operand.vmem [shape: f32[1,4], index: 2, kind: input, shape index: {}]   ;;  %s23834_s4 = inlined_call_operand.vmem [shape: f32[1,4], index: 4, kind: input, shape index: {}]   ;;  %s23835_s5 = inlined_call_operand.vmem [shape: f32[2,16,16,4], index: 5, kind: output, shape index: {}]  }
   0x1   :  { %v13421_v0 = vld [vmem:[%s23830_s1 + $0x4] sm:$0xf]  ;;  %v86_v2 = vld [vmem:[%s23831_s0 + $0x9] sm:$0xff]  ;;  %v84_v3 = vld [vmem:[%s23830_s1] sm:$0xf] }
   0x2   :  { %v85_v1 = vld [vmem:[%s23831_s0 + $0x1] sm:$0xff]  ;;  %16227 = vmatprep.subr.msk.mxu0 %vm344_vm0, %v13421_v0  ;;  %v87_v4 = vld [vmem:[%s23831_s0 + $0x19] sm:$0xff]  ;;  %v89_v6 = vld [vmem:[%s23831_s0 + $0x31] sm:$0xff] }
   0x3   :  { %16229 = vmatprep.mubr.msk.f32.mxu0 %vm151_vm1, %v85_v1  ;;  %16228 = vmatpush3.msk.msra.mxu0 %vm344_vm0, %v13421_v0  ;;  %v88_v5 = vld [vmem:[%s23831_s0 + $0x21] sm:$0xff]  ;;  %v90_v7 = vld [vmem:[%s23831_s0 + $0x39] sm:$0xff]  ;;  %v91_v8 = vld [vmem:[%s23831_s0 + $0x49] sm:$0xff] }
   0x4   :  { %16230 = vmatmul.mubr.msk.f32.vlgmr.msra.gmra.mrb[0].mxu0 %vm151_vm1, %v86_v2  ;;  %16325 = vmatprep.subr.msk.mxu0 %vm344_vm0, %v84_v3  ;;  %v92_v9 = vld [vmem:[%s23831_s0 + $0x51] sm:$0xff]  ;;  %v93_v10 = vld [vmem:[%s23831_s0 + $0x61] sm:$0xff]  ;;  %v94_v11 = vld [vmem:[%s23831_s0 + $0x69] sm:$0xff] }
   0x5   :  { %16326 = vmatpush3.msk.msra.mxu0 %vm344_vm0, %v84_v3  ;;  %16232 = vmatprep.mubr.msk.f32.mxu0 %vm151_vm1, %v87_v4  ;;  %v95_v12 = vld [vmem:[%s23831_s0 + $0x79] sm:$0xff]  ;;  %v96_v13 = vld [vmem:[%s23831_s0 + $0x81] sm:$0xff]  ;;  %v97_v14 = vld [vmem:[%s23831_s0 + $0x91] sm:$0xff] }
   0x6   :  { %v19110_v15 = vld [vmem:[%s23830_s1 + $0x8] sm:$0xf]  ;;  %v98_v16 = vld [vmem:[%s23831_s0 + $0x99] sm:$0xff]  ;;  %v100_v18 = vld [vmem:[%s23831_s0 + $0xb1] sm:$0xff] }
   0x7   :  { %16423 = vmatprep.subr.msk.mxu0 %vm344_vm0, %v19110_v15  ;;  %v99_v17 = vld [vmem:[%s23831_s0 + $0xa9] sm:$0xff]  ;;  %v101_v19 = vld [vmem:[%s23831_s0 + $0xc1] sm:$0xff]  ;;  %v103_v21 = vld [vmem:[%s23831_s0 + $0xd9] sm:$0xff] }
   0x8   :  { %16233 = vmatmul.mubr.msk.f32.gmra.mrb[2].mxu0 %vm151_vm1, %v88_v5  ;;  %v102_v20 = vld [vmem:[%s23831_s0 + $0xc9] sm:$0xff]  ;;  %v104_v22 = vld [vmem:[%s23831_s0 + $0xe1] sm:$0xff]  ;;  %v105_v23 = vld [vmem:[%s23831_s0 + $0xf1] sm:$0xff] }
   0x9   :  { %16235 = vmatprep.mubr.msk.f32.mxu0 %vm151_vm1, %v89_v6  ;;  %v106_v24 = vld [vmem:[%s23831_s0 + $0xf9] sm:$0xff]  ;;  %v107_v25 = vld [vmem:[%s23831_s0 + $0x109] sm:$0xff]  ;;  %v108_v26 = vld [vmem:[%s23831_s0 + $0x111] sm:$0xff] }
   0xa   :  { %v109_v27 = vld [vmem:[%s23831_s0 + $0x121] sm:$0xff]  ;;  %v110_v28 = vld [vmem:[%s23831_s0 + $0x129] sm:$0xff]  ;;  %v111_v29 = vld [vmem:[%s23831_s0 + $0x139] sm:$0xff] }
   0xb   :  { %v112_v30 = vld [vmem:[%s23831_s0 + $0x141] sm:$0xff]  ;;  %v113_v31 = vld [vmem:[%s23831_s0 + $0x151] sm:$0xff]  ;;  %v114_v32 = vld [vmem:[%s23831_s0 + $0x159] sm:$0xff] }
   0xc   :  { %16236 = vmatmul.mubr.msk.f32.gmra.mrb[4].mxu0 %vm151_vm1, %v90_v7  ;;  %v115_v33 = vld [vmem:[%s23831_s0 + $0x169] sm:$0xff]  ;;  %v116_v34 = vld [vmem:[%s23831_s0 + $0x171] sm:$0xff]  ;;  %v118_v36 = vld [vmem:[%s23831_s0 + $0x1b9] sm:$0xff] }
   0xd   :  { %16238 = vmatprep.mubr.msk.f32.mxu0 %vm151_vm1, %v91_v8  ;;  %v117_v35 = vld [vmem:[%s23831_s0 + $0x1b1] sm:$0xff]  ;;  %v119_v37 = vld [vmem:[%s23831_s0 + $0x1c9] sm:$0xff]  ;;  %v121_v39 = vld [vmem:[%s23831_s0 + $0x1e1] sm:$0xff] }
   0xe   :  { %v120_v38 = vld [vmem:[%s23831_s0 + $0x1d1] sm:$0xff]  ;;  %v122_v40 = vld [vmem:[%s23831_s0 + $0x1e9] sm:$0xff]  ;;  %v123_v41 = vld [vmem:[%s23831_s0 + $0x1f9] sm:$0xff] }
   0xf   :  { %v124_v42 = vld [vmem:[%s23831_s0 + $0x201] sm:$0xff]  ;;  %v125_v43 = vld [vmem:[%s23831_s0 + $0x211] sm:$0xff]  ;;  %v126_v44 = vld [vmem:[%s23831_s0 + $0x219] sm:$0xff] }
  0x10   :  { %16239 = vmatmul.mubr.msk.f32.gmra.mrb[6].mxu0 %vm151_vm1, %v92_v9  ;;  %v127_v45 = vld [vmem:[%s23831_s0 + $0x229] sm:$0xff]  ;;  %v128_v46 = vld [vmem:[%s23831_s0 + $0x231] sm:$0xff]  ;;  %v129_v47 = vld [vmem:[%s23831_s0 + $0x241] sm:$0xff] }
  0x11   :  { %16241 = vmatprep.mubr.msk.f32.mxu0 %vm151_vm1, %v93_v10  ;;  %v130_v48 = vld [vmem:[%s23831_s0 + $0x249] sm:$0xff]  ;;  %v131_v49 = vld [vmem:[%s23831_s0 + $0x259] sm:$0xff]  ;;  %v132_v50 = vld [vmem:[%s23831_s0 + $0x261] sm:$0xff] }
  0x12   :  { %v133_v51 = vld [vmem:[%s23831_s0 + $0x271] sm:$0xff]  ;;  %v134_v52 = vld [vmem:[%s23831_s0 + $0x279] sm:$0xff]  ;;  %v135_v53 = vld [vmem:[%s23831_s0 + $0x289] sm:$0xff] }
  0x13   :  { %v136_v54 = vld [vmem:[%s23831_s0 + $0x291] sm:$0xff]  ;;  %v137_v55 = vld [vmem:[%s23831_s0 + $0x2a1] sm:$0xff]  ;;  %v138_v56 = vld [vmem:[%s23831_s0 + $0x2a9] sm:$0xff] }
  0x14   :  { %16242 = vmatmul.mubr.msk.f32.gmra.mrb[8].mxu0 %vm151_vm1, %v94_v11  ;;  %v139_v57 = vld [vmem:[%s23831_s0 + $0x2b9] sm:$0xff]  ;;  %v140_v58 = vld [vmem:[%s23831_s0 + $0x2c1] sm:$0xff]  ;;  %v141_v59 = vld [vmem:[%s23831_s0 + $0x2d1] sm:$0xff] }
  0x15   :  { %16244 = vmatprep.mubr.msk.f32.mxu0 %vm151_vm1, %v95_v12  ;;  %v142_v60 = vld [vmem:[%s23831_s0 + $0x2d9] sm:$0xff]  ;;  %v143_v61 = vld [vmem:[%s23831_s0 + $0x2e9] sm:$0xff]  ;;  %v144_v62 = vld [vmem:[%s23831_s0 + $0x2f1] sm:$0xff] }
  0x16   :  { %v145_v63 = vld [vmem:[%s23831_s0 + $0x301] sm:$0xff]  ;;  %v146_v0 = vld [vmem:[%s23831_s0 + $0x309] sm:$0xff]  ;;  %v147_v1 = vld [vmem:[%s23831_s0 + $0x319] sm:$0xff] }
  0x17   :  { %v148_v2 = vld [vmem:[%s23831_s0 + $0x321] sm:$0xff]  ;;  %v19330_v5 = vld [vmem:[%s23831_s0 + $0x18] sm:$0xff]  ;;  %v19336_v6 = vld [vmem:[%s23830_s1 + $0xc] sm:$0xf] }
  0x18   :  { %16245 = vmatmul.mubr.msk.f32.gmra.mrb[10].mxu0 %vm151_vm1, %v96_v13  ;;  %v20_v3 = vld [vmem:[%s23831_s0] sm:$0xff]  ;;  %v21_v4 = vld [vmem:[%s23831_s0 + $0x8] sm:$0xff]  ;;  %v19350_v8 = vld [vmem:[%s23831_s0 + $0x30] sm:$0xff] }
  0x19   :  { %16247 = vmatprep.mubr.msk.f32.mxu0 %vm151_vm1, %v97_v14  ;;  %v19345_v7 = vld [vmem:[%s23831_s0 + $0x20] sm:$0xff]  ;;  %v19361_v9 = vld [vmem:[%s23831_s0 + $0x38] sm:$0xff]  ;;  %v19366_v10 = vld [vmem:[%s23831_s0 + $0x48] sm:$0xff] }
  0x1a   :  { %v19375_v11 = vld [vmem:[%s23831_s0 + $0x50] sm:$0xff]  ;;  %v19380_v12 = vld [vmem:[%s23831_s0 + $0x60] sm:$0xff]  ;;  %v19389_v13 = vld [vmem:[%s23831_s0 + $0x68] sm:$0xff] }
  0x1b   :  { %v19394_v14 = vld [vmem:[%s23831_s0 + $0x78] sm:$0xff] }
  0x1c   :  { %16248 = vmatmul.mubr.msk.f32.gmra.mrb[12].mxu0 %vm151_vm1, %v98_v16  ;;  %v19408_v16 = vld [vmem:[%s23831_s0 + $0x90] sm:$0xff] }
  0x1d   :  { %16250 = vmatprep.mubr.msk.f32.mxu0 %vm151_vm1, %v99_v17  ;;  %v19417_v17 = vld [vmem:[%s23831_s0 + $0x98] sm:$0xff] }
  0x20   :  { %16251 = vmatmul.mubr.msk.f32.gmra.mrb[14].mxu0 %vm151_vm1, %v100_v18  ;;  %v19422_v18 = vld [vmem:[%s23831_s0 + $0xa8] sm:$0xff] }
  0x21   :  { %16253 = vmatprep.mubr.msk.f32.mxu0 %vm151_vm1, %v101_v19  ;;  %v19431_v19 = vld [vmem:[%s23831_s0 + $0xb0] sm:$0xff] }
  0x24   :  { %16254 = vmatmul.mubr.msk.f32.gmra.mrb[16].mxu0 %vm151_vm1, %v102_v20  ;;  %v19436_v20 = vld [vmem:[%s23831_s0 + $0xc0] sm:$0xff] }
  0x25   :  { %16256 = vmatprep.mubr.msk.f32.mxu0 %vm151_vm1, %v103_v21  ;;  %v19445_v21 = vld [vmem:[%s23831_s0 + $0xc8] sm:$0xff] }
  0x28   :  { %16257 = vmatmul.mubr.msk.f32.gmra.mrb[18].mxu0 %vm151_vm1, %v104_v22  ;;  %v19450_v22 = vld [vmem:[%s23831_s0 + $0xd8] sm:$0xff] }
  0x29   :  { %16259 = vmatprep.mubr.msk.f32.mxu0 %vm151_vm1, %v105_v23  ;;  %v19459_v23 = vld [vmem:[%s23831_s0 + $0xe0] sm:$0xff] }
  0x2c   :  { %16260 = vmatmul.mubr.msk.f32.gmra.mrb[20].mxu0 %vm151_vm1, %v106_v24  ;;  %v19464_v24 = vld [vmem:[%s23831_s0 + $0xf0] sm:$0xff] }
  0x2d   :  { %16262 = vmatprep.mubr.msk.f32.mxu0 %vm151_vm1, %v107_v25  ;;  %v19473_v25 = vld [vmem:[%s23831_s0 + $0xf8] sm:$0xff] }
  0x30   :  { %16263 = vmatmul.mubr.msk.f32.gmra.mrb[22].mxu0 %vm151_vm1, %v108_v26  ;;  %v19478_v26 = vld [vmem:[%s23831_s0 + $0x108] sm:$0xff] }
  0x31   :  { %16265 = vmatprep.mubr.msk.f32.mxu0 %vm151_vm1, %v109_v27  ;;  %v19487_v27 = vld [vmem:[%s23831_s0 + $0x110] sm:$0xff] }
  0x34   :  { %16266 = vmatmul.mubr.msk.f32.gmra.mrb[24].mxu0 %vm151_vm1, %v110_v28  ;;  %v19492_v28 = vld [vmem:[%s23831_s0 + $0x120] sm:$0xff] }
  0x35   :  { %16268 = vmatprep.mubr.msk.f32.mxu0 %vm151_vm1, %v111_v29  ;;  %v19501_v29 = vld [vmem:[%s23831_s0 + $0x128] sm:$0xff] }
  0x38   :  { %16269 = vmatmul.mubr.msk.f32.gmra.mrb[26].mxu0 %vm151_vm1, %v112_v30  ;;  %v19506_v30 = vld [vmem:[%s23831_s0 + $0x138] sm:$0xff] }
  0x39   :  { %16271 = vmatprep.mubr.msk.f32.mxu0 %vm151_vm1, %v113_v31  ;;  %v19515_v31 = vld [vmem:[%s23831_s0 + $0x140] sm:$0xff] }
  0x3c   :  { %16272 = vmatmul.mubr.msk.f32.gmra.mrb[28].mxu0 %vm151_vm1, %v114_v32  ;;  %v19520_v32 = vld [vmem:[%s23831_s0 + $0x150] sm:$0xff] }
  0x3d   :  { %16274 = vmatprep.mubr.msk.f32.mxu0 %vm151_vm1, %v115_v33  ;;  %v19529_v33 = vld [vmem:[%s23831_s0 + $0x158] sm:$0xff] }
  0x40   :  { %16275 = vmatmul.mubr.msk.f32.gmra.mrb[30].mxu0 %vm151_vm1, %v116_v34  ;;  %v19534_v34 = vld [vmem:[%s23831_s0 + $0x168] sm:$0xff] }
  0x41   :  { %16277 = vmatprep.mubr.msk.f32.mxu0 %vm151_vm1, %v117_v35  ;;  %v19543_v35 = vld [vmem:[%s23831_s0 + $0x170] sm:$0xff] }
  0x44   :  { %16278 = vmatmul.mubr.msk.f32.gmra.mrb[32].mxu0 %vm151_vm1, %v118_v36  ;;  %v52_v36 = vld [vmem:[%s23831_s0 + $0x1b0] sm:$0xff] }
  0x45   :  { %16280 = vmatprep.mubr.msk.f32.mxu0 %vm151_vm1, %v119_v37  ;;  %v53_v37 = vld [vmem:[%s23831_s0 + $0x1b8] sm:$0xff] }
  0x48   :  { %16281 = vmatmul.mubr.msk.f32.gmra.mrb[34].mxu0 %vm151_vm1, %v120_v38  ;;  %v19557_v38 = vld [vmem:[%s23831_s0 + $0x1c8] sm:$0xff] }
  0x49   :  { %16283 = vmatprep.mubr.msk.f32.mxu0 %vm151_vm1, %v121_v39  ;;  %v19565_v39 = vld [vmem:[%s23831_s0 + $0x1d0] sm:$0xff] }
  0x4c   :  { %16284 = vmatmul.mubr.msk.f32.gmra.mrb[36].mxu0 %vm151_vm1, %v122_v40  ;;  %v19570_v40 = vld [vmem:[%s23831_s0 + $0x1e0] sm:$0xff] }
  0x4d   :  { %16286 = vmatprep.mubr.msk.f32.mxu0 %vm151_vm1, %v123_v41  ;;  %v19579_v41 = vld [vmem:[%s23831_s0 + $0x1e8] sm:$0xff] }
  0x50   :  { %16287 = vmatmul.mubr.msk.f32.gmra.mrb[38].mxu0 %vm151_vm1, %v124_v42  ;;  %v19584_v42 = vld [vmem:[%s23831_s0 + $0x1f8] sm:$0xff] }
  0x51   :  { %16289 = vmatprep.mubr.msk.f32.mxu0 %vm151_vm1, %v125_v43  ;;  %v19593_v43 = vld [vmem:[%s23831_s0 + $0x200] sm:$0xff] }
  0x54   :  { %16290 = vmatmul.mubr.msk.f32.gmra.mrb[40].mxu0 %vm151_vm1, %v126_v44  ;;  %v19598_v44 = vld [vmem:[%s23831_s0 + $0x210] sm:$0xff] }
  0x55   :  { %16292 = vmatprep.mubr.msk.f32.mxu0 %vm151_vm1, %v127_v45  ;;  %v19607_v45 = vld [vmem:[%s23831_s0 + $0x218] sm:$0xff] }
  0x58   :  { %16293 = vmatmul.mubr.msk.f32.gmra.mrb[42].mxu0 %vm151_vm1, %v128_v46  ;;  %v19612_v46 = vld [vmem:[%s23831_s0 + $0x228] sm:$0xff] }
  0x59   :  { %16295 = vmatprep.mubr.msk.f32.mxu0 %vm151_vm1, %v129_v47  ;;  %v19621_v47 = vld [vmem:[%s23831_s0 + $0x230] sm:$0xff] }
  0x5c   :  { %16296 = vmatmul.mubr.msk.f32.gmra.mrb[44].mxu0 %vm151_vm1, %v130_v48  ;;  %v19626_v48 = vld [vmem:[%s23831_s0 + $0x240] sm:$0xff] }
  0x5d   :  { %16298 = vmatprep.mubr.msk.f32.mxu0 %vm151_vm1, %v131_v49  ;;  %v19635_v49 = vld [vmem:[%s23831_s0 + $0x248] sm:$0xff] }
  0x60   :  { %16299 = vmatmul.mubr.msk.f32.gmra.mrb[46].mxu0 %vm151_vm1, %v132_v50  ;;  %v19640_v50 = vld [vmem:[%s23831_s0 + $0x258] sm:$0xff] }
  0x61   :  { %16301 = vmatprep.mubr.msk.f32.mxu0 %vm151_vm1, %v133_v51  ;;  %v19649_v51 = vld [vmem:[%s23831_s0 + $0x260] sm:$0xff] }
  0x64   :  { %16302 = vmatmul.mubr.msk.f32.gmra.mrb[48].mxu0 %vm151_vm1, %v134_v52  ;;  %v19654_v52 = vld [vmem:[%s23831_s0 + $0x270] sm:$0xff] }
  0x65   :  { %16304 = vmatprep.mubr.msk.f32.mxu0 %vm151_vm1, %v135_v53  ;;  %v19663_v53 = vld [vmem:[%s23831_s0 + $0x278] sm:$0xff] }
  0x68   :  { %16305 = vmatmul.mubr.msk.f32.gmra.mrb[50].mxu0 %vm151_vm1, %v136_v54  ;;  %v19668_v54 = vld [vmem:[%s23831_s0 + $0x288] sm:$0xff] }
  0x69   :  { %16307 = vmatprep.mubr.msk.f32.mxu0 %vm151_vm1, %v137_v55  ;;  %v19677_v55 = vld [vmem:[%s23831_s0 + $0x290] sm:$0xff] }
  0x6c   :  { %16308 = vmatmul.mubr.msk.f32.gmra.mrb[52].mxu0 %vm151_vm1, %v138_v56  ;;  %v19682_v56 = vld [vmem:[%s23831_s0 + $0x2a0] sm:$0xff] }
  0x6d   :  { %16310 = vmatprep.mubr.msk.f32.mxu0 %vm151_vm1, %v139_v57  ;;  %v19691_v57 = vld [vmem:[%s23831_s0 + $0x2a8] sm:$0xff] }
  0x70   :  { %16311 = vmatmul.mubr.msk.f32.gmra.mrb[54].mxu0 %vm151_vm1, %v140_v58  ;;  %v19696_v58 = vld [vmem:[%s23831_s0 + $0x2b8] sm:$0xff] }
  0x71   :  { %16313 = vmatprep.mubr.msk.f32.mxu0 %vm151_vm1, %v141_v59  ;;  %v19705_v59 = vld [vmem:[%s23831_s0 + $0x2c0] sm:$0xff] }
  0x74   :  { %16314 = vmatmul.mubr.msk.f32.gmra.mrb[56].mxu0 %vm151_vm1, %v142_v60  ;;  %v19710_v60 = vld [vmem:[%s23831_s0 + $0x2d0] sm:$0xff] }
  0x75   :  { %16316 = vmatprep.mubr.msk.f32.mxu0 %vm151_vm1, %v143_v61  ;;  %v19719_v61 = vld [vmem:[%s23831_s0 + $0x2d8] sm:$0xff] }
  0x78   :  { %16317 = vmatmul.mubr.msk.f32.gmra.mrb[58].mxu0 %vm151_vm1, %v144_v62  ;;  %v19724_v62 = vld [vmem:[%s23831_s0 + $0x2e8] sm:$0xff] }
  0x79   :  { %16319 = vmatprep.mubr.msk.f32.mxu0 %vm151_vm1, %v145_v63  ;;  %v19733_v63 = vld [vmem:[%s23831_s0 + $0x2f0] sm:$0xff] }
  0x7c   :  { %16320 = vmatmul.mubr.msk.f32.gmra.mrb[60].mxu0 %vm151_vm1, %v146_v0  ;;  %v19738_v0 = vld [vmem:[%s23831_s0 + $0x300] sm:$0xff] }
  0x7d   :  { %16322 = vmatprep.mubr.msk.f32.mxu0 %vm151_vm1, %v147_v1  ;;  %v19747_v1 = vld [vmem:[%s23831_s0 + $0x308] sm:$0xff] }
  0x80   :  { %16323 = vmatmul.mubr.msk.f32.gmra.mrb[62].mxu0 %vm151_vm1, %v148_v2  ;;  %v19752_v2 = vld [vmem:[%s23831_s0 + $0x318] sm:$0xff] }
  0x81   :  { %16327 = vmatprep.mubr.msk.f32.mxu0 %vm151_vm1, %v20_v3  ;;  %23981 = vst [vmem:[#allocation3_spill] sm:$0xff] %v19752_v2  ;;  %v19761_v3 = vld [vmem:[%s23831_s0 + $0x320] sm:$0xff] }
  0x84   :  { %16328 = vmatmul.mubr.msk.f32.vlgmr.msra.gmra.mrb[0].mxu0 %vm151_vm1, %v21_v4  ;;  %v1313_v4 = vld [vmem:[%s23831_s0 + $0x2] sm:$0xff] }
  0x85   :  { %16424 = vmatpush3.msk.msra.mxu0 %vm344_vm0, %v19110_v15  ;;  %16330 = vmatprep.mubr.msk.f32.mxu0 %vm151_vm1, %v19330_v5  ;;  %v19403_v15 = vld [vmem:[%s23831_s0 + $0x80] sm:$0xff] }
  0x86   :  { %16521 = vmatprep.subr.msk.mxu0 %vm344_vm0, %v19336_v6 }
  0x88   :  { %16331 = vmatmul.mubr.msk.f32.gmra.mrb[2].mxu0 %vm151_vm1, %v19345_v7 }
  0x89   :  { %16333 = vmatprep.mubr.msk.f32.mxu0 %vm151_vm1, %v19350_v8 }
  0x8c   :  { %16334 = vmatmul.mubr.msk.f32.gmra.mrb[4].mxu0 %vm151_vm1, %v19361_v9 }
  0x8d   :  { %16336 = vmatprep.mubr.msk.f32.mxu0 %vm151_vm1, %v19366_v10 }
  0x90   :  { %16337 = vmatmul.mubr.msk.f32.gmra.mrb[6].mxu0 %vm151_vm1, %v19375_v11 }
  0x91   :  { %16339 = vmatprep.mubr.msk.f32.mxu0 %vm151_vm1, %v19380_v12 }
  0x94   :  { %16340 = vmatmul.mubr.msk.f32.gmra.mrb[8].mxu0 %vm151_vm1, %v19389_v13 }
  0x95   :  { %16342 = vmatprep.mubr.msk.f32.mxu0 %vm151_vm1, %v19394_v14 }
  0x98   :  { %16343 = vmatmul.mubr.msk.f32.gmra.mrb[10].mxu0 %vm151_vm1, %v19403_v15 }
  0x99   :  { %16345 = vmatprep.mubr.msk.f32.mxu0 %vm151_vm1, %v19408_v16 }
  0x9c   :  { %16346 = vmatmul.mubr.msk.f32.gmra.mrb[12].mxu0 %vm151_vm1, %v19417_v17 }
  0x9d   :  { %16348 = vmatprep.mubr.msk.f32.mxu0 %vm151_vm1, %v19422_v18 }
  0xa0   :  { %16349 = vmatmul.mubr.msk.f32.gmra.mrb[14].mxu0 %vm151_vm1, %v19431_v19 }
  0xa1   :  { %16351 = vmatprep.mubr.msk.f32.mxu0 %vm151_vm1, %v19436_v20 }
  0xa4   :  { %16352 = vmatmul.mubr.msk.f32.gmra.mrb[16].mxu0 %vm151_vm1, %v19445_v21 }
  0xa5   :  { %16354 = vmatprep.mubr.msk.f32.mxu0 %vm151_vm1, %v19450_v22 }
  0xa8   :  { %16355 = vmatmul.mubr.msk.f32.gmra.mrb[18].mxu0 %vm151_vm1, %v19459_v23 }
  0xa9   :  { %16357 = vmatprep.mubr.msk.f32.mxu0 %vm151_vm1, %v19464_v24 }
  0xac   :  { %16358 = vmatmul.mubr.msk.f32.gmra.mrb[20].mxu0 %vm151_vm1, %v19473_v25 }
  0xad   :  { %16360 = vmatprep.mubr.msk.f32.mxu0 %vm151_vm1, %v19478_v26 }
  0xb0   :  { %16361 = vmatmul.mubr.msk.f32.gmra.mrb[22].mxu0 %vm151_vm1, %v19487_v27 }
  0xb1   :  { %16363 = vmatprep.mubr.msk.f32.mxu0 %vm151_vm1, %v19492_v28 }
  0xb4   :  { %16364 = vmatmul.mubr.msk.f32.gmra.mrb[24].mxu0 %vm151_vm1, %v19501_v29 }
  0xb5   :  { %16366 = vmatprep.mubr.msk.f32.mxu0 %vm151_vm1, %v19506_v30 }
  0xb8   :  { %16367 = vmatmul.mubr.msk.f32.gmra.mrb[26].mxu0 %vm151_vm1, %v19515_v31 }
  0xb9   :  { %16369 = vmatprep.mubr.msk.f32.mxu0 %vm151_vm1, %v19520_v32 }
  0xbc   :  { %16370 = vmatmul.mubr.msk.f32.gmra.mrb[28].mxu0 %vm151_vm1, %v19529_v33 }
  0xbd   :  { %16372 = vmatprep.mubr.msk.f32.mxu0 %vm151_vm1, %v19534_v34 }
  0xc0   :  { %16373 = vmatmul.mubr.msk.f32.gmra.mrb[30].mxu0 %vm151_vm1, %v19543_v35 }
  0xc1   :  { %16375 = vmatprep.mubr.msk.f32.mxu0 %vm151_vm1, %v52_v36  ;;  %v1314_v36 = vld [vmem:[%s23831_s0 + $0xa] sm:$0xff] }
  0xc4   :  { %16376 = vmatmul.mubr.msk.f32.gmra.mrb[32].mxu0 %vm151_vm1, %v53_v37  ;;  %v19775_v37 = vld [vmem:[%s23831_s0 + $0x1a] sm:$0xff] }
  0xc5   :  { %16378 = vmatprep.mubr.msk.f32.mxu0 %vm151_vm1, %v19557_v38  ;;  %23982 = vst [vmem:[#allocation4_spill] sm:$0xff] %v19775_v37 }
  0xc8   :  { %16379 = vmatmul.mubr.msk.f32.gmra.mrb[34].mxu0 %vm151_vm1, %v19565_v39 }
  0xc9   :  { %16381 = vmatprep.mubr.msk.f32.mxu0 %vm151_vm1, %v19570_v40 }
  0xcc   :  { %16382 = vmatmul.mubr.msk.f32.gmra.mrb[36].mxu0 %vm151_vm1, %v19579_v41 }
  0xcd   :  { %16384 = vmatprep.mubr.msk.f32.mxu0 %vm151_vm1, %v19584_v42 }
  0xd0   :  { %16385 = vmatmul.mubr.msk.f32.gmra.mrb[38].mxu0 %vm151_vm1, %v19593_v43 }
  0xd1   :  { %16387 = vmatprep.mubr.msk.f32.mxu0 %vm151_vm1, %v19598_v44 }
  0xd4   :  { %16388 = vmatmul.mubr.msk.f32.gmra.mrb[40].mxu0 %vm151_vm1, %v19607_v45 }
  0xd5   :  { %16390 = vmatprep.mubr.msk.f32.mxu0 %vm151_vm1, %v19612_v46 }
  0xd8   :  { %16391 = vmatmul.mubr.msk.f32.gmra.mrb[42].mxu0 %vm151_vm1, %v19621_v47 }
  0xd9   :  { %16393 = vmatprep.mubr.msk.f32.mxu0 %vm151_vm1, %v19626_v48 }
  0xdc   :  { %16394 = vmatmul.mubr.msk.f32.gmra.mrb[44].mxu0 %vm151_vm1, %v19635_v49 }
  0xdd   :  { %16396 = vmatprep.mubr.msk.f32.mxu0 %vm151_vm1, %v19640_v50 }
  0xe0   :  { %16397 = vmatmul.mubr.msk.f32.gmra.mrb[46].mxu0 %vm151_vm1, %v19649_v51 }
  0xe1   :  { %16399 = vmatprep.mubr.msk.f32.mxu0 %vm151_vm1, %v19654_v52 }
  0xe4   :  { %16400 = vmatmul.mubr.msk.f32.gmra.mrb[48].mxu0 %vm151_vm1, %v19663_v53 }
  0xe5   :  { %16402 = vmatprep.mubr.msk.f32.mxu0 %vm151_vm1, %v19668_v54 }
  0xe8   :  { %16403 = vmatmul.mubr.msk.f32.gmra.mrb[50].mxu0 %vm151_vm1, %v19677_v55 }
  0xe9   :  { %16405 = vmatprep.mubr.msk.f32.mxu0 %vm151_vm1, %v19682_v56 }
  0xec   :  { %16406 = vmatmul.mubr.msk.f32.gmra.mrb[52].mxu0 %vm151_vm1, %v19691_v57 }
  0xed   :  { %16408 = vmatprep.mubr.msk.f32.mxu0 %vm151_vm1, %v19696_v58 }
  0xf0   :  { %16409 = vmatmul.mubr.msk.f32.gmra.mrb[54].mxu0 %vm151_vm1, %v19705_v59 }
  0xf1   :  { %16411 = vmatprep.mubr.msk.f32.mxu0 %vm151_vm1, %v19710_v60 }
  0xf4   :  { %16412 = vmatmul.mubr.msk.f32.gmra.mrb[56].mxu0 %vm151_vm1, %v19719_v61 }
  0xf5   :  { %16414 = vmatprep.mubr.msk.f32.mxu0 %vm151_vm1, %v19724_v62 }
  0xf8   :  { %16415 = vmatmul.mubr.msk.f32.gmra.mrb[58].mxu0 %vm151_vm1, %v19733_v63 }
  0xf9   :  { %16417 = vmatprep.mubr.msk.f32.mxu0 %vm151_vm1, %v19738_v0 }
  0xfc   :  { %16418 = vmatmul.mubr.msk.f32.gmra.mrb[60].mxu0 %vm151_vm1, %v19747_v1 }
  0xfd   :  { %16420 = vmatprep.mubr.msk.f32.mxu0 %vm151_vm1, %v19752_v2  ;;  %v19781_v2 = vld [vmem:[%s23830_s1 + $0x10] sm:$0xf] }
 0x100   :  { %16421 = vmatmul.mubr.msk.f32.gmra.mrb[62].mxu0 %vm151_vm1, %v19761_v3 }
 0x101   :  { %16425 = vmatprep.mubr.msk.f32.mxu0 %vm151_vm1, %v1313_v4  ;;  %v19790_v4 = vld [vmem:[%s23831_s0 + $0x22] sm:$0xff] }
 0x102   :  { %23983 = vst [vmem:[#allocation5_spill] sm:$0xff] %v19790_v4 }
 0x104   :  { %16426 = vmatmul.mubr.msk.f32.vlgmr.msra.gmra.mrb[0].mxu0 %vm151_vm1, %v1314_v36  ;;  %v19795_v36 = vld [vmem:[%s23831_s0 + $0x32] sm:$0xff] }
 0x105   :  { %16522 = vmatpush3.msk.msra.mxu0 %vm344_vm0, %v19336_v6  ;;  %16428 = vmatprep.mubr.msk.f32.mxu0 %vm151_vm1, %v19775_v37  ;;  %23984 = vst [vmem:[#allocation6_spill] sm:$0xff] %v19795_v36  ;;  %v19806_v6 = vld [vmem:[%s23831_s0 + $0x3a] sm:$0xff]  ;;  %v19811_v37 = vld [vmem:[%s23831_s0 + $0x4a] sm:$0xff] }
 0x106   :  { %16619 = vmatprep.subr.msk.mxu0 %vm344_vm0, %v19781_v2  ;;  %23985 = vst [vmem:[#allocation7_spill] sm:$0xff] %v19806_v6  ;;  %23986 = vst [vmem:[#allocation8_spill] sm:$0xff] %v19811_v37 }
 0x108   :  { %16429 = vmatmul.mubr.msk.f32.gmra.mrb[2].mxu0 %vm151_vm1, %v19790_v4  ;;  %v19825_v4 = vld [vmem:[%s23831_s0 + $0x62] sm:$0xff] }
 0x109   :  { %16431 = vmatprep.mubr.msk.f32.mxu0 %vm151_vm1, %v19795_v36  ;;  %v19820_v36 = vld [vmem:[%s23831_s0 + $0x52] sm:$0xff]  ;;  %23988 = vst [vmem:[#allocation10_spill] sm:$0xff] %v19825_v4 }
 0x10a   :  { %23987 = vst [vmem:[#allocation9_spill] sm:$0xff] %v19820_v36 }
 0x10c   :  { %16432 = vmatmul.mubr.msk.f32.gmra.mrb[4].mxu0 %vm151_vm1, %v19806_v6  ;;  %v19839_v6 = vld [vmem:[%s23831_s0 + $0x7a] sm:$0xff] }
 0x10d   :  { %16434 = vmatprep.mubr.msk.f32.mxu0 %vm151_vm1, %v19811_v37  ;;  %v19834_v37 = vld [vmem:[%s23831_s0 + $0x6a] sm:$0xff]  ;;  %23990 = vst [vmem:[#allocation12_spill] sm:$0xff] %v19839_v6 }
 0x10e   :  { %23989 = vst [vmem:[#allocation11_spill] sm:$0xff] %v19834_v37 }
 0x110   :  { %16435 = vmatmul.mubr.msk.f32.gmra.mrb[6].mxu0 %vm151_vm1, %v19820_v36  ;;  %v19853_v36 = vld [vmem:[%s23831_s0 + $0x92] sm:$0xff] }
 0x111   :  { %16437 = vmatprep.mubr.msk.f32.mxu0 %vm151_vm1, %v19825_v4  ;;  %v19848_v4 = vld [vmem:[%s23831_s0 + $0x82] sm:$0xff]  ;;  %23992 = vst [vmem:[#allocation14_spill] sm:$0xff] %v19853_v36 }
 0x112   :  { %23991 = vst [vmem:[#allocation13_spill] sm:$0xff] %v19848_v4 }
 0x114   :  { %16438 = vmatmul.mubr.msk.f32.gmra.mrb[8].mxu0 %vm151_vm1, %v19834_v37  ;;  %v19867_v37 = vld [vmem:[%s23831_s0 + $0xaa] sm:$0xff] }
 0x115   :  { %16440 = vmatprep.mubr.msk.f32.mxu0 %vm151_vm1, %v19839_v6  ;;  %v19862_v6 = vld [vmem:[%s23831_s0 + $0x9a] sm:$0xff]  ;;  %23994 = vst [vmem:[#allocation16_spill] sm:$0xff] %v19867_v37 }
 0x116   :  { %23993 = vst [vmem:[#allocation15_spill] sm:$0xff] %v19862_v6 }
 0x118   :  { %16441 = vmatmul.mubr.msk.f32.gmra.mrb[10].mxu0 %vm151_vm1, %v19848_v4  ;;  %v19881_v4 = vld [vmem:[%s23831_s0 + $0xc2] sm:$0xff] }
 0x119   :  { %16443 = vmatprep.mubr.msk.f32.mxu0 %vm151_vm1, %v19853_v36  ;;  %v19876_v36 = vld [vmem:[%s23831_s0 + $0xb2] sm:$0xff]  ;;  %23996 = vst [vmem:[#allocation18_spill] sm:$0xff] %v19881_v4 }
 0x11a   :  { %23995 = vst [vmem:[#allocation17_spill] sm:$0xff] %v19876_v36 }
 0x11c   :  { %16444 = vmatmul.mubr.msk.f32.gmra.mrb[12].mxu0 %vm151_vm1, %v19862_v6  ;;  %v19895_v6 = vld [vmem:[%s23831_s0 + $0xda] sm:$0xff] }
 0x11d   :  { %16446 = vmatprep.mubr.msk.f32.mxu0 %vm151_vm1, %v19867_v37  ;;  %v19890_v37 = vld [vmem:[%s23831_s0 + $0xca] sm:$0xff]  ;;  %23998 = vst [vmem:[#allocation20_spill] sm:$0xff] %v19895_v6 }
 0x11e   :  { %23997 = vst [vmem:[#allocation19_spill] sm:$0xff] %v19890_v37 }
 0x120   :  { %16447 = vmatmul.mubr.msk.f32.gmra.mrb[14].mxu0 %vm151_vm1, %v19876_v36  ;;  %v19909_v36 = vld [vmem:[%s23831_s0 + $0xf2] sm:$0xff] }
 0x121   :  { %16449 = vmatprep.mubr.msk.f32.mxu0 %vm151_vm1, %v19881_v4  ;;  %v19904_v4 = vld [vmem:[%s23831_s0 + $0xe2] sm:$0xff]  ;;  %24000 = vst [vmem:[#allocation22_spill] sm:$0xff] %v19909_v36 }
 0x122   :  { %23999 = vst [vmem:[#allocation21_spill] sm:$0xff] %v19904_v4 }
 0x124   :  { %16450 = vmatmul.mubr.msk.f32.gmra.mrb[16].mxu0 %vm151_vm1, %v19890_v37  ;;  %v19923_v37 = vld [vmem:[%s23831_s0 + $0x10a] sm:$0xff] }
 0x125   :  { %16452 = vmatprep.mubr.msk.f32.mxu0 %vm151_vm1, %v19895_v6  ;;  %v19918_v6 = vld [vmem:[%s23831_s0 + $0xfa] sm:$0xff]  ;;  %24002 = vst [vmem:[#allocation24_spill] sm:$0xff] %v19923_v37 }
 0x126   :  { %24001 = vst [vmem:[#allocation23_spill] sm:$0xff] %v19918_v6 }
 0x128   :  { %16453 = vmatmul.mubr.msk.f32.gmra.mrb[18].mxu0 %vm151_vm1, %v19904_v4  ;;  %v19937_v4 = vld [vmem:[%s23831_s0 + $0x122] sm:$0xff] }
 0x129   :  { %16455 = vmatprep.mubr.msk.f32.mxu0 %vm151_vm1, %v19909_v36  ;;  %v19932_v36 = vld [vmem:[%s23831_s0 + $0x112] sm:$0xff]  ;;  %24004 = vst [vmem:[#allocation26_spill] sm:$0xff] %v19937_v4 }
 0x12a   :  { %24003 = vst [vmem:[#allocation25_spill] sm:$0xff] %v19932_v36 }
 0x12c   :  { %16456 = vmatmul.mubr.msk.f32.gmra.mrb[20].mxu0 %vm151_vm1, %v19918_v6  ;;  %v19951_v6 = vld [vmem:[%s23831_s0 + $0x13a] sm:$0xff] }
 0x12d   :  { %16458 = vmatprep.mubr.msk.f32.mxu0 %vm151_vm1, %v19923_v37  ;;  %v19946_v37 = vld [vmem:[%s23831_s0 + $0x12a] sm:$0xff]  ;;  %24006 = vst [vmem:[#allocation28_spill] sm:$0xff] %v19951_v6 }
 0x12e   :  { %24005 = vst [vmem:[#allocation27_spill] sm:$0xff] %v19946_v37 }
 0x130   :  { %16459 = vmatmul.mubr.msk.f32.gmra.mrb[22].mxu0 %vm151_vm1, %v19932_v36  ;;  %v19965_v36 = vld [vmem:[%s23831_s0 + $0x152] sm:$0xff] }
 0x131   :  { %16461 = vmatprep.mubr.msk.f32.mxu0 %vm151_vm1, %v19937_v4  ;;  %v19960_v4 = vld [vmem:[%s23831_s0 + $0x142] sm:$0xff]  ;;  %24008 = vst [vmem:[#allocation30_spill] sm:$0xff] %v19965_v36 }
 0x132   :  { %24007 = vst [vmem:[#allocation29_spill] sm:$0xff] %v19960_v4 }
 0x134   :  { %16462 = vmatmul.mubr.msk.f32.gmra.mrb[24].mxu0 %vm151_vm1, %v19946_v37  ;;  %v19979_v37 = vld [vmem:[%s23831_s0 + $0x16a] sm:$0xff] }
 0x135   :  { %16464 = vmatprep.mubr.msk.f32.mxu0 %vm151_vm1, %v19951_v6  ;;  %v19974_v6 = vld [vmem:[%s23831_s0 + $0x15a] sm:$0xff]  ;;  %24010 = vst [vmem:[#allocation32_spill] sm:$0xff] %v19979_v37 }
 0x136   :  { %24009 = vst [vmem:[#allocation31_spill] sm:$0xff] %v19974_v6 }
 0x138   :  { %16465 = vmatmul.mubr.msk.f32.gmra.mrb[26].mxu0 %vm151_vm1, %v19960_v4  ;;  %v1345_v4 = vld [vmem:[%s23831_s0 + $0x1b2] sm:$0xff] }
 0x139   :  { %16467 = vmatprep.mubr.msk.f32.mxu0 %vm151_vm1, %v19965_v36  ;;  %v19988_v36 = vld [vmem:[%s23831_s0 + $0x172] sm:$0xff] }
 0x13a   :  { %24011 = vst [vmem:[#allocation33_spill] sm:$0xff] %v19988_v36 }
 0x13c   :  { %16468 = vmatmul.mubr.msk.f32.gmra.mrb[28].mxu0 %vm151_vm1, %v19974_v6  ;;  %v1346_v6 = vld [vmem:[%s23831_s0 + $0x1ba] sm:$0xff] }
 0x13d   :  { %16470 = vmatprep.mubr.msk.f32.mxu0 %vm151_vm1, %v19979_v37  ;;  %v20002_v37 = vld [vmem:[%s23831_s0 + $0x1ca] sm:$0xff] }
 0x13e   :  { %24012 = vst [vmem:[#allocation34_spill] sm:$0xff] %v20002_v37 }
 0x140   :  { %16471 = vmatmul.mubr.msk.f32.gmra.mrb[30].mxu0 %vm151_vm1, %v19988_v36  ;;  %v20010_v36 = vld [vmem:[%s23831_s0 + $0x1d2] sm:$0xff] }
 0x141   :  { %16473 = vmatprep.mubr.msk.f32.mxu0 %vm151_vm1, %v1345_v4  ;;  %24013 = vst [vmem:[#allocation35_spill] sm:$0xff] %v20010_v36  ;;  %v20015_v4 = vld [vmem:[%s23831_s0 + $0x1e2] sm:$0xff] }
 0x142   :  { %24014 = vst [vmem:[#allocation36_spill] sm:$0xff] %v20015_v4 }
 0x144   :  { %16474 = vmatmul.mubr.msk.f32.gmra.mrb[32].mxu0 %vm151_vm1, %v1346_v6  ;;  %v20024_v6 = vld [vmem:[%s23831_s0 + $0x1ea] sm:$0xff] }
 0x145   :  { %16476 = vmatprep.mubr.msk.f32.mxu0 %vm151_vm1, %v20002_v37  ;;  %24015 = vst [vmem:[#allocation37_spill] sm:$0xff] %v20024_v6  ;;  %v20029_v37 = vld [vmem:[%s23831_s0 + $0x1fa] sm:$0xff] }
 0x146   :  { %24016 = vst [vmem:[#allocation38_spill] sm:$0xff] %v20029_v37 }
 0x148   :  { %16477 = vmatmul.mubr.msk.f32.gmra.mrb[34].mxu0 %vm151_vm1, %v20010_v36  ;;  %v20043_v36 = vld [vmem:[%s23831_s0 + $0x212] sm:$0xff] }
 0x149   :  { %16479 = vmatprep.mubr.msk.f32.mxu0 %vm151_vm1, %v20015_v4  ;;  %v20038_v4 = vld [vmem:[%s23831_s0 + $0x202] sm:$0xff]  ;;  %24018 = vst [vmem:[#allocation40_spill] sm:$0xff] %v20043_v36 }
 0x14a   :  { %24017 = vst [vmem:[#allocation39_spill] sm:$0xff] %v20038_v4 }
 0x14c   :  { %16480 = vmatmul.mubr.msk.f32.gmra.mrb[36].mxu0 %vm151_vm1, %v20024_v6  ;;  %v20057_v6 = vld [vmem:[%s23831_s0 + $0x22a] sm:$0xff] }
 0x14d   :  { %16482 = vmatprep.mubr.msk.f32.mxu0 %vm151_vm1, %v20029_v37  ;;  %v20052_v37 = vld [vmem:[%s23831_s0 + $0x21a] sm:$0xff]  ;;  %24020 = vst [vmem:[#allocation42_spill] sm:$0xff] %v20057_v6 }
 0x14e   :  { %24019 = vst [vmem:[#allocation41_spill] sm:$0xff] %v20052_v37 }
 0x150   :  { %16483 = vmatmul.mubr.msk.f32.gmra.mrb[38].mxu0 %vm151_vm1, %v20038_v4  ;;  %v20071_v4 = vld [vmem:[%s23831_s0 + $0x242] sm:$0xff] }
 0x151   :  { %16485 = vmatprep.mubr.msk.f32.mxu0 %vm151_vm1, %v20043_v36  ;;  %v20066_v36 = vld [vmem:[%s23831_s0 + $0x232] sm:$0xff]  ;;  %24022 = vst [vmem:[#allocation44_spill] sm:$0xff] %v20071_v4 }
 0x152   :  { %24021 = vst [vmem:[#allocation43_spill] sm:$0xff] %v20066_v36 }
 0x154   :  { %16486 = vmatmul.mubr.msk.f32.gmra.mrb[40].mxu0 %vm151_vm1, %v20052_v37  ;;  %v20085_v37 = vld [vmem:[%s23831_s0 + $0x25a] sm:$0xff] }
 0x155   :  { %16488 = vmatprep.mubr.msk.f32.mxu0 %vm151_vm1, %v20057_v6  ;;  %v20080_v6 = vld [vmem:[%s23831_s0 + $0x24a] sm:$0xff]  ;;  %24024 = vst [vmem:[#allocation46_spill] sm:$0xff] %v20085_v37 }
 0x156   :  { %24023 = vst [vmem:[#allocation45_spill] sm:$0xff] %v20080_v6 }
 0x158   :  { %16489 = vmatmul.mubr.msk.f32.gmra.mrb[42].mxu0 %vm151_vm1, %v20066_v36  ;;  %v20099_v36 = vld [vmem:[%s23831_s0 + $0x272] sm:$0xff] }
 0x159   :  { %16491 = vmatprep.mubr.msk.f32.mxu0 %vm151_vm1, %v20071_v4  ;;  %v20094_v4 = vld [vmem:[%s23831_s0 + $0x262] sm:$0xff]  ;;  %24026 = vst [vmem:[#allocation48_spill] sm:$0xff] %v20099_v36 }
 0x15a   :  { %24025 = vst [vmem:[#allocation47_spill] sm:$0xff] %v20094_v4 }
 0x15c   :  { %16492 = vmatmul.mubr.msk.f32.gmra.mrb[44].mxu0 %vm151_vm1, %v20080_v6  ;;  %v20113_v6 = vld [vmem:[%s23831_s0 + $0x28a] sm:$0xff] }
 0x15d   :  { %16494 = vmatprep.mubr.msk.f32.mxu0 %vm151_vm1, %v20085_v37  ;;  %v20108_v37 = vld [vmem:[%s23831_s0 + $0x27a] sm:$0xff]  ;;  %24028 = vst [vmem:[#allocation50_spill] sm:$0xff] %v20113_v6 }
 0x15e   :  { %24027 = vst [vmem:[#allocation49_spill] sm:$0xff] %v20108_v37 }
 0x160   :  { %16495 = vmatmul.mubr.msk.f32.gmra.mrb[46].mxu0 %vm151_vm1, %v20094_v4  ;;  %v20127_v4 = vld [vmem:[%s23831_s0 + $0x2a2] sm:$0xff] }
 0x161   :  { %16497 = vmatprep.mubr.msk.f32.mxu0 %vm151_vm1, %v20099_v36  ;;  %v20122_v36 = vld [vmem:[%s23831_s0 + $0x292] sm:$0xff]  ;;  %24030 = vst [vmem:[#allocation52_spill] sm:$0xff] %v20127_v4 }
 0x162   :  { %24029 = vst [vmem:[#allocation51_spill] sm:$0xff] %v20122_v36 }
 0x164   :  { %16498 = vmatmul.mubr.msk.f32.gmra.mrb[48].mxu0 %vm151_vm1, %v20108_v37  ;;  %v20141_v37 = vld [vmem:[%s23831_s0 + $0x2ba] sm:$0xff] }
 0x165   :  { %16500 = vmatprep.mubr.msk.f32.mxu0 %vm151_vm1, %v20113_v6  ;;  %v20136_v6 = vld [vmem:[%s23831_s0 + $0x2aa] sm:$0xff]  ;;  %24032 = vst [vmem:[#allocation54_spill] sm:$0xff] %v20141_v37 }
 0x166   :  { %24031 = vst [vmem:[#allocation53_spill] sm:$0xff] %v20136_v6 }
 0x168   :  { %16501 = vmatmul.mubr.msk.f32.gmra.mrb[50].mxu0 %vm151_vm1, %v20122_v36  ;;  %v20155_v36 = vld [vmem:[%s23831_s0 + $0x2d2] sm:$0xff] }
 0x169   :  { %16503 = vmatprep.mubr.msk.f32.mxu0 %vm151_vm1, %v20127_v4  ;;  %v20150_v4 = vld [vmem:[%s23831_s0 + $0x2c2] sm:$0xff]  ;;  %24034 = vst [vmem:[#allocation56_spill] sm:$0xff] %v20155_v36 }
 0x16a   :  { %24033 = vst [vmem:[#allocation55_spill] sm:$0xff] %v20150_v4 }
 0x16c   :  { %16504 = vmatmul.mubr.msk.f32.gmra.mrb[52].mxu0 %vm151_vm1, %v20136_v6  ;;  %v20169_v6 = vld [vmem:[%s23831_s0 + $0x2ea] sm:$0xff] }
 0x16d   :  { %16506 = vmatprep.mubr.msk.f32.mxu0 %vm151_vm1, %v20141_v37  ;;  %v20164_v37 = vld [vmem:[%s23831_s0 + $0x2da] sm:$0xff]  ;;  %24036 = vst [vmem:[#allocation58_spill] sm:$0xff] %v20169_v6 }
 0x16e   :  { %24035 = vst [vmem:[#allocation57_spill] sm:$0xff] %v20164_v37 }
 0x170   :  { %16507 = vmatmul.mubr.msk.f32.gmra.mrb[54].mxu0 %vm151_vm1, %v20150_v4  ;;  %v20183_v4 = vld [vmem:[%s23831_s0 + $0x302] sm:$0xff] }
 0x171   :  { %16509 = vmatprep.mubr.msk.f32.mxu0 %vm151_vm1, %v20155_v36  ;;  %v20178_v36 = vld [vmem:[%s23831_s0 + $0x2f2] sm:$0xff]  ;;  %24037 = vst [vmem:[#allocation59_spill] sm:$0xff] %v20183_v4 }
 0x174   :  { %16510 = vmatmul.mubr.msk.f32.gmra.mrb[56].mxu0 %vm151_vm1, %v20164_v37  ;;  %v20197_v37 = vld [vmem:[%s23831_s0 + $0x31a] sm:$0xff] }
 0x175   :  { %16512 = vmatprep.mubr.msk.f32.mxu0 %vm151_vm1, %v20169_v6  ;;  %v20192_v6 = vld [vmem:[%s23831_s0 + $0x30a] sm:$0xff] }
 0x176   :  { %24038 = vst [vmem:[#allocation60_spill] sm:$0xff] %v20192_v6 }
 0x178   :  { %16513 = vmatmul.mubr.msk.f32.gmra.mrb[58].mxu0 %vm151_vm1, %v20178_v36 }
 0x179   :  { %16515 = vmatprep.mubr.msk.f32.mxu0 %vm151_vm1, %v20183_v4  ;;  %v20206_v4 = vld [vmem:[%s23831_s0 + $0x322] sm:$0xff] }
 0x17c   :  { %16516 = vmatmul.mubr.msk.f32.gmra.mrb[60].mxu0 %vm151_vm1, %v20192_v6  ;;  %v20217_v6 = vld [vmem:[%s23830_s1 + $0x14] sm:$0xf] }
 0x17d   :  { %16518 = vmatprep.mubr.msk.f32.mxu0 %vm151_vm1, %v20197_v37 }
 0x180   :  { %16519 = vmatmul.mubr.msk.f32.gmra.mrb[62].mxu0 %vm151_vm1, %v20206_v4 }
 0x181   :  { %16523 = vmatprep.mubr.msk.f32.mxu0 %vm151_vm1, %v19330_v5  ;;  %v20280_v5 = vld [vmem:[%s23831_s0 + $0x180] sm:$0xff] }
 0x184   :  { %16524 = vmatmul.mubr.msk.f32.vlgmr.msra.gmra.mrb[0].mxu0 %vm151_vm1, %v19345_v7  ;;  %v20289_v7 = vld [vmem:[%s23831_s0 + $0x188] sm:$0xff] }
 0x185   :  { %16620 = vmatpush3.msk.msra.mxu0 %vm344_vm0, %v19781_v2  ;;  %16526 = vmatprep.mubr.msk.f32.mxu0 %vm151_vm1, %v19350_v8  ;;  %v24039_v8 = vld [vmem:[#allocation3_spill] sm:$0xff] }
 0x186   :  { %16717 = vmatprep.subr.msk.mxu0 %vm344_vm0, %v20217_v6  ;;  %v20729_v2 = vld [vmem:[%s23831_s0 + $0x2b9] sm:$0xff] }
 0x187   :  { %24040 = vst [vmem:[#allocation3_spill] sm:$0xff] %v20729_v2 }
 0x188   :  { %16527 = vmatmul.mubr.msk.f32.gmra.mrb[2].mxu0 %vm151_vm1, %v19361_v9  ;;  %v20354_v9 = vld [vmem:[%s23831_s0 + $0x330] sm:$0xff] }
 0x189   :  { %16529 = vmatprep.mubr.msk.f32.mxu0 %vm151_vm1, %v19366_v10  ;;  %v20363_v10 = vld [vmem:[%s23831_s0 + $0x338] sm:$0xff] }
 0x18c   :  { %16530 = vmatmul.mubr.msk.f32.gmra.mrb[4].mxu0 %vm151_vm1, %v19375_v11  ;;  %v13748_v11 = vld [vmem:[%s23831_s0 + $0x19] sm:$0xff] }
 0x18d   :  { %16532 = vmatprep.mubr.msk.f32.mxu0 %vm151_vm1, %v19380_v12  ;;  %v13749_v12 = vld [vmem:[%s23831_s0 + $0x21] sm:$0xff] }
 0x190   :  { %16533 = vmatmul.mubr.msk.f32.gmra.mrb[6].mxu0 %vm151_vm1, %v19389_v13  ;;  %v20377_v13 = vld [vmem:[%s23831_s0 + $0x31] sm:$0xff] }
 0x191   :  { %16535 = vmatprep.mubr.msk.f32.mxu0 %vm151_vm1, %v19394_v14  ;;  %v20383_v14 = vld [vmem:[%s23830_s1 + $0x18] sm:$0xf] }
 0x194   :  { %16536 = vmatmul.mubr.msk.f32.gmra.mrb[8].mxu0 %vm151_vm1, %v19403_v15  ;;  %v20392_v15 = vld [vmem:[%s23831_s0 + $0x39] sm:$0xff] }
 0x195   :  { %16538 = vmatprep.mubr.msk.f32.mxu0 %vm151_vm1, %v19408_v16  ;;  %v20397_v16 = vld [vmem:[%s23831_s0 + $0x49] sm:$0xff] }
 0x198   :  { %16539 = vmatmul.mubr.msk.f32.gmra.mrb[10].mxu0 %vm151_vm1, %v19417_v17  ;;  %v20408_v17 = vld [vmem:[%s23831_s0 + $0x51] sm:$0xff] }
 0x199   :  { %16541 = vmatprep.mubr.msk.f32.mxu0 %vm151_vm1, %v19422_v18  ;;  %v20413_v18 = vld [vmem:[%s23831_s0 + $0x61] sm:$0xff] }
 0x19c   :  { %16542 = vmatmul.mubr.msk.f32.gmra.mrb[12].mxu0 %vm151_vm1, %v19431_v19  ;;  %v20422_v19 = vld [vmem:[%s23831_s0 + $0x69] sm:$0xff] }
 0x19d   :  { %16544 = vmatprep.mubr.msk.f32.mxu0 %vm151_vm1, %v19436_v20  ;;  %v20427_v20 = vld [vmem:[%s23831_s0 + $0x79] sm:$0xff] }
 0x1a0   :  { %16545 = vmatmul.mubr.msk.f32.gmra.mrb[14].mxu0 %vm151_vm1, %v19445_v21  ;;  %v20436_v21 = vld [vmem:[%s23831_s0 + $0x81] sm:$0xff] }
 0x1a1   :  { %16547 = vmatprep.mubr.msk.f32.mxu0 %vm151_vm1, %v19450_v22  ;;  %v20441_v22 = vld [vmem:[%s23831_s0 + $0x91] sm:$0xff] }
 0x1a4   :  { %16548 = vmatmul.mubr.msk.f32.gmra.mrb[16].mxu0 %vm151_vm1, %v19459_v23  ;;  %v20450_v23 = vld [vmem:[%s23831_s0 + $0x99] sm:$0xff] }
 0x1a5   :  { %16550 = vmatprep.mubr.msk.f32.mxu0 %vm151_vm1, %v19464_v24  ;;  %v20455_v24 = vld [vmem:[%s23831_s0 + $0xa9] sm:$0xff] }
 0x1a8   :  { %16551 = vmatmul.mubr.msk.f32.gmra.mrb[18].mxu0 %vm151_vm1, %v19473_v25  ;;  %v20464_v25 = vld [vmem:[%s23831_s0 + $0xb1] sm:$0xff] }
 0x1a9   :  { %16553 = vmatprep.mubr.msk.f32.mxu0 %vm151_vm1, %v19478_v26  ;;  %v20469_v26 = vld [vmem:[%s23831_s0 + $0xc1] sm:$0xff] }
 0x1ac   :  { %16554 = vmatmul.mubr.msk.f32.gmra.mrb[20].mxu0 %vm151_vm1, %v19487_v27  ;;  %v20478_v27 = vld [vmem:[%s23831_s0 + $0xc9] sm:$0xff] }
 0x1ad   :  { %16556 = vmatprep.mubr.msk.f32.mxu0 %vm151_vm1, %v19492_v28  ;;  %v20483_v28 = vld [vmem:[%s23831_s0 + $0xd9] sm:$0xff] }
 0x1b0   :  { %16557 = vmatmul.mubr.msk.f32.gmra.mrb[22].mxu0 %vm151_vm1, %v19501_v29  ;;  %v20492_v29 = vld [vmem:[%s23831_s0 + $0xe1] sm:$0xff] }
 0x1b1   :  { %16559 = vmatprep.mubr.msk.f32.mxu0 %vm151_vm1, %v19506_v30  ;;  %v20497_v30 = vld [vmem:[%s23831_s0 + $0xf1] sm:$0xff] }
 0x1b4   :  { %16560 = vmatmul.mubr.msk.f32.gmra.mrb[24].mxu0 %vm151_vm1, %v19515_v31  ;;  %v20506_v31 = vld [vmem:[%s23831_s0 + $0xf9] sm:$0xff] }
 0x1b5   :  { %16562 = vmatprep.mubr.msk.f32.mxu0 %vm151_vm1, %v19520_v32  ;;  %v20511_v32 = vld [vmem:[%s23831_s0 + $0x109] sm:$0xff] }
 0x1b8   :  { %16563 = vmatmul.mubr.msk.f32.gmra.mrb[26].mxu0 %vm151_vm1, %v19529_v33  ;;  %v20520_v33 = vld [vmem:[%s23831_s0 + $0x111] sm:$0xff] }
 0x1b9   :  { %16565 = vmatprep.mubr.msk.f32.mxu0 %vm151_vm1, %v19534_v34  ;;  %v20525_v34 = vld [vmem:[%s23831_s0 + $0x121] sm:$0xff] }
 0x1bc   :  { %16566 = vmatmul.mubr.msk.f32.gmra.mrb[28].mxu0 %vm151_vm1, %v19543_v35  ;;  %v20534_v35 = vld [vmem:[%s23831_s0 + $0x129] sm:$0xff] }
 0x1bd   :  { %16568 = vmatprep.mubr.msk.f32.mxu0 %vm151_vm1, %v20280_v5 }
 0x1c0   :  { %16569 = vmatmul.mubr.msk.f32.gmra.mrb[30].mxu0 %vm151_vm1, %v20289_v7 }
 0x1c1   :  { %16571 = vmatprep.mubr.msk.f32.mxu0 %vm151_vm1, %v19557_v38  ;;  %v20539_v38 = vld [vmem:[%s23831_s0 + $0x139] sm:$0xff] }
 0x1c4   :  { %16572 = vmatmul.mubr.msk.f32.gmra.mrb[32].mxu0 %vm151_vm1, %v19565_v39  ;;  %v20548_v39 = vld [vmem:[%s23831_s0 + $0x141] sm:$0xff] }
 0x1c5   :  { %16574 = vmatprep.mubr.msk.f32.mxu0 %vm151_vm1, %v19570_v40  ;;  %v20553_v40 = vld [vmem:[%s23831_s0 + $0x151] sm:$0xff] }
 0x1c8   :  { %16575 = vmatmul.mubr.msk.f32.gmra.mrb[34].mxu0 %vm151_vm1, %v19579_v41  ;;  %v20562_v41 = vld [vmem:[%s23831_s0 + $0x159] sm:$0xff] }
 0x1c9   :  { %16577 = vmatprep.mubr.msk.f32.mxu0 %vm151_vm1, %v19584_v42  ;;  %v20567_v42 = vld [vmem:[%s23831_s0 + $0x169] sm:$0xff] }
 0x1cc   :  { %16578 = vmatmul.mubr.msk.f32.gmra.mrb[36].mxu0 %vm151_vm1, %v19593_v43  ;;  %v20576_v43 = vld [vmem:[%s23831_s0 + $0x171] sm:$0xff] }
 0x1cd   :  { %16580 = vmatprep.mubr.msk.f32.mxu0 %vm151_vm1, %v19598_v44  ;;  %v20581_v44 = vld [vmem:[%s23831_s0 + $0x181] sm:$0xff] }
 0x1d0   :  { %16581 = vmatmul.mubr.msk.f32.gmra.mrb[38].mxu0 %vm151_vm1, %v19607_v45  ;;  %v20590_v45 = vld [vmem:[%s23831_s0 + $0x189] sm:$0xff] }
 0x1d1   :  { %16583 = vmatprep.mubr.msk.f32.mxu0 %vm151_vm1, %v19612_v46  ;;  %v13780_v46 = vld [vmem:[%s23831_s0 + $0x1c9] sm:$0xff] }
 0x1d4   :  { %16584 = vmatmul.mubr.msk.f32.gmra.mrb[40].mxu0 %vm151_vm1, %v19621_v47  ;;  %v13781_v47 = vld [vmem:[%s23831_s0 + $0x1d1] sm:$0xff] }
 0x1d5   :  { %16586 = vmatprep.mubr.msk.f32.mxu0 %vm151_vm1, %v19626_v48  ;;  %v20604_v48 = vld [vmem:[%s23831_s0 + $0x1e1] sm:$0xff] }
 0x1d8   :  { %16587 = vmatmul.mubr.msk.f32.gmra.mrb[42].mxu0 %vm151_vm1, %v19635_v49  ;;  %v20612_v49 = vld [vmem:[%s23831_s0 + $0x1e9] sm:$0xff] }
 0x1d9   :  { %16589 = vmatprep.mubr.msk.f32.mxu0 %vm151_vm1, %v19640_v50  ;;  %v20617_v50 = vld [vmem:[%s23831_s0 + $0x1f9] sm:$0xff] }
 0x1dc   :  { %16590 = vmatmul.mubr.msk.f32.gmra.mrb[44].mxu0 %vm151_vm1, %v19649_v51  ;;  %v20626_v51 = vld [vmem:[%s23831_s0 + $0x201] sm:$0xff] }
 0x1dd   :  { %16592 = vmatprep.mubr.msk.f32.mxu0 %vm151_vm1, %v19654_v52  ;;  %v20631_v52 = vld [vmem:[%s23831_s0 + $0x211] sm:$0xff] }
 0x1e0   :  { %16593 = vmatmul.mubr.msk.f32.gmra.mrb[46].mxu0 %vm151_vm1, %v19663_v53  ;;  %v20640_v53 = vld [vmem:[%s23831_s0 + $0x219] sm:$0xff] }
 0x1e1   :  { %16595 = vmatprep.mubr.msk.f32.mxu0 %vm151_vm1, %v19668_v54  ;;  %v20645_v54 = vld [vmem:[%s23831_s0 + $0x229] sm:$0xff] }
 0x1e4   :  { %16596 = vmatmul.mubr.msk.f32.gmra.mrb[48].mxu0 %vm151_vm1, %v19677_v55  ;;  %v20654_v55 = vld [vmem:[%s23831_s0 + $0x231] sm:$0xff] }
 0x1e5   :  { %16598 = vmatprep.mubr.msk.f32.mxu0 %vm151_vm1, %v19682_v56  ;;  %v20659_v56 = vld [vmem:[%s23831_s0 + $0x241] sm:$0xff] }
 0x1e8   :  { %16599 = vmatmul.mubr.msk.f32.gmra.mrb[50].mxu0 %vm151_vm1, %v19691_v57  ;;  %v20668_v57 = vld [vmem:[%s23831_s0 + $0x249] sm:$0xff] }
 0x1e9   :  { %16601 = vmatprep.mubr.msk.f32.mxu0 %vm151_vm1, %v19696_v58  ;;  %v20673_v58 = vld [vmem:[%s23831_s0 + $0x259] sm:$0xff] }
 0x1ec   :  { %16602 = vmatmul.mubr.msk.f32.gmra.mrb[52].mxu0 %vm151_vm1, %v19705_v59  ;;  %v20682_v59 = vld [vmem:[%s23831_s0 + $0x261] sm:$0xff] }
 0x1ed   :  { %16604 = vmatprep.mubr.msk.f32.mxu0 %vm151_vm1, %v19710_v60  ;;  %v20687_v60 = vld [vmem:[%s23831_s0 + $0x271] sm:$0xff] }
 0x1f0   :  { %16605 = vmatmul.mubr.msk.f32.gmra.mrb[54].mxu0 %vm151_vm1, %v19719_v61  ;;  %v20696_v61 = vld [vmem:[%s23831_s0 + $0x279] sm:$0xff] }
 0x1f1   :  { %16607 = vmatprep.mubr.msk.f32.mxu0 %vm151_vm1, %v19724_v62  ;;  %v20701_v62 = vld [vmem:[%s23831_s0 + $0x289] sm:$0xff] }
 0x1f4   :  { %16608 = vmatmul.mubr.msk.f32.gmra.mrb[56].mxu0 %vm151_vm1, %v19733_v63  ;;  %v20710_v63 = vld [vmem:[%s23831_s0 + $0x291] sm:$0xff] }
 0x1f5   :  { %16610 = vmatprep.mubr.msk.f32.mxu0 %vm151_vm1, %v19738_v0  ;;  %v20715_v0 = vld [vmem:[%s23831_s0 + $0x2a1] sm:$0xff] }
 0x1f8   :  { %16611 = vmatmul.mubr.msk.f32.gmra.mrb[58].mxu0 %vm151_vm1, %v19747_v1  ;;  %v20724_v1 = vld [vmem:[%s23831_s0 + $0x2a9] sm:$0xff] }
 0x1f9   :  { %16613 = vmatprep.mubr.msk.f32.mxu0 %vm151_vm1, %v24039_v8  ;;  %v20752_v8 = vld [vmem:[%s23831_s0 + $0x2d9] sm:$0xff] }
 0x1fa   :  { %24043 = vst [vmem:[#allocation63_spill] sm:$0xff] %v20752_v8 }
 0x1fc   :  { %16614 = vmatmul.mubr.msk.f32.gmra.mrb[60].mxu0 %vm151_vm1, %v19761_v3  ;;  %v20738_v3 = vld [vmem:[%s23831_s0 + $0x2c1] sm:$0xff] }
 0x1fd   :  { %16616 = vmatprep.mubr.msk.f32.mxu0 %vm151_vm1, %v20354_v9  ;;  %24041 = vst [vmem:[#allocation61_spill] sm:$0xff] %v20738_v3 }
 0x200   :  { %16617 = vmatmul.mubr.msk.f32.gmra.mrb[62].mxu0 %vm151_vm1, %v20363_v10 }
 0x201   :  { %16621 = vmatprep.mubr.msk.f32.mxu0 %vm151_vm1, %v13748_v11  ;;  %v20757_v11 = vld [vmem:[%s23831_s0 + $0x2e9] sm:$0xff] }
 0x202   :  { %24044 = vst [vmem:[#allocation64_spill] sm:$0xff] %v20757_v11 }
 0x204   :  { %16622 = vmatmul.mubr.msk.f32.vlgmr.msra.gmra.mrb[0].mxu0 %vm151_vm1, %v13749_v12  ;;  %v20766_v12 = vld [vmem:[%s23831_s0 + $0x2f1] sm:$0xff] }
 0x205   :  { %16718 = vmatpush3.msk.msra.mxu0 %vm344_vm0, %v20217_v6  ;;  %16624 = vmatprep.mubr.msk.f32.mxu0 %vm151_vm1, %v20377_v13  ;;  %v20743_v6 = vld [vmem:[%s23831_s0 + $0x2d1] sm:$0xff]  ;;  %24045 = vst [vmem:[#allocation65_spill] sm:$0xff] %v20766_v12 }
 0x206   :  { %16815 = vmatprep.subr.msk.mxu0 %vm344_vm0, %v20383_v14  ;;  %24042 = vst [vmem:[#allocation62_spill] sm:$0xff] %v20743_v6 }
 0x208   :  { %16625 = vmatmul.mubr.msk.f32.gmra.mrb[2].mxu0 %vm151_vm1, %v20392_v15 }
 0x209   :  { %16627 = vmatprep.mubr.msk.f32.mxu0 %vm151_vm1, %v20397_v16 }
 0x20c   :  { %16628 = vmatmul.mubr.msk.f32.gmra.mrb[4].mxu0 %vm151_vm1, %v20408_v17 }
 0x20d   :  { %16630 = vmatprep.mubr.msk.f32.mxu0 %vm151_vm1, %v20413_v18 }
 0x210   :  { %16631 = vmatmul.mubr.msk.f32.gmra.mrb[6].mxu0 %vm151_vm1, %v20422_v19 }
 0x211   :  { %16633 = vmatprep.mubr.msk.f32.mxu0 %vm151_vm1, %v20427_v20 }
 0x214   :  { %16634 = vmatmul.mubr.msk.f32.gmra.mrb[8].mxu0 %vm151_vm1, %v20436_v21 }
 0x215   :  { %16636 = vmatprep.mubr.msk.f32.mxu0 %vm151_vm1, %v20441_v22 }
 0x218   :  { %16637 = vmatmul.mubr.msk.f32.gmra.mrb[10].mxu0 %vm151_vm1, %v20450_v23 }
 0x219   :  { %16639 = vmatprep.mubr.msk.f32.mxu0 %vm151_vm1, %v20455_v24 }
 0x21c   :  { %16640 = vmatmul.mubr.msk.f32.gmra.mrb[12].mxu0 %vm151_vm1, %v20464_v25 }
 0x21d   :  { %16642 = vmatprep.mubr.msk.f32.mxu0 %vm151_vm1, %v20469_v26 }
 0x220   :  { %16643 = vmatmul.mubr.msk.f32.gmra.mrb[14].mxu0 %vm151_vm1, %v20478_v27 }
 0x221   :  { %16645 = vmatprep.mubr.msk.f32.mxu0 %vm151_vm1, %v20483_v28 }
 0x224   :  { %16646 = vmatmul.mubr.msk.f32.gmra.mrb[16].mxu0 %vm151_vm1, %v20492_v29 }
 0x225   :  { %16648 = vmatprep.mubr.msk.f32.mxu0 %vm151_vm1, %v20497_v30 }
 0x228   :  { %16649 = vmatmul.mubr.msk.f32.gmra.mrb[18].mxu0 %vm151_vm1, %v20506_v31 }
 0x229   :  { %16651 = vmatprep.mubr.msk.f32.mxu0 %vm151_vm1, %v20511_v32 }
 0x22c   :  { %16652 = vmatmul.mubr.msk.f32.gmra.mrb[20].mxu0 %vm151_vm1, %v20520_v33 }
 0x22d   :  { %16654 = vmatprep.mubr.msk.f32.mxu0 %vm151_vm1, %v20525_v34 }
 0x230   :  { %16655 = vmatmul.mubr.msk.f32.gmra.mrb[22].mxu0 %vm151_vm1, %v20534_v35 }
 0x231   :  { %16657 = vmatprep.mubr.msk.f32.mxu0 %vm151_vm1, %v20539_v38 }
 0x234   :  { %16658 = vmatmul.mubr.msk.f32.gmra.mrb[24].mxu0 %vm151_vm1, %v20548_v39 }
 0x235   :  { %16660 = vmatprep.mubr.msk.f32.mxu0 %vm151_vm1, %v20553_v40 }
 0x238   :  { %16661 = vmatmul.mubr.msk.f32.gmra.mrb[26].mxu0 %vm151_vm1, %v20562_v41 }
 0x239   :  { %16663 = vmatprep.mubr.msk.f32.mxu0 %vm151_vm1, %v20567_v42 }
 0x23c   :  { %16664 = vmatmul.mubr.msk.f32.gmra.mrb[28].mxu0 %vm151_vm1, %v20576_v43 }
 0x23d   :  { %16666 = vmatprep.mubr.msk.f32.mxu0 %vm151_vm1, %v20581_v44 }
 0x240   :  { %16667 = vmatmul.mubr.msk.f32.gmra.mrb[30].mxu0 %vm151_vm1, %v20590_v45 }
 0x241   :  { %16669 = vmatprep.mubr.msk.f32.mxu0 %vm151_vm1, %v13780_v46  ;;  %v20771_v46 = vld [vmem:[%s23831_s0 + $0x301] sm:$0xff] }
 0x242   :  { %24046 = vst [vmem:[#allocation66_spill] sm:$0xff] %v20771_v46 }
 0x244   :  { %16670 = vmatmul.mubr.msk.f32.gmra.mrb[32].mxu0 %vm151_vm1, %v13781_v47  ;;  %v20780_v47 = vld [vmem:[%s23831_s0 + $0x309] sm:$0xff] }
 0x245   :  { %16672 = vmatprep.mubr.msk.f32.mxu0 %vm151_vm1, %v20604_v48  ;;  %24047 = vst [vmem:[#allocation67_spill] sm:$0xff] %v20780_v47 }
 0x248   :  { %16673 = vmatmul.mubr.msk.f32.gmra.mrb[34].mxu0 %vm151_vm1, %v20612_v49 }
 0x249   :  { %16675 = vmatprep.mubr.msk.f32.mxu0 %vm151_vm1, %v20617_v50 }
 0x24c   :  { %16676 = vmatmul.mubr.msk.f32.gmra.mrb[36].mxu0 %vm151_vm1, %v20626_v51 }
 0x24d   :  { %16678 = vmatprep.mubr.msk.f32.mxu0 %vm151_vm1, %v20631_v52 }
 0x250   :  { %16679 = vmatmul.mubr.msk.f32.gmra.mrb[38].mxu0 %vm151_vm1, %v20640_v53 }
 0x251   :  { %16681 = vmatprep.mubr.msk.f32.mxu0 %vm151_vm1, %v20645_v54 }
 0x254   :  { %16682 = vmatmul.mubr.msk.f32.gmra.mrb[40].mxu0 %vm151_vm1, %v20654_v55 }
 0x255   :  { %16684 = vmatprep.mubr.msk.f32.mxu0 %vm151_vm1, %v20659_v56 }
 0x258   :  { %16685 = vmatmul.mubr.msk.f32.gmra.mrb[42].mxu0 %vm151_vm1, %v20668_v57 }
 0x259   :  { %16687 = vmatprep.mubr.msk.f32.mxu0 %vm151_vm1, %v20673_v58 }
 0x25c   :  { %16688 = vmatmul.mubr.msk.f32.gmra.mrb[44].mxu0 %vm151_vm1, %v20682_v59 }
 0x25d   :  { %16690 = vmatprep.mubr.msk.f32.mxu0 %vm151_vm1, %v20687_v60 }
 0x260   :  { %16691 = vmatmul.mubr.msk.f32.gmra.mrb[46].mxu0 %vm151_vm1, %v20696_v61 }
 0x261   :  { %16693 = vmatprep.mubr.msk.f32.mxu0 %vm151_vm1, %v20701_v62 }
 0x264   :  { %16694 = vmatmul.mubr.msk.f32.gmra.mrb[48].mxu0 %vm151_vm1, %v20710_v63 }
 0x265   :  { %16696 = vmatprep.mubr.msk.f32.mxu0 %vm151_vm1, %v20715_v0 }
 0x268   :  { %16697 = vmatmul.mubr.msk.f32.gmra.mrb[50].mxu0 %vm151_vm1, %v20724_v1 }
 0x269   :  { %16699 = vmatprep.mubr.msk.f32.mxu0 %vm151_vm1, %v20729_v2  ;;  %v24062_v2 = vld [vmem:[#allocation14_spill] sm:$0xff] }
 0x26c   :  { %16700 = vmatmul.mubr.msk.f32.gmra.mrb[52].mxu0 %vm151_vm1, %v20738_v3  ;;  %v24059_v3 = vld [vmem:[#allocation11_spill] sm:$0xff] }
 0x26d   :  { %16702 = vmatprep.mubr.msk.f32.mxu0 %vm151_vm1, %v20743_v6  ;;  %v24058_v6 = vld [vmem:[#allocation10_spill] sm:$0xff] }
 0x270   :  { %16703 = vmatmul.mubr.msk.f32.gmra.mrb[54].mxu0 %vm151_vm1, %v20752_v8  ;;  %v24053_v8 = vld [vmem:[#allocation5_spill] sm:$0xff] }
 0x271   :  { %16705 = vmatprep.mubr.msk.f32.mxu0 %vm151_vm1, %v20757_v11  ;;  %v20785_v11 = vld [vmem:[%s23831_s0 + $0x319] sm:$0xff] }
 0x272   :  { %24048 = vst [vmem:[#allocation68_spill] sm:$0xff] %v20785_v11 }
 0x274   :  { %16706 = vmatmul.mubr.msk.f32.gmra.mrb[56].mxu0 %vm151_vm1, %v20766_v12  ;;  %v20799_v12 = vld [vmem:[%s23831_s0 + $0x331] sm:$0xff] }
 0x275   :  { %16708 = vmatprep.mubr.msk.f32.mxu0 %vm151_vm1, %v20771_v46  ;;  %v20794_v46 = vld [vmem:[%s23831_s0 + $0x321] sm:$0xff]  ;;  %24050 = vst [vmem:[#allocation70_spill] sm:$0xff] %v20799_v12 }
 0x276   :  { %24049 = vst [vmem:[#allocation69_spill] sm:$0xff] %v20794_v46 }
 0x278   :  { %16709 = vmatmul.mubr.msk.f32.gmra.mrb[58].mxu0 %vm151_vm1, %v20780_v47  ;;  %v24052_v47 = vld [vmem:[#allocation4_spill] sm:$0xff] }
 0x279   :  { %16711 = vmatprep.mubr.msk.f32.mxu0 %vm151_vm1, %v20785_v11  ;;  %v20808_v11 = vld [vmem:[%s23831_s0 + $0x339] sm:$0xff] }
 0x27a   :  { %24051 = vst [vmem:[#allocation71_spill] sm:$0xff] %v20808_v11 }
 0x27c   :  { %16712 = vmatmul.mubr.msk.f32.gmra.mrb[60].mxu0 %vm151_vm1, %v20794_v46  ;;  %v20819_v46 = vld [vmem:[%s23830_s1 + $0x1c] sm:$0xf] }
 0x27d   :  { %16714 = vmatprep.mubr.msk.f32.mxu0 %vm151_vm1, %v20799_v12  ;;  %v24054_v12 = vld [vmem:[#allocation6_spill] sm:$0xff] }
 0x280   :  { %16715 = vmatmul.mubr.msk.f32.gmra.mrb[62].mxu0 %vm151_vm1, %v20808_v11  ;;  %v24055_v11 = vld [vmem:[#allocation7_spill] sm:$0xff] }
 0x281   :  { %16719 = vmatprep.mubr.msk.f32.mxu0 %vm151_vm1, %v24052_v47  ;;  %v24056_v47 = vld [vmem:[#allocation8_spill] sm:$0xff] }
 0x284   :  { %16720 = vmatmul.mubr.msk.f32.vlgmr.msra.gmra.mrb[0].mxu0 %vm151_vm1, %v24053_v8  ;;  %v24057_v8 = vld [vmem:[#allocation9_spill] sm:$0xff] }
 0x285   :  { %16816 = vmatpush3.msk.msra.mxu0 %vm344_vm0, %v20383_v14  ;;  %16722 = vmatprep.mubr.msk.f32.mxu0 %vm151_vm1, %v24054_v12  ;;  %v24060_v14 = vld [vmem:[#allocation12_spill] sm:$0xff]  ;;  %v24061_v12 = vld [vmem:[#allocation13_spill] sm:$0xff] }
 0x286   :  { %16913 = vmatprep.subr.msk.mxu0 %vm344_vm0, %v20819_v46 }
 0x288   :  { %16723 = vmatmul.mubr.msk.f32.gmra.mrb[2].mxu0 %vm151_vm1, %v24055_v11  ;;  %v24063_v11 = vld [vmem:[#allocation15_spill] sm:$0xff] }
 0x289   :  { %16725 = vmatprep.mubr.msk.f32.mxu0 %vm151_vm1, %v24056_v47  ;;  %v24064_v47 = vld [vmem:[#allocation16_spill] sm:$0xff] }
 0x28c   :  { %16726 = vmatmul.mubr.msk.f32.gmra.mrb[4].mxu0 %vm151_vm1, %v24057_v8  ;;  %v24065_v8 = vld [vmem:[#allocation17_spill] sm:$0xff] }
 0x28d   :  { %16728 = vmatprep.mubr.msk.f32.mxu0 %vm151_vm1, %v24058_v6  ;;  %v24066_v6 = vld [vmem:[#allocation18_spill] sm:$0xff] }
 0x290   :  { %16729 = vmatmul.mubr.msk.f32.gmra.mrb[6].mxu0 %vm151_vm1, %v24059_v3  ;;  %v24067_v3 = vld [vmem:[#allocation19_spill] sm:$0xff] }
 0x291   :  { %16731 = vmatprep.mubr.msk.f32.mxu0 %vm151_vm1, %v24060_v14  ;;  %v24068_v14 = vld [vmem:[#allocation20_spill] sm:$0xff] }
 0x294   :  { %16732 = vmatmul.mubr.msk.f32.gmra.mrb[8].mxu0 %vm151_vm1, %v24061_v12  ;;  %v24069_v12 = vld [vmem:[#allocation21_spill] sm:$0xff] }
 0x295   :  { %16734 = vmatprep.mubr.msk.f32.mxu0 %vm151_vm1, %v24062_v2  ;;  %v24070_v2 = vld [vmem:[#allocation22_spill] sm:$0xff] }
 0x298   :  { %16735 = vmatmul.mubr.msk.f32.gmra.mrb[10].mxu0 %vm151_vm1, %v24063_v11  ;;  %v24071_v11 = vld [vmem:[#allocation23_spill] sm:$0xff] }
 0x299   :  { %16737 = vmatprep.mubr.msk.f32.mxu0 %vm151_vm1, %v24064_v47  ;;  %v24072_v47 = vld [vmem:[#allocation24_spill] sm:$0xff] }
 0x29c   :  { %16738 = vmatmul.mubr.msk.f32.gmra.mrb[12].mxu0 %vm151_vm1, %v24065_v8  ;;  %v24073_v8 = vld [vmem:[#allocation25_spill] sm:$0xff] }
 0x29d   :  { %16740 = vmatprep.mubr.msk.f32.mxu0 %vm151_vm1, %v24066_v6  ;;  %v24074_v6 = vld [vmem:[#allocation26_spill] sm:$0xff] }
 0x2a0   :  { %16741 = vmatmul.mubr.msk.f32.gmra.mrb[14].mxu0 %vm151_vm1, %v24067_v3  ;;  %v24075_v3 = vld [vmem:[#allocation27_spill] sm:$0xff] }
 0x2a1   :  { %16743 = vmatprep.mubr.msk.f32.mxu0 %vm151_vm1, %v24068_v14  ;;  %v24076_v14 = vld [vmem:[#allocation28_spill] sm:$0xff] }
 0x2a4   :  { %16744 = vmatmul.mubr.msk.f32.gmra.mrb[16].mxu0 %vm151_vm1, %v24069_v12  ;;  %v24077_v12 = vld [vmem:[#allocation29_spill] sm:$0xff] }
 0x2a5   :  { %16746 = vmatprep.mubr.msk.f32.mxu0 %vm151_vm1, %v24070_v2  ;;  %v24078_v2 = vld [vmem:[#allocation30_spill] sm:$0xff] }
 0x2a8   :  { %16747 = vmatmul.mubr.msk.f32.gmra.mrb[18].mxu0 %vm151_vm1, %v24071_v11  ;;  %v24079_v11 = vld [vmem:[#allocation31_spill] sm:$0xff] }
 0x2a9   :  { %16749 = vmatprep.mubr.msk.f32.mxu0 %vm151_vm1, %v24072_v47  ;;  %v24080_v47 = vld [vmem:[#allocation32_spill] sm:$0xff] }
 0x2ac   :  { %16750 = vmatmul.mubr.msk.f32.gmra.mrb[20].mxu0 %vm151_vm1, %v24073_v8  ;;  %v20882_v8 = vld [vmem:[%s23831_s0 + $0x182] sm:$0xff] }
 0x2ad   :  { %16752 = vmatprep.mubr.msk.f32.mxu0 %vm151_vm1, %v24074_v6  ;;  %24081 = vst [vmem:[#allocation4_spill] sm:$0xff] %v20882_v8  ;;  %v24082_v6 = vld [vmem:[#allocation33_spill] sm:$0xff] }
 0x2b0   :  { %16753 = vmatmul.mubr.msk.f32.gmra.mrb[22].mxu0 %vm151_vm1, %v24075_v3  ;;  %v20891_v3 = vld [vmem:[%s23831_s0 + $0x18a] sm:$0xff] }
 0x2b1   :  { %16755 = vmatprep.mubr.msk.f32.mxu0 %vm151_vm1, %v24076_v14  ;;  %24083 = vst [vmem:[#allocation5_spill] sm:$0xff] %v20891_v3  ;;  %v24084_v14 = vld [vmem:[#allocation34_spill] sm:$0xff] }
 0x2b4   :  { %16756 = vmatmul.mubr.msk.f32.gmra.mrb[24].mxu0 %vm151_vm1, %v24077_v12  ;;  %v24085_v12 = vld [vmem:[#allocation35_spill] sm:$0xff] }
 0x2b5   :  { %16758 = vmatprep.mubr.msk.f32.mxu0 %vm151_vm1, %v24078_v2  ;;  %v24086_v2 = vld [vmem:[#allocation36_spill] sm:$0xff] }
 0x2b8   :  { %16759 = vmatmul.mubr.msk.f32.gmra.mrb[26].mxu0 %vm151_vm1, %v24079_v11  ;;  %v24087_v11 = vld [vmem:[#allocation37_spill] sm:$0xff] }
 0x2b9   :  { %16761 = vmatprep.mubr.msk.f32.mxu0 %vm151_vm1, %v24080_v47  ;;  %v24088_v47 = vld [vmem:[#allocation38_spill] sm:$0xff] }
 0x2bc   :  { %16762 = vmatmul.mubr.msk.f32.gmra.mrb[28].mxu0 %vm151_vm1, %v24082_v6  ;;  %v24089_v6 = vld [vmem:[#allocation39_spill] sm:$0xff] }
 0x2bd   :  { %16764 = vmatprep.mubr.msk.f32.mxu0 %vm151_vm1, %v20882_v8  ;;  %v24090_v8 = vld [vmem:[#allocation40_spill] sm:$0xff] }
 0x2c0   :  { %16765 = vmatmul.mubr.msk.f32.gmra.mrb[30].mxu0 %vm151_vm1, %v20891_v3  ;;  %v24091_v3 = vld [vmem:[#allocation41_spill] sm:$0xff] }
 0x2c1   :  { %16767 = vmatprep.mubr.msk.f32.mxu0 %vm151_vm1, %v24084_v14  ;;  %v24092_v14 = vld [vmem:[#allocation42_spill] sm:$0xff] }
 0x2c4   :  { %16768 = vmatmul.mubr.msk.f32.gmra.mrb[32].mxu0 %vm151_vm1, %v24085_v12  ;;  %v24093_v12 = vld [vmem:[#allocation43_spill] sm:$0xff] }
 0x2c5   :  { %16770 = vmatprep.mubr.msk.f32.mxu0 %vm151_vm1, %v24086_v2  ;;  %v24094_v2 = vld [vmem:[#allocation44_spill] sm:$0xff] }
 0x2c8   :  { %16771 = vmatmul.mubr.msk.f32.gmra.mrb[34].mxu0 %vm151_vm1, %v24087_v11  ;;  %v24095_v11 = vld [vmem:[#allocation45_spill] sm:$0xff] }
 0x2c9   :  { %16773 = vmatprep.mubr.msk.f32.mxu0 %vm151_vm1, %v24088_v47  ;;  %v24096_v47 = vld [vmem:[#allocation46_spill] sm:$0xff] }
 0x2cc   :  { %16774 = vmatmul.mubr.msk.f32.gmra.mrb[36].mxu0 %vm151_vm1, %v24089_v6  ;;  %v24097_v6 = vld [vmem:[#allocation47_spill] sm:$0xff] }
 0x2cd   :  { %16776 = vmatprep.mubr.msk.f32.mxu0 %vm151_vm1, %v24090_v8  ;;  %v24098_v8 = vld [vmem:[#allocation48_spill] sm:$0xff] }
 0x2d0   :  { %16777 = vmatmul.mubr.msk.f32.gmra.mrb[38].mxu0 %vm151_vm1, %v24091_v3  ;;  %v24099_v3 = vld [vmem:[#allocation49_spill] sm:$0xff] }
 0x2d1   :  { %16779 = vmatprep.mubr.msk.f32.mxu0 %vm151_vm1, %v24092_v14  ;;  %v24100_v14 = vld [vmem:[#allocation50_spill] sm:$0xff] }
 0x2d4   :  { %16780 = vmatmul.mubr.msk.f32.gmra.mrb[40].mxu0 %vm151_vm1, %v24093_v12  ;;  %v24101_v12 = vld [vmem:[#allocation51_spill] sm:$0xff] }
 0x2d5   :  { %16782 = vmatprep.mubr.msk.f32.mxu0 %vm151_vm1, %v24094_v2  ;;  %v24102_v2 = vld [vmem:[#allocation52_spill] sm:$0xff] }
 0x2d8   :  { %16783 = vmatmul.mubr.msk.f32.gmra.mrb[42].mxu0 %vm151_vm1, %v24095_v11  ;;  %v24103_v11 = vld [vmem:[#allocation53_spill] sm:$0xff] }
 0x2d9   :  { %16785 = vmatprep.mubr.msk.f32.mxu0 %vm151_vm1, %v24096_v47  ;;  %v24104_v47 = vld [vmem:[#allocation54_spill] sm:$0xff] }
 0x2dc   :  { %16786 = vmatmul.mubr.msk.f32.gmra.mrb[44].mxu0 %vm151_vm1, %v24097_v6  ;;  %v24105_v6 = vld [vmem:[#allocation55_spill] sm:$0xff] }
 0x2dd   :  { %16788 = vmatprep.mubr.msk.f32.mxu0 %vm151_vm1, %v24098_v8  ;;  %v24106_v8 = vld [vmem:[#allocation56_spill] sm:$0xff] }
 0x2e0   :  { %16789 = vmatmul.mubr.msk.f32.gmra.mrb[46].mxu0 %vm151_vm1, %v24099_v3  ;;  %v24107_v3 = vld [vmem:[#allocation57_spill] sm:$0xff] }
 0x2e1   :  { %16791 = vmatprep.mubr.msk.f32.mxu0 %vm151_vm1, %v24100_v14  ;;  %v24108_v14 = vld [vmem:[#allocation58_spill] sm:$0xff] }
 0x2e4   :  { %16792 = vmatmul.mubr.msk.f32.gmra.mrb[48].mxu0 %vm151_vm1, %v24101_v12  ;;  %v24109_v12 = vld [vmem:[#allocation59_spill] sm:$0xff] }
 0x2e5   :  { %16794 = vmatprep.mubr.msk.f32.mxu0 %vm151_vm1, %v24102_v2  ;;  %v24110_v2 = vld [vmem:[#allocation60_spill] sm:$0xff] }
 0x2e8   :  { %16795 = vmatmul.mubr.msk.f32.gmra.mrb[50].mxu0 %vm151_vm1, %v24103_v11  ;;  %v20956_v11 = vld [vmem:[%s23831_s0 + $0x332] sm:$0xff] }
 0x2e9   :  { %16797 = vmatprep.mubr.msk.f32.mxu0 %vm151_vm1, %v24104_v47  ;;  %v14010_v47 = vld [vmem:[%s23831_s0 + $0x48] sm:$0xff] }
 0x2ec   :  { %16798 = vmatmul.mubr.msk.f32.gmra.mrb[52].mxu0 %vm151_vm1, %v24105_v6  ;;  %v20983_v6 = vld [vmem:[%s23830_s1 + $0x20] sm:$0xf] }
 0x2ed   :  { %16800 = vmatprep.mubr.msk.f32.mxu0 %vm151_vm1, %v24106_v8  ;;  %v14011_v8 = vld [vmem:[%s23831_s0 + $0x50] sm:$0xff] }
 0x2f0   :  { %16801 = vmatmul.mubr.msk.f32.gmra.mrb[54].mxu0 %vm151_vm1, %v24107_v3  ;;  %v14012_v3 = vld [vmem:[%s23831_s0 + $0x60] sm:$0xff] }
 0x2f1   :  { %16803 = vmatprep.mubr.msk.f32.mxu0 %vm151_vm1, %v24108_v14  ;;  %v14014_v14 = vld [vmem:[%s23831_s0 + $0x78] sm:$0xff] }
 0x2f4   :  { %16804 = vmatmul.mubr.msk.f32.gmra.mrb[56].mxu0 %vm151_vm1, %v20178_v36  ;;  %v20965_v36 = vld [vmem:[%s23831_s0 + $0x33a] sm:$0xff] }
 0x2f5   :  { %16806 = vmatprep.mubr.msk.f32.mxu0 %vm151_vm1, %v24109_v12  ;;  %v14015_v12 = vld [vmem:[%s23831_s0 + $0x80] sm:$0xff] }
 0x2f8   :  { %16807 = vmatmul.mubr.msk.f32.gmra.mrb[58].mxu0 %vm151_vm1, %v24110_v2  ;;  %v14016_v2 = vld [vmem:[%s23831_s0 + $0x90] sm:$0xff] }
 0x2f9   :  { %16809 = vmatprep.mubr.msk.f32.mxu0 %vm151_vm1, %v20197_v37  ;;  %v14008_v37 = vld [vmem:[%s23831_s0 + $0x30] sm:$0xff] }
 0x2fc   :  { %16810 = vmatmul.mubr.msk.f32.gmra.mrb[60].mxu0 %vm151_vm1, %v20206_v4  ;;  %v14009_v4 = vld [vmem:[%s23831_s0 + $0x38] sm:$0xff] }
 0x2fd   :  { %16812 = vmatprep.mubr.msk.f32.mxu0 %vm151_vm1, %v20956_v11 }
 0x300   :  { %16813 = vmatmul.mubr.msk.f32.gmra.mrb[62].mxu0 %vm151_vm1, %v20965_v36 }
 0x301   :  { %16817 = vmatprep.mubr.msk.f32.mxu0 %vm151_vm1, %v14008_v37  ;;  %v14017_v37 = vld [vmem:[%s23831_s0 + $0x98] sm:$0xff] }
 0x304   :  { %16818 = vmatmul.mubr.msk.f32.vlgmr.msra.gmra.mrb[0].mxu0 %vm151_vm1, %v14009_v4  ;;  %v14018_v4 = vld [vmem:[%s23831_s0 + $0xa8] sm:$0xff] }
 0x305   :  { %16914 = vmatpush3.msk.msra.mxu0 %vm344_vm0, %v20819_v46  ;;  %16820 = vmatprep.mubr.msk.f32.mxu0 %vm151_vm1, %v14010_v47  ;;  %v14013_v46 = vld [vmem:[%s23831_s0 + $0x68] sm:$0xff]  ;;  %v14019_v47 = vld [vmem:[%s23831_s0 + $0xb0] sm:$0xff] }
 0x306   :  { %17011 = vmatprep.subr.msk.mxu0 %vm344_vm0, %v20983_v6 }
 0x308   :  { %16821 = vmatmul.mubr.msk.f32.gmra.mrb[2].mxu0 %vm151_vm1, %v14011_v8  ;;  %v14020_v8 = vld [vmem:[%s23831_s0 + $0xc0] sm:$0xff] }
 0x309   :  { %16823 = vmatprep.mubr.msk.f32.mxu0 %vm151_vm1, %v14012_v3  ;;  %v14021_v3 = vld [vmem:[%s23831_s0 + $0xc8] sm:$0xff] }
 0x30c   :  { %16824 = vmatmul.mubr.msk.f32.gmra.mrb[4].mxu0 %vm151_vm1, %v14013_v46  ;;  %v14022_v46 = vld [vmem:[%s23831_s0 + $0xd8] sm:$0xff] }
 0x30d   :  { %16826 = vmatprep.mubr.msk.f32.mxu0 %vm151_vm1, %v14014_v14  ;;  %v14023_v14 = vld [vmem:[%s23831_s0 + $0xe0] sm:$0xff] }
 0x310   :  { %16827 = vmatmul.mubr.msk.f32.gmra.mrb[6].mxu0 %vm151_vm1, %v14015_v12  ;;  %v14024_v12 = vld [vmem:[%s23831_s0 + $0xf0] sm:$0xff] }
 0x311   :  { %16829 = vmatprep.mubr.msk.f32.mxu0 %vm151_vm1, %v14016_v2  ;;  %v14025_v2 = vld [vmem:[%s23831_s0 + $0xf8] sm:$0xff] }
 0x314   :  { %16830 = vmatmul.mubr.msk.f32.gmra.mrb[8].mxu0 %vm151_vm1, %v14017_v37  ;;  %v14026_v37 = vld [vmem:[%s23831_s0 + $0x108] sm:$0xff] }
 0x315   :  { %16832 = vmatprep.mubr.msk.f32.mxu0 %vm151_vm1, %v14018_v4  ;;  %v14027_v4 = vld [vmem:[%s23831_s0 + $0x110] sm:$0xff] }
 0x318   :  { %16833 = vmatmul.mubr.msk.f32.gmra.mrb[10].mxu0 %vm151_vm1, %v14019_v47  ;;  %v14028_v47 = vld [vmem:[%s23831_s0 + $0x120] sm:$0xff] }
 0x319   :  { %16835 = vmatprep.mubr.msk.f32.mxu0 %vm151_vm1, %v14020_v8  ;;  %v14029_v8 = vld [vmem:[%s23831_s0 + $0x128] sm:$0xff] }
 0x31c   :  { %16836 = vmatmul.mubr.msk.f32.gmra.mrb[12].mxu0 %vm151_vm1, %v14021_v3  ;;  %v14030_v3 = vld [vmem:[%s23831_s0 + $0x138] sm:$0xff] }
 0x31d   :  { %16838 = vmatprep.mubr.msk.f32.mxu0 %vm151_vm1, %v14022_v46  ;;  %v14031_v46 = vld [vmem:[%s23831_s0 + $0x140] sm:$0xff] }
 0x320   :  { %16839 = vmatmul.mubr.msk.f32.gmra.mrb[14].mxu0 %vm151_vm1, %v14023_v14  ;;  %v14032_v14 = vld [vmem:[%s23831_s0 + $0x150] sm:$0xff] }
 0x321   :  { %16841 = vmatprep.mubr.msk.f32.mxu0 %vm151_vm1, %v14024_v12  ;;  %v14033_v12 = vld [vmem:[%s23831_s0 + $0x158] sm:$0xff] }
 0x324   :  { %16842 = vmatmul.mubr.msk.f32.gmra.mrb[16].mxu0 %vm151_vm1, %v14025_v2  ;;  %v14034_v2 = vld [vmem:[%s23831_s0 + $0x168] sm:$0xff] }
 0x325   :  { %16844 = vmatprep.mubr.msk.f32.mxu0 %vm151_vm1, %v14026_v37  ;;  %v14035_v37 = vld [vmem:[%s23831_s0 + $0x170] sm:$0xff] }
 0x328   :  { %16845 = vmatmul.mubr.msk.f32.gmra.mrb[18].mxu0 %vm151_vm1, %v14027_v4  ;;  %v14038_v4 = vld [vmem:[%s23831_s0 + $0x198] sm:$0xff] }
 0x329   :  { %16847 = vmatprep.mubr.msk.f32.mxu0 %vm151_vm1, %v14028_v47  ;;  %v14039_v47 = vld [vmem:[%s23831_s0 + $0x1a0] sm:$0xff] }
 0x32c   :  { %16848 = vmatmul.mubr.msk.f32.gmra.mrb[20].mxu0 %vm151_vm1, %v14029_v8  ;;  %v14040_v8 = vld [vmem:[%s23831_s0 + $0x1e0] sm:$0xff] }
 0x32d   :  { %16850 = vmatprep.mubr.msk.f32.mxu0 %vm151_vm1, %v14030_v3  ;;  %v14043_v3 = vld [vmem:[%s23831_s0 + $0x200] sm:$0xff] }
 0x330   :  { %16851 = vmatmul.mubr.msk.f32.gmra.mrb[22].mxu0 %vm151_vm1, %v14031_v46  ;;  %v14044_v46 = vld [vmem:[%s23831_s0 + $0x210] sm:$0xff] }
 0x331   :  { %16853 = vmatprep.mubr.msk.f32.mxu0 %vm151_vm1, %v14032_v14  ;;  %v14045_v14 = vld [vmem:[%s23831_s0 + $0x218] sm:$0xff] }
 0x334   :  { %16854 = vmatmul.mubr.msk.f32.gmra.mrb[24].mxu0 %vm151_vm1, %v14033_v12  ;;  %v14046_v12 = vld [vmem:[%s23831_s0 + $0x228] sm:$0xff] }
 0x335   :  { %16856 = vmatprep.mubr.msk.f32.mxu0 %vm151_vm1, %v14034_v2  ;;  %v14047_v2 = vld [vmem:[%s23831_s0 + $0x230] sm:$0xff] }
 0x338   :  { %16857 = vmatmul.mubr.msk.f32.gmra.mrb[26].mxu0 %vm151_vm1, %v14035_v37  ;;  %v14048_v37 = vld [vmem:[%s23831_s0 + $0x240] sm:$0xff] }
 0x339   :  { %16859 = vmatprep.mubr.msk.f32.mxu0 %vm151_vm1, %v20280_v5  ;;  %v14041_v5 = vld [vmem:[%s23831_s0 + $0x1e8] sm:$0xff] }
 0x33c   :  { %16860 = vmatmul.mubr.msk.f32.gmra.mrb[28].mxu0 %vm151_vm1, %v20289_v7  ;;  %v14042_v7 = vld [vmem:[%s23831_s0 + $0x1f8] sm:$0xff] }
 0x33d   :  { %16862 = vmatprep.mubr.msk.f32.mxu0 %vm151_vm1, %v14038_v4  ;;  %v14049_v4 = vld [vmem:[%s23831_s0 + $0x248] sm:$0xff] }
 0x340   :  { %16863 = vmatmul.mubr.msk.f32.gmra.mrb[30].mxu0 %vm151_vm1, %v14039_v47  ;;  %v14050_v47 = vld [vmem:[%s23831_s0 + $0x258] sm:$0xff] }
 0x341   :  { %16865 = vmatprep.mubr.msk.f32.mxu0 %vm151_vm1, %v14040_v8  ;;  %v14051_v8 = vld [vmem:[%s23831_s0 + $0x260] sm:$0xff] }
 0x344   :  { %16866 = vmatmul.mubr.msk.f32.gmra.mrb[32].mxu0 %vm151_vm1, %v14041_v5  ;;  %v14052_v5 = vld [vmem:[%s23831_s0 + $0x270] sm:$0xff] }
 0x345   :  { %16868 = vmatprep.mubr.msk.f32.mxu0 %vm151_vm1, %v14042_v7  ;;  %v14053_v7 = vld [vmem:[%s23831_s0 + $0x278] sm:$0xff] }
 0x348   :  { %16869 = vmatmul.mubr.msk.f32.gmra.mrb[34].mxu0 %vm151_vm1, %v14043_v3  ;;  %v14054_v3 = vld [vmem:[%s23831_s0 + $0x288] sm:$0xff] }
 0x349   :  { %16871 = vmatprep.mubr.msk.f32.mxu0 %vm151_vm1, %v14044_v46  ;;  %v14055_v46 = vld [vmem:[%s23831_s0 + $0x290] sm:$0xff] }
 0x34c   :  { %16872 = vmatmul.mubr.msk.f32.gmra.mrb[36].mxu0 %vm151_vm1, %v14045_v14  ;;  %v14056_v14 = vld [vmem:[%s23831_s0 + $0x2a0] sm:$0xff] }
 0x34d   :  { %16874 = vmatprep.mubr.msk.f32.mxu0 %vm151_vm1, %v14046_v12  ;;  %v14057_v12 = vld [vmem:[%s23831_s0 + $0x2a8] sm:$0xff] }
 0x350   :  { %16875 = vmatmul.mubr.msk.f32.gmra.mrb[38].mxu0 %vm151_vm1, %v14047_v2  ;;  %v14058_v2 = vld [vmem:[%s23831_s0 + $0x2b8] sm:$0xff] }
 0x351   :  { %16877 = vmatprep.mubr.msk.f32.mxu0 %vm151_vm1, %v14048_v37  ;;  %v14059_v37 = vld [vmem:[%s23831_s0 + $0x2c0] sm:$0xff] }
 0x354   :  { %16878 = vmatmul.mubr.msk.f32.gmra.mrb[40].mxu0 %vm151_vm1, %v14049_v4  ;;  %v14060_v4 = vld [vmem:[%s23831_s0 + $0x2d0] sm:$0xff] }
 0x355   :  { %16880 = vmatprep.mubr.msk.f32.mxu0 %vm151_vm1, %v14050_v47  ;;  %v14061_v47 = vld [vmem:[%s23831_s0 + $0x2d8] sm:$0xff] }
 0x358   :  { %16881 = vmatmul.mubr.msk.f32.gmra.mrb[42].mxu0 %vm151_vm1, %v14051_v8  ;;  %v14062_v8 = vld [vmem:[%s23831_s0 + $0x2e8] sm:$0xff] }
 0x359   :  { %16883 = vmatprep.mubr.msk.f32.mxu0 %vm151_vm1, %v14052_v5  ;;  %v14063_v5 = vld [vmem:[%s23831_s0 + $0x2f0] sm:$0xff] }
 0x35c   :  { %16884 = vmatmul.mubr.msk.f32.gmra.mrb[44].mxu0 %vm151_vm1, %v14053_v7  ;;  %v14064_v7 = vld [vmem:[%s23831_s0 + $0x300] sm:$0xff] }
 0x35d   :  { %16886 = vmatprep.mubr.msk.f32.mxu0 %vm151_vm1, %v14054_v3  ;;  %v14065_v3 = vld [vmem:[%s23831_s0 + $0x308] sm:$0xff] }
 0x360   :  { %16887 = vmatmul.mubr.msk.f32.gmra.mrb[46].mxu0 %vm151_vm1, %v14055_v46  ;;  %v14066_v46 = vld [vmem:[%s23831_s0 + $0x318] sm:$0xff] }
 0x361   :  { %16889 = vmatprep.mubr.msk.f32.mxu0 %vm151_vm1, %v14056_v14  ;;  %v14067_v14 = vld [vmem:[%s23831_s0 + $0x320] sm:$0xff] }
 0x364   :  { %16890 = vmatmul.mubr.msk.f32.gmra.mrb[48].mxu0 %vm151_vm1, %v14057_v12  ;;  %v14070_v12 = vld [vmem:[%s23831_s0 + $0x348] sm:$0xff] }
 0x365   :  { %16892 = vmatprep.mubr.msk.f32.mxu0 %vm151_vm1, %v14058_v2  ;;  %v14071_v2 = vld [vmem:[%s23831_s0 + $0x350] sm:$0xff] }
 0x368   :  { %16893 = vmatmul.mubr.msk.f32.gmra.mrb[50].mxu0 %vm151_vm1, %v14059_v37  ;;  %v14303_v37 = vld [vmem:[%s23831_s0 + $0x202] sm:$0xff] }
 0x369   :  { %16895 = vmatprep.mubr.msk.f32.mxu0 %vm151_vm1, %v14060_v4  ;;  %v14304_v4 = vld [vmem:[%s23831_s0 + $0x212] sm:$0xff] }
 0x36c   :  { %16896 = vmatmul.mubr.msk.f32.gmra.mrb[52].mxu0 %vm151_vm1, %v14061_v47  ;;  %v14305_v47 = vld [vmem:[%s23831_s0 + $0x21a] sm:$0xff] }
 0x36d   :  { %16898 = vmatprep.mubr.msk.f32.mxu0 %vm151_vm1, %v14062_v8  ;;  %v14306_v8 = vld [vmem:[%s23831_s0 + $0x22a] sm:$0xff] }
 0x370   :  { %16899 = vmatmul.mubr.msk.f32.gmra.mrb[54].mxu0 %vm151_vm1, %v14063_v5  ;;  %v14307_v5 = vld [vmem:[%s23831_s0 + $0x232] sm:$0xff] }
 0x371   :  { %16901 = vmatprep.mubr.msk.f32.mxu0 %vm151_vm1, %v14064_v7  ;;  %v14308_v7 = vld [vmem:[%s23831_s0 + $0x242] sm:$0xff] }
 0x374   :  { %16902 = vmatmul.mubr.msk.f32.gmra.mrb[56].mxu0 %vm151_vm1, %v14065_v3  ;;  %v14309_v3 = vld [vmem:[%s23831_s0 + $0x24a] sm:$0xff] }
 0x375   :  { %16904 = vmatprep.mubr.msk.f32.mxu0 %vm151_vm1, %v14066_v46  ;;  %v14310_v46 = vld [vmem:[%s23831_s0 + $0x25a] sm:$0xff] }
 0x378   :  { %16905 = vmatmul.mubr.msk.f32.gmra.mrb[58].mxu0 %vm151_vm1, %v14067_v14  ;;  %v14311_v14 = vld [vmem:[%s23831_s0 + $0x262] sm:$0xff] }
 0x379   :  { %16907 = vmatprep.mubr.msk.f32.mxu0 %vm151_vm1, %v20354_v9  ;;  %v14168_v9 = vld [vmem:[%s23831_s0 + $0x199] sm:$0xff] }
 0x37c   :  { %16908 = vmatmul.mubr.msk.f32.gmra.mrb[60].mxu0 %vm151_vm1, %v20363_v10  ;;  %v14169_v10 = vld [vmem:[%s23831_s0 + $0x1a1] sm:$0xff] }
 0x37d   :  { %16910 = vmatprep.mubr.msk.f32.mxu0 %vm151_vm1, %v14070_v12  ;;  %v14312_v12 = vld [vmem:[%s23831_s0 + $0x272] sm:$0xff] }
 0x380   :  { %16911 = vmatmul.mubr.msk.f32.gmra.mrb[62].mxu0 %vm151_vm1, %v14071_v2  ;;  %v14313_v2 = vld [vmem:[%s23831_s0 + $0x27a] sm:$0xff] }
 0x381   :  { %16915 = vmatprep.mubr.msk.f32.mxu0 %vm151_vm1, %v20377_v13  ;;  %v24111_v13 = vld [vmem:[#allocation3_spill] sm:$0xff] }
 0x384   :  { %16916 = vmatmul.mubr.msk.f32.vlgmr.msra.gmra.mrb[0].mxu0 %vm151_vm1, %v20392_v15  ;;  %v24112_v15 = vld [vmem:[#allocation61_spill] sm:$0xff] }
 0x385   :  { %17012 = vmatpush3.msk.msra.mxu0 %vm344_vm0, %v20983_v6  ;;  %16918 = vmatprep.mubr.msk.f32.mxu0 %vm151_vm1, %v20397_v16  ;;  %v24113_v16 = vld [vmem:[#allocation62_spill] sm:$0xff] }
 0x386   :  { %v14302_v6 = vld [vmem:[%s23831_s0 + $0x1fa] sm:$0xff] }
 0x388   :  { %16919 = vmatmul.mubr.msk.f32.gmra.mrb[2].mxu0 %vm151_vm1, %v20408_v17  ;;  %v24114_v17 = vld [vmem:[#allocation63_spill] sm:$0xff] }
 0x389   :  { %16921 = vmatprep.mubr.msk.f32.mxu0 %vm151_vm1, %v20413_v18  ;;  %v24115_v18 = vld [vmem:[#allocation64_spill] sm:$0xff] }
 0x38c   :  { %16922 = vmatmul.mubr.msk.f32.gmra.mrb[4].mxu0 %vm151_vm1, %v20422_v19  ;;  %v24116_v19 = vld [vmem:[#allocation65_spill] sm:$0xff] }
 0x38d   :  { %16924 = vmatprep.mubr.msk.f32.mxu0 %vm151_vm1, %v20427_v20  ;;  %v24117_v20 = vld [vmem:[#allocation66_spill] sm:$0xff] }
 0x390   :  { %16925 = vmatmul.mubr.msk.f32.gmra.mrb[6].mxu0 %vm151_vm1, %v20436_v21  ;;  %v24118_v21 = vld [vmem:[#allocation67_spill] sm:$0xff] }
 0x391   :  { %16927 = vmatprep.mubr.msk.f32.mxu0 %vm151_vm1, %v20441_v22  ;;  %v24119_v22 = vld [vmem:[#allocation68_spill] sm:$0xff] }
 0x394   :  { %16928 = vmatmul.mubr.msk.f32.gmra.mrb[8].mxu0 %vm151_vm1, %v20450_v23  ;;  %v24120_v23 = vld [vmem:[#allocation69_spill] sm:$0xff] }
 0x395   :  { %16930 = vmatprep.mubr.msk.f32.mxu0 %vm151_vm1, %v20455_v24  ;;  %v24121_v24 = vld [vmem:[#allocation70_spill] sm:$0xff] }
 0x398   :  { %16931 = vmatmul.mubr.msk.f32.gmra.mrb[10].mxu0 %vm151_vm1, %v20464_v25  ;;  %v14200_v25 = vld [vmem:[%s23831_s0 + $0x349] sm:$0xff] }
 0x399   :  { %16933 = vmatprep.mubr.msk.f32.mxu0 %vm151_vm1, %v20469_v26  ;;  %v24122_v26 = vld [vmem:[#allocation71_spill] sm:$0xff] }
 0x39c   :  { %16934 = vmatmul.mubr.msk.f32.gmra.mrb[12].mxu0 %vm151_vm1, %v20478_v27  ;;  %v14201_v27 = vld [vmem:[%s23831_s0 + $0x351] sm:$0xff] }
 0x39d   :  { %16936 = vmatprep.mubr.msk.f32.mxu0 %vm151_vm1, %v20483_v28  ;;  %v14268_v28 = vld [vmem:[%s23831_s0 + $0x32] sm:$0xff] }
 0x3a0   :  { %16937 = vmatmul.mubr.msk.f32.gmra.mrb[14].mxu0 %vm151_vm1, %v20492_v29  ;;  %v14269_v29 = vld [vmem:[%s23831_s0 + $0x3a] sm:$0xff] }
 0x3a1   :  { %16939 = vmatprep.mubr.msk.f32.mxu0 %vm151_vm1, %v20497_v30  ;;  %v14270_v30 = vld [vmem:[%s23831_s0 + $0x4a] sm:$0xff] }
 0x3a4   :  { %16940 = vmatmul.mubr.msk.f32.gmra.mrb[16].mxu0 %vm151_vm1, %v20506_v31  ;;  %v14271_v31 = vld [vmem:[%s23831_s0 + $0x52] sm:$0xff] }
 0x3a5   :  { %16942 = vmatprep.mubr.msk.f32.mxu0 %vm151_vm1, %v20511_v32  ;;  %v14272_v32 = vld [vmem:[%s23831_s0 + $0x62] sm:$0xff] }
 0x3a8   :  { %16943 = vmatmul.mubr.msk.f32.gmra.mrb[18].mxu0 %vm151_vm1, %v20520_v33  ;;  %v14273_v33 = vld [vmem:[%s23831_s0 + $0x6a] sm:$0xff] }
 0x3a9   :  { %16945 = vmatprep.mubr.msk.f32.mxu0 %vm151_vm1, %v20525_v34  ;;  %v14274_v34 = vld [vmem:[%s23831_s0 + $0x7a] sm:$0xff] }
 0x3ac   :  { %16946 = vmatmul.mubr.msk.f32.gmra.mrb[20].mxu0 %vm151_vm1, %v20534_v35  ;;  %v14275_v35 = vld [vmem:[%s23831_s0 + $0x82] sm:$0xff] }
 0x3ad   :  { %16948 = vmatprep.mubr.msk.f32.mxu0 %vm151_vm1, %v20539_v38  ;;  %v14276_v38 = vld [vmem:[%s23831_s0 + $0x92] sm:$0xff] }
 0x3b0   :  { %16949 = vmatmul.mubr.msk.f32.gmra.mrb[22].mxu0 %vm151_vm1, %v20548_v39  ;;  %v14277_v39 = vld [vmem:[%s23831_s0 + $0x9a] sm:$0xff] }
 0x3b1   :  { %16951 = vmatprep.mubr.msk.f32.mxu0 %vm151_vm1, %v20553_v40  ;;  %v14278_v40 = vld [vmem:[%s23831_s0 + $0xaa] sm:$0xff] }
 0x3b4   :  { %16952 = vmatmul.mubr.msk.f32.gmra.mrb[24].mxu0 %vm151_vm1, %v20562_v41  ;;  %v14279_v41 = vld [vmem:[%s23831_s0 + $0xb2] sm:$0xff] }
 0x3b5   :  { %16954 = vmatprep.mubr.msk.f32.mxu0 %vm151_vm1, %v20567_v42  ;;  %v14280_v42 = vld [vmem:[%s23831_s0 + $0xc2] sm:$0xff] }
 0x3b8   :  { %16955 = vmatmul.mubr.msk.f32.gmra.mrb[26].mxu0 %vm151_vm1, %v20576_v43  ;;  %v14281_v43 = vld [vmem:[%s23831_s0 + $0xca] sm:$0xff] }
 0x3b9   :  { %16957 = vmatprep.mubr.msk.f32.mxu0 %vm151_vm1, %v20581_v44  ;;  %v14282_v44 = vld [vmem:[%s23831_s0 + $0xda] sm:$0xff] }
 0x3bc   :  { %16958 = vmatmul.mubr.msk.f32.gmra.mrb[28].mxu0 %vm151_vm1, %v20590_v45  ;;  %v14283_v45 = vld [vmem:[%s23831_s0 + $0xe2] sm:$0xff] }
 0x3bd   :  { %16960 = vmatprep.mubr.msk.f32.mxu0 %vm151_vm1, %v14168_v9  ;;  %v14314_v9 = vld [vmem:[%s23831_s0 + $0x28a] sm:$0xff] }
 0x3c0   :  { %16961 = vmatmul.mubr.msk.f32.gmra.mrb[30].mxu0 %vm151_vm1, %v14169_v10  ;;  %v19016_v10 = vmov 0.0  }
 0x3c1   :  { %16963 = vmatprep.mubr.msk.f32.mxu0 %vm151_vm1, %v20604_v48  ;;  %v14284_v48 = vld [vmem:[%s23831_s0 + $0xf2] sm:$0xff]  ;;  %6548 = vst.msk [vmem:[#allocation2] sm:$0xff] %vm151_vm1, %v19016_v10  ;;  %6549 = vst.msk [vmem:[#allocation2 + $0x8] sm:$0xff] %vm151_vm1, %v19016_v10 }
 0x3c2   :  { %6552 = vst.msk [vmem:[#allocation2 + $0x1b0] sm:$0xff] %vm151_vm1, %v19016_v10  ;;  %6553 = vst.msk [vmem:[#allocation2 + $0x1b8] sm:$0xff] %vm151_vm1, %v19016_v10 }
 0x3c3   :  { %6556 = vst.msk [vmem:[#allocation2 + $0x198] sm:$0xff] %vm151_vm1, %v19016_v10  ;;  %6557 = vst.msk [vmem:[#allocation2 + $0x1a0] sm:$0xff] %vm151_vm1, %v19016_v10 }
 0x3c4   :  { %16964 = vmatmul.mubr.msk.f32.gmra.mrb[32].mxu0 %vm151_vm1, %v20612_v49  ;;  %v14285_v49 = vld [vmem:[%s23831_s0 + $0xfa] sm:$0xff]  ;;  %6559 = vst.msk [vmem:[#allocation2 + $0x348] sm:$0xff] %vm151_vm1, %v19016_v10  ;;  %6560 = vst.msk [vmem:[#allocation2 + $0x350] sm:$0xff] %vm151_vm1, %v19016_v10 }
 0x3c5   :  { %16966 = vmatprep.mubr.msk.f32.mxu0 %vm151_vm1, %v20617_v50  ;;  %v14286_v50 = vld [vmem:[%s23831_s0 + $0x10a] sm:$0xff]  ;;  %6551 = vst.msk [vmem:[#allocation2 + $0x10] sm:$0x3] %vm6550_vm2, %v19016_v10  ;;  %6554 = vst.msk [vmem:[#allocation2 + $0x1c0] sm:$0x3] %vm6550_vm2, %v19016_v10 }
 0x3c6   :  { %6558 = vst.msk [vmem:[#allocation2 + $0x1a8] sm:$0x3] %vm6550_vm2, %v19016_v10  ;;  %6561 = vst.msk [vmem:[#allocation2 + $0x358] sm:$0x3] %vm6550_vm2, %v19016_v10 }
 0x3c7   :  { %6599 = vst.msk [vmem:[#allocation2 + $0x11] sm:$0x1] %vm6562_vm3, %v19016_v10  ;;  %6563 = vst.msk [vmem:[#allocation2] sm:$0x1] %vm6562_vm3, %v19016_v10 }
 0x3c8   :  { %16967 = vmatmul.mubr.msk.f32.gmra.mrb[34].mxu0 %vm151_vm1, %v20626_v51  ;;  %v14287_v51 = vld [vmem:[%s23831_s0 + $0x112] sm:$0xff]  ;;  %6564 = vst.msk [vmem:[#allocation2 + $0x18] sm:$0x1] %vm6562_vm3, %v19016_v10  ;;  %6565 = vst.msk [vmem:[#allocation2 + $0x30] sm:$0x1] %vm6562_vm3, %v19016_v10 }
 0x3c9   :  { %16969 = vmatprep.mubr.msk.f32.mxu0 %vm151_vm1, %v20631_v52  ;;  %v14288_v52 = vld [vmem:[%s23831_s0 + $0x122] sm:$0xff]  ;;  %6566 = vst.msk [vmem:[#allocation2 + $0x48] sm:$0x1] %vm6562_vm3, %v19016_v10  ;;  %6567 = vst.msk [vmem:[#allocation2 + $0x60] sm:$0x1] %vm6562_vm3, %v19016_v10 }
 0x3ca   :  { %6568 = vst.msk [vmem:[#allocation2 + $0x78] sm:$0x1] %vm6562_vm3, %v19016_v10  ;;  %6569 = vst.msk [vmem:[#allocation2 + $0x90] sm:$0x1] %vm6562_vm3, %v19016_v10 }
 0x3cb   :  { %6570 = vst.msk [vmem:[#allocation2 + $0xa8] sm:$0x1] %vm6562_vm3, %v19016_v10  ;;  %6571 = vst.msk [vmem:[#allocation2 + $0xc0] sm:$0x1] %vm6562_vm3, %v19016_v10 }
 0x3cc   :  { %16970 = vmatmul.mubr.msk.f32.gmra.mrb[36].mxu0 %vm151_vm1, %v20640_v53  ;;  %v14289_v53 = vld [vmem:[%s23831_s0 + $0x12a] sm:$0xff]  ;;  %6572 = vst.msk [vmem:[#allocation2 + $0xd8] sm:$0x1] %vm6562_vm3, %v19016_v10  ;;  %6573 = vst.msk [vmem:[#allocation2 + $0xf0] sm:$0x1] %vm6562_vm3, %v19016_v10 }
 0x3cd   :  { %16972 = vmatprep.mubr.msk.f32.mxu0 %vm151_vm1, %v20645_v54  ;;  %v14290_v54 = vld [vmem:[%s23831_s0 + $0x13a] sm:$0xff]  ;;  %6574 = vst.msk [vmem:[#allocation2 + $0x108] sm:$0x1] %vm6562_vm3, %v19016_v10  ;;  %6575 = vst.msk [vmem:[#allocation2 + $0x120] sm:$0x1] %vm6562_vm3, %v19016_v10 }
 0x3ce   :  { %6576 = vst.msk [vmem:[#allocation2 + $0x138] sm:$0x1] %vm6562_vm3, %v19016_v10  ;;  %6577 = vst.msk [vmem:[#allocation2 + $0x150] sm:$0x1] %vm6562_vm3, %v19016_v10 }
 0x3cf   :  { %6578 = vst.msk [vmem:[#allocation2 + $0x168] sm:$0x1] %vm6562_vm3, %v19016_v10  ;;  %6579 = vst.msk [vmem:[#allocation2 + $0x180] sm:$0x1] %vm6562_vm3, %v19016_v10 }
 0x3d0   :  { %16973 = vmatmul.mubr.msk.f32.gmra.mrb[38].mxu0 %vm151_vm1, %v20654_v55  ;;  %v14291_v55 = vld [vmem:[%s23831_s0 + $0x142] sm:$0xff]  ;;  %6580 = vst.msk [vmem:[#allocation2 + $0x198] sm:$0x1] %vm6562_vm3, %v19016_v10  ;;  %6581 = vst.msk [vmem:[#allocation2 + $0x1b0] sm:$0x1] %vm6562_vm3, %v19016_v10 }
 0x3d1   :  { %16975 = vmatprep.mubr.msk.f32.mxu0 %vm151_vm1, %v20659_v56  ;;  %v14292_v56 = vld [vmem:[%s23831_s0 + $0x152] sm:$0xff]  ;;  %6582 = vst.msk [vmem:[#allocation2 + $0x1c8] sm:$0x1] %vm6562_vm3, %v19016_v10  ;;  %6583 = vst.msk [vmem:[#allocation2 + $0x1e0] sm:$0x1] %vm6562_vm3, %v19016_v10 }
 0x3d2   :  { %6584 = vst.msk [vmem:[#allocation2 + $0x1f8] sm:$0x1] %vm6562_vm3, %v19016_v10  ;;  %6585 = vst.msk [vmem:[#allocation2 + $0x210] sm:$0x1] %vm6562_vm3, %v19016_v10 }
 0x3d3   :  { %6586 = vst.msk [vmem:[#allocation2 + $0x228] sm:$0x1] %vm6562_vm3, %v19016_v10  ;;  %6587 = vst.msk [vmem:[#allocation2 + $0x240] sm:$0x1] %vm6562_vm3, %v19016_v10 }
 0x3d4   :  { %16976 = vmatmul.mubr.msk.f32.gmra.mrb[40].mxu0 %vm151_vm1, %v20668_v57  ;;  %v14293_v57 = vld [vmem:[%s23831_s0 + $0x15a] sm:$0xff]  ;;  %6588 = vst.msk [vmem:[#allocation2 + $0x258] sm:$0x1] %vm6562_vm3, %v19016_v10  ;;  %6589 = vst.msk [vmem:[#allocation2 + $0x270] sm:$0x1] %vm6562_vm3, %v19016_v10 }
 0x3d5   :  { %16978 = vmatprep.mubr.msk.f32.mxu0 %vm151_vm1, %v20673_v58  ;;  %v14294_v58 = vld [vmem:[%s23831_s0 + $0x16a] sm:$0xff]  ;;  %6590 = vst.msk [vmem:[#allocation2 + $0x288] sm:$0x1] %vm6562_vm3, %v19016_v10  ;;  %6591 = vst.msk [vmem:[#allocation2 + $0x2a0] sm:$0x1] %vm6562_vm3, %v19016_v10 }
 0x3d6   :  { %6592 = vst.msk [vmem:[#allocation2 + $0x2b8] sm:$0x1] %vm6562_vm3, %v19016_v10  ;;  %6593 = vst.msk [vmem:[#allocation2 + $0x2d0] sm:$0x1] %vm6562_vm3, %v19016_v10 }
 0x3d7   :  { %6594 = vst.msk [vmem:[#allocation2 + $0x2e8] sm:$0x1] %vm6562_vm3, %v19016_v10  ;;  %6595 = vst.msk [vmem:[#allocation2 + $0x300] sm:$0x1] %vm6562_vm3, %v19016_v10 }
 0x3d8   :  { %16979 = vmatmul.mubr.msk.f32.gmra.mrb[42].mxu0 %vm151_vm1, %v20682_v59  ;;  %v14295_v59 = vld [vmem:[%s23831_s0 + $0x172] sm:$0xff]  ;;  %6596 = vst.msk [vmem:[#allocation2 + $0x318] sm:$0x1] %vm6562_vm3, %v19016_v10  ;;  %6597 = vst.msk [vmem:[#allocation2 + $0x330] sm:$0x1] %vm6562_vm3, %v19016_v10 }
 0x3d9   :  { %16981 = vmatprep.mubr.msk.f32.mxu0 %vm151_vm1, %v20687_v60  ;;  %v24123_v60 = vld [vmem:[#allocation4_spill] sm:$0xff]  ;;  %6598 = vst.msk [vmem:[#allocation2 + $0x348] sm:$0x1] %vm6562_vm3, %v19016_v10  ;;  %6600 = vst.msk [vmem:[#allocation2 + $0x29] sm:$0x1] %vm6562_vm3, %v19016_v10 }
 0x3da   :  { %6601 = vst.msk [vmem:[#allocation2 + $0x41] sm:$0x1] %vm6562_vm3, %v19016_v10  ;;  %6602 = vst.msk [vmem:[#allocation2 + $0x59] sm:$0x1] %vm6562_vm3, %v19016_v10 }
 0x3db   :  { %6603 = vst.msk [vmem:[#allocation2 + $0x71] sm:$0x1] %vm6562_vm3, %v19016_v10  ;;  %6604 = vst.msk [vmem:[#allocation2 + $0x89] sm:$0x1] %vm6562_vm3, %v19016_v10 }
 0x3dc   :  { %16982 = vmatmul.mubr.msk.f32.gmra.mrb[44].mxu0 %vm151_vm1, %v20696_v61  ;;  %v14298_v61 = vld [vmem:[%s23831_s0 + $0x19a] sm:$0xff]  ;;  %6605 = vst.msk [vmem:[#allocation2 + $0xa1] sm:$0x1] %vm6562_vm3, %v19016_v10  ;;  %6606 = vst.msk [vmem:[#allocation2 + $0xb9] sm:$0x1] %vm6562_vm3, %v19016_v10 }
 0x3dd   :  { %16984 = vmatprep.mubr.msk.f32.mxu0 %vm151_vm1, %v20701_v62  ;;  %v24124_v62 = vld [vmem:[#allocation5_spill] sm:$0xff]  ;;  %6607 = vst.msk [vmem:[#allocation2 + $0xd1] sm:$0x1] %vm6562_vm3, %v19016_v10  ;;  %6608 = vst.msk [vmem:[#allocation2 + $0xe9] sm:$0x1] %vm6562_vm3, %v19016_v10 }
 0x3de   :  { %6609 = vst.msk [vmem:[#allocation2 + $0x101] sm:$0x1] %vm6562_vm3, %v19016_v10  ;;  %6610 = vst.msk [vmem:[#allocation2 + $0x119] sm:$0x1] %vm6562_vm3, %v19016_v10 }
 0x3df   :  { %6611 = vst.msk [vmem:[#allocation2 + $0x131] sm:$0x1] %vm6562_vm3, %v19016_v10  ;;  %6612 = vst.msk [vmem:[#allocation2 + $0x149] sm:$0x1] %vm6562_vm3, %v19016_v10 }
 0x3e0   :  { %16985 = vmatmul.mubr.msk.f32.gmra.mrb[46].mxu0 %vm151_vm1, %v20710_v63  ;;  %v14299_v63 = vld [vmem:[%s23831_s0 + $0x1a2] sm:$0xff]  ;;  %6613 = vst.msk [vmem:[#allocation2 + $0x161] sm:$0x1] %vm6562_vm3, %v19016_v10  ;;  %6614 = vst.msk [vmem:[#allocation2 + $0x179] sm:$0x1] %vm6562_vm3, %v19016_v10 }
 0x3e1   :  { %16987 = vmatprep.mubr.msk.f32.mxu0 %vm151_vm1, %v20715_v0  ;;  %v14300_v0 = vld [vmem:[%s23831_s0 + $0x1e2] sm:$0xff]  ;;  %6615 = vst.msk [vmem:[#allocation2 + $0x191] sm:$0x1] %vm6562_vm3, %v19016_v10  ;;  %6618 = vst.msk [vmem:[#allocation2 + $0x1d9] sm:$0x1] %vm6562_vm3, %v19016_v10 }
 0x3e2   :  { %6619 = vst.msk [vmem:[#allocation2 + $0x1f1] sm:$0x1] %vm6562_vm3, %v19016_v10  ;;  %6620 = vst.msk [vmem:[#allocation2 + $0x209] sm:$0x1] %vm6562_vm3, %v19016_v10 }
 0x3e3   :  { %6621 = vst.msk [vmem:[#allocation2 + $0x221] sm:$0x1] %vm6562_vm3, %v19016_v10  ;;  %6622 = vst.msk [vmem:[#allocation2 + $0x239] sm:$0x1] %vm6562_vm3, %v19016_v10 }
 0x3e4   :  { %16988 = vmatmul.mubr.msk.f32.gmra.mrb[48].mxu0 %vm151_vm1, %v20724_v1  ;;  %v14301_v1 = vld [vmem:[%s23831_s0 + $0x1ea] sm:$0xff]  ;;  %6623 = vst.msk [vmem:[#allocation2 + $0x251] sm:$0x1] %vm6562_vm3, %v19016_v10  ;;  %6624 = vst.msk [vmem:[#allocation2 + $0x269] sm:$0x1] %vm6562_vm3, %v19016_v10 }
 0x3e5   :  { %16990 = vmatprep.mubr.msk.f32.mxu0 %vm151_vm1, %v24111_v13  ;;  %v21571_v13 = vld [vmem:[%s23831_s0 + $0x292] sm:$0xff]  ;;  %6625 = vst.msk [vmem:[#allocation2 + $0x281] sm:$0x1] %vm6562_vm3, %v19016_v10  ;;  %6626 = vst.msk [vmem:[#allocation2 + $0x299] sm:$0x1] %vm6562_vm3, %v19016_v10 }
 0x3e6   :  { %6627 = vst.msk [vmem:[#allocation2 + $0x2b1] sm:$0x1] %vm6562_vm3, %v19016_v10  ;;  %6628 = vst.msk [vmem:[#allocation2 + $0x2c9] sm:$0x1] %vm6562_vm3, %v19016_v10 }
 0x3e7   :  { %6629 = vst.msk [vmem:[#allocation2 + $0x2e1] sm:$0x1] %vm6562_vm3, %v19016_v10  ;;  %6630 = vst.msk [vmem:[#allocation2 + $0x2f9] sm:$0x1] %vm6562_vm3, %v19016_v10 }
 0x3e8   :  { %16991 = vmatmul.mubr.msk.f32.gmra.mrb[50].mxu0 %vm151_vm1, %v24112_v15  ;;  %6631 = vst.msk [vmem:[#allocation2 + $0x311] sm:$0x1] %vm6562_vm3, %v19016_v10  ;;  %6632 = vst.msk [vmem:[#allocation2 + $0x329] sm:$0x1] %vm6562_vm3, %v19016_v10  ;;  %v14316_v15 = vld [vmem:[%s23831_s0 + $0x2a2] sm:$0xff] }
 0x3e9   :  { %16993 = vmatprep.mubr.msk.f32.mxu0 %vm151_vm1, %v24113_v16  ;;  %6633 = vst.msk [vmem:[#allocation2 + $0x341] sm:$0x1] %vm6562_vm3, %v19016_v10  ;;  %6616 = vst.msk [vmem:[#allocation2 + $0x1a9] sm:$0x1] %vm6562_vm3, %v19016_v10  ;;  %v14399_v16 = vld [vmem:[%s23832_s3 + $0x4] sm:$0xf] }
 0x3ea   :  { %6617 = vst.msk [vmem:[#allocation2 + $0x1c1] sm:$0x1] %vm6562_vm3, %v19016_v10  ;;  %6634 = vst.msk [vmem:[#allocation2 + $0x359] sm:$0x1] %vm6562_vm3, %v19016_v10  ;;  %17109 = vmatprep.subr.msk.mxu1 %vm344_vm0, %v14399_v16 }
 0x3eb   :  { %17110 = vmatpush3.msk.msra.mxu1 %vm344_vm0, %v14399_v16 }
 0x3ec   :  { %16994 = vmatmul.mubr.msk.f32.gmra.mrb[52].mxu0 %vm151_vm1, %v24114_v17  ;;  %v14317_v17 = vld [vmem:[%s23831_s0 + $0x2aa] sm:$0xff] }
 0x3ed   :  { %16996 = vmatprep.mubr.msk.f32.mxu0 %vm151_vm1, %v24115_v18  ;;  %v6765_v18 = vld [vmem:[#allocation2 + $0x1] sm:$0xff] }
 0x3ee   :  { %17111 = vmatprep.mubr.msk.f32.mxu1 %vm151_vm1, %v6765_v18 }
 0x3f0   :  { %16997 = vmatmul.mubr.msk.f32.gmra.mrb[54].mxu0 %vm151_vm1, %v24116_v19  ;;  %v14318_v19 = vld [vmem:[%s23831_s0 + $0x2ba] sm:$0xff] }
 0x3f1   :  { %16999 = vmatprep.mubr.msk.f32.mxu0 %vm151_vm1, %v24117_v20  ;;  %v6766_v20 = vld [vmem:[#allocation2 + $0x9] sm:$0xff] }
 0x3f2   :  { %17112 = vmatmul.mubr.msk.f32.vlgmr.msra.gmra.mrb[0].mxu1 %vm151_vm1, %v6766_v20 }
 0x3f4   :  { %17000 = vmatmul.mubr.msk.f32.gmra.mrb[56].mxu0 %vm151_vm1, %v24118_v21  ;;  %v14319_v21 = vld [vmem:[%s23831_s0 + $0x2c2] sm:$0xff] }
 0x3f5   :  { %17002 = vmatprep.mubr.msk.f32.mxu0 %vm151_vm1, %v24119_v22  ;;  %v14320_v22 = vld [vmem:[%s23831_s0 + $0x2d2] sm:$0xff] }
 0x3f8   :  { %17003 = vmatmul.mubr.msk.f32.gmra.mrb[58].mxu0 %vm151_vm1, %v24120_v23  ;;  %v14321_v23 = vld [vmem:[%s23831_s0 + $0x2da] sm:$0xff] }
 0x3f9   :  { %17005 = vmatprep.mubr.msk.f32.mxu0 %vm151_vm1, %v24121_v24  ;;  %v6764_v24 = vld [vmem:[%s23832_s3] sm:$0xf] }
 0x3fa   :  { %17207 = vmatprep.subr.msk.mxu1 %vm344_vm0, %v6764_v24 }
 0x3fb   :  { %17208 = vmatpush3.msk.msra.mxu1 %vm344_vm0, %v6764_v24 }
 0x3fc   :  { %17006 = vmatmul.mubr.msk.f32.gmra.mrb[60].mxu0 %vm151_vm1, %v24122_v26  ;;  %v14323_v26 = vld [vmem:[%s23831_s0 + $0x2f2] sm:$0xff] }
 0x3fd   :  { %17008 = vmatprep.mubr.msk.f32.mxu0 %vm151_vm1, %v14200_v25  ;;  %v14322_v25 = vld [vmem:[%s23831_s0 + $0x2ea] sm:$0xff] }
 0x400   :  { %17009 = vmatmul.mubr.msk.f32.gmra.mrb[62].mxu0 %vm151_vm1, %v14201_v27  ;;  %v14324_v27 = vld [vmem:[%s23831_s0 + $0x302] sm:$0xff] }
 0x401   :  { %17013 = vmatprep.mubr.msk.f32.mxu0 %vm151_vm1, %v14268_v28  ;;  %v14325_v28 = vld [vmem:[%s23831_s0 + $0x30a] sm:$0xff] }
 0x404   :  { %17014 = vmatmul.mubr.msk.f32.vlgmr.msra.gmra.mrb[0].mxu0 %vm151_vm1, %v14269_v29  ;;  %v14326_v29 = vld [vmem:[%s23831_s0 + $0x31a] sm:$0xff] }
 0x405   :  { %17016 = vmatprep.mubr.msk.f32.mxu0 %vm151_vm1, %v14270_v30  ;;  %v14327_v30 = vld [vmem:[%s23831_s0 + $0x322] sm:$0xff] }
 0x408   :  { %17017 = vmatmul.mubr.msk.f32.gmra.mrb[2].mxu0 %vm151_vm1, %v14271_v31  ;;  %v14330_v31 = vld [vmem:[%s23831_s0 + $0x34a] sm:$0xff] }
 0x409   :  { %17019 = vmatprep.mubr.msk.f32.mxu0 %vm151_vm1, %v14272_v32  ;;  %v14331_v32 = vld [vmem:[%s23831_s0 + $0x352] sm:$0xff] }
 0x40c   :  { %17020 = vmatmul.mubr.msk.f32.gmra.mrb[4].mxu0 %vm151_vm1, %v14273_v33  ;;  %v21794_v33 = vld [vmem:[%s23833_s2] ss:$0 sm:$0xff] }
 0x40d   :  { %17022 = vmatprep.mubr.msk.f32.mxu0 %vm151_vm1, %v14274_v34 }
 0x410   :  { %17023 = vmatmul.mubr.msk.f32.gmra.mrb[6].mxu0 %vm151_vm1, %v14275_v35 }
 0x411   :  { %17025 = vmatprep.mubr.msk.f32.mxu0 %vm151_vm1, %v14276_v38 }
 0x414   :  { %17026 = vmatmul.mubr.msk.f32.gmra.mrb[8].mxu0 %vm151_vm1, %v14277_v39 }
 0x415   :  { %17028 = vmatprep.mubr.msk.f32.mxu0 %vm151_vm1, %v14278_v40 }
 0x418   :  { %17029 = vmatmul.mubr.msk.f32.gmra.mrb[10].mxu0 %vm151_vm1, %v14279_v41 }
 0x419   :  { %17031 = vmatprep.mubr.msk.f32.mxu0 %vm151_vm1, %v14280_v42 }
 0x41c   :  { %17032 = vmatmul.mubr.msk.f32.gmra.mrb[12].mxu0 %vm151_vm1, %v14281_v43 }
 0x41d   :  { %17034 = vmatprep.mubr.msk.f32.mxu0 %vm151_vm1, %v14282_v44 }
 0x420   :  { %17035 = vmatmul.mubr.msk.f32.gmra.mrb[14].mxu0 %vm151_vm1, %v14283_v45 }
 0x421   :  { %17037 = vmatprep.mubr.msk.f32.mxu0 %vm151_vm1, %v14284_v48 }
 0x424   :  { %17038 = vmatmul.mubr.msk.f32.gmra.mrb[16].mxu0 %vm151_vm1, %v14285_v49 }
 0x425   :  { %17040 = vmatprep.mubr.msk.f32.mxu0 %vm151_vm1, %v14286_v50 }
 0x428   :  { %17041 = vmatmul.mubr.msk.f32.gmra.mrb[18].mxu0 %vm151_vm1, %v14287_v51 }
 0x429   :  { %17043 = vmatprep.mubr.msk.f32.mxu0 %vm151_vm1, %v14288_v52 }
 0x42c   :  { %17044 = vmatmul.mubr.msk.f32.gmra.mrb[20].mxu0 %vm151_vm1, %v14289_v53 }
 0x42d   :  { %17046 = vmatprep.mubr.msk.f32.mxu0 %vm151_vm1, %v14290_v54 }
 0x430   :  { %17047 = vmatmul.mubr.msk.f32.gmra.mrb[22].mxu0 %vm151_vm1, %v14291_v55 }
 0x431   :  { %17049 = vmatprep.mubr.msk.f32.mxu0 %vm151_vm1, %v14292_v56 }
 0x434   :  { %17050 = vmatmul.mubr.msk.f32.gmra.mrb[24].mxu0 %vm151_vm1, %v14293_v57 }
 0x435   :  { %17052 = vmatprep.mubr.msk.f32.mxu0 %vm151_vm1, %v14294_v58 }
 0x438   :  { %17053 = vmatmul.mubr.msk.f32.gmra.mrb[26].mxu0 %vm151_vm1, %v14295_v59  ;;  %v21809_v59 = vld [vmem:[%s23832_s3 + $0x8] sm:$0xf] }
 0x439   :  { %17055 = vmatprep.mubr.msk.f32.mxu0 %vm151_vm1, %v24123_v60  ;;  %17305 = vmatprep.subr.msk.mxu1 %vm344_vm0, %v21809_v59 }
 0x43c   :  { %17056 = vmatmul.mubr.msk.f32.gmra.mrb[28].mxu0 %vm151_vm1, %v24124_v62 }
 0x43d   :  { %17058 = vmatprep.mubr.msk.f32.mxu0 %vm151_vm1, %v14298_v61 }
 0x440   :  { %17059 = vmatmul.mubr.msk.f32.gmra.mrb[30].mxu0 %vm151_vm1, %v14299_v63 }
 0x441   :  { %17061 = vmatprep.mubr.msk.f32.mxu0 %vm151_vm1, %v14300_v0 }
 0x444   :  { %17062 = vmatmul.mubr.msk.f32.gmra.mrb[32].mxu0 %vm151_vm1, %v14301_v1 }
 0x445   :  { %17064 = vmatprep.mubr.msk.f32.mxu0 %vm151_vm1, %v14302_v6 }
 0x448   :  { %17065 = vmatmul.mubr.msk.f32.gmra.mrb[34].mxu0 %vm151_vm1, %v14303_v37 }
 0x449   :  { %17067 = vmatprep.mubr.msk.f32.mxu0 %vm151_vm1, %v14304_v4 }
 0x44c   :  { %17068 = vmatmul.mubr.msk.f32.gmra.mrb[36].mxu0 %vm151_vm1, %v14305_v47 }
 0x44d   :  { %17070 = vmatprep.mubr.msk.f32.mxu0 %vm151_vm1, %v14306_v8 }
 0x450   :  { %17071 = vmatmul.mubr.msk.f32.gmra.mrb[38].mxu0 %vm151_vm1, %v14307_v5 }
 0x451   :  { %17073 = vmatprep.mubr.msk.f32.mxu0 %vm151_vm1, %v14308_v7 }
 0x454   :  { %17074 = vmatmul.mubr.msk.f32.gmra.mrb[40].mxu0 %vm151_vm1, %v14309_v3 }
 0x455   :  { %17076 = vmatprep.mubr.msk.f32.mxu0 %vm151_vm1, %v14310_v46 }
 0x458   :  { %17077 = vmatmul.mubr.msk.f32.gmra.mrb[42].mxu0 %vm151_vm1, %v14311_v14 }
 0x459   :  { %17079 = vmatprep.mubr.msk.f32.mxu0 %vm151_vm1, %v14312_v12 }
 0x45c   :  { %17080 = vmatmul.mubr.msk.f32.gmra.mrb[44].mxu0 %vm151_vm1, %v14313_v2 }
 0x45d   :  { %17082 = vmatprep.mubr.msk.f32.mxu0 %vm151_vm1, %v14314_v9 }
 0x460   :  { %17083 = vmatmul.mubr.msk.f32.gmra.mrb[46].mxu0 %vm151_vm1, %v21571_v13 }
 0x461   :  { %17085 = vmatprep.mubr.msk.f32.mxu0 %vm151_vm1, %v14316_v15 }
 0x464   :  { %17086 = vmatmul.mubr.msk.f32.gmra.mrb[48].mxu0 %vm151_vm1, %v14317_v17 }
 0x465   :  { %17088 = vmatprep.mubr.msk.f32.mxu0 %vm151_vm1, %v14318_v19 }
 0x468   :  { %17089 = vmatmul.mubr.msk.f32.gmra.mrb[50].mxu0 %vm151_vm1, %v14319_v21 }
 0x469   :  { %17091 = vmatprep.mubr.msk.f32.mxu0 %vm151_vm1, %v14320_v22 }
 0x46c   :  { %17092 = vmatmul.mubr.msk.f32.gmra.mrb[52].mxu0 %vm151_vm1, %v14321_v23 }
 0x46d   :  { %17094 = vmatprep.mubr.msk.f32.mxu0 %vm151_vm1, %v14322_v25 }
 0x470   :  { %17095 = vmatmul.mubr.msk.f32.gmra.mrb[54].mxu0 %vm151_vm1, %v14323_v26 }
 0x471   :  { %17097 = vmatprep.mubr.msk.f32.mxu0 %vm151_vm1, %v14324_v27 }
 0x474   :  { %17098 = vmatmul.mubr.msk.f32.gmra.mrb[56].mxu0 %vm151_vm1, %v14325_v28 }
 0x475   :  { %17100 = vmatprep.mubr.msk.f32.mxu0 %vm151_vm1, %v14326_v29 }
 0x478   :  { %17101 = vmatmul.mubr.msk.f32.gmra.mrb[58].mxu0 %vm151_vm1, %v14327_v30 }
 0x479   :  { %17103 = vmatprep.mubr.msk.f32.mxu0 %vm151_vm1, %v20956_v11 }
 0x47c   :  { %17104 = vmatmul.mubr.msk.f32.gmra.mrb[60].mxu0 %vm151_vm1, %v20965_v36 }
 0x47d   :  { %17106 = vmatprep.mubr.msk.f32.mxu0 %vm151_vm1, %v14330_v31 }
 0x480   :  { %17107 = vmatmul.mubr.msk.f32.gmra.mrb[62].mxu0 %vm151_vm1, %v14331_v32 }
 0x4d7   :  { %v17015_v11 = vpop.f32.mrb[0].mxu0 }
 0x4d8   :  { %v6293_v34 = vadd.f32 %v17015_v11, %v21794_v33  ;;  %v5902_v35 = vpop.f32.mrb[1].mxu0 }
 0x4d9   :  { %v6292_v38 = vadd.f32 %v21794_v33, %v5902_v35 }
 0x4da   :  { %vm6357_vm4 = vcmp.gt.f32.partialorder %v6293_v34, 0.0  ;;  %v6421_v36 = vmul.f32 0.1, %v6293_v34 }
 0x4db   :  { %vm6356_vm5 = vcmp.gt.f32.partialorder %v6292_v38, 0.0  ;;  %v6420_v39 = vmul.f32 0.1, %v6292_v38  ;;  %v17018_v40 = vpop.f32.mrb[2].mxu0 }
 0x4dc   :  { %v6485_v41 = vsel %vm6357_vm4, %v6293_v34, %v6421_v36  ;;  %v6295_v42 = vadd.f32 %v17018_v40, %v21794_v33  ;;  %v5912_v43 = vpop.f32.mrb[3].mxu0 }
 0x4dd   :  { %6637 = vst.msk [vmem:[#allocation2 + $0x21] sm:$0xff] %vm151_vm1, %v6485_v41  ;;  %v6484_v44 = vsel %vm6356_vm5, %v6292_v38, %v6420_v39  ;;  %v6294_v45 = vadd.f32 %v21794_v33, %v5912_v43 }
 0x4de   :  { %6636 = vst.msk [vmem:[#allocation2 + $0x19] sm:$0xff] %vm151_vm1, %v6484_v44  ;;  %vm6359_vm6 = vcmp.gt.f32.partialorder %v6295_v42, 0.0  ;;  %v6423_v48 = vmul.f32 0.1, %v6295_v42 }
 0x4df   :  { %vm6358_vm7 = vcmp.gt.f32.partialorder %v6294_v45, 0.0  ;;  %v6422_v49 = vmul.f32 0.1, %v6294_v45  ;;  %v17021_v50 = vpop.f32.mrb[4].mxu0 }
 0x4e0   :  { %v6487_v51 = vsel %vm6359_vm6, %v6295_v42, %v6423_v48  ;;  %v6297_v52 = vadd.f32 %v17021_v50, %v21794_v33  ;;  %v5922_v53 = vpop.f32.mrb[5].mxu0 }
 0x4e1   :  { %6639 = vst.msk [vmem:[#allocation2 + $0x39] sm:$0xff] %vm151_vm1, %v6487_v51  ;;  %v6486_v54 = vsel %vm6358_vm7, %v6294_v45, %v6422_v49  ;;  %v6296_v55 = vadd.f32 %v21794_v33, %v5922_v53 }
 0x4e2   :  { %6638 = vst.msk [vmem:[#allocation2 + $0x31] sm:$0xff] %vm151_vm1, %v6486_v54  ;;  %vm6361_vm8 = vcmp.gt.f32.partialorder %v6297_v52, 0.0  ;;  %v6425_v56 = vmul.f32 0.1, %v6297_v52 }
 0x4e3   :  { %vm6360_vm9 = vcmp.gt.f32.partialorder %v6296_v55, 0.0  ;;  %v6424_v57 = vmul.f32 0.1, %v6296_v55  ;;  %v17024_v58 = vpop.f32.mrb[6].mxu0 }
 0x4e4   :  { %v6489_v60 = vsel %vm6361_vm8, %v6297_v52, %v6425_v56  ;;  %v6299_v61 = vadd.f32 %v17024_v58, %v21794_v33  ;;  %v5932_v62 = vpop.f32.mrb[7].mxu0  ;;  %v6768_v37 = vld [vmem:[#allocation2 + $0x21] sm:$0xff] }
 0x4e5   :  { %6641 = vst.msk [vmem:[#allocation2 + $0x51] sm:$0xff] %vm151_vm1, %v6489_v60  ;;  %v6488_v63 = vsel %vm6360_vm9, %v6296_v55, %v6424_v57  ;;  %v6298_v0 = vadd.f32 %v21794_v33, %v5932_v62  ;;  %v6767_v1 = vld [vmem:[#allocation2 + $0x19] sm:$0xff] }
 0x4e6   :  { %6640 = vst.msk [vmem:[#allocation2 + $0x49] sm:$0xff] %vm151_vm1, %v6488_v63  ;;  %vm6363_vm10 = vcmp.gt.f32.partialorder %v6299_v61, 0.0  ;;  %v6427_v6 = vmul.f32 0.1, %v6299_v61  ;;  %17114 = vmatprep.mubr.msk.f32.mxu1 %vm151_vm1, %v6767_v1 }
 0x4e7   :  { %vm6362_vm11 = vcmp.gt.f32.partialorder %v6298_v0, 0.0  ;;  %v6426_v4 = vmul.f32 0.1, %v6298_v0  ;;  %v17027_v47 = vpop.f32.mrb[8].mxu0  ;;  %17115 = vmatmul.mubr.msk.f32.gmra.mrb[2].mxu1 %vm151_vm1, %v6768_v37 }
 0x4e8   :  { %v6491_v8 = vsel %vm6363_vm10, %v6299_v61, %v6427_v6  ;;  %v6301_v5 = vadd.f32 %v17027_v47, %v21794_v33  ;;  %v5942_v7 = vpop.f32.mrb[9].mxu0  ;;  %v6770_v2 = vld [vmem:[#allocation2 + $0x39] sm:$0xff] }
 0x4e9   :  { %6643 = vst.msk [vmem:[#allocation2 + $0x69] sm:$0xff] %vm151_vm1, %v6491_v8  ;;  %v6490_v3 = vsel %vm6362_vm11, %v6298_v0, %v6426_v4  ;;  %v6300_v46 = vadd.f32 %v21794_v33, %v5942_v7  ;;  %v6769_v14 = vld [vmem:[#allocation2 + $0x31] sm:$0xff] }
 0x4ea   :  { %6642 = vst.msk [vmem:[#allocation2 + $0x61] sm:$0xff] %vm151_vm1, %v6490_v3  ;;  %vm6365_vm12 = vcmp.gt.f32.partialorder %v6301_v5, 0.0  ;;  %v6429_v12 = vmul.f32 0.1, %v6301_v5  ;;  %17117 = vmatprep.mubr.msk.f32.mxu1 %vm151_vm1, %v6769_v14 }
 0x4eb   :  { %vm6364_vm13 = vcmp.gt.f32.partialorder %v6300_v46, 0.0  ;;  %v6428_v9 = vmul.f32 0.1, %v6300_v46  ;;  %v17030_v10 = vpop.f32.mrb[10].mxu0  ;;  %17118 = vmatmul.mubr.msk.f32.gmra.mrb[4].mxu1 %vm151_vm1, %v6770_v2 }
 0x4ec   :  { %v6493_v13 = vsel %vm6365_vm12, %v6301_v5, %v6429_v12  ;;  %v6303_v15 = vadd.f32 %v17030_v10, %v21794_v33  ;;  %v5952_v16 = vpop.f32.mrb[11].mxu0  ;;  %v6772_v21 = vld [vmem:[#allocation2 + $0x51] sm:$0xff] }
 0x4ed   :  { %6645 = vst.msk [vmem:[#allocation2 + $0x81] sm:$0xff] %vm151_vm1, %v6493_v13  ;;  %v6492_v17 = vsel %vm6364_vm13, %v6300_v46, %v6428_v9  ;;  %v6302_v18 = vadd.f32 %v21794_v33, %v5952_v16  ;;  %v6771_v19 = vld [vmem:[#allocation2 + $0x49] sm:$0xff] }
 0x4ee   :  { %6644 = vst.msk [vmem:[#allocation2 + $0x79] sm:$0xff] %vm151_vm1, %v6492_v17  ;;  %vm6367_vm14 = vcmp.gt.f32.partialorder %v6303_v15, 0.0  ;;  %v6431_v20 = vmul.f32 0.1, %v6303_v15  ;;  %17120 = vmatprep.mubr.msk.f32.mxu1 %vm151_vm1, %v6771_v19 }
 0x4ef   :  { %vm6366_vm15 = vcmp.gt.f32.partialorder %v6302_v18, 0.0  ;;  %v6430_v22 = vmul.f32 0.1, %v6302_v18  ;;  %v17033_v23 = vpop.f32.mrb[12].mxu0  ;;  %17121 = vmatmul.mubr.msk.f32.gmra.mrb[6].mxu1 %vm151_vm1, %v6772_v21 }
 0x4f0   :  { %v6495_v24 = vsel %vm6367_vm14, %v6303_v15, %v6431_v20  ;;  %v6305_v25 = vadd.f32 %v17033_v23, %v21794_v33  ;;  %v5962_v26 = vpop.f32.mrb[13].mxu0  ;;  %v6774_v31 = vld [vmem:[#allocation2 + $0x69] sm:$0xff] }
 0x4f1   :  { %6647 = vst.msk [vmem:[#allocation2 + $0x99] sm:$0xff] %vm151_vm1, %v6495_v24  ;;  %v6494_v27 = vsel %vm6366_vm15, %v6302_v18, %v6430_v22  ;;  %v6304_v28 = vadd.f32 %v21794_v33, %v5962_v26  ;;  %v6773_v29 = vld [vmem:[#allocation2 + $0x61] sm:$0xff] }
 0x4f2   :  { %6646 = vst.msk [vmem:[#allocation2 + $0x91] sm:$0xff] %vm151_vm1, %v6494_v27  ;;  %vm6369_vm2 = vcmp.gt.f32.partialorder %v6305_v25, 0.0  ;;  %v6433_v30 = vmul.f32 0.1, %v6305_v25  ;;  %17123 = vmatprep.mubr.msk.f32.mxu1 %vm151_vm1, %v6773_v29 }
 0x4f3   :  { %vm6368_vm3 = vcmp.gt.f32.partialorder %v6304_v28, 0.0  ;;  %v6432_v32 = vmul.f32 0.1, %v6304_v28  ;;  %v17036_v11 = vpop.f32.mrb[14].mxu0  ;;  %17124 = vmatmul.mubr.msk.f32.gmra.mrb[8].mxu1 %vm151_vm1, %v6774_v31 }
 0x4f4   :  { %v6497_v34 = vsel %vm6369_vm2, %v6305_v25, %v6433_v30  ;;  %v6307_v35 = vadd.f32 %v17036_v11, %v21794_v33  ;;  %v5972_v38 = vpop.f32.mrb[15].mxu0  ;;  %v6776_v42 = vld [vmem:[#allocation2 + $0x81] sm:$0xff] }
 0x4f5   :  { %6649 = vst.msk [vmem:[#allocation2 + $0xb1] sm:$0xff] %vm151_vm1, %v6497_v34  ;;  %v6496_v36 = vsel %vm6368_vm3, %v6304_v28, %v6432_v32  ;;  %v6306_v39 = vadd.f32 %v21794_v33, %v5972_v38  ;;  %v6775_v40 = vld [vmem:[#allocation2 + $0x79] sm:$0xff] }
 0x4f6   :  { %6648 = vst.msk [vmem:[#allocation2 + $0xa9] sm:$0xff] %vm151_vm1, %v6496_v36  ;;  %vm6371_vm4 = vcmp.gt.f32.partialorder %v6307_v35, 0.0  ;;  %v6435_v41 = vmul.f32 0.1, %v6307_v35  ;;  %17126 = vmatprep.mubr.msk.f32.mxu1 %vm151_vm1, %v6775_v40 }
 0x4f7   :  { %vm6370_vm5 = vcmp.gt.f32.partialorder %v6306_v39, 0.0  ;;  %v6434_v43 = vmul.f32 0.1, %v6306_v39  ;;  %v17039_v44 = vpop.f32.mrb[16].mxu0  ;;  %17127 = vmatmul.mubr.msk.f32.gmra.mrb[10].mxu1 %vm151_vm1, %v6776_v42 }
 0x4f8   :  { %v6499_v45 = vsel %vm6371_vm4, %v6307_v35, %v6435_v41  ;;  %v6309_v48 = vadd.f32 %v17039_v44, %v21794_v33  ;;  %v5982_v49 = vpop.f32.mrb[17].mxu0  ;;  %v6778_v54 = vld [vmem:[#allocation2 + $0x99] sm:$0xff] }
 0x4f9   :  { %6651 = vst.msk [vmem:[#allocation2 + $0xc9] sm:$0xff] %vm151_vm1, %v6499_v45  ;;  %v6498_v50 = vsel %vm6370_vm5, %v6306_v39, %v6434_v43  ;;  %v6308_v51 = vadd.f32 %v21794_v33, %v5982_v49  ;;  %v6777_v52 = vld [vmem:[#allocation2 + $0x91] sm:$0xff] }
 0x4fa   :  { %6650 = vst.msk [vmem:[#allocation2 + $0xc1] sm:$0xff] %vm151_vm1, %v6498_v50  ;;  %vm6373_vm6 = vcmp.gt.f32.partialorder %v6309_v48, 0.0  ;;  %v6437_v53 = vmul.f32 0.1, %v6309_v48  ;;  %17129 = vmatprep.mubr.msk.f32.mxu1 %vm151_vm1, %v6777_v52 }
 0x4fb   :  { %vm6372_vm7 = vcmp.gt.f32.partialorder %v6308_v51, 0.0  ;;  %v6436_v55 = vmul.f32 0.1, %v6308_v51  ;;  %v17042_v56 = vpop.f32.mrb[18].mxu0  ;;  %17130 = vmatmul.mubr.msk.f32.gmra.mrb[12].mxu1 %vm151_vm1, %v6778_v54 }
 0x4fc   :  { %v6501_v57 = vsel %vm6373_vm6, %v6309_v48, %v6437_v53  ;;  %v6311_v58 = vadd.f32 %v17042_v56, %v21794_v33  ;;  %v5992_v60 = vpop.f32.mrb[19].mxu0  ;;  %v6780_v1 = vld [vmem:[#allocation2 + $0xb1] sm:$0xff] }
 0x4fd   :  { %6653 = vst.msk [vmem:[#allocation2 + $0xe1] sm:$0xff] %vm151_vm1, %v6501_v57  ;;  %v6500_v61 = vsel %vm6372_vm7, %v6308_v51, %v6436_v55  ;;  %v6310_v62 = vadd.f32 %v21794_v33, %v5992_v60  ;;  %v6779_v63 = vld [vmem:[#allocation2 + $0xa9] sm:$0xff] }
 0x4fe   :  { %6652 = vst.msk [vmem:[#allocation2 + $0xd9] sm:$0xff] %vm151_vm1, %v6500_v61  ;;  %vm6375_vm8 = vcmp.gt.f32.partialorder %v6311_v58, 0.0  ;;  %v6439_v0 = vmul.f32 0.1, %v6311_v58  ;;  %17132 = vmatprep.mubr.msk.f32.mxu1 %vm151_vm1, %v6779_v63 }
 0x4ff   :  { %vm6374_vm9 = vcmp.gt.f32.partialorder %v6310_v62, 0.0  ;;  %v6438_v6 = vmul.f32 0.1, %v6310_v62  ;;  %v17045_v37 = vpop.f32.mrb[20].mxu0  ;;  %17133 = vmatmul.mubr.msk.f32.gmra.mrb[14].mxu1 %vm151_vm1, %v6780_v1 }
 0x500   :  { %v6503_v4 = vsel %vm6375_vm8, %v6311_v58, %v6439_v0  ;;  %v6313_v47 = vadd.f32 %v17045_v37, %v21794_v33  ;;  %v6002_v8 = vpop.f32.mrb[21].mxu0  ;;  %v6782_v14 = vld [vmem:[#allocation2 + $0xc9] sm:$0xff] }
 0x501   :  { %6655 = vst.msk [vmem:[#allocation2 + $0xf9] sm:$0xff] %vm151_vm1, %v6503_v4  ;;  %v6502_v5 = vsel %vm6374_vm9, %v6310_v62, %v6438_v6  ;;  %v6312_v7 = vadd.f32 %v21794_v33, %v6002_v8  ;;  %v6781_v3 = vld [vmem:[#allocation2 + $0xc1] sm:$0xff] }
 0x502   :  { %6654 = vst.msk [vmem:[#allocation2 + $0xf1] sm:$0xff] %vm151_vm1, %v6502_v5  ;;  %vm6377_vm10 = vcmp.gt.f32.partialorder %v6313_v47, 0.0  ;;  %v6441_v46 = vmul.f32 0.1, %v6313_v47  ;;  %17135 = vmatprep.mubr.msk.f32.mxu1 %vm151_vm1, %v6781_v3 }
 0x503   :  { %vm6376_vm11 = vcmp.gt.f32.partialorder %v6312_v7, 0.0  ;;  %v6440_v12 = vmul.f32 0.1, %v6312_v7  ;;  %v17048_v2 = vpop.f32.mrb[22].mxu0  ;;  %17136 = vmatmul.mubr.msk.f32.gmra.mrb[16].mxu1 %vm151_vm1, %v6782_v14 }
 0x504   :  { %v6505_v9 = vsel %vm6377_vm10, %v6313_v47, %v6441_v46  ;;  %v6315_v10 = vadd.f32 %v17048_v2, %v21794_v33  ;;  %v6012_v13 = vpop.f32.mrb[23].mxu0  ;;  %v6784_v19 = vld [vmem:[#allocation2 + $0xe1] sm:$0xff] }
 0x505   :  { %6657 = vst.msk [vmem:[#allocation2 + $0x111] sm:$0xff] %vm151_vm1, %v6505_v9  ;;  %v6504_v15 = vsel %vm6376_vm11, %v6312_v7, %v6440_v12  ;;  %v6314_v16 = vadd.f32 %v21794_v33, %v6012_v13  ;;  %v6783_v17 = vld [vmem:[#allocation2 + $0xd9] sm:$0xff] }
 0x506   :  { %6656 = vst.msk [vmem:[#allocation2 + $0x109] sm:$0xff] %vm151_vm1, %v6504_v15  ;;  %vm6379_vm12 = vcmp.gt.f32.partialorder %v6315_v10, 0.0  ;;  %v6443_v18 = vmul.f32 0.1, %v6315_v10  ;;  %17138 = vmatprep.mubr.msk.f32.mxu1 %vm151_vm1, %v6783_v17 }
 0x507   :  { %vm6378_vm13 = vcmp.gt.f32.partialorder %v6314_v16, 0.0  ;;  %v6442_v20 = vmul.f32 0.1, %v6314_v16  ;;  %v17051_v21 = vpop.f32.mrb[24].mxu0  ;;  %17139 = vmatmul.mubr.msk.f32.gmra.mrb[18].mxu1 %vm151_vm1, %v6784_v19 }
 0x508   :  { %v6507_v22 = vsel %vm6379_vm12, %v6315_v10, %v6443_v18  ;;  %v6317_v23 = vadd.f32 %v17051_v21, %v21794_v33  ;;  %v6022_v24 = vpop.f32.mrb[25].mxu0  ;;  %v6786_v29 = vld [vmem:[#allocation2 + $0xf9] sm:$0xff] }
 0x509   :  { %6659 = vst.msk [vmem:[#allocation2 + $0x129] sm:$0xff] %vm151_vm1, %v6507_v22  ;;  %v6506_v25 = vsel %vm6378_vm13, %v6314_v16, %v6442_v20  ;;  %v6316_v26 = vadd.f32 %v21794_v33, %v6022_v24  ;;  %v6785_v27 = vld [vmem:[#allocation2 + $0xf1] sm:$0xff]  ;;  %v6798_v24 = vld [vmem:[#allocation2 + $0x1b9] sm:$0xff] }
 0x50a   :  { %6658 = vst.msk [vmem:[#allocation2 + $0x121] sm:$0xff] %vm151_vm1, %v6506_v25  ;;  %vm6381_vm14 = vcmp.gt.f32.partialorder %v6317_v23, 0.0  ;;  %v6445_v28 = vmul.f32 0.1, %v6317_v23  ;;  %17141 = vmatprep.mubr.msk.f32.mxu1 %vm151_vm1, %v6785_v27  ;;  %v6797_v16 = vld [vmem:[#allocation2 + $0x1b1] sm:$0xff] }
 0x50b   :  { %vm6380_vm15 = vcmp.gt.f32.partialorder %v6316_v26, 0.0  ;;  %v6444_v30 = vmul.f32 0.1, %v6316_v26  ;;  %v17054_v31 = vpop.f32.mrb[26].mxu0  ;;  %17142 = vmatmul.mubr.msk.f32.gmra.mrb[20].mxu1 %vm151_vm1, %v6786_v29 }
 0x50c   :  { %v6509_v32 = vsel %vm6381_vm14, %v6317_v23, %v6445_v28  ;;  %v6319_v11 = vadd.f32 %v17054_v31, %v21794_v33  ;;  %v6032_v34 = vpop.f32.mrb[27].mxu0  ;;  %v6788_v40 = vld [vmem:[#allocation2 + $0x111] sm:$0xff] }
 0x50d   :  { %6661 = vst.msk [vmem:[#allocation2 + $0x141] sm:$0xff] %vm151_vm1, %v6509_v32  ;;  %v6508_v35 = vsel %vm6380_vm15, %v6316_v26, %v6444_v30  ;;  %v6318_v38 = vadd.f32 %v21794_v33, %v6032_v34  ;;  %v6787_v36 = vld [vmem:[#allocation2 + $0x109] sm:$0xff] }
 0x50e   :  { %6660 = vst.msk [vmem:[#allocation2 + $0x139] sm:$0xff] %vm151_vm1, %v6508_v35  ;;  %vm6383_vm2 = vcmp.gt.f32.partialorder %v6319_v11, 0.0  ;;  %v6447_v39 = vmul.f32 0.1, %v6319_v11  ;;  %17144 = vmatprep.mubr.msk.f32.mxu1 %vm151_vm1, %v6787_v36 }
 0x50f   :  { %vm6382_vm3 = vcmp.gt.f32.partialorder %v6318_v38, 0.0  ;;  %v6446_v41 = vmul.f32 0.1, %v6318_v38  ;;  %v17057_v42 = vpop.f32.mrb[28].mxu0  ;;  %17145 = vmatmul.mubr.msk.f32.gmra.mrb[22].mxu1 %vm151_vm1, %v6788_v40 }
 0x510   :  { %v6511_v43 = vsel %vm6383_vm2, %v6319_v11, %v6447_v39  ;;  %v6321_v44 = vadd.f32 %v17057_v42, %v21794_v33  ;;  %v6042_v45 = vpop.f32.mrb[29].mxu0  ;;  %v6790_v52 = vld [vmem:[#allocation2 + $0x129] sm:$0xff] }
 0x511   :  { %6663 = vst.msk [vmem:[#allocation2 + $0x159] sm:$0xff] %vm151_vm1, %v6511_v43  ;;  %v6510_v48 = vsel %vm6382_vm3, %v6318_v38, %v6446_v41  ;;  %v6320_v49 = vadd.f32 %v21794_v33, %v6042_v45  ;;  %v6789_v50 = vld [vmem:[#allocation2 + $0x121] sm:$0xff] }
 0x512   :  { %6662 = vst.msk [vmem:[#allocation2 + $0x151] sm:$0xff] %vm151_vm1, %v6510_v48  ;;  %vm6385_vm4 = vcmp.gt.f32.partialorder %v6321_v44, 0.0  ;;  %v6449_v51 = vmul.f32 0.1, %v6321_v44  ;;  %17147 = vmatprep.mubr.msk.f32.mxu1 %vm151_vm1, %v6789_v50 }
 0x513   :  { %vm6384_vm5 = vcmp.gt.f32.partialorder %v6320_v49, 0.0  ;;  %v6448_v53 = vmul.f32 0.1, %v6320_v49  ;;  %v17060_v54 = vpop.f32.mrb[30].mxu0  ;;  %17148 = vmatmul.mubr.msk.f32.gmra.mrb[24].mxu1 %vm151_vm1, %v6790_v52 }
 0x514   :  { %v6513_v55 = vsel %vm6385_vm4, %v6321_v44, %v6449_v51  ;;  %v6323_v56 = vadd.f32 %v17060_v54, %v21794_v33  ;;  %v6052_v57 = vpop.f32.mrb[31].mxu0  ;;  %v6792_v63 = vld [vmem:[#allocation2 + $0x141] sm:$0xff] }
 0x515   :  { %6665 = vst.msk [vmem:[#allocation2 + $0x171] sm:$0xff] %vm151_vm1, %v6513_v55  ;;  %v6512_v58 = vsel %vm6384_vm5, %v6320_v49, %v6448_v53  ;;  %v6322_v60 = vadd.f32 %v21794_v33, %v6052_v57  ;;  %v6791_v61 = vld [vmem:[#allocation2 + $0x139] sm:$0xff] }
 0x516   :  { %6664 = vst.msk [vmem:[#allocation2 + $0x169] sm:$0xff] %vm151_vm1, %v6512_v58  ;;  %vm6387_vm6 = vcmp.gt.f32.partialorder %v6323_v56, 0.0  ;;  %v6451_v62 = vmul.f32 0.1, %v6323_v56  ;;  %17150 = vmatprep.mubr.msk.f32.mxu1 %vm151_vm1, %v6791_v61 }
 0x517   :  { %vm6386_vm7 = vcmp.gt.f32.partialorder %v6322_v60, 0.0  ;;  %v6450_v0 = vmul.f32 0.1, %v6322_v60  ;;  %v17063_v1 = vpop.f32.mrb[32].mxu0  ;;  %17151 = vmatmul.mubr.msk.f32.gmra.mrb[26].mxu1 %vm151_vm1, %v6792_v63 }
 0x518   :  { %v6515_v6 = vsel %vm6387_vm6, %v6323_v56, %v6451_v62  ;;  %v6325_v37 = vadd.f32 %v17063_v1, %v21794_v33  ;;  %v6062_v4 = vpop.f32.mrb[33].mxu0  ;;  %v6794_v3 = vld [vmem:[#allocation2 + $0x159] sm:$0xff] }
 0x519   :  { %6667 = vst.msk [vmem:[#allocation2 + $0x189] sm:$0xff] %vm151_vm1, %v6515_v6  ;;  %v6514_v47 = vsel %vm6386_vm7, %v6322_v60, %v6450_v0  ;;  %v6324_v8 = vadd.f32 %v21794_v33, %v6062_v4  ;;  %v6793_v5 = vld [vmem:[#allocation2 + $0x151] sm:$0xff] }
 0x51a   :  { %6666 = vst.msk [vmem:[#allocation2 + $0x181] sm:$0xff] %vm151_vm1, %v6514_v47  ;;  %vm6389_vm8 = vcmp.gt.f32.partialorder %v6325_v37, 0.0  ;;  %v6453_v7 = vmul.f32 0.1, %v6325_v37  ;;  %17153 = vmatprep.mubr.msk.f32.mxu1 %vm151_vm1, %v6793_v5 }
 0x51b   :  { %vm6388_vm9 = vcmp.gt.f32.partialorder %v6324_v8, 0.0  ;;  %v6452_v46 = vmul.f32 0.1, %v6324_v8  ;;  %v17066_v14 = vpop.f32.mrb[34].mxu0  ;;  %17154 = vmatmul.mubr.msk.f32.gmra.mrb[28].mxu1 %vm151_vm1, %v6794_v3 }
 0x51c   :  { %v6517_v12 = vsel %vm6389_vm8, %v6325_v37, %v6453_v7  ;;  %v6327_v2 = vadd.f32 %v17066_v14, %v21794_v33  ;;  %v6072_v9 = vpop.f32.mrb[35].mxu0  ;;  %v6796_v18 = vld [vmem:[#allocation2 + $0x171] sm:$0xff] }
 0x51d   :  { %6669 = vst.msk [vmem:[#allocation2 + $0x1d1] sm:$0xff] %vm151_vm1, %v6517_v12  ;;  %v6516_v10 = vsel %vm6388_vm9, %v6324_v8, %v6452_v46  ;;  %v6326_v13 = vadd.f32 %v21794_v33, %v6072_v9  ;;  %v6795_v15 = vld [vmem:[#allocation2 + $0x169] sm:$0xff] }
 0x51e   :  { %6668 = vst.msk [vmem:[#allocation2 + $0x1c9] sm:$0xff] %vm151_vm1, %v6516_v10  ;;  %vm6391_vm10 = vcmp.gt.f32.partialorder %v6327_v2, 0.0  ;;  %v6455_v17 = vmul.f32 0.1, %v6327_v2  ;;  %17156 = vmatprep.mubr.msk.f32.mxu1 %vm151_vm1, %v6795_v15 }
 0x51f   :  { %vm6390_vm11 = vcmp.gt.f32.partialorder %v6326_v13, 0.0  ;;  %v6454_v19 = vmul.f32 0.1, %v6326_v13  ;;  %v17069_v20 = vpop.f32.mrb[36].mxu0  ;;  %17157 = vmatmul.mubr.msk.f32.gmra.mrb[30].mxu1 %vm151_vm1, %v6796_v18 }
 0x520   :  { %v6519_v21 = vsel %vm6391_vm10, %v6327_v2, %v6455_v17  ;;  %v6329_v22 = vadd.f32 %v17069_v20, %v21794_v33  ;;  %v6082_v23 = vpop.f32.mrb[37].mxu0  ;;  %17159 = vmatprep.mubr.msk.f32.mxu1 %vm151_vm1, %v6797_v16 }
 0x521   :  { %6671 = vst.msk [vmem:[#allocation2 + $0x1e9] sm:$0xff] %vm151_vm1, %v6519_v21  ;;  %v6518_v25 = vsel %vm6390_vm11, %v6326_v13, %v6454_v19  ;;  %v6328_v26 = vadd.f32 %v21794_v33, %v6082_v23 }
 0x522   :  { %6670 = vst.msk [vmem:[#allocation2 + $0x1e1] sm:$0xff] %vm151_vm1, %v6518_v25  ;;  %vm6393_vm12 = vcmp.gt.f32.partialorder %v6329_v22, 0.0  ;;  %v6457_v27 = vmul.f32 0.1, %v6329_v22 }
 0x523   :  { %vm6392_vm13 = vcmp.gt.f32.partialorder %v6328_v26, 0.0  ;;  %v6456_v28 = vmul.f32 0.1, %v6328_v26  ;;  %v17072_v29 = vpop.f32.mrb[38].mxu0  ;;  %17160 = vmatmul.mubr.msk.f32.gmra.mrb[32].mxu1 %vm151_vm1, %v6798_v24 }
 0x524   :  { %v6521_v30 = vsel %vm6393_vm12, %v6329_v22, %v6457_v27  ;;  %v6331_v31 = vadd.f32 %v17072_v29, %v21794_v33  ;;  %v6092_v32 = vpop.f32.mrb[39].mxu0  ;;  %v6800_v36 = vld [vmem:[#allocation2 + $0x1d1] sm:$0xff] }
 0x525   :  { %6673 = vst.msk [vmem:[#allocation2 + $0x201] sm:$0xff] %vm151_vm1, %v6521_v30  ;;  %v6520_v11 = vsel %vm6392_vm13, %v6328_v26, %v6456_v28  ;;  %v6330_v34 = vadd.f32 %v21794_v33, %v6092_v32  ;;  %v6799_v35 = vld [vmem:[#allocation2 + $0x1c9] sm:$0xff] }
 0x526   :  { %6672 = vst.msk [vmem:[#allocation2 + $0x1f9] sm:$0xff] %vm151_vm1, %v6520_v11  ;;  %vm6395_vm14 = vcmp.gt.f32.partialorder %v6331_v31, 0.0  ;;  %v6459_v38 = vmul.f32 0.1, %v6331_v31  ;;  %17162 = vmatprep.mubr.msk.f32.mxu1 %vm151_vm1, %v6799_v35 }
 0x527   :  { %vm6394_vm15 = vcmp.gt.f32.partialorder %v6330_v34, 0.0  ;;  %v6458_v39 = vmul.f32 0.1, %v6330_v34  ;;  %v17075_v40 = vpop.f32.mrb[40].mxu0  ;;  %17163 = vmatmul.mubr.msk.f32.gmra.mrb[34].mxu1 %vm151_vm1, %v6800_v36 }
 0x528   :  { %v6523_v41 = vsel %vm6395_vm14, %v6331_v31, %v6459_v38  ;;  %v6333_v42 = vadd.f32 %v17075_v40, %v21794_v33  ;;  %v6102_v43 = vpop.f32.mrb[41].mxu0  ;;  %v6802_v50 = vld [vmem:[#allocation2 + $0x1e9] sm:$0xff] }
 0x529   :  { %6675 = vst.msk [vmem:[#allocation2 + $0x219] sm:$0xff] %vm151_vm1, %v6523_v41  ;;  %v6522_v44 = vsel %vm6394_vm15, %v6330_v34, %v6458_v39  ;;  %v6332_v45 = vadd.f32 %v21794_v33, %v6102_v43  ;;  %v6801_v48 = vld [vmem:[#allocation2 + $0x1e1] sm:$0xff] }
 0x52a   :  { %6674 = vst.msk [vmem:[#allocation2 + $0x211] sm:$0xff] %vm151_vm1, %v6522_v44  ;;  %vm6397_vm2 = vcmp.gt.f32.partialorder %v6333_v42, 0.0  ;;  %v6461_v49 = vmul.f32 0.1, %v6333_v42  ;;  %17165 = vmatprep.mubr.msk.f32.mxu1 %vm151_vm1, %v6801_v48 }
 0x52b   :  { %vm6396_vm3 = vcmp.gt.f32.partialorder %v6332_v45, 0.0  ;;  %v6460_v51 = vmul.f32 0.1, %v6332_v45  ;;  %v17078_v52 = vpop.f32.mrb[42].mxu0  ;;  %17166 = vmatmul.mubr.msk.f32.gmra.mrb[36].mxu1 %vm151_vm1, %v6802_v50 }
 0x52c   :  { %v6525_v53 = vsel %vm6397_vm2, %v6333_v42, %v6461_v49  ;;  %v6335_v54 = vadd.f32 %v17078_v52, %v21794_v33  ;;  %v6112_v55 = vpop.f32.mrb[43].mxu0  ;;  %v6804_v61 = vld [vmem:[#allocation2 + $0x201] sm:$0xff] }
 0x52d   :  { %6677 = vst.msk [vmem:[#allocation2 + $0x231] sm:$0xff] %vm151_vm1, %v6525_v53  ;;  %v6524_v56 = vsel %vm6396_vm3, %v6332_v45, %v6460_v51  ;;  %v6334_v57 = vadd.f32 %v21794_v33, %v6112_v55  ;;  %v6803_v58 = vld [vmem:[#allocation2 + $0x1f9] sm:$0xff] }
 0x52e   :  { %6676 = vst.msk [vmem:[#allocation2 + $0x229] sm:$0xff] %vm151_vm1, %v6524_v56  ;;  %vm6399_vm4 = vcmp.gt.f32.partialorder %v6335_v54, 0.0  ;;  %v6463_v60 = vmul.f32 0.1, %v6335_v54  ;;  %17168 = vmatprep.mubr.msk.f32.mxu1 %vm151_vm1, %v6803_v58 }
 0x52f   :  { %vm6398_vm5 = vcmp.gt.f32.partialorder %v6334_v57, 0.0  ;;  %v6462_v62 = vmul.f32 0.1, %v6334_v57  ;;  %v17081_v63 = vpop.f32.mrb[44].mxu0  ;;  %17169 = vmatmul.mubr.msk.f32.gmra.mrb[38].mxu1 %vm151_vm1, %v6804_v61 }
 0x530   :  { %v6527_v0 = vsel %vm6399_vm4, %v6335_v54, %v6463_v60  ;;  %v6337_v1 = vadd.f32 %v17081_v63, %v21794_v33  ;;  %v6122_v6 = vpop.f32.mrb[45].mxu0  ;;  %v6806_v5 = vld [vmem:[#allocation2 + $0x219] sm:$0xff] }
 0x531   :  { %6679 = vst.msk [vmem:[#allocation2 + $0x249] sm:$0xff] %vm151_vm1, %v6527_v0  ;;  %v6526_v37 = vsel %vm6398_vm5, %v6334_v57, %v6462_v62  ;;  %v6336_v4 = vadd.f32 %v21794_v33, %v6122_v6  ;;  %v6805_v47 = vld [vmem:[#allocation2 + $0x211] sm:$0xff] }
 0x532   :  { %6678 = vst.msk [vmem:[#allocation2 + $0x241] sm:$0xff] %vm151_vm1, %v6526_v37  ;;  %vm6401_vm6 = vcmp.gt.f32.partialorder %v6337_v1, 0.0  ;;  %v6465_v8 = vmul.f32 0.1, %v6337_v1  ;;  %17171 = vmatprep.mubr.msk.f32.mxu1 %vm151_vm1, %v6805_v47 }
 0x533   :  { %vm6400_vm7 = vcmp.gt.f32.partialorder %v6336_v4, 0.0  ;;  %v6464_v7 = vmul.f32 0.1, %v6336_v4  ;;  %v17084_v3 = vpop.f32.mrb[46].mxu0  ;;  %17172 = vmatmul.mubr.msk.f32.gmra.mrb[40].mxu1 %vm151_vm1, %v6806_v5 }
 0x534   :  { %v6529_v46 = vsel %vm6401_vm6, %v6337_v1, %v6465_v8  ;;  %v6339_v14 = vadd.f32 %v17084_v3, %v21794_v33  ;;  %v6132_v12 = vpop.f32.mrb[47].mxu0  ;;  %v6808_v15 = vld [vmem:[#allocation2 + $0x231] sm:$0xff] }
 0x535   :  { %6681 = vst.msk [vmem:[#allocation2 + $0x261] sm:$0xff] %vm151_vm1, %v6529_v46  ;;  %v6528_v2 = vsel %vm6400_vm7, %v6336_v4, %v6464_v7  ;;  %v6338_v9 = vadd.f32 %v21794_v33, %v6132_v12  ;;  %v6807_v10 = vld [vmem:[#allocation2 + $0x229] sm:$0xff] }
 0x536   :  { %6680 = vst.msk [vmem:[#allocation2 + $0x259] sm:$0xff] %vm151_vm1, %v6528_v2  ;;  %vm6403_vm8 = vcmp.gt.f32.partialorder %v6339_v14, 0.0  ;;  %v6467_v13 = vmul.f32 0.1, %v6339_v14  ;;  %17174 = vmatprep.mubr.msk.f32.mxu1 %vm151_vm1, %v6807_v10 }
 0x537   :  { %vm6402_vm9 = vcmp.gt.f32.partialorder %v6338_v9, 0.0  ;;  %v6466_v16 = vmul.f32 0.1, %v6338_v9  ;;  %v17087_v17 = vpop.f32.mrb[48].mxu0  ;;  %17175 = vmatmul.mubr.msk.f32.gmra.mrb[42].mxu1 %vm151_vm1, %v6808_v15 }
 0x538   :  { %v6531_v18 = vsel %vm6403_vm8, %v6339_v14, %v6467_v13  ;;  %v6341_v19 = vadd.f32 %v17087_v17, %v21794_v33  ;;  %v6142_v20 = vpop.f32.mrb[49].mxu0  ;;  %v6810_v25 = vld [vmem:[#allocation2 + $0x249] sm:$0xff] }
 0x539   :  { %6683 = vst.msk [vmem:[#allocation2 + $0x279] sm:$0xff] %vm151_vm1, %v6531_v18  ;;  %v6530_v21 = vsel %vm6402_vm9, %v6338_v9, %v6466_v16  ;;  %v6340_v22 = vadd.f32 %v21794_v33, %v6142_v20  ;;  %v6809_v23 = vld [vmem:[#allocation2 + $0x241] sm:$0xff] }
 0x53a   :  { %6682 = vst.msk [vmem:[#allocation2 + $0x271] sm:$0xff] %vm151_vm1, %v6530_v21  ;;  %vm6405_vm10 = vcmp.gt.f32.partialorder %v6341_v19, 0.0  ;;  %v6469_v24 = vmul.f32 0.1, %v6341_v19  ;;  %17177 = vmatprep.mubr.msk.f32.mxu1 %vm151_vm1, %v6809_v23 }
 0x53b   :  { %vm6404_vm11 = vcmp.gt.f32.partialorder %v6340_v22, 0.0  ;;  %v6468_v26 = vmul.f32 0.1, %v6340_v22  ;;  %v17090_v27 = vpop.f32.mrb[50].mxu0  ;;  %17178 = vmatmul.mubr.msk.f32.gmra.mrb[44].mxu1 %vm151_vm1, %v6810_v25 }
 0x53c   :  { %v6533_v28 = vsel %vm6405_vm10, %v6341_v19, %v6469_v24  ;;  %v6343_v29 = vadd.f32 %v17090_v27, %v21794_v33  ;;  %v6152_v30 = vpop.f32.mrb[51].mxu0  ;;  %v6812_v35 = vld [vmem:[#allocation2 + $0x261] sm:$0xff] }
 0x53d   :  { %6685 = vst.msk [vmem:[#allocation2 + $0x291] sm:$0xff] %vm151_vm1, %v6533_v28  ;;  %v6532_v31 = vsel %vm6404_vm11, %v6340_v22, %v6468_v26  ;;  %v6342_v32 = vadd.f32 %v21794_v33, %v6152_v30  ;;  %v6811_v11 = vld [vmem:[#allocation2 + $0x259] sm:$0xff] }
 0x53e   :  { %6684 = vst.msk [vmem:[#allocation2 + $0x289] sm:$0xff] %vm151_vm1, %v6532_v31  ;;  %vm6407_vm12 = vcmp.gt.f32.partialorder %v6343_v29, 0.0  ;;  %v6471_v34 = vmul.f32 0.1, %v6343_v29  ;;  %17180 = vmatprep.mubr.msk.f32.mxu1 %vm151_vm1, %v6811_v11 }
 0x53f   :  { %vm6406_vm13 = vcmp.gt.f32.partialorder %v6342_v32, 0.0  ;;  %v6470_v38 = vmul.f32 0.1, %v6342_v32  ;;  %v17093_v36 = vpop.f32.mrb[52].mxu0  ;;  %17181 = vmatmul.mubr.msk.f32.gmra.mrb[46].mxu1 %vm151_vm1, %v6812_v35 }
 0x540   :  { %v6535_v39 = vsel %vm6407_vm12, %v6343_v29, %v6471_v34  ;;  %v6345_v40 = vadd.f32 %v17093_v36, %v21794_v33  ;;  %v6162_v41 = vpop.f32.mrb[53].mxu0  ;;  %v6814_v48 = vld [vmem:[#allocation2 + $0x279] sm:$0xff] }
 0x541   :  { %6687 = vst.msk [vmem:[#allocation2 + $0x2a9] sm:$0xff] %vm151_vm1, %v6535_v39  ;;  %v6534_v42 = vsel %vm6406_vm13, %v6342_v32, %v6470_v38  ;;  %v6344_v43 = vadd.f32 %v21794_v33, %v6162_v41  ;;  %v6813_v44 = vld [vmem:[#allocation2 + $0x271] sm:$0xff] }
 0x542   :  { %6686 = vst.msk [vmem:[#allocation2 + $0x2a1] sm:$0xff] %vm151_vm1, %v6534_v42  ;;  %vm6409_vm14 = vcmp.gt.f32.partialorder %v6345_v40, 0.0  ;;  %v6473_v45 = vmul.f32 0.1, %v6345_v40  ;;  %17183 = vmatprep.mubr.msk.f32.mxu1 %vm151_vm1, %v6813_v44  ;;  %v6701_v42 = vld [vmem:[#allocation2 + $0x8] sm:$0xff] }
 0x543   :  { %vm6408_vm15 = vcmp.gt.f32.partialorder %v6344_v43, 0.0  ;;  %v6472_v49 = vmul.f32 0.1, %v6344_v43  ;;  %v17096_v50 = vpop.f32.mrb[54].mxu0  ;;  %17184 = vmatmul.mubr.msk.f32.gmra.mrb[48].mxu1 %vm151_vm1, %v6814_v48  ;;  %v22000_v44 = vld [vmem:[%s23832_s3 + $0xc] sm:$0xf] }
 0x544   :  { %v6537_v51 = vsel %vm6409_vm14, %v6345_v40, %v6473_v45  ;;  %v6347_v52 = vadd.f32 %v17096_v50, %v21794_v33  ;;  %v6172_v53 = vpop.f32.mrb[55].mxu0  ;;  %v6816_v58 = vld [vmem:[#allocation2 + $0x291] sm:$0xff]  ;;  %v6700_v40 = vld [vmem:[#allocation2] sm:$0xff]  ;;  %v22020_v50 = vld [vmem:[#allocation2 + $0x48] sm:$0xff] }
 0x545   :  { %6689 = vst.msk [vmem:[#allocation2 + $0x2c1] sm:$0xff] %vm151_vm1, %v6537_v51  ;;  %v6536_v54 = vsel %vm6408_vm15, %v6344_v43, %v6472_v49  ;;  %v6346_v55 = vadd.f32 %v21794_v33, %v6172_v53  ;;  %v6815_v56 = vld [vmem:[#allocation2 + $0x289] sm:$0xff]  ;;  %v21995_v43 = vld [vmem:[#allocation2 + $0x18] sm:$0xff]  ;;  %v22008_v45 = vld [vmem:[#allocation2 + $0x20] sm:$0xff] }
 0x546   :  { %6688 = vst.msk [vmem:[#allocation2 + $0x2b9] sm:$0xff] %vm151_vm1, %v6536_v54  ;;  %vm6411_vm2 = vcmp.gt.f32.partialorder %v6347_v52, 0.0  ;;  %v6475_v57 = vmul.f32 0.1, %v6347_v52  ;;  %17186 = vmatprep.mubr.msk.f32.mxu1 %vm151_vm1, %v6815_v56  ;;  %v22012_v48 = vld [vmem:[#allocation2 + $0x30] sm:$0xff]  ;;  %v22016_v49 = vld [vmem:[#allocation2 + $0x38] sm:$0xff] }
 0x547   :  { %vm6410_vm3 = vcmp.gt.f32.partialorder %v6346_v55, 0.0  ;;  %v6474_v60 = vmul.f32 0.1, %v6346_v55  ;;  %v17099_v61 = vpop.f32.mrb[56].mxu0  ;;  %17187 = vmatmul.mubr.msk.f32.gmra.mrb[50].mxu1 %vm151_vm1, %v6816_v58  ;;  %v22028_v51 = vld [vmem:[#allocation2 + $0x60] sm:$0xff]  ;;  %v22036_v53 = vld [vmem:[#allocation2 + $0x78] sm:$0xff] }
 0x548   :  { %v6539_v62 = vsel %vm6411_vm2, %v6347_v52, %v6475_v57  ;;  %v6349_v63 = vadd.f32 %v17099_v61, %v21794_v33  ;;  %v6182_v0 = vpop.f32.mrb[57].mxu0  ;;  %v6818_v47 = vld [vmem:[#allocation2 + $0x2a9] sm:$0xff]  ;;  %v22040_v54 = vld [vmem:[#allocation2 + $0x80] sm:$0xff]  ;;  %v22048_v56 = vld [vmem:[#allocation2 + $0x98] sm:$0xff] }
 0x549   :  { %6691 = vst.msk [vmem:[#allocation2 + $0x2d9] sm:$0xff] %vm151_vm1, %v6539_v62  ;;  %v6538_v1 = vsel %vm6410_vm3, %v6346_v55, %v6474_v60  ;;  %v6348_v6 = vadd.f32 %v21794_v33, %v6182_v0  ;;  %v6817_v37 = vld [vmem:[#allocation2 + $0x2a1] sm:$0xff]  ;;  %v22044_v55 = vld [vmem:[#allocation2 + $0x90] sm:$0xff]  ;;  %v22068_v62 = vld [vmem:[#allocation2 + $0xd8] sm:$0xff] }
 0x54a   :  { %6690 = vst.msk [vmem:[#allocation2 + $0x2d1] sm:$0xff] %vm151_vm1, %v6538_v1  ;;  %vm6413_vm4 = vcmp.gt.f32.partialorder %v6349_v63, 0.0  ;;  %v6477_v4 = vmul.f32 0.1, %v6349_v63  ;;  %17189 = vmatprep.mubr.msk.f32.mxu1 %vm151_vm1, %v6817_v37  ;;  %v22032_v52 = vld [vmem:[#allocation2 + $0x68] sm:$0xff]  ;;  %v22056_v58 = vld [vmem:[#allocation2 + $0xb0] sm:$0xff] }
 0x54b   :  { %vm6412_vm5 = vcmp.gt.f32.partialorder %v6348_v6, 0.0  ;;  %v6476_v8 = vmul.f32 0.1, %v6348_v6  ;;  %v17102_v5 = vpop.f32.mrb[58].mxu0  ;;  %17190 = vmatmul.mubr.msk.f32.gmra.mrb[52].mxu1 %vm151_vm1, %v6818_v47  ;;  %v22052_v57 = vld [vmem:[#allocation2 + $0xa8] sm:$0xff]  ;;  %v22060_v60 = vld [vmem:[#allocation2 + $0xc0] sm:$0xff] }
 0x54c   :  { %v6541_v7 = vsel %vm6413_vm4, %v6349_v63, %v6477_v4  ;;  %v6351_v3 = vadd.f32 %v17102_v5, %v21794_v33  ;;  %v6192_v46 = vpop.f32.mrb[59].mxu0  ;;  %v6820_v10 = vld [vmem:[#allocation2 + $0x2c1] sm:$0xff]  ;;  %v22076_v0 = vld [vmem:[#allocation2 + $0xf0] sm:$0xff]  ;;  %v22080_v1 = vld [vmem:[#allocation2 + $0xf8] sm:$0xff] }
 0x54d   :  { %6693 = vst.msk [vmem:[#allocation2 + $0x2f1] sm:$0xff] %vm151_vm1, %v6541_v7  ;;  %v6540_v14 = vsel %vm6412_vm5, %v6348_v6, %v6476_v8  ;;  %v6350_v12 = vadd.f32 %v21794_v33, %v6192_v46  ;;  %v6819_v2 = vld [vmem:[#allocation2 + $0x2b9] sm:$0xff]  ;;  %v22064_v61 = vld [vmem:[#allocation2 + $0xc8] sm:$0xff]  ;;  %v22088_v37 = vld [vmem:[#allocation2 + $0x110] sm:$0xff] }
 0x54e   :  { %6692 = vst.msk [vmem:[#allocation2 + $0x2e9] sm:$0xff] %vm151_vm1, %v6540_v14  ;;  %vm6415_vm6 = vcmp.gt.f32.partialorder %v6351_v3, 0.0  ;;  %v6479_v9 = vmul.f32 0.1, %v6351_v3  ;;  %17192 = vmatprep.mubr.msk.f32.mxu1 %vm151_vm1, %v6819_v2  ;;  %v22072_v63 = vld [vmem:[#allocation2 + $0xe0] sm:$0xff]  ;;  %v22084_v6 = vld [vmem:[#allocation2 + $0x108] sm:$0xff] }
 0x54f   :  { %vm6414_vm7 = vcmp.gt.f32.partialorder %v6350_v12, 0.0  ;;  %v6478_v13 = vmul.f32 0.1, %v6350_v12  ;;  %v17105_v15 = vpop.f32.mrb[60].mxu0  ;;  %17193 = vmatmul.mubr.msk.f32.gmra.mrb[54].mxu1 %vm151_vm1, %v6820_v10  ;;  %v22092_v4 = vld [vmem:[#allocation2 + $0x120] sm:$0xff]  ;;  %v22096_v47 = vld [vmem:[#allocation2 + $0x128] sm:$0xff] }
 0x550   :  { %v6543_v16 = vsel %vm6415_vm6, %v6351_v3, %v6479_v9  ;;  %v6353_v17 = vadd.f32 %v17105_v15, %v21794_v33  ;;  %v6202_v18 = vpop.f32.mrb[61].mxu0  ;;  %v6822_v23 = vld [vmem:[#allocation2 + $0x2d9] sm:$0xff]  ;;  %v22108_v7 = vld [vmem:[#allocation2 + $0x150] sm:$0xff]  ;;  %v22116_v46 = vld [vmem:[#allocation2 + $0x168] sm:$0xff] }
 0x551   :  { %6695 = vst.msk [vmem:[#allocation2 + $0x309] sm:$0xff] %vm151_vm1, %v6543_v16  ;;  %v6542_v19 = vsel %vm6414_vm7, %v6350_v12, %v6478_v13  ;;  %v6352_v20 = vadd.f32 %v21794_v33, %v6202_v18  ;;  %v6821_v21 = vld [vmem:[#allocation2 + $0x2d1] sm:$0xff]  ;;  %v22104_v5 = vld [vmem:[#allocation2 + $0x140] sm:$0xff]  ;;  %v22126_v9 = vld [vmem:[#allocation2 + $0x1c8] sm:$0xff] }
 0x552   :  { %6694 = vst.msk [vmem:[#allocation2 + $0x301] sm:$0xff] %vm151_vm1, %v6542_v19  ;;  %vm6417_vm8 = vcmp.gt.f32.partialorder %v6353_v17, 0.0  ;;  %v6481_v22 = vmul.f32 0.1, %v6353_v17  ;;  %17195 = vmatprep.mubr.msk.f32.mxu1 %vm151_vm1, %v6821_v21  ;;  %v22100_v8 = vld [vmem:[#allocation2 + $0x138] sm:$0xff]  ;;  %v6732_v14 = vld [vmem:[#allocation2 + $0x1b0] sm:$0xff] }
 0x553   :  { %vm6416_vm9 = vcmp.gt.f32.partialorder %v6352_v20, 0.0  ;;  %v6480_v24 = vmul.f32 0.1, %v6352_v20  ;;  %v17108_v25 = vpop.f32.mrb[62].mxu0  ;;  %17196 = vmatmul.mubr.msk.f32.gmra.mrb[56].mxu1 %vm151_vm1, %v6822_v23  ;;  %v22112_v3 = vld [vmem:[#allocation2 + $0x158] sm:$0xff]  ;;  %v22120_v12 = vld [vmem:[#allocation2 + $0x170] sm:$0xff] }
 0x554   :  { %v6545_v26 = vsel %vm6417_vm8, %v6353_v17, %v6481_v22  ;;  %v6355_v27 = vadd.f32 %v17108_v25, %v21794_v33  ;;  %v6212_v28 = vpop.f32.mrb[63].mxu0  ;;  %v6824_v11 = vld [vmem:[#allocation2 + $0x2f1] sm:$0xff]  ;;  %v22134_v13 = vld [vmem:[#allocation2 + $0x1e0] sm:$0xff]  ;;  %v22138_v15 = vld [vmem:[#allocation2 + $0x1e8] sm:$0xff] }
 0x555   :  { %6697 = vst.msk [vmem:[#allocation2 + $0x321] sm:$0xff] %vm151_vm1, %v6545_v26  ;;  %v6544_v29 = vsel %vm6416_vm9, %v6352_v20, %v6480_v24  ;;  %v6354_v30 = vadd.f32 %v21794_v33, %v6212_v28  ;;  %v6823_v31 = vld [vmem:[#allocation2 + $0x2e9] sm:$0xff]  ;;  %v6733_v2 = vld [vmem:[#allocation2 + $0x1b8] sm:$0xff]  ;;  %v22146_v17 = vld [vmem:[#allocation2 + $0x200] sm:$0xff] }
 0x556   :  { %6696 = vst.msk [vmem:[#allocation2 + $0x319] sm:$0xff] %vm151_vm1, %v6544_v29  ;;  %vm6419_vm10 = vcmp.gt.f32.partialorder %v6355_v27, 0.0  ;;  %v6483_v32 = vmul.f32 0.1, %v6355_v27  ;;  %17198 = vmatprep.mubr.msk.f32.mxu1 %vm151_vm1, %v6823_v31  ;;  %v22130_v10 = vld [vmem:[#allocation2 + $0x1d0] sm:$0xff]  ;;  %v22142_v16 = vld [vmem:[#allocation2 + $0x1f8] sm:$0xff] }
 0x557   :  { %vm6418_vm11 = vcmp.gt.f32.partialorder %v6354_v30, 0.0  ;;  %v6482_v34 = vmul.f32 0.1, %v6354_v30  ;;  %17199 = vmatmul.mubr.msk.f32.gmra.mrb[58].mxu1 %vm151_vm1, %v6824_v11  ;;  %v22150_v18 = vld [vmem:[#allocation2 + $0x210] sm:$0xff]  ;;  %v22154_v19 = vld [vmem:[#allocation2 + $0x218] sm:$0xff]  ;;  %v22158_v20 = vld [vmem:[#allocation2 + $0x228] sm:$0xff] }
 0x558   :  { %v6547_v35 = vsel %vm6419_vm10, %v6355_v27, %v6483_v32  ;;  %v6826_v33 = vld [vmem:[#allocation2 + $0x309] sm:$0xff]  ;;  %v22166_v22 = vld [vmem:[#allocation2 + $0x240] sm:$0xff]  ;;  %v22174_v24 = vld [vmem:[#allocation2 + $0x258] sm:$0xff] }
 0x559   :  { %6699 = vst.msk [vmem:[#allocation2 + $0x339] sm:$0xff] %vm151_vm1, %v6547_v35  ;;  %v6546_v38 = vsel %vm6418_vm11, %v6354_v30, %v6482_v34  ;;  %v6825_v36 = vld [vmem:[#allocation2 + $0x301] sm:$0xff]  ;;  %v22162_v21 = vld [vmem:[#allocation2 + $0x230] sm:$0xff]  ;;  %v22186_v27 = vld [vmem:[#allocation2 + $0x278] sm:$0xff] }
 0x55a   :  { %6698 = vst.msk [vmem:[#allocation2 + $0x331] sm:$0xff] %vm151_vm1, %v6546_v38  ;;  %17201 = vmatprep.mubr.msk.f32.mxu1 %vm151_vm1, %v6825_v36  ;;  %v22170_v23 = vld [vmem:[#allocation2 + $0x248] sm:$0xff]  ;;  %v22178_v25 = vld [vmem:[#allocation2 + $0x260] sm:$0xff]  ;;  %v22182_v26 = vld [vmem:[#allocation2 + $0x270] sm:$0xff] }
 0x55b   :  { %17202 = vmatmul.mubr.msk.f32.gmra.mrb[60].mxu1 %vm151_vm1, %v6826_v33  ;;  %v22190_v28 = vld [vmem:[#allocation2 + $0x288] sm:$0xff]  ;;  %v22194_v29 = vld [vmem:[#allocation2 + $0x290] sm:$0xff]  ;;  %v22198_v30 = vld [vmem:[#allocation2 + $0x2a0] sm:$0xff] }
 0x55c   :  { %v6828_v41 = vld [vmem:[#allocation2 + $0x321] sm:$0xff]  ;;  %v22206_v32 = vld [vmem:[#allocation2 + $0x2b8] sm:$0xff]  ;;  %v22214_v34 = vld [vmem:[#allocation2 + $0x2d0] sm:$0xff] }
 0x55d   :  { %v6827_v39 = vld [vmem:[#allocation2 + $0x319] sm:$0xff]  ;;  %v22202_v31 = vld [vmem:[#allocation2 + $0x2a8] sm:$0xff]  ;;  %v22226_v36 = vld [vmem:[#allocation2 + $0x2f0] sm:$0xff] }
 0x55e   :  { %17204 = vmatprep.mubr.msk.f32.mxu1 %vm151_vm1, %v6827_v39  ;;  %v22210_v11 = vld [vmem:[#allocation2 + $0x2c0] sm:$0xff]  ;;  %v22218_v35 = vld [vmem:[#allocation2 + $0x2d8] sm:$0xff]  ;;  %v22222_v38 = vld [vmem:[#allocation2 + $0x2e8] sm:$0xff] }
 0x55f   :  { %17205 = vmatmul.mubr.msk.f32.gmra.mrb[62].mxu1 %vm151_vm1, %v6828_v41  ;;  %v22230_v33 = vld [vmem:[#allocation2 + $0x300] sm:$0xff]  ;;  %v22234_v39 = vld [vmem:[#allocation2 + $0x308] sm:$0xff] }
 0x560   :  { %17209 = vmatprep.mubr.msk.f32.mxu1 %vm151_vm1, %v6700_v40  ;;  %24125 = vst [vmem:[#allocation6_spill] sm:$0xff] %v22234_v39  ;;  %v22238_v40 = vld [vmem:[#allocation2 + $0x318] sm:$0xff]  ;;  %v7991_v41 = vld [vmem:[#allocation2 + $0x2] sm:$0xff] }
 0x561   :  { %24126 = vst [vmem:[#allocation7_spill] sm:$0xff] %v22238_v40 }
 0x563   :  { %17210 = vmatmul.mubr.msk.f32.vlgmr.msra.gmra.mrb[0].mxu1 %vm151_vm1, %v6701_v42  ;;  %v22242_v42 = vld [vmem:[#allocation2 + $0x320] sm:$0xff] }
 0x564   :  { %17212 = vmatprep.mubr.msk.f32.mxu1 %vm151_vm1, %v21995_v43  ;;  %17306 = vmatpush3.msk.msra.mxu1 %vm344_vm0, %v21809_v59  ;;  %v22024_v59 = vld [vmem:[#allocation2 + $0x50] sm:$0xff]  ;;  %24127 = vst [vmem:[#allocation8_spill] sm:$0xff] %v22242_v42 }
 0x565   :  { %17403 = vmatprep.subr.msk.mxu1 %vm344_vm0, %v22000_v44 }
 0x567   :  { %17213 = vmatmul.mubr.msk.f32.gmra.mrb[2].mxu1 %vm151_vm1, %v22008_v45 }
 0x568   :  { %17215 = vmatprep.mubr.msk.f32.mxu1 %vm151_vm1, %v22012_v48 }
 0x56b   :  { %17216 = vmatmul.mubr.msk.f32.gmra.mrb[4].mxu1 %vm151_vm1, %v22016_v49 }
 0x56c   :  { %17218 = vmatprep.mubr.msk.f32.mxu1 %vm151_vm1, %v22020_v50 }
 0x56f   :  { %17219 = vmatmul.mubr.msk.f32.gmra.mrb[6].mxu1 %vm151_vm1, %v22024_v59 }
 0x570   :  { %17221 = vmatprep.mubr.msk.f32.mxu1 %vm151_vm1, %v22028_v51 }
 0x573   :  { %17222 = vmatmul.mubr.msk.f32.gmra.mrb[8].mxu1 %vm151_vm1, %v22032_v52 }
 0x574   :  { %17224 = vmatprep.mubr.msk.f32.mxu1 %vm151_vm1, %v22036_v53 }
 0x577   :  { %17225 = vmatmul.mubr.msk.f32.gmra.mrb[10].mxu1 %vm151_vm1, %v22040_v54 }
 0x578   :  { %17227 = vmatprep.mubr.msk.f32.mxu1 %vm151_vm1, %v22044_v55 }
 0x57b   :  { %17228 = vmatmul.mubr.msk.f32.gmra.mrb[12].mxu1 %vm151_vm1, %v22048_v56 }
 0x57c   :  { %17230 = vmatprep.mubr.msk.f32.mxu1 %vm151_vm1, %v22052_v57 }
 0x57f   :  { %17231 = vmatmul.mubr.msk.f32.gmra.mrb[14].mxu1 %vm151_vm1, %v22056_v58 }
 0x580   :  { %17233 = vmatprep.mubr.msk.f32.mxu1 %vm151_vm1, %v22060_v60 }
 0x583   :  { %17234 = vmatmul.mubr.msk.f32.gmra.mrb[16].mxu1 %vm151_vm1, %v22064_v61 }
 0x584   :  { %17236 = vmatprep.mubr.msk.f32.mxu1 %vm151_vm1, %v22068_v62 }
 0x587   :  { %17237 = vmatmul.mubr.msk.f32.gmra.mrb[18].mxu1 %vm151_vm1, %v22072_v63 }
 0x588   :  { %17239 = vmatprep.mubr.msk.f32.mxu1 %vm151_vm1, %v22076_v0 }
 0x58b   :  { %17240 = vmatmul.mubr.msk.f32.gmra.mrb[20].mxu1 %vm151_vm1, %v22080_v1 }
 0x58c   :  { %17242 = vmatprep.mubr.msk.f32.mxu1 %vm151_vm1, %v22084_v6 }
 0x58f   :  { %17243 = vmatmul.mubr.msk.f32.gmra.mrb[22].mxu1 %vm151_vm1, %v22088_v37 }
 0x590   :  { %17245 = vmatprep.mubr.msk.f32.mxu1 %vm151_vm1, %v22092_v4 }
 0x593   :  { %17246 = vmatmul.mubr.msk.f32.gmra.mrb[24].mxu1 %vm151_vm1, %v22096_v47 }
 0x594   :  { %17248 = vmatprep.mubr.msk.f32.mxu1 %vm151_vm1, %v22100_v8 }
 0x597   :  { %17249 = vmatmul.mubr.msk.f32.gmra.mrb[26].mxu1 %vm151_vm1, %v22104_v5 }
 0x598   :  { %17251 = vmatprep.mubr.msk.f32.mxu1 %vm151_vm1, %v22108_v7 }
 0x59b   :  { %17252 = vmatmul.mubr.msk.f32.gmra.mrb[28].mxu1 %vm151_vm1, %v22112_v3 }
 0x59c   :  { %17254 = vmatprep.mubr.msk.f32.mxu1 %vm151_vm1, %v22116_v46 }
 0x59f   :  { %17255 = vmatmul.mubr.msk.f32.gmra.mrb[30].mxu1 %vm151_vm1, %v22120_v12 }
 0x5a0   :  { %17257 = vmatprep.mubr.msk.f32.mxu1 %vm151_vm1, %v6732_v14  ;;  %v7992_v14 = vld [vmem:[#allocation2 + $0xa] sm:$0xff] }
 0x5a3   :  { %17258 = vmatmul.mubr.msk.f32.gmra.mrb[32].mxu1 %vm151_vm1, %v6733_v2  ;;  %v22248_v2 = vld [vmem:[#allocation2 + $0x1a] sm:$0xff] }
 0x5a4   :  { %17260 = vmatprep.mubr.msk.f32.mxu1 %vm151_vm1, %v22126_v9  ;;  %24128 = vst [vmem:[#allocation9_spill] sm:$0xff] %v22248_v2 }
 0x5a7   :  { %17261 = vmatmul.mubr.msk.f32.gmra.mrb[34].mxu1 %vm151_vm1, %v22130_v10 }
 0x5a8   :  { %17263 = vmatprep.mubr.msk.f32.mxu1 %vm151_vm1, %v22134_v13 }
 0x5ab   :  { %17264 = vmatmul.mubr.msk.f32.gmra.mrb[36].mxu1 %vm151_vm1, %v22138_v15 }
 0x5ac   :  { %17266 = vmatprep.mubr.msk.f32.mxu1 %vm151_vm1, %v22142_v16 }
 0x5af   :  { %17267 = vmatmul.mubr.msk.f32.gmra.mrb[38].mxu1 %vm151_vm1, %v22146_v17 }
 0x5b0   :  { %17269 = vmatprep.mubr.msk.f32.mxu1 %vm151_vm1, %v22150_v18 }
 0x5b3   :  { %17270 = vmatmul.mubr.msk.f32.gmra.mrb[40].mxu1 %vm151_vm1, %v22154_v19 }
 0x5b4   :  { %17272 = vmatprep.mubr.msk.f32.mxu1 %vm151_vm1, %v22158_v20 }
 0x5b7   :  { %17273 = vmatmul.mubr.msk.f32.gmra.mrb[42].mxu1 %vm151_vm1, %v22162_v21 }
 0x5b8   :  { %17275 = vmatprep.mubr.msk.f32.mxu1 %vm151_vm1, %v22166_v22 }
 0x5bb   :  { %17276 = vmatmul.mubr.msk.f32.gmra.mrb[44].mxu1 %vm151_vm1, %v22170_v23 }
 0x5bc   :  { %17278 = vmatprep.mubr.msk.f32.mxu1 %vm151_vm1, %v22174_v24 }
 0x5bf   :  { %17279 = vmatmul.mubr.msk.f32.gmra.mrb[46].mxu1 %vm151_vm1, %v22178_v25 }
 0x5c0   :  { %17281 = vmatprep.mubr.msk.f32.mxu1 %vm151_vm1, %v22182_v26 }
 0x5c3   :  { %17282 = vmatmul.mubr.msk.f32.gmra.mrb[48].mxu1 %vm151_vm1, %v22186_v27 }
 0x5c4   :  { %17284 = vmatprep.mubr.msk.f32.mxu1 %vm151_vm1, %v22190_v28 }
 0x5c7   :  { %17285 = vmatmul.mubr.msk.f32.gmra.mrb[50].mxu1 %vm151_vm1, %v22194_v29 }
 0x5c8   :  { %17287 = vmatprep.mubr.msk.f32.mxu1 %vm151_vm1, %v22198_v30 }
 0x5cb   :  { %17288 = vmatmul.mubr.msk.f32.gmra.mrb[52].mxu1 %vm151_vm1, %v22202_v31 }
 0x5cc   :  { %17290 = vmatprep.mubr.msk.f32.mxu1 %vm151_vm1, %v22206_v32 }
 0x5cf   :  { %17291 = vmatmul.mubr.msk.f32.gmra.mrb[54].mxu1 %vm151_vm1, %v22210_v11 }
 0x5d0   :  { %17293 = vmatprep.mubr.msk.f32.mxu1 %vm151_vm1, %v22214_v34 }
 0x5d3   :  { %17294 = vmatmul.mubr.msk.f32.gmra.mrb[56].mxu1 %vm151_vm1, %v22218_v35 }
 0x5d4   :  { %17296 = vmatprep.mubr.msk.f32.mxu1 %vm151_vm1, %v22222_v38 }
 0x5d7   :  { %17297 = vmatmul.mubr.msk.f32.gmra.mrb[58].mxu1 %vm151_vm1, %v22226_v36 }
 0x5d8   :  { %17299 = vmatprep.mubr.msk.f32.mxu1 %vm151_vm1, %v22230_v33 }
 0x5db   :  { %17300 = vmatmul.mubr.msk.f32.gmra.mrb[60].mxu1 %vm151_vm1, %v22234_v39  ;;  %v22253_v39 = vld [vmem:[%s23832_s3 + $0x10] sm:$0xf] }
 0x5dc   :  { %17302 = vmatprep.mubr.msk.f32.mxu1 %vm151_vm1, %v22238_v40  ;;  %v22373_v40 = vld [vmem:[#allocation2 + $0x172] sm:$0xff] }
 0x5dd   :  { %24157 = vst [vmem:[#allocation38_spill] sm:$0xff] %v22373_v40 }
 0x5df   :  { %17303 = vmatmul.mubr.msk.f32.gmra.mrb[62].mxu1 %vm151_vm1, %v22242_v42  ;;  %v22269_v42 = vld [vmem:[#allocation2 + $0x3a] sm:$0xff] }
 0x5e0   :  { %17307 = vmatprep.mubr.msk.f32.mxu1 %vm151_vm1, %v7991_v41  ;;  %v22261_v41 = vld [vmem:[#allocation2 + $0x22] sm:$0xff]  ;;  %24131 = vst [vmem:[#allocation12_spill] sm:$0xff] %v22269_v42 }
 0x5e1   :  { %24129 = vst [vmem:[#allocation10_spill] sm:$0xff] %v22261_v41 }
 0x5e3   :  { %17308 = vmatmul.mubr.msk.f32.vlgmr.msra.gmra.mrb[0].mxu1 %vm151_vm1, %v7992_v14  ;;  %v22265_v14 = vld [vmem:[#allocation2 + $0x32] sm:$0xff] }
 0x5e4   :  { %17310 = vmatprep.mubr.msk.f32.mxu1 %vm151_vm1, %v22248_v2  ;;  %17404 = vmatpush3.msk.msra.mxu1 %vm344_vm0, %v22000_v44  ;;  %24130 = vst [vmem:[#allocation11_spill] sm:$0xff] %v22265_v14  ;;  %v22273_v2 = vld [vmem:[#allocation2 + $0x4a] sm:$0xff]  ;;  %v22277_v44 = vld [vmem:[#allocation2 + $0x52] sm:$0xff] }
 0x5e5   :  { %17501 = vmatprep.subr.msk.mxu1 %vm344_vm0, %v22253_v39  ;;  %24132 = vst [vmem:[#allocation13_spill] sm:$0xff] %v22273_v2  ;;  %24133 = vst [vmem:[#allocation14_spill] sm:$0xff] %v22277_v44 }
 0x5e7   :  { %17311 = vmatmul.mubr.msk.f32.gmra.mrb[2].mxu1 %vm151_vm1, %v22261_v41  ;;  %v22281_v41 = vld [vmem:[#allocation2 + $0x62] sm:$0xff] }
 0x5e8   :  { %17313 = vmatprep.mubr.msk.f32.mxu1 %vm151_vm1, %v22265_v14  ;;  %24134 = vst [vmem:[#allocation15_spill] sm:$0xff] %v22281_v41  ;;  %v22285_v14 = vld [vmem:[#allocation2 + $0x6a] sm:$0xff] }
 0x5e9   :  { %24135 = vst [vmem:[#allocation16_spill] sm:$0xff] %v22285_v14 }
 0x5eb   :  { %17314 = vmatmul.mubr.msk.f32.gmra.mrb[4].mxu1 %vm151_vm1, %v22269_v42  ;;  %v22289_v42 = vld [vmem:[#allocation2 + $0x7a] sm:$0xff] }
 0x5ec   :  { %17316 = vmatprep.mubr.msk.f32.mxu1 %vm151_vm1, %v22273_v2  ;;  %24136 = vst [vmem:[#allocation17_spill] sm:$0xff] %v22289_v42  ;;  %v22293_v2 = vld [vmem:[#allocation2 + $0x82] sm:$0xff] }
 0x5ed   :  { %24137 = vst [vmem:[#allocation18_spill] sm:$0xff] %v22293_v2 }
 0x5ef   :  { %17317 = vmatmul.mubr.msk.f32.gmra.mrb[6].mxu1 %vm151_vm1, %v22277_v44  ;;  %v22297_v44 = vld [vmem:[#allocation2 + $0x92] sm:$0xff] }
 0x5f0   :  { %17319 = vmatprep.mubr.msk.f32.mxu1 %vm151_vm1, %v22281_v41  ;;  %24138 = vst [vmem:[#allocation19_spill] sm:$0xff] %v22297_v44  ;;  %v22301_v41 = vld [vmem:[#allocation2 + $0x9a] sm:$0xff] }
 0x5f1   :  { %24139 = vst [vmem:[#allocation20_spill] sm:$0xff] %v22301_v41 }
 0x5f3   :  { %17320 = vmatmul.mubr.msk.f32.gmra.mrb[8].mxu1 %vm151_vm1, %v22285_v14  ;;  %v22305_v14 = vld [vmem:[#allocation2 + $0xaa] sm:$0xff] }
 0x5f4   :  { %17322 = vmatprep.mubr.msk.f32.mxu1 %vm151_vm1, %v22289_v42  ;;  %24140 = vst [vmem:[#allocation21_spill] sm:$0xff] %v22305_v14  ;;  %v22309_v42 = vld [vmem:[#allocation2 + $0xb2] sm:$0xff] }
 0x5f5   :  { %24141 = vst [vmem:[#allocation22_spill] sm:$0xff] %v22309_v42 }
 0x5f7   :  { %17323 = vmatmul.mubr.msk.f32.gmra.mrb[10].mxu1 %vm151_vm1, %v22293_v2  ;;  %v22313_v2 = vld [vmem:[#allocation2 + $0xc2] sm:$0xff] }
 0x5f8   :  { %17325 = vmatprep.mubr.msk.f32.mxu1 %vm151_vm1, %v22297_v44  ;;  %24142 = vst [vmem:[#allocation23_spill] sm:$0xff] %v22313_v2  ;;  %v22317_v44 = vld [vmem:[#allocation2 + $0xca] sm:$0xff] }
 0x5f9   :  { %24143 = vst [vmem:[#allocation24_spill] sm:$0xff] %v22317_v44 }
 0x5fb   :  { %17326 = vmatmul.mubr.msk.f32.gmra.mrb[12].mxu1 %vm151_vm1, %v22301_v41  ;;  %v22321_v41 = vld [vmem:[#allocation2 + $0xda] sm:$0xff] }
 0x5fc   :  { %17328 = vmatprep.mubr.msk.f32.mxu1 %vm151_vm1, %v22305_v14  ;;  %24144 = vst [vmem:[#allocation25_spill] sm:$0xff] %v22321_v41  ;;  %v22325_v14 = vld [vmem:[#allocation2 + $0xe2] sm:$0xff] }
 0x5fd   :  { %24145 = vst [vmem:[#allocation26_spill] sm:$0xff] %v22325_v14 }
 0x5ff   :  { %17329 = vmatmul.mubr.msk.f32.gmra.mrb[14].mxu1 %vm151_vm1, %v22309_v42  ;;  %v22329_v42 = vld [vmem:[#allocation2 + $0xf2] sm:$0xff] }
 0x600   :  { %17331 = vmatprep.mubr.msk.f32.mxu1 %vm151_vm1, %v22313_v2  ;;  %24146 = vst [vmem:[#allocation27_spill] sm:$0xff] %v22329_v42  ;;  %v22333_v2 = vld [vmem:[#allocation2 + $0xfa] sm:$0xff] }
 0x601   :  { %24147 = vst [vmem:[#allocation28_spill] sm:$0xff] %v22333_v2 }
 0x603   :  { %17332 = vmatmul.mubr.msk.f32.gmra.mrb[16].mxu1 %vm151_vm1, %v22317_v44  ;;  %v22337_v44 = vld [vmem:[#allocation2 + $0x10a] sm:$0xff] }
 0x604   :  { %17334 = vmatprep.mubr.msk.f32.mxu1 %vm151_vm1, %v22321_v41  ;;  %24148 = vst [vmem:[#allocation29_spill] sm:$0xff] %v22337_v44  ;;  %v22341_v41 = vld [vmem:[#allocation2 + $0x112] sm:$0xff] }
 0x605   :  { %24149 = vst [vmem:[#allocation30_spill] sm:$0xff] %v22341_v41 }
 0x607   :  { %17335 = vmatmul.mubr.msk.f32.gmra.mrb[18].mxu1 %vm151_vm1, %v22325_v14  ;;  %v22345_v14 = vld [vmem:[#allocation2 + $0x122] sm:$0xff] }
 0x608   :  { %17337 = vmatprep.mubr.msk.f32.mxu1 %vm151_vm1, %v22329_v42  ;;  %24150 = vst [vmem:[#allocation31_spill] sm:$0xff] %v22345_v14  ;;  %v22349_v42 = vld [vmem:[#allocation2 + $0x12a] sm:$0xff] }
 0x609   :  { %24151 = vst [vmem:[#allocation32_spill] sm:$0xff] %v22349_v42 }
 0x60b   :  { %17338 = vmatmul.mubr.msk.f32.gmra.mrb[20].mxu1 %vm151_vm1, %v22333_v2  ;;  %v22353_v2 = vld [vmem:[#allocation2 + $0x13a] sm:$0xff] }
 0x60c   :  { %17340 = vmatprep.mubr.msk.f32.mxu1 %vm151_vm1, %v22337_v44  ;;  %24152 = vst [vmem:[#allocation33_spill] sm:$0xff] %v22353_v2  ;;  %v22357_v44 = vld [vmem:[#allocation2 + $0x142] sm:$0xff] }
 0x60d   :  { %24153 = vst [vmem:[#allocation34_spill] sm:$0xff] %v22357_v44 }
 0x60f   :  { %17341 = vmatmul.mubr.msk.f32.gmra.mrb[22].mxu1 %vm151_vm1, %v22341_v41  ;;  %v22361_v41 = vld [vmem:[#allocation2 + $0x152] sm:$0xff] }
 0x610   :  { %17343 = vmatprep.mubr.msk.f32.mxu1 %vm151_vm1, %v22345_v14  ;;  %24154 = vst [vmem:[#allocation35_spill] sm:$0xff] %v22361_v41  ;;  %v22365_v14 = vld [vmem:[#allocation2 + $0x15a] sm:$0xff] }
 0x611   :  { %24155 = vst [vmem:[#allocation36_spill] sm:$0xff] %v22365_v14 }
 0x613   :  { %17344 = vmatmul.mubr.msk.f32.gmra.mrb[24].mxu1 %vm151_vm1, %v22349_v42  ;;  %v22369_v42 = vld [vmem:[#allocation2 + $0x16a] sm:$0xff] }
 0x614   :  { %17346 = vmatprep.mubr.msk.f32.mxu1 %vm151_vm1, %v22353_v2  ;;  %24156 = vst [vmem:[#allocation37_spill] sm:$0xff] %v22369_v42  ;;  %v8023_v2 = vld [vmem:[#allocation2 + $0x1b2] sm:$0xff] }
 0x617   :  { %17347 = vmatmul.mubr.msk.f32.gmra.mrb[26].mxu1 %vm151_vm1, %v22357_v44  ;;  %v8024_v44 = vld [vmem:[#allocation2 + $0x1ba] sm:$0xff] }
 0x618   :  { %17349 = vmatprep.mubr.msk.f32.mxu1 %vm151_vm1, %v22361_v41  ;;  %v22379_v41 = vld [vmem:[#allocation2 + $0x1ca] sm:$0xff] }
 0x61b   :  { %17350 = vmatmul.mubr.msk.f32.gmra.mrb[28].mxu1 %vm151_vm1, %v22365_v14  ;;  %v22383_v14 = vld [vmem:[#allocation2 + $0x1d2] sm:$0xff] }
 0x61c   :  { %17352 = vmatprep.mubr.msk.f32.mxu1 %vm151_vm1, %v22369_v42  ;;  %24158 = vst [vmem:[#allocation39_spill] sm:$0xff] %v22383_v14  ;;  %v22387_v42 = vld [vmem:[#allocation2 + $0x1e2] sm:$0xff] }
 0x61d   :  { %24159 = vst [vmem:[#allocation40_spill] sm:$0xff] %v22387_v42 }
 0x61f   :  { %17353 = vmatmul.mubr.msk.f32.gmra.mrb[30].mxu1 %vm151_vm1, %v22373_v40  ;;  %v22391_v40 = vld [vmem:[#allocation2 + $0x1ea] sm:$0xff] }
 0x620   :  { %17355 = vmatprep.mubr.msk.f32.mxu1 %vm151_vm1, %v8023_v2  ;;  %24160 = vst [vmem:[#allocation41_spill] sm:$0xff] %v22391_v40  ;;  %v22395_v2 = vld [vmem:[#allocation2 + $0x1fa] sm:$0xff] }
 0x621   :  { %24161 = vst [vmem:[#allocation42_spill] sm:$0xff] %v22395_v2 }
 0x623   :  { %17356 = vmatmul.mubr.msk.f32.gmra.mrb[32].mxu1 %vm151_vm1, %v8024_v44  ;;  %v22399_v44 = vld [vmem:[#allocation2 + $0x202] sm:$0xff] }
 0x624   :  { %17358 = vmatprep.mubr.msk.f32.mxu1 %vm151_vm1, %v22379_v41  ;;  %24162 = vst [vmem:[#allocation43_spill] sm:$0xff] %v22399_v44 }
 0x627   :  { %17359 = vmatmul.mubr.msk.f32.gmra.mrb[34].mxu1 %vm151_vm1, %v22383_v14  ;;  %v22403_v14 = vld [vmem:[#allocation2 + $0x212] sm:$0xff] }
 0x628   :  { %17361 = vmatprep.mubr.msk.f32.mxu1 %vm151_vm1, %v22387_v42  ;;  %24163 = vst [vmem:[#allocation44_spill] sm:$0xff] %v22403_v14  ;;  %v22407_v42 = vld [vmem:[#allocation2 + $0x21a] sm:$0xff] }
 0x629   :  { %24164 = vst [vmem:[#allocation45_spill] sm:$0xff] %v22407_v42 }
 0x62b   :  { %17362 = vmatmul.mubr.msk.f32.gmra.mrb[36].mxu1 %vm151_vm1, %v22391_v40  ;;  %v22411_v40 = vld [vmem:[#allocation2 + $0x22a] sm:$0xff] }
 0x62c   :  { %17364 = vmatprep.mubr.msk.f32.mxu1 %vm151_vm1, %v22395_v2  ;;  %24165 = vst [vmem:[#allocation46_spill] sm:$0xff] %v22411_v40  ;;  %v22415_v2 = vld [vmem:[#allocation2 + $0x232] sm:$0xff] }
 0x62d   :  { %24166 = vst [vmem:[#allocation47_spill] sm:$0xff] %v22415_v2 }
 0x62f   :  { %17365 = vmatmul.mubr.msk.f32.gmra.mrb[38].mxu1 %vm151_vm1, %v22399_v44  ;;  %v22419_v44 = vld [vmem:[#allocation2 + $0x242] sm:$0xff] }
 0x630   :  { %17367 = vmatprep.mubr.msk.f32.mxu1 %vm151_vm1, %v22403_v14  ;;  %24167 = vst [vmem:[#allocation48_spill] sm:$0xff] %v22419_v44  ;;  %v22423_v14 = vld [vmem:[#allocation2 + $0x24a] sm:$0xff] }
 0x631   :  { %24168 = vst [vmem:[#allocation49_spill] sm:$0xff] %v22423_v14 }
 0x633   :  { %17368 = vmatmul.mubr.msk.f32.gmra.mrb[40].mxu1 %vm151_vm1, %v22407_v42  ;;  %v22427_v42 = vld [vmem:[#allocation2 + $0x25a] sm:$0xff] }
 0x634   :  { %17370 = vmatprep.mubr.msk.f32.mxu1 %vm151_vm1, %v22411_v40  ;;  %24169 = vst [vmem:[#allocation50_spill] sm:$0xff] %v22427_v42  ;;  %v22431_v40 = vld [vmem:[#allocation2 + $0x262] sm:$0xff] }
 0x635   :  { %24170 = vst [vmem:[#allocation51_spill] sm:$0xff] %v22431_v40 }
 0x637   :  { %17371 = vmatmul.mubr.msk.f32.gmra.mrb[42].mxu1 %vm151_vm1, %v22415_v2  ;;  %v22435_v2 = vld [vmem:[#allocation2 + $0x272] sm:$0xff] }
 0x638   :  { %17373 = vmatprep.mubr.msk.f32.mxu1 %vm151_vm1, %v22419_v44  ;;  %24171 = vst [vmem:[#allocation52_spill] sm:$0xff] %v22435_v2  ;;  %v22439_v44 = vld [vmem:[#allocation2 + $0x27a] sm:$0xff] }
 0x639   :  { %24172 = vst [vmem:[#allocation53_spill] sm:$0xff] %v22439_v44 }
 0x63b   :  { %17374 = vmatmul.mubr.msk.f32.gmra.mrb[44].mxu1 %vm151_vm1, %v22423_v14  ;;  %v22443_v14 = vld [vmem:[#allocation2 + $0x28a] sm:$0xff] }
 0x63c   :  { %17376 = vmatprep.mubr.msk.f32.mxu1 %vm151_vm1, %v22427_v42  ;;  %24173 = vst [vmem:[#allocation54_spill] sm:$0xff] %v22443_v14  ;;  %v22447_v42 = vld [vmem:[#allocation2 + $0x292] sm:$0xff] }
 0x63d   :  { %24174 = vst [vmem:[#allocation55_spill] sm:$0xff] %v22447_v42 }
 0x63f   :  { %17377 = vmatmul.mubr.msk.f32.gmra.mrb[46].mxu1 %vm151_vm1, %v22431_v40  ;;  %v22451_v40 = vld [vmem:[#allocation2 + $0x2a2] sm:$0xff] }
 0x640   :  { %17379 = vmatprep.mubr.msk.f32.mxu1 %vm151_vm1, %v22435_v2  ;;  %24175 = vst [vmem:[#allocation56_spill] sm:$0xff] %v22451_v40  ;;  %v22455_v2 = vld [vmem:[#allocation2 + $0x2aa] sm:$0xff] }
 0x641   :  { %24176 = vst [vmem:[#allocation57_spill] sm:$0xff] %v22455_v2 }
 0x643   :  { %17380 = vmatmul.mubr.msk.f32.gmra.mrb[48].mxu1 %vm151_vm1, %v22439_v44  ;;  %v22459_v44 = vld [vmem:[#allocation2 + $0x2ba] sm:$0xff] }
 0x644   :  { %17382 = vmatprep.mubr.msk.f32.mxu1 %vm151_vm1, %v22443_v14  ;;  %24177 = vst [vmem:[#allocation58_spill] sm:$0xff] %v22459_v44  ;;  %v22463_v14 = vld [vmem:[#allocation2 + $0x2c2] sm:$0xff] }
 0x645   :  { %24178 = vst [vmem:[#allocation59_spill] sm:$0xff] %v22463_v14 }
 0x647   :  { %17383 = vmatmul.mubr.msk.f32.gmra.mrb[50].mxu1 %vm151_vm1, %v22447_v42  ;;  %v22467_v42 = vld [vmem:[#allocation2 + $0x2d2] sm:$0xff] }
 0x648   :  { %17385 = vmatprep.mubr.msk.f32.mxu1 %vm151_vm1, %v22451_v40  ;;  %24179 = vst [vmem:[#allocation60_spill] sm:$0xff] %v22467_v42  ;;  %v22471_v40 = vld [vmem:[#allocation2 + $0x2da] sm:$0xff] }
 0x649   :  { %24180 = vst [vmem:[#allocation3_spill] sm:$0xff] %v22471_v40 }
 0x64b   :  { %17386 = vmatmul.mubr.msk.f32.gmra.mrb[52].mxu1 %vm151_vm1, %v22455_v2  ;;  %v22475_v2 = vld [vmem:[#allocation2 + $0x2ea] sm:$0xff] }
 0x64c   :  { %17388 = vmatprep.mubr.msk.f32.mxu1 %vm151_vm1, %v22459_v44  ;;  %24181 = vst [vmem:[#allocation61_spill] sm:$0xff] %v22475_v2  ;;  %v22479_v44 = vld [vmem:[#allocation2 + $0x2f2] sm:$0xff] }
 0x64f   :  { %17389 = vmatmul.mubr.msk.f32.gmra.mrb[54].mxu1 %vm151_vm1, %v22463_v14  ;;  %v22483_v14 = vld [vmem:[#allocation2 + $0x302] sm:$0xff] }
 0x650   :  { %17391 = vmatprep.mubr.msk.f32.mxu1 %vm151_vm1, %v22467_v42  ;;  %v22487_v42 = vld [vmem:[#allocation2 + $0x30a] sm:$0xff] }
 0x651   :  { %24182 = vst [vmem:[#allocation62_spill] sm:$0xff] %v22487_v42 }
 0x653   :  { %17392 = vmatmul.mubr.msk.f32.gmra.mrb[56].mxu1 %vm151_vm1, %v22471_v40  ;;  %v22491_v40 = vld [vmem:[#allocation2 + $0x31a] sm:$0xff] }
 0x654   :  { %17394 = vmatprep.mubr.msk.f32.mxu1 %vm151_vm1, %v22475_v2  ;;  %v22495_v2 = vld [vmem:[#allocation2 + $0x322] sm:$0xff] }
 0x657   :  { %17395 = vmatmul.mubr.msk.f32.gmra.mrb[58].mxu1 %vm151_vm1, %v22479_v44 }
 0x658   :  { %17397 = vmatprep.mubr.msk.f32.mxu1 %vm151_vm1, %v22483_v14 }
 0x65b   :  { %17398 = vmatmul.mubr.msk.f32.gmra.mrb[60].mxu1 %vm151_vm1, %v22487_v42  ;;  %v22506_v42 = vld [vmem:[%s23832_s3 + $0x14] sm:$0xf] }
 0x65c   :  { %17400 = vmatprep.mubr.msk.f32.mxu1 %vm151_vm1, %v22491_v40 }
 0x65f   :  { %17401 = vmatmul.mubr.msk.f32.gmra.mrb[62].mxu1 %vm151_vm1, %v22495_v2 }
 0x660   :  { %17405 = vmatprep.mubr.msk.f32.mxu1 %vm151_vm1, %v21995_v43  ;;  %v22568_v43 = vld [vmem:[#allocation2 + $0x180] sm:$0xff] }
 0x663   :  { %17406 = vmatmul.mubr.msk.f32.vlgmr.msra.gmra.mrb[0].mxu1 %vm151_vm1, %v22008_v45  ;;  %v22572_v45 = vld [vmem:[#allocation2 + $0x188] sm:$0xff] }
 0x664   :  { %17408 = vmatprep.mubr.msk.f32.mxu1 %vm151_vm1, %v22012_v48  ;;  %17502 = vmatpush3.msk.msra.mxu1 %vm344_vm0, %v22253_v39  ;;  %v24183_v48 = vld [vmem:[#allocation6_spill] sm:$0xff] }
 0x665   :  { %17599 = vmatprep.subr.msk.mxu1 %vm344_vm0, %v22506_v42  ;;  %v22837_v39 = vld [vmem:[#allocation2 + $0x291] sm:$0xff] }
 0x667   :  { %17409 = vmatmul.mubr.msk.f32.gmra.mrb[2].mxu1 %vm151_vm1, %v22016_v49  ;;  %v24184_v49 = vld [vmem:[#allocation7_spill] sm:$0xff] }
 0x668   :  { %17411 = vmatprep.mubr.msk.f32.mxu1 %vm151_vm1, %v22020_v50  ;;  %v24185_v50 = vld [vmem:[#allocation8_spill] sm:$0xff] }
 0x66b   :  { %17412 = vmatmul.mubr.msk.f32.gmra.mrb[4].mxu1 %vm151_vm1, %v22024_v59  ;;  %v22636_v59 = vld [vmem:[#allocation2 + $0x330] sm:$0xff] }
 0x66c   :  { %17414 = vmatprep.mubr.msk.f32.mxu1 %vm151_vm1, %v22028_v51  ;;  %v22640_v51 = vld [vmem:[#allocation2 + $0x338] sm:$0xff] }
 0x66f   :  { %17415 = vmatmul.mubr.msk.f32.gmra.mrb[6].mxu1 %vm151_vm1, %v22032_v52  ;;  %v9411_v52 = vld [vmem:[#allocation2 + $0x19] sm:$0xff] }
 0x670   :  { %17417 = vmatprep.mubr.msk.f32.mxu1 %vm151_vm1, %v22036_v53  ;;  %v9412_v53 = vld [vmem:[#allocation2 + $0x21] sm:$0xff] }
 0x673   :  { %17418 = vmatmul.mubr.msk.f32.gmra.mrb[8].mxu1 %vm151_vm1, %v22040_v54  ;;  %v22646_v54 = vld [vmem:[#allocation2 + $0x31] sm:$0xff] }
 0x674   :  { %17420 = vmatprep.mubr.msk.f32.mxu1 %vm151_vm1, %v22044_v55  ;;  %v22651_v55 = vld [vmem:[%s23832_s3 + $0x18] sm:$0xf] }
 0x677   :  { %17421 = vmatmul.mubr.msk.f32.gmra.mrb[10].mxu1 %vm151_vm1, %v22048_v56  ;;  %v22659_v56 = vld [vmem:[#allocation2 + $0x39] sm:$0xff] }
 0x678   :  { %17423 = vmatprep.mubr.msk.f32.mxu1 %vm151_vm1, %v22052_v57  ;;  %v22663_v57 = vld [vmem:[#allocation2 + $0x49] sm:$0xff] }
 0x67b   :  { %17424 = vmatmul.mubr.msk.f32.gmra.mrb[12].mxu1 %vm151_vm1, %v22056_v58  ;;  %v22667_v58 = vld [vmem:[#allocation2 + $0x51] sm:$0xff] }
 0x67c   :  { %17426 = vmatprep.mubr.msk.f32.mxu1 %vm151_vm1, %v22060_v60  ;;  %v22671_v60 = vld [vmem:[#allocation2 + $0x61] sm:$0xff] }
 0x67f   :  { %17427 = vmatmul.mubr.msk.f32.gmra.mrb[14].mxu1 %vm151_vm1, %v22064_v61  ;;  %v22675_v61 = vld [vmem:[#allocation2 + $0x69] sm:$0xff] }
 0x680   :  { %17429 = vmatprep.mubr.msk.f32.mxu1 %vm151_vm1, %v22068_v62  ;;  %v22679_v62 = vld [vmem:[#allocation2 + $0x79] sm:$0xff] }
 0x683   :  { %17430 = vmatmul.mubr.msk.f32.gmra.mrb[16].mxu1 %vm151_vm1, %v22072_v63  ;;  %v22683_v63 = vld [vmem:[#allocation2 + $0x81] sm:$0xff] }
 0x684   :  { %17432 = vmatprep.mubr.msk.f32.mxu1 %vm151_vm1, %v22076_v0  ;;  %v22687_v0 = vld [vmem:[#allocation2 + $0x91] sm:$0xff] }
 0x687   :  { %17433 = vmatmul.mubr.msk.f32.gmra.mrb[18].mxu1 %vm151_vm1, %v22080_v1  ;;  %v22691_v1 = vld [vmem:[#allocation2 + $0x99] sm:$0xff] }
 0x688   :  { %17435 = vmatprep.mubr.msk.f32.mxu1 %vm151_vm1, %v22084_v6  ;;  %v22695_v6 = vld [vmem:[#allocation2 + $0xa9] sm:$0xff] }
 0x68b   :  { %17436 = vmatmul.mubr.msk.f32.gmra.mrb[20].mxu1 %vm151_vm1, %v22088_v37  ;;  %v22699_v37 = vld [vmem:[#allocation2 + $0xb1] sm:$0xff] }
 0x68c   :  { %17438 = vmatprep.mubr.msk.f32.mxu1 %vm151_vm1, %v22092_v4  ;;  %v22703_v4 = vld [vmem:[#allocation2 + $0xc1] sm:$0xff] }
 0x68f   :  { %17439 = vmatmul.mubr.msk.f32.gmra.mrb[22].mxu1 %vm151_vm1, %v22096_v47  ;;  %v22707_v47 = vld [vmem:[#allocation2 + $0xc9] sm:$0xff] }
 0x690   :  { %17441 = vmatprep.mubr.msk.f32.mxu1 %vm151_vm1, %v22100_v8  ;;  %v22711_v8 = vld [vmem:[#allocation2 + $0xd9] sm:$0xff] }
 0x693   :  { %17442 = vmatmul.mubr.msk.f32.gmra.mrb[24].mxu1 %vm151_vm1, %v22104_v5  ;;  %v22715_v5 = vld [vmem:[#allocation2 + $0xe1] sm:$0xff] }
 0x694   :  { %17444 = vmatprep.mubr.msk.f32.mxu1 %vm151_vm1, %v22108_v7  ;;  %v22719_v7 = vld [vmem:[#allocation2 + $0xf1] sm:$0xff] }
 0x697   :  { %17445 = vmatmul.mubr.msk.f32.gmra.mrb[26].mxu1 %vm151_vm1, %v22112_v3  ;;  %v22723_v3 = vld [vmem:[#allocation2 + $0xf9] sm:$0xff] }
 0x698   :  { %17447 = vmatprep.mubr.msk.f32.mxu1 %vm151_vm1, %v22116_v46  ;;  %v22727_v46 = vld [vmem:[#allocation2 + $0x109] sm:$0xff] }
 0x69b   :  { %17448 = vmatmul.mubr.msk.f32.gmra.mrb[28].mxu1 %vm151_vm1, %v22120_v12  ;;  %v22731_v12 = vld [vmem:[#allocation2 + $0x111] sm:$0xff] }
 0x69c   :  { %17450 = vmatprep.mubr.msk.f32.mxu1 %vm151_vm1, %v22568_v43 }
 0x69f   :  { %17451 = vmatmul.mubr.msk.f32.gmra.mrb[30].mxu1 %vm151_vm1, %v22572_v45 }
 0x6a0   :  { %17453 = vmatprep.mubr.msk.f32.mxu1 %vm151_vm1, %v22126_v9  ;;  %v22735_v9 = vld [vmem:[#allocation2 + $0x121] sm:$0xff] }
 0x6a3   :  { %17454 = vmatmul.mubr.msk.f32.gmra.mrb[32].mxu1 %vm151_vm1, %v22130_v10  ;;  %v22739_v10 = vld [vmem:[#allocation2 + $0x129] sm:$0xff] }
 0x6a4   :  { %17456 = vmatprep.mubr.msk.f32.mxu1 %vm151_vm1, %v22134_v13  ;;  %v22743_v13 = vld [vmem:[#allocation2 + $0x139] sm:$0xff] }
 0x6a7   :  { %17457 = vmatmul.mubr.msk.f32.gmra.mrb[34].mxu1 %vm151_vm1, %v22138_v15  ;;  %v22747_v15 = vld [vmem:[#allocation2 + $0x141] sm:$0xff] }
 0x6a8   :  { %17459 = vmatprep.mubr.msk.f32.mxu1 %vm151_vm1, %v22142_v16  ;;  %v22751_v16 = vld [vmem:[#allocation2 + $0x151] sm:$0xff] }
 0x6ab   :  { %17460 = vmatmul.mubr.msk.f32.gmra.mrb[36].mxu1 %vm151_vm1, %v22146_v17  ;;  %v22755_v17 = vld [vmem:[#allocation2 + $0x159] sm:$0xff] }
 0x6ac   :  { %17462 = vmatprep.mubr.msk.f32.mxu1 %vm151_vm1, %v22150_v18  ;;  %v22759_v18 = vld [vmem:[#allocation2 + $0x169] sm:$0xff] }
 0x6af   :  { %17463 = vmatmul.mubr.msk.f32.gmra.mrb[38].mxu1 %vm151_vm1, %v22154_v19  ;;  %v22763_v19 = vld [vmem:[#allocation2 + $0x171] sm:$0xff] }
 0x6b0   :  { %17465 = vmatprep.mubr.msk.f32.mxu1 %vm151_vm1, %v22158_v20  ;;  %v22767_v20 = vld [vmem:[#allocation2 + $0x181] sm:$0xff] }
 0x6b3   :  { %17466 = vmatmul.mubr.msk.f32.gmra.mrb[40].mxu1 %vm151_vm1, %v22162_v21  ;;  %v22771_v21 = vld [vmem:[#allocation2 + $0x189] sm:$0xff] }
 0x6b4   :  { %17468 = vmatprep.mubr.msk.f32.mxu1 %vm151_vm1, %v22166_v22  ;;  %v9443_v22 = vld [vmem:[#allocation2 + $0x1c9] sm:$0xff] }
 0x6b7   :  { %17469 = vmatmul.mubr.msk.f32.gmra.mrb[42].mxu1 %vm151_vm1, %v22170_v23  ;;  %v9444_v23 = vld [vmem:[#allocation2 + $0x1d1] sm:$0xff] }
 0x6b8   :  { %17471 = vmatprep.mubr.msk.f32.mxu1 %vm151_vm1, %v22174_v24  ;;  %v22777_v24 = vld [vmem:[#allocation2 + $0x1e1] sm:$0xff] }
 0x6bb   :  { %17472 = vmatmul.mubr.msk.f32.gmra.mrb[44].mxu1 %vm151_vm1, %v22178_v25  ;;  %v22781_v25 = vld [vmem:[#allocation2 + $0x1e9] sm:$0xff] }
 0x6bc   :  { %17474 = vmatprep.mubr.msk.f32.mxu1 %vm151_vm1, %v22182_v26  ;;  %v22785_v26 = vld [vmem:[#allocation2 + $0x1f9] sm:$0xff] }
 0x6bf   :  { %17475 = vmatmul.mubr.msk.f32.gmra.mrb[46].mxu1 %vm151_vm1, %v22186_v27  ;;  %v22789_v27 = vld [vmem:[#allocation2 + $0x201] sm:$0xff] }
 0x6c0   :  { %17477 = vmatprep.mubr.msk.f32.mxu1 %vm151_vm1, %v22190_v28  ;;  %v22793_v28 = vld [vmem:[#allocation2 + $0x211] sm:$0xff] }
 0x6c3   :  { %17478 = vmatmul.mubr.msk.f32.gmra.mrb[48].mxu1 %vm151_vm1, %v22194_v29  ;;  %v22797_v29 = vld [vmem:[#allocation2 + $0x219] sm:$0xff] }
 0x6c4   :  { %17480 = vmatprep.mubr.msk.f32.mxu1 %vm151_vm1, %v22198_v30  ;;  %v22801_v30 = vld [vmem:[#allocation2 + $0x229] sm:$0xff] }
 0x6c7   :  { %17481 = vmatmul.mubr.msk.f32.gmra.mrb[50].mxu1 %vm151_vm1, %v22202_v31  ;;  %v22805_v31 = vld [vmem:[#allocation2 + $0x231] sm:$0xff] }
 0x6c8   :  { %17483 = vmatprep.mubr.msk.f32.mxu1 %vm151_vm1, %v22206_v32  ;;  %v22809_v32 = vld [vmem:[#allocation2 + $0x241] sm:$0xff] }
 0x6cb   :  { %17484 = vmatmul.mubr.msk.f32.gmra.mrb[52].mxu1 %vm151_vm1, %v22210_v11  ;;  %v22813_v11 = vld [vmem:[#allocation2 + $0x249] sm:$0xff] }
 0x6cc   :  { %17486 = vmatprep.mubr.msk.f32.mxu1 %vm151_vm1, %v22214_v34  ;;  %v22817_v34 = vld [vmem:[#allocation2 + $0x259] sm:$0xff] }
 0x6cf   :  { %17487 = vmatmul.mubr.msk.f32.gmra.mrb[54].mxu1 %vm151_vm1, %v22218_v35  ;;  %v22821_v35 = vld [vmem:[#allocation2 + $0x261] sm:$0xff] }
 0x6d0   :  { %17489 = vmatprep.mubr.msk.f32.mxu1 %vm151_vm1, %v22222_v38  ;;  %v22825_v38 = vld [vmem:[#allocation2 + $0x271] sm:$0xff] }
 0x6d3   :  { %17490 = vmatmul.mubr.msk.f32.gmra.mrb[56].mxu1 %vm151_vm1, %v22226_v36  ;;  %v22829_v36 = vld [vmem:[#allocation2 + $0x279] sm:$0xff] }
 0x6d4   :  { %17492 = vmatprep.mubr.msk.f32.mxu1 %vm151_vm1, %v22230_v33  ;;  %v22833_v33 = vld [vmem:[#allocation2 + $0x289] sm:$0xff] }
 0x6d7   :  { %17493 = vmatmul.mubr.msk.f32.gmra.mrb[58].mxu1 %vm151_vm1, %v24183_v48  ;;  %v22845_v48 = vld [vmem:[#allocation2 + $0x2a9] sm:$0xff] }
 0x6d8   :  { %17495 = vmatprep.mubr.msk.f32.mxu1 %vm151_vm1, %v24184_v49  ;;  %24187 = vst [vmem:[#allocation64_spill] sm:$0xff] %v22845_v48  ;;  %v22849_v49 = vld [vmem:[#allocation2 + $0x2b9] sm:$0xff] }
 0x6d9   :  { %24188 = vst [vmem:[#allocation65_spill] sm:$0xff] %v22849_v49 }
 0x6db   :  { %17496 = vmatmul.mubr.msk.f32.gmra.mrb[60].mxu1 %vm151_vm1, %v24185_v50  ;;  %v22853_v50 = vld [vmem:[#allocation2 + $0x2c1] sm:$0xff] }
 0x6dc   :  { %17498 = vmatprep.mubr.msk.f32.mxu1 %vm151_vm1, %v22636_v59  ;;  %24189 = vst [vmem:[#allocation66_spill] sm:$0xff] %v22853_v50 }
 0x6df   :  { %17499 = vmatmul.mubr.msk.f32.gmra.mrb[62].mxu1 %vm151_vm1, %v22640_v51 }
 0x6e0   :  { %17503 = vmatprep.mubr.msk.f32.mxu1 %vm151_vm1, %v9411_v52  ;;  %v22857_v52 = vld [vmem:[#allocation2 + $0x2d1] sm:$0xff] }
 0x6e1   :  { %24190 = vst [vmem:[#allocation67_spill] sm:$0xff] %v22857_v52 }
 0x6e3   :  { %17504 = vmatmul.mubr.msk.f32.vlgmr.msra.gmra.mrb[0].mxu1 %vm151_vm1, %v9412_v53  ;;  %v22861_v53 = vld [vmem:[#allocation2 + $0x2d9] sm:$0xff] }
 0x6e4   :  { %17506 = vmatprep.mubr.msk.f32.mxu1 %vm151_vm1, %v22646_v54  ;;  %17600 = vmatpush3.msk.msra.mxu1 %vm344_vm0, %v22506_v42  ;;  %v22841_v42 = vld [vmem:[#allocation2 + $0x2a1] sm:$0xff]  ;;  %24191 = vst [vmem:[#allocation68_spill] sm:$0xff] %v22861_v53 }
 0x6e5   :  { %17697 = vmatprep.subr.msk.mxu1 %vm344_vm0, %v22651_v55  ;;  %24186 = vst [vmem:[#allocation63_spill] sm:$0xff] %v22841_v42 }
 0x6e7   :  { %17507 = vmatmul.mubr.msk.f32.gmra.mrb[2].mxu1 %vm151_vm1, %v22659_v56 }
 0x6e8   :  { %17509 = vmatprep.mubr.msk.f32.mxu1 %vm151_vm1, %v22663_v57 }
 0x6eb   :  { %17510 = vmatmul.mubr.msk.f32.gmra.mrb[4].mxu1 %vm151_vm1, %v22667_v58 }
 0x6ec   :  { %17512 = vmatprep.mubr.msk.f32.mxu1 %vm151_vm1, %v22671_v60 }
 0x6ef   :  { %17513 = vmatmul.mubr.msk.f32.gmra.mrb[6].mxu1 %vm151_vm1, %v22675_v61 }
 0x6f0   :  { %17515 = vmatprep.mubr.msk.f32.mxu1 %vm151_vm1, %v22679_v62 }
 0x6f3   :  { %17516 = vmatmul.mubr.msk.f32.gmra.mrb[8].mxu1 %vm151_vm1, %v22683_v63 }
 0x6f4   :  { %17518 = vmatprep.mubr.msk.f32.mxu1 %vm151_vm1, %v22687_v0 }
 0x6f7   :  { %17519 = vmatmul.mubr.msk.f32.gmra.mrb[10].mxu1 %vm151_vm1, %v22691_v1 }
 0x6f8   :  { %17521 = vmatprep.mubr.msk.f32.mxu1 %vm151_vm1, %v22695_v6 }
 0x6fb   :  { %17522 = vmatmul.mubr.msk.f32.gmra.mrb[12].mxu1 %vm151_vm1, %v22699_v37 }
 0x6fc   :  { %17524 = vmatprep.mubr.msk.f32.mxu1 %vm151_vm1, %v22703_v4 }
 0x6ff   :  { %17525 = vmatmul.mubr.msk.f32.gmra.mrb[14].mxu1 %vm151_vm1, %v22707_v47 }
 0x700   :  { %17527 = vmatprep.mubr.msk.f32.mxu1 %vm151_vm1, %v22711_v8 }
 0x703   :  { %17528 = vmatmul.mubr.msk.f32.gmra.mrb[16].mxu1 %vm151_vm1, %v22715_v5 }
 0x704   :  { %17530 = vmatprep.mubr.msk.f32.mxu1 %vm151_vm1, %v22719_v7 }
 0x707   :  { %17531 = vmatmul.mubr.msk.f32.gmra.mrb[18].mxu1 %vm151_vm1, %v22723_v3 }
 0x708   :  { %17533 = vmatprep.mubr.msk.f32.mxu1 %vm151_vm1, %v22727_v46 }
 0x70b   :  { %17534 = vmatmul.mubr.msk.f32.gmra.mrb[20].mxu1 %vm151_vm1, %v22731_v12 }
 0x70c   :  { %17536 = vmatprep.mubr.msk.f32.mxu1 %vm151_vm1, %v22735_v9 }
 0x70f   :  { %17537 = vmatmul.mubr.msk.f32.gmra.mrb[22].mxu1 %vm151_vm1, %v22739_v10 }
 0x710   :  { %17539 = vmatprep.mubr.msk.f32.mxu1 %vm151_vm1, %v22743_v13 }
 0x713   :  { %17540 = vmatmul.mubr.msk.f32.gmra.mrb[24].mxu1 %vm151_vm1, %v22747_v15 }
 0x714   :  { %17542 = vmatprep.mubr.msk.f32.mxu1 %vm151_vm1, %v22751_v16 }
 0x717   :  { %17543 = vmatmul.mubr.msk.f32.gmra.mrb[26].mxu1 %vm151_vm1, %v22755_v17 }
 0x718   :  { %17545 = vmatprep.mubr.msk.f32.mxu1 %vm151_vm1, %v22759_v18 }
 0x71b   :  { %17546 = vmatmul.mubr.msk.f32.gmra.mrb[28].mxu1 %vm151_vm1, %v22763_v19 }
 0x71c   :  { %17548 = vmatprep.mubr.msk.f32.mxu1 %vm151_vm1, %v22767_v20 }
 0x71f   :  { %17549 = vmatmul.mubr.msk.f32.gmra.mrb[30].mxu1 %vm151_vm1, %v22771_v21 }
 0x720   :  { %17551 = vmatprep.mubr.msk.f32.mxu1 %vm151_vm1, %v9443_v22  ;;  %v22865_v22 = vld [vmem:[#allocation2 + $0x2e9] sm:$0xff] }
 0x721   :  { %24192 = vst [vmem:[#allocation69_spill] sm:$0xff] %v22865_v22 }
 0x723   :  { %17552 = vmatmul.mubr.msk.f32.gmra.mrb[32].mxu1 %vm151_vm1, %v9444_v23  ;;  %v22869_v23 = vld [vmem:[#allocation2 + $0x2f1] sm:$0xff] }
 0x724   :  { %17554 = vmatprep.mubr.msk.f32.mxu1 %vm151_vm1, %v22777_v24  ;;  %24193 = vst [vmem:[#allocation70_spill] sm:$0xff] %v22869_v23 }
 0x727   :  { %17555 = vmatmul.mubr.msk.f32.gmra.mrb[34].mxu1 %vm151_vm1, %v22781_v25 }
 0x728   :  { %17557 = vmatprep.mubr.msk.f32.mxu1 %vm151_vm1, %v22785_v26 }
 0x72b   :  { %17558 = vmatmul.mubr.msk.f32.gmra.mrb[36].mxu1 %vm151_vm1, %v22789_v27 }
 0x72c   :  { %17560 = vmatprep.mubr.msk.f32.mxu1 %vm151_vm1, %v22793_v28 }
 0x72f   :  { %17561 = vmatmul.mubr.msk.f32.gmra.mrb[38].mxu1 %vm151_vm1, %v22797_v29 }
 0x730   :  { %17563 = vmatprep.mubr.msk.f32.mxu1 %vm151_vm1, %v22801_v30 }
 0x733   :  { %17564 = vmatmul.mubr.msk.f32.gmra.mrb[40].mxu1 %vm151_vm1, %v22805_v31 }
 0x734   :  { %17566 = vmatprep.mubr.msk.f32.mxu1 %vm151_vm1, %v22809_v32 }
 0x737   :  { %17567 = vmatmul.mubr.msk.f32.gmra.mrb[42].mxu1 %vm151_vm1, %v22813_v11 }
 0x738   :  { %17569 = vmatprep.mubr.msk.f32.mxu1 %vm151_vm1, %v22817_v34 }
 0x73b   :  { %17570 = vmatmul.mubr.msk.f32.gmra.mrb[44].mxu1 %vm151_vm1, %v22821_v35 }
 0x73c   :  { %17572 = vmatprep.mubr.msk.f32.mxu1 %vm151_vm1, %v22825_v38 }
 0x73f   :  { %17573 = vmatmul.mubr.msk.f32.gmra.mrb[46].mxu1 %vm151_vm1, %v22829_v36 }
 0x740   :  { %17575 = vmatprep.mubr.msk.f32.mxu1 %vm151_vm1, %v22833_v33 }
 0x743   :  { %17576 = vmatmul.mubr.msk.f32.gmra.mrb[48].mxu1 %vm151_vm1, %v22837_v39 }
 0x744   :  { %17578 = vmatprep.mubr.msk.f32.mxu1 %vm151_vm1, %v22841_v42  ;;  %v24210_v42 = vld [vmem:[#allocation19_spill] sm:$0xff] }
 0x747   :  { %17579 = vmatmul.mubr.msk.f32.gmra.mrb[50].mxu1 %vm151_vm1, %v22845_v48  ;;  %v24207_v48 = vld [vmem:[#allocation16_spill] sm:$0xff] }
 0x748   :  { %17581 = vmatprep.mubr.msk.f32.mxu1 %vm151_vm1, %v22849_v49  ;;  %v24201_v49 = vld [vmem:[#allocation10_spill] sm:$0xff] }
 0x74b   :  { %17582 = vmatmul.mubr.msk.f32.gmra.mrb[52].mxu1 %vm151_vm1, %v22853_v50  ;;  %v22873_v50 = vld [vmem:[#allocation2 + $0x301] sm:$0xff] }
 0x74c   :  { %17584 = vmatprep.mubr.msk.f32.mxu1 %vm151_vm1, %v22857_v52  ;;  %24194 = vst [vmem:[#allocation71_spill] sm:$0xff] %v22873_v50  ;;  %v22877_v52 = vld [vmem:[#allocation2 + $0x309] sm:$0xff] }
 0x74d   :  { %24195 = vst [vmem:[#allocation4_spill] sm:$0xff] %v22877_v52 }
 0x74f   :  { %17585 = vmatmul.mubr.msk.f32.gmra.mrb[54].mxu1 %vm151_vm1, %v22861_v53  ;;  %v22881_v53 = vld [vmem:[#allocation2 + $0x319] sm:$0xff] }
 0x750   :  { %17587 = vmatprep.mubr.msk.f32.mxu1 %vm151_vm1, %v22865_v22  ;;  %24196 = vst [vmem:[#allocation5_spill] sm:$0xff] %v22881_v53  ;;  %v22885_v22 = vld [vmem:[#allocation2 + $0x321] sm:$0xff] }
 0x751   :  { %24197 = vst [vmem:[#allocation6_spill] sm:$0xff] %v22885_v22 }
 0x753   :  { %17588 = vmatmul.mubr.msk.f32.gmra.mrb[56].mxu1 %vm151_vm1, %v22869_v23  ;;  %v22889_v23 = vld [vmem:[#allocation2 + $0x331] sm:$0xff] }
 0x754   :  { %17590 = vmatprep.mubr.msk.f32.mxu1 %vm151_vm1, %v22873_v50  ;;  %24198 = vst [vmem:[#allocation7_spill] sm:$0xff] %v22889_v23  ;;  %v22893_v50 = vld [vmem:[#allocation2 + $0x339] sm:$0xff] }
 0x755   :  { %24199 = vst [vmem:[#allocation8_spill] sm:$0xff] %v22893_v50 }
 0x757   :  { %17591 = vmatmul.mubr.msk.f32.gmra.mrb[58].mxu1 %vm151_vm1, %v22877_v52  ;;  %v24200_v52 = vld [vmem:[#allocation9_spill] sm:$0xff] }
 0x758   :  { %17593 = vmatprep.mubr.msk.f32.mxu1 %vm151_vm1, %v22881_v53  ;;  %v24202_v53 = vld [vmem:[#allocation11_spill] sm:$0xff] }
 0x75b   :  { %17594 = vmatmul.mubr.msk.f32.gmra.mrb[60].mxu1 %vm151_vm1, %v22885_v22  ;;  %v22904_v22 = vld [vmem:[%s23832_s3 + $0x1c] sm:$0xf] }
 0x75c   :  { %17596 = vmatprep.mubr.msk.f32.mxu1 %vm151_vm1, %v22889_v23  ;;  %v24206_v23 = vld [vmem:[#allocation15_spill] sm:$0xff] }
 0x75f   :  { %17597 = vmatmul.mubr.msk.f32.gmra.mrb[62].mxu1 %vm151_vm1, %v22893_v50  ;;  %v24203_v50 = vld [vmem:[#allocation12_spill] sm:$0xff] }
 0x760   :  { %17601 = vmatprep.mubr.msk.f32.mxu1 %vm151_vm1, %v24200_v52  ;;  %v24204_v52 = vld [vmem:[#allocation13_spill] sm:$0xff] }
 0x763   :  { %17602 = vmatmul.mubr.msk.f32.vlgmr.msra.gmra.mrb[0].mxu1 %vm151_vm1, %v24201_v49  ;;  %v24205_v49 = vld [vmem:[#allocation14_spill] sm:$0xff] }
 0x764   :  { %17604 = vmatprep.mubr.msk.f32.mxu1 %vm151_vm1, %v24202_v53  ;;  %17698 = vmatpush3.msk.msra.mxu1 %vm344_vm0, %v22651_v55  ;;  %v24208_v53 = vld [vmem:[#allocation17_spill] sm:$0xff]  ;;  %v24209_v55 = vld [vmem:[#allocation18_spill] sm:$0xff] }
 0x765   :  { %17795 = vmatprep.subr.msk.mxu1 %vm344_vm0, %v22904_v22 }
 0x767   :  { %17605 = vmatmul.mubr.msk.f32.gmra.mrb[2].mxu1 %vm151_vm1, %v24203_v50  ;;  %v24211_v50 = vld [vmem:[#allocation20_spill] sm:$0xff] }
 0x768   :  { %17607 = vmatprep.mubr.msk.f32.mxu1 %vm151_vm1, %v24204_v52  ;;  %v24212_v52 = vld [vmem:[#allocation21_spill] sm:$0xff] }
 0x76b   :  { %17608 = vmatmul.mubr.msk.f32.gmra.mrb[4].mxu1 %vm151_vm1, %v24205_v49  ;;  %v24213_v49 = vld [vmem:[#allocation22_spill] sm:$0xff] }
 0x76c   :  { %17610 = vmatprep.mubr.msk.f32.mxu1 %vm151_vm1, %v24206_v23  ;;  %v24214_v23 = vld [vmem:[#allocation23_spill] sm:$0xff] }
 0x76f   :  { %17611 = vmatmul.mubr.msk.f32.gmra.mrb[6].mxu1 %vm151_vm1, %v24207_v48  ;;  %v24215_v48 = vld [vmem:[#allocation24_spill] sm:$0xff] }
 0x770   :  { %17613 = vmatprep.mubr.msk.f32.mxu1 %vm151_vm1, %v24208_v53  ;;  %v24216_v53 = vld [vmem:[#allocation25_spill] sm:$0xff] }
 0x773   :  { %17614 = vmatmul.mubr.msk.f32.gmra.mrb[8].mxu1 %vm151_vm1, %v24209_v55  ;;  %v24217_v55 = vld [vmem:[#allocation26_spill] sm:$0xff] }
 0x774   :  { %17616 = vmatprep.mubr.msk.f32.mxu1 %vm151_vm1, %v24210_v42  ;;  %v24218_v42 = vld [vmem:[#allocation27_spill] sm:$0xff] }
 0x777   :  { %17617 = vmatmul.mubr.msk.f32.gmra.mrb[10].mxu1 %vm151_vm1, %v24211_v50  ;;  %v24219_v50 = vld [vmem:[#allocation28_spill] sm:$0xff] }
 0x778   :  { %17619 = vmatprep.mubr.msk.f32.mxu1 %vm151_vm1, %v24212_v52  ;;  %v24220_v52 = vld [vmem:[#allocation29_spill] sm:$0xff] }
 0x77b   :  { %17620 = vmatmul.mubr.msk.f32.gmra.mrb[12].mxu1 %vm151_vm1, %v24213_v49  ;;  %v24221_v49 = vld [vmem:[#allocation30_spill] sm:$0xff] }
 0x77c   :  { %17622 = vmatprep.mubr.msk.f32.mxu1 %vm151_vm1, %v24214_v23  ;;  %v24222_v23 = vld [vmem:[#allocation31_spill] sm:$0xff] }
 0x77f   :  { %17623 = vmatmul.mubr.msk.f32.gmra.mrb[14].mxu1 %vm151_vm1, %v24215_v48  ;;  %v24223_v48 = vld [vmem:[#allocation32_spill] sm:$0xff] }
 0x780   :  { %17625 = vmatprep.mubr.msk.f32.mxu1 %vm151_vm1, %v24216_v53  ;;  %v24224_v53 = vld [vmem:[#allocation33_spill] sm:$0xff] }
 0x783   :  { %17626 = vmatmul.mubr.msk.f32.gmra.mrb[16].mxu1 %vm151_vm1, %v24217_v55  ;;  %v24225_v55 = vld [vmem:[#allocation34_spill] sm:$0xff] }
 0x784   :  { %17628 = vmatprep.mubr.msk.f32.mxu1 %vm151_vm1, %v24218_v42  ;;  %v24226_v42 = vld [vmem:[#allocation35_spill] sm:$0xff] }
 0x787   :  { %17629 = vmatmul.mubr.msk.f32.gmra.mrb[18].mxu1 %vm151_vm1, %v24219_v50  ;;  %v24227_v50 = vld [vmem:[#allocation36_spill] sm:$0xff] }
 0x788   :  { %17631 = vmatprep.mubr.msk.f32.mxu1 %vm151_vm1, %v24220_v52  ;;  %v24228_v52 = vld [vmem:[#allocation37_spill] sm:$0xff] }
 0x78b   :  { %17632 = vmatmul.mubr.msk.f32.gmra.mrb[20].mxu1 %vm151_vm1, %v24221_v49  ;;  %v24229_v49 = vld [vmem:[#allocation38_spill] sm:$0xff] }
 0x78c   :  { %17634 = vmatprep.mubr.msk.f32.mxu1 %vm151_vm1, %v24222_v23  ;;  %v22966_v23 = vld [vmem:[#allocation2 + $0x182] sm:$0xff] }
 0x78f   :  { %17635 = vmatmul.mubr.msk.f32.gmra.mrb[22].mxu1 %vm151_vm1, %v24223_v48  ;;  %v22970_v48 = vld [vmem:[#allocation2 + $0x18a] sm:$0xff] }
 0x790   :  { %17637 = vmatprep.mubr.msk.f32.mxu1 %vm151_vm1, %v24224_v53  ;;  %24230 = vst [vmem:[#allocation9_spill] sm:$0xff] %v22970_v48  ;;  %v24231_v53 = vld [vmem:[#allocation39_spill] sm:$0xff] }
 0x793   :  { %17638 = vmatmul.mubr.msk.f32.gmra.mrb[24].mxu1 %vm151_vm1, %v24225_v55  ;;  %v24232_v55 = vld [vmem:[#allocation40_spill] sm:$0xff] }
 0x794   :  { %17640 = vmatprep.mubr.msk.f32.mxu1 %vm151_vm1, %v24226_v42  ;;  %v24233_v42 = vld [vmem:[#allocation41_spill] sm:$0xff] }
 0x797   :  { %17641 = vmatmul.mubr.msk.f32.gmra.mrb[26].mxu1 %vm151_vm1, %v24227_v50  ;;  %v24234_v50 = vld [vmem:[#allocation42_spill] sm:$0xff] }
 0x798   :  { %17643 = vmatprep.mubr.msk.f32.mxu1 %vm151_vm1, %v24228_v52  ;;  %v24235_v52 = vld [vmem:[#allocation43_spill] sm:$0xff] }
 0x79b   :  { %17644 = vmatmul.mubr.msk.f32.gmra.mrb[28].mxu1 %vm151_vm1, %v24229_v49  ;;  %v24236_v49 = vld [vmem:[#allocation44_spill] sm:$0xff] }
 0x79c   :  { %17646 = vmatprep.mubr.msk.f32.mxu1 %vm151_vm1, %v22966_v23 }
 0x79f   :  { %17647 = vmatmul.mubr.msk.f32.gmra.mrb[30].mxu1 %vm151_vm1, %v22970_v48  ;;  %v24237_v48 = vld [vmem:[#allocation45_spill] sm:$0xff] }
 0x7a0   :  { %17649 = vmatprep.mubr.msk.f32.mxu1 %vm151_vm1, %v22379_v41  ;;  %v24238_v41 = vld [vmem:[#allocation46_spill] sm:$0xff] }
 0x7a3   :  { %17650 = vmatmul.mubr.msk.f32.gmra.mrb[32].mxu1 %vm151_vm1, %v24231_v53  ;;  %v24239_v53 = vld [vmem:[#allocation47_spill] sm:$0xff] }
 0x7a4   :  { %17652 = vmatprep.mubr.msk.f32.mxu1 %vm151_vm1, %v24232_v55  ;;  %v24240_v55 = vld [vmem:[#allocation48_spill] sm:$0xff] }
 0x7a7   :  { %17653 = vmatmul.mubr.msk.f32.gmra.mrb[34].mxu1 %vm151_vm1, %v24233_v42  ;;  %v24241_v42 = vld [vmem:[#allocation49_spill] sm:$0xff] }
 0x7a8   :  { %17655 = vmatprep.mubr.msk.f32.mxu1 %vm151_vm1, %v24234_v50  ;;  %v24242_v50 = vld [vmem:[#allocation50_spill] sm:$0xff] }
 0x7ab   :  { %17656 = vmatmul.mubr.msk.f32.gmra.mrb[36].mxu1 %vm151_vm1, %v24235_v52  ;;  %v24243_v52 = vld [vmem:[#allocation51_spill] sm:$0xff] }
 0x7ac   :  { %17658 = vmatprep.mubr.msk.f32.mxu1 %vm151_vm1, %v24236_v49  ;;  %v24244_v49 = vld [vmem:[#allocation52_spill] sm:$0xff] }
 0x7af   :  { %17659 = vmatmul.mubr.msk.f32.gmra.mrb[38].mxu1 %vm151_vm1, %v24237_v48  ;;  %v24245_v48 = vld [vmem:[#allocation53_spill] sm:$0xff] }
 0x7b0   :  { %17661 = vmatprep.mubr.msk.f32.mxu1 %vm151_vm1, %v24238_v41  ;;  %v24246_v41 = vld [vmem:[#allocation54_spill] sm:$0xff] }
 0x7b3   :  { %17662 = vmatmul.mubr.msk.f32.gmra.mrb[40].mxu1 %vm151_vm1, %v24239_v53  ;;  %v24247_v53 = vld [vmem:[#allocation55_spill] sm:$0xff] }
 0x7b4   :  { %17664 = vmatprep.mubr.msk.f32.mxu1 %vm151_vm1, %v24240_v55  ;;  %v24248_v55 = vld [vmem:[#allocation56_spill] sm:$0xff] }
 0x7b7   :  { %17665 = vmatmul.mubr.msk.f32.gmra.mrb[42].mxu1 %vm151_vm1, %v24241_v42  ;;  %v24249_v42 = vld [vmem:[#allocation57_spill] sm:$0xff] }
 0x7b8   :  { %17667 = vmatprep.mubr.msk.f32.mxu1 %vm151_vm1, %v24242_v50  ;;  %v24250_v50 = vld [vmem:[#allocation58_spill] sm:$0xff] }
 0x7bb   :  { %17668 = vmatmul.mubr.msk.f32.gmra.mrb[44].mxu1 %vm151_vm1, %v24243_v52  ;;  %v24251_v52 = vld [vmem:[#allocation59_spill] sm:$0xff] }
 0x7bc   :  { %17670 = vmatprep.mubr.msk.f32.mxu1 %vm151_vm1, %v24244_v49  ;;  %v24252_v49 = vld [vmem:[#allocation60_spill] sm:$0xff] }
 0x7bf   :  { %17671 = vmatmul.mubr.msk.f32.gmra.mrb[46].mxu1 %vm151_vm1, %v24245_v48  ;;  %v24253_v48 = vld [vmem:[#allocation3_spill] sm:$0xff] }
 0x7c0   :  { %17673 = vmatprep.mubr.msk.f32.mxu1 %vm151_vm1, %v24246_v41  ;;  %v24254_v41 = vld [vmem:[#allocation61_spill] sm:$0xff] }
 0x7c3   :  { %17674 = vmatmul.mubr.msk.f32.gmra.mrb[48].mxu1 %vm151_vm1, %v24247_v53  ;;  %v24255_v53 = vld [vmem:[#allocation62_spill] sm:$0xff] }
 0x7c4   :  { %17676 = vmatprep.mubr.msk.f32.mxu1 %vm151_vm1, %v24248_v55  ;;  %v23034_v55 = vld [vmem:[#allocation2 + $0x332] sm:$0xff] }
 0x7c7   :  { %17677 = vmatmul.mubr.msk.f32.gmra.mrb[50].mxu1 %vm151_vm1, %v24249_v42  ;;  %v23038_v42 = vld [vmem:[#allocation2 + $0x33a] sm:$0xff] }
 0x7c8   :  { %17679 = vmatprep.mubr.msk.f32.mxu1 %vm151_vm1, %v24250_v50  ;;  %v10835_v50 = vld [vmem:[#allocation2 + $0x50] sm:$0xff] }
 0x7cb   :  { %17680 = vmatmul.mubr.msk.f32.gmra.mrb[52].mxu1 %vm151_vm1, %v24251_v52  ;;  %v10836_v52 = vld [vmem:[#allocation2 + $0x60] sm:$0xff] }
 0x7cc   :  { %17682 = vmatprep.mubr.msk.f32.mxu1 %vm151_vm1, %v24252_v49  ;;  %v10837_v49 = vld [vmem:[#allocation2 + $0x68] sm:$0xff] }
 0x7cf   :  { %17683 = vmatmul.mubr.msk.f32.gmra.mrb[54].mxu1 %vm151_vm1, %v24253_v48  ;;  %v10838_v48 = vld [vmem:[#allocation2 + $0x78] sm:$0xff] }
 0x7d0   :  { %17685 = vmatprep.mubr.msk.f32.mxu1 %vm151_vm1, %v24254_v41  ;;  %v10839_v41 = vld [vmem:[#allocation2 + $0x80] sm:$0xff] }
 0x7d3   :  { %17686 = vmatmul.mubr.msk.f32.gmra.mrb[56].mxu1 %vm151_vm1, %v22479_v44  ;;  %v10833_v44 = vld [vmem:[#allocation2 + $0x38] sm:$0xff] }
 0x7d4   :  { %17688 = vmatprep.mubr.msk.f32.mxu1 %vm151_vm1, %v22483_v14  ;;  %v10832_v14 = vld [vmem:[#allocation2 + $0x30] sm:$0xff] }
 0x7d7   :  { %17689 = vmatmul.mubr.msk.f32.gmra.mrb[58].mxu1 %vm151_vm1, %v24255_v53  ;;  %v10840_v53 = vld [vmem:[#allocation2 + $0x90] sm:$0xff] }
 0x7d8   :  { %17691 = vmatprep.mubr.msk.f32.mxu1 %vm151_vm1, %v22491_v40  ;;  %v10834_v40 = vld [vmem:[#allocation2 + $0x48] sm:$0xff] }
 0x7db   :  { %17692 = vmatmul.mubr.msk.f32.gmra.mrb[60].mxu1 %vm151_vm1, %v22495_v2  ;;  %v23047_v2 = vld [vmem:[%s23832_s3 + $0x20] sm:$0xf] }
 0x7dc   :  { %17694 = vmatprep.mubr.msk.f32.mxu1 %vm151_vm1, %v23034_v55 }
 0x7df   :  { %17695 = vmatmul.mubr.msk.f32.gmra.mrb[62].mxu1 %vm151_vm1, %v23038_v42 }
 0x7e0   :  { %17699 = vmatprep.mubr.msk.f32.mxu1 %vm151_vm1, %v10832_v14  ;;  %v10842_v14 = vld [vmem:[#allocation2 + $0xa8] sm:$0xff] }
 0x7e3   :  { %17700 = vmatmul.mubr.msk.f32.vlgmr.msra.gmra.mrb[0].mxu1 %vm151_vm1, %v10833_v44  ;;  %v10843_v44 = vld [vmem:[#allocation2 + $0xb0] sm:$0xff] }
 0x7e4   :  { %17702 = vmatprep.mubr.msk.f32.mxu1 %vm151_vm1, %v10834_v40  ;;  %17796 = vmatpush3.msk.msra.mxu1 %vm344_vm0, %v22904_v22  ;;  %v10841_v22 = vld [vmem:[#allocation2 + $0x98] sm:$0xff]  ;;  %v10844_v40 = vld [vmem:[#allocation2 + $0xc0] sm:$0xff] }
 0x7e5   :  { %17893 = vmatprep.subr.msk.mxu1 %vm344_vm0, %v23047_v2 }
 0x7e7   :  { %17703 = vmatmul.mubr.msk.f32.gmra.mrb[2].mxu1 %vm151_vm1, %v10835_v50  ;;  %v10845_v50 = vld [vmem:[#allocation2 + $0xc8] sm:$0xff] }
 0x7e8   :  { %17705 = vmatprep.mubr.msk.f32.mxu1 %vm151_vm1, %v10836_v52  ;;  %v10846_v52 = vld [vmem:[#allocation2 + $0xd8] sm:$0xff] }
 0x7eb   :  { %17706 = vmatmul.mubr.msk.f32.gmra.mrb[4].mxu1 %vm151_vm1, %v10837_v49  ;;  %v10847_v49 = vld [vmem:[#allocation2 + $0xe0] sm:$0xff] }
 0x7ec   :  { %17708 = vmatprep.mubr.msk.f32.mxu1 %vm151_vm1, %v10838_v48  ;;  %v10848_v48 = vld [vmem:[#allocation2 + $0xf0] sm:$0xff] }
 0x7ef   :  { %17709 = vmatmul.mubr.msk.f32.gmra.mrb[6].mxu1 %vm151_vm1, %v10839_v41  ;;  %v10849_v41 = vld [vmem:[#allocation2 + $0xf8] sm:$0xff] }
 0x7f0   :  { %17711 = vmatprep.mubr.msk.f32.mxu1 %vm151_vm1, %v10840_v53  ;;  %v10850_v53 = vld [vmem:[#allocation2 + $0x108] sm:$0xff] }
 0x7f3   :  { %17712 = vmatmul.mubr.msk.f32.gmra.mrb[8].mxu1 %vm151_vm1, %v10841_v22  ;;  %v10851_v22 = vld [vmem:[#allocation2 + $0x110] sm:$0xff] }
 0x7f4   :  { %17714 = vmatprep.mubr.msk.f32.mxu1 %vm151_vm1, %v10842_v14  ;;  %v10852_v14 = vld [vmem:[#allocation2 + $0x120] sm:$0xff] }
 0x7f7   :  { %17715 = vmatmul.mubr.msk.f32.gmra.mrb[10].mxu1 %vm151_vm1, %v10843_v44  ;;  %v10853_v44 = vld [vmem:[#allocation2 + $0x128] sm:$0xff] }
 0x7f8   :  { %17717 = vmatprep.mubr.msk.f32.mxu1 %vm151_vm1, %v10844_v40  ;;  %v10854_v40 = vld [vmem:[#allocation2 + $0x138] sm:$0xff] }
 0x7fb   :  { %17718 = vmatmul.mubr.msk.f32.gmra.mrb[12].mxu1 %vm151_vm1, %v10845_v50  ;;  %v10855_v50 = vld [vmem:[#allocation2 + $0x140] sm:$0xff] }
 0x7fc   :  { %17720 = vmatprep.mubr.msk.f32.mxu1 %vm151_vm1, %v10846_v52  ;;  %v10856_v52 = vld [vmem:[#allocation2 + $0x150] sm:$0xff] }
 0x7ff   :  { %17721 = vmatmul.mubr.msk.f32.gmra.mrb[14].mxu1 %vm151_vm1, %v10847_v49  ;;  %v10857_v49 = vld [vmem:[#allocation2 + $0x158] sm:$0xff] }
 0x800   :  { %17723 = vmatprep.mubr.msk.f32.mxu1 %vm151_vm1, %v10848_v48  ;;  %v10858_v48 = vld [vmem:[#allocation2 + $0x168] sm:$0xff] }
 0x803   :  { %17724 = vmatmul.mubr.msk.f32.gmra.mrb[16].mxu1 %vm151_vm1, %v10849_v41  ;;  %v10859_v41 = vld [vmem:[#allocation2 + $0x170] sm:$0xff] }
 0x804   :  { %17726 = vmatprep.mubr.msk.f32.mxu1 %vm151_vm1, %v10850_v53  ;;  %v10862_v53 = vld [vmem:[#allocation2 + $0x198] sm:$0xff] }
 0x807   :  { %17727 = vmatmul.mubr.msk.f32.gmra.mrb[18].mxu1 %vm151_vm1, %v10851_v22  ;;  %v10863_v22 = vld [vmem:[#allocation2 + $0x1a0] sm:$0xff] }
 0x808   :  { %17729 = vmatprep.mubr.msk.f32.mxu1 %vm151_vm1, %v10852_v14  ;;  %v10864_v14 = vld [vmem:[#allocation2 + $0x1e0] sm:$0xff] }
 0x80b   :  { %17730 = vmatmul.mubr.msk.f32.gmra.mrb[20].mxu1 %vm151_vm1, %v10853_v44  ;;  %v10865_v44 = vld [vmem:[#allocation2 + $0x1e8] sm:$0xff] }
 0x80c   :  { %17732 = vmatprep.mubr.msk.f32.mxu1 %vm151_vm1, %v10854_v40  ;;  %v10866_v40 = vld [vmem:[#allocation2 + $0x1f8] sm:$0xff] }
 0x80f   :  { %17733 = vmatmul.mubr.msk.f32.gmra.mrb[22].mxu1 %vm151_vm1, %v10855_v50  ;;  %v10867_v50 = vld [vmem:[#allocation2 + $0x200] sm:$0xff] }
 0x810   :  { %17735 = vmatprep.mubr.msk.f32.mxu1 %vm151_vm1, %v10856_v52  ;;  %v10870_v52 = vld [vmem:[#allocation2 + $0x228] sm:$0xff] }
 0x813   :  { %17736 = vmatmul.mubr.msk.f32.gmra.mrb[24].mxu1 %vm151_vm1, %v10857_v49  ;;  %v10871_v49 = vld [vmem:[#allocation2 + $0x230] sm:$0xff] }
 0x814   :  { %17738 = vmatprep.mubr.msk.f32.mxu1 %vm151_vm1, %v10858_v48  ;;  %v10872_v48 = vld [vmem:[#allocation2 + $0x240] sm:$0xff] }
 0x817   :  { %17739 = vmatmul.mubr.msk.f32.gmra.mrb[26].mxu1 %vm151_vm1, %v10859_v41  ;;  %v10873_v41 = vld [vmem:[#allocation2 + $0x248] sm:$0xff] }
 0x818   :  { %17741 = vmatprep.mubr.msk.f32.mxu1 %vm151_vm1, %v22568_v43  ;;  %v10868_v43 = vld [vmem:[#allocation2 + $0x210] sm:$0xff] }
 0x81b   :  { %17742 = vmatmul.mubr.msk.f32.gmra.mrb[28].mxu1 %vm151_vm1, %v22572_v45  ;;  %v10869_v45 = vld [vmem:[#allocation2 + $0x218] sm:$0xff] }
 0x81c   :  { %17744 = vmatprep.mubr.msk.f32.mxu1 %vm151_vm1, %v10862_v53  ;;  %v10874_v53 = vld [vmem:[#allocation2 + $0x258] sm:$0xff] }
 0x81f   :  { %17745 = vmatmul.mubr.msk.f32.gmra.mrb[30].mxu1 %vm151_vm1, %v10863_v22  ;;  %v10875_v22 = vld [vmem:[#allocation2 + $0x260] sm:$0xff] }
 0x820   :  { %17747 = vmatprep.mubr.msk.f32.mxu1 %vm151_vm1, %v10864_v14  ;;  %v10876_v14 = vld [vmem:[#allocation2 + $0x270] sm:$0xff] }
 0x823   :  { %17748 = vmatmul.mubr.msk.f32.gmra.mrb[32].mxu1 %vm151_vm1, %v10865_v44  ;;  %v10877_v44 = vld [vmem:[#allocation2 + $0x278] sm:$0xff] }
 0x824   :  { %17750 = vmatprep.mubr.msk.f32.mxu1 %vm151_vm1, %v10866_v40  ;;  %v10878_v40 = vld [vmem:[#allocation2 + $0x288] sm:$0xff] }
 0x827   :  { %17751 = vmatmul.mubr.msk.f32.gmra.mrb[34].mxu1 %vm151_vm1, %v10867_v50  ;;  %v10879_v50 = vld [vmem:[#allocation2 + $0x290] sm:$0xff] }
 0x828   :  { %17753 = vmatprep.mubr.msk.f32.mxu1 %vm151_vm1, %v10868_v43  ;;  %v10880_v43 = vld [vmem:[#allocation2 + $0x2a0] sm:$0xff] }
 0x82b   :  { %17754 = vmatmul.mubr.msk.f32.gmra.mrb[36].mxu1 %vm151_vm1, %v10869_v45  ;;  %v10881_v45 = vld [vmem:[#allocation2 + $0x2a8] sm:$0xff] }
 0x82c   :  { %17756 = vmatprep.mubr.msk.f32.mxu1 %vm151_vm1, %v10870_v52  ;;  %v10882_v52 = vld [vmem:[#allocation2 + $0x2b8] sm:$0xff] }
 0x82f   :  { %17757 = vmatmul.mubr.msk.f32.gmra.mrb[38].mxu1 %vm151_vm1, %v10871_v49  ;;  %v10883_v49 = vld [vmem:[#allocation2 + $0x2c0] sm:$0xff] }
 0x830   :  { %17759 = vmatprep.mubr.msk.f32.mxu1 %vm151_vm1, %v10872_v48  ;;  %v10884_v48 = vld [vmem:[#allocation2 + $0x2d0] sm:$0xff] }
 0x833   :  { %17760 = vmatmul.mubr.msk.f32.gmra.mrb[40].mxu1 %vm151_vm1, %v10873_v41  ;;  %v10885_v41 = vld [vmem:[#allocation2 + $0x2d8] sm:$0xff] }
 0x834   :  { %17762 = vmatprep.mubr.msk.f32.mxu1 %vm151_vm1, %v10874_v53  ;;  %v10886_v53 = vld [vmem:[#allocation2 + $0x2e8] sm:$0xff] }
 0x837   :  { %17763 = vmatmul.mubr.msk.f32.gmra.mrb[42].mxu1 %vm151_vm1, %v10875_v22  ;;  %v10887_v22 = vld [vmem:[#allocation2 + $0x2f0] sm:$0xff] }
 0x838   :  { %17765 = vmatprep.mubr.msk.f32.mxu1 %vm151_vm1, %v10876_v14  ;;  %v10888_v14 = vld [vmem:[#allocation2 + $0x300] sm:$0xff] }
 0x83b   :  { %17766 = vmatmul.mubr.msk.f32.gmra.mrb[44].mxu1 %vm151_vm1, %v10877_v44  ;;  %v10889_v44 = vld [vmem:[#allocation2 + $0x308] sm:$0xff] }
 0x83c   :  { %17768 = vmatprep.mubr.msk.f32.mxu1 %vm151_vm1, %v10878_v40  ;;  %v10890_v40 = vld [vmem:[#allocation2 + $0x318] sm:$0xff] }
 0x83f   :  { %17769 = vmatmul.mubr.msk.f32.gmra.mrb[46].mxu1 %vm151_vm1, %v10879_v50  ;;  %v10891_v50 = vld [vmem:[#allocation2 + $0x320] sm:$0xff] }
 0x840   :  { %17771 = vmatprep.mubr.msk.f32.mxu1 %vm151_vm1, %v10880_v43  ;;  %v10894_v43 = vld [vmem:[#allocation2 + $0x348] sm:$0xff] }
 0x843   :  { %17772 = vmatmul.mubr.msk.f32.gmra.mrb[48].mxu1 %vm151_vm1, %v10881_v45  ;;  %v10895_v45 = vld [vmem:[#allocation2 + $0x350] sm:$0xff] }
 0x844   :  { %17774 = vmatprep.mubr.msk.f32.mxu1 %vm151_vm1, %v10882_v52  ;;  %v12284_v52 = vld [vmem:[#allocation2 + $0x1e2] sm:$0xff] }
 0x847   :  { %17775 = vmatmul.mubr.msk.f32.gmra.mrb[50].mxu1 %vm151_vm1, %v10883_v49  ;;  %v12285_v49 = vld [vmem:[#allocation2 + $0x1ea] sm:$0xff] }
 0x848   :  { %17777 = vmatprep.mubr.msk.f32.mxu1 %vm151_vm1, %v10884_v48  ;;  %v12286_v48 = vld [vmem:[#allocation2 + $0x1fa] sm:$0xff] }
 0x84b   :  { %17778 = vmatmul.mubr.msk.f32.gmra.mrb[52].mxu1 %vm151_vm1, %v10885_v41  ;;  %v12287_v41 = vld [vmem:[#allocation2 + $0x202] sm:$0xff] }
 0x84c   :  { %17780 = vmatprep.mubr.msk.f32.mxu1 %vm151_vm1, %v10886_v53  ;;  %v12289_v53 = vld [vmem:[#allocation2 + $0x21a] sm:$0xff] }
 0x84f   :  { %17781 = vmatmul.mubr.msk.f32.gmra.mrb[54].mxu1 %vm151_vm1, %v10887_v22  ;;  %v12290_v22 = vld [vmem:[#allocation2 + $0x22a] sm:$0xff] }
 0x850   :  { %17783 = vmatprep.mubr.msk.f32.mxu1 %vm151_vm1, %v10888_v14  ;;  %v12291_v14 = vld [vmem:[#allocation2 + $0x232] sm:$0xff] }
 0x853   :  { %17784 = vmatmul.mubr.msk.f32.gmra.mrb[56].mxu1 %vm151_vm1, %v10889_v44  ;;  %v12292_v44 = vld [vmem:[#allocation2 + $0x242] sm:$0xff] }
 0x854   :  { %17786 = vmatprep.mubr.msk.f32.mxu1 %vm151_vm1, %v10890_v40  ;;  %v12293_v40 = vld [vmem:[#allocation2 + $0x24a] sm:$0xff] }
 0x857   :  { %17787 = vmatmul.mubr.msk.f32.gmra.mrb[58].mxu1 %vm151_vm1, %v10891_v50  ;;  %v12294_v50 = vld [vmem:[#allocation2 + $0x25a] sm:$0xff] }
 0x858   :  { %17789 = vmatprep.mubr.msk.f32.mxu1 %vm151_vm1, %v22636_v59  ;;  %v11572_v59 = vld [vmem:[#allocation2 + $0x199] sm:$0xff] }
 0x85b   :  { %17790 = vmatmul.mubr.msk.f32.gmra.mrb[60].mxu1 %vm151_vm1, %v22640_v51  ;;  %v11573_v51 = vld [vmem:[#allocation2 + $0x1a1] sm:$0xff] }
 0x85c   :  { %17792 = vmatprep.mubr.msk.f32.mxu1 %vm151_vm1, %v10894_v43  ;;  %v12295_v43 = vld [vmem:[#allocation2 + $0x262] sm:$0xff] }
 0x85f   :  { %17793 = vmatmul.mubr.msk.f32.gmra.mrb[62].mxu1 %vm151_vm1, %v10895_v45  ;;  %v12296_v45 = vld [vmem:[#allocation2 + $0x272] sm:$0xff] }
 0x860   :  { %17797 = vmatprep.mubr.msk.f32.mxu1 %vm151_vm1, %v22646_v54  ;;  %v24256_v54 = vld [vmem:[#allocation63_spill] sm:$0xff] }
 0x863   :  { %17798 = vmatmul.mubr.msk.f32.vlgmr.msra.gmra.mrb[0].mxu1 %vm151_vm1, %v22659_v56  ;;  %v24257_v56 = vld [vmem:[#allocation64_spill] sm:$0xff] }
 0x864   :  { %17800 = vmatprep.mubr.msk.f32.mxu1 %vm151_vm1, %v22663_v57  ;;  %17894 = vmatpush3.msk.msra.mxu1 %vm344_vm0, %v23047_v2  ;;  %v24258_v57 = vld [vmem:[#allocation65_spill] sm:$0xff]  ;;  %v12283_v2 = vld [vmem:[#allocation2 + $0x1a2] sm:$0xff] }
 0x867   :  { %17801 = vmatmul.mubr.msk.f32.gmra.mrb[2].mxu1 %vm151_vm1, %v22667_v58  ;;  %v24259_v58 = vld [vmem:[#allocation66_spill] sm:$0xff] }
 0x868   :  { %17803 = vmatprep.mubr.msk.f32.mxu1 %vm151_vm1, %v22671_v60  ;;  %v24260_v60 = vld [vmem:[#allocation67_spill] sm:$0xff] }
 0x86b   :  { %17804 = vmatmul.mubr.msk.f32.gmra.mrb[4].mxu1 %vm151_vm1, %v22675_v61  ;;  %v24261_v61 = vld [vmem:[#allocation68_spill] sm:$0xff] }
 0x86c   :  { %17806 = vmatprep.mubr.msk.f32.mxu1 %vm151_vm1, %v22679_v62  ;;  %v24262_v62 = vld [vmem:[#allocation69_spill] sm:$0xff] }
 0x86f   :  { %17807 = vmatmul.mubr.msk.f32.gmra.mrb[6].mxu1 %vm151_vm1, %v22683_v63  ;;  %v24263_v63 = vld [vmem:[#allocation70_spill] sm:$0xff] }
 0x870   :  { %17809 = vmatprep.mubr.msk.f32.mxu1 %vm151_vm1, %v22687_v0  ;;  %v24264_v0 = vld [vmem:[#allocation71_spill] sm:$0xff] }
 0x873   :  { %17810 = vmatmul.mubr.msk.f32.gmra.mrb[8].mxu1 %vm151_vm1, %v22691_v1  ;;  %v24265_v1 = vld [vmem:[#allocation4_spill] sm:$0xff] }
 0x874   :  { %17812 = vmatprep.mubr.msk.f32.mxu1 %vm151_vm1, %v22695_v6  ;;  %v24266_v6 = vld [vmem:[#allocation5_spill] sm:$0xff] }
 0x877   :  { %17813 = vmatmul.mubr.msk.f32.gmra.mrb[10].mxu1 %vm151_vm1, %v22699_v37  ;;  %v24267_v37 = vld [vmem:[#allocation6_spill] sm:$0xff] }
 0x878   :  { %17815 = vmatprep.mubr.msk.f32.mxu1 %vm151_vm1, %v22703_v4  ;;  %v24268_v4 = vld [vmem:[#allocation7_spill] sm:$0xff] }
 0x87b   :  { %17816 = vmatmul.mubr.msk.f32.gmra.mrb[12].mxu1 %vm151_vm1, %v22707_v47  ;;  %v11604_v47 = vld [vmem:[#allocation2 + $0x349] sm:$0xff] }
 0x87c   :  { %17818 = vmatprep.mubr.msk.f32.mxu1 %vm151_vm1, %v22711_v8  ;;  %v24269_v8 = vld [vmem:[#allocation8_spill] sm:$0xff] }
 0x87f   :  { %17819 = vmatmul.mubr.msk.f32.gmra.mrb[14].mxu1 %vm151_vm1, %v22715_v5  ;;  %v11605_v5 = vld [vmem:[#allocation2 + $0x351] sm:$0xff] }
 0x880   :  { %17821 = vmatprep.mubr.msk.f32.mxu1 %vm151_vm1, %v22719_v7  ;;  %v12252_v7 = vld [vmem:[#allocation2 + $0x32] sm:$0xff] }
 0x883   :  { %17822 = vmatmul.mubr.msk.f32.gmra.mrb[16].mxu1 %vm151_vm1, %v22723_v3  ;;  %v12253_v3 = vld [vmem:[#allocation2 + $0x3a] sm:$0xff] }
 0x884   :  { %17824 = vmatprep.mubr.msk.f32.mxu1 %vm151_vm1, %v22727_v46  ;;  %v12254_v46 = vld [vmem:[#allocation2 + $0x4a] sm:$0xff] }
 0x887   :  { %17825 = vmatmul.mubr.msk.f32.gmra.mrb[18].mxu1 %vm151_vm1, %v22731_v12  ;;  %v12255_v12 = vld [vmem:[#allocation2 + $0x52] sm:$0xff] }
 0x888   :  { %17827 = vmatprep.mubr.msk.f32.mxu1 %vm151_vm1, %v22735_v9  ;;  %v12256_v9 = vld [vmem:[#allocation2 + $0x62] sm:$0xff] }
 0x88b   :  { %17828 = vmatmul.mubr.msk.f32.gmra.mrb[20].mxu1 %vm151_vm1, %v22739_v10  ;;  %v12257_v10 = vld [vmem:[#allocation2 + $0x6a] sm:$0xff] }
 0x88c   :  { %17830 = vmatprep.mubr.msk.f32.mxu1 %vm151_vm1, %v22743_v13  ;;  %v12258_v13 = vld [vmem:[#allocation2 + $0x7a] sm:$0xff] }
 0x88f   :  { %17831 = vmatmul.mubr.msk.f32.gmra.mrb[22].mxu1 %vm151_vm1, %v22747_v15  ;;  %v12259_v15 = vld [vmem:[#allocation2 + $0x82] sm:$0xff] }
 0x890   :  { %17833 = vmatprep.mubr.msk.f32.mxu1 %vm151_vm1, %v22751_v16  ;;  %v12260_v16 = vld [vmem:[#allocation2 + $0x92] sm:$0xff] }
 0x893   :  { %17834 = vmatmul.mubr.msk.f32.gmra.mrb[24].mxu1 %vm151_vm1, %v22755_v17  ;;  %v12261_v17 = vld [vmem:[#allocation2 + $0x9a] sm:$0xff] }
 0x894   :  { %17836 = vmatprep.mubr.msk.f32.mxu1 %vm151_vm1, %v22759_v18  ;;  %v12262_v18 = vld [vmem:[#allocation2 + $0xaa] sm:$0xff] }
 0x897   :  { %17837 = vmatmul.mubr.msk.f32.gmra.mrb[26].mxu1 %vm151_vm1, %v22763_v19  ;;  %v12263_v19 = vld [vmem:[#allocation2 + $0xb2] sm:$0xff] }
 0x898   :  { %17839 = vmatprep.mubr.msk.f32.mxu1 %vm151_vm1, %v22767_v20  ;;  %v12264_v20 = vld [vmem:[#allocation2 + $0xc2] sm:$0xff] }
 0x89b   :  { %17840 = vmatmul.mubr.msk.f32.gmra.mrb[28].mxu1 %vm151_vm1, %v22771_v21  ;;  %v12265_v21 = vld [vmem:[#allocation2 + $0xca] sm:$0xff] }
 0x89c   :  { %17842 = vmatprep.mubr.msk.f32.mxu1 %vm151_vm1, %v11572_v59  ;;  %v12297_v59 = vld [vmem:[#allocation2 + $0x27a] sm:$0xff] }
 0x89f   :  { %17843 = vmatmul.mubr.msk.f32.gmra.mrb[30].mxu1 %vm151_vm1, %v11573_v51  ;;  %v12298_v51 = vld [vmem:[#allocation2 + $0x28a] sm:$0xff] }
 0x8a0   :  { %17845 = vmatprep.mubr.msk.f32.mxu1 %vm151_vm1, %v22777_v24  ;;  %v12266_v24 = vld [vmem:[#allocation2 + $0xda] sm:$0xff] }
 0x8a3   :  { %17846 = vmatmul.mubr.msk.f32.gmra.mrb[32].mxu1 %vm151_vm1, %v22781_v25  ;;  %v12267_v25 = vld [vmem:[#allocation2 + $0xe2] sm:$0xff] }
 0x8a4   :  { %17848 = vmatprep.mubr.msk.f32.mxu1 %vm151_vm1, %v22785_v26  ;;  %v12268_v26 = vld [vmem:[#allocation2 + $0xf2] sm:$0xff] }
 0x8a7   :  { %17849 = vmatmul.mubr.msk.f32.gmra.mrb[34].mxu1 %vm151_vm1, %v22789_v27  ;;  %v12269_v27 = vld [vmem:[#allocation2 + $0xfa] sm:$0xff] }
 0x8a8   :  { %17851 = vmatprep.mubr.msk.f32.mxu1 %vm151_vm1, %v22793_v28  ;;  %v12270_v28 = vld [vmem:[#allocation2 + $0x10a] sm:$0xff] }
 0x8ab   :  { %17852 = vmatmul.mubr.msk.f32.gmra.mrb[36].mxu1 %vm151_vm1, %v22797_v29  ;;  %v12271_v29 = vld [vmem:[#allocation2 + $0x112] sm:$0xff] }
 0x8ac   :  { %17854 = vmatprep.mubr.msk.f32.mxu1 %vm151_vm1, %v22801_v30  ;;  %v12272_v30 = vld [vmem:[#allocation2 + $0x122] sm:$0xff] }
 0x8af   :  { %17855 = vmatmul.mubr.msk.f32.gmra.mrb[38].mxu1 %vm151_vm1, %v22805_v31  ;;  %v12273_v31 = vld [vmem:[#allocation2 + $0x12a] sm:$0xff] }
 0x8b0   :  { %17857 = vmatprep.mubr.msk.f32.mxu1 %vm151_vm1, %v22809_v32  ;;  %v12274_v32 = vld [vmem:[#allocation2 + $0x13a] sm:$0xff] }
 0x8b3   :  { %17858 = vmatmul.mubr.msk.f32.gmra.mrb[40].mxu1 %vm151_vm1, %v22813_v11  ;;  %v12275_v11 = vld [vmem:[#allocation2 + $0x142] sm:$0xff] }
 0x8b4   :  { %17860 = vmatprep.mubr.msk.f32.mxu1 %vm151_vm1, %v22817_v34  ;;  %v12276_v34 = vld [vmem:[#allocation2 + $0x152] sm:$0xff] }
 0x8b7   :  { %17861 = vmatmul.mubr.msk.f32.gmra.mrb[42].mxu1 %vm151_vm1, %v22821_v35  ;;  %v12277_v35 = vld [vmem:[#allocation2 + $0x15a] sm:$0xff] }
 0x8b8   :  { %17863 = vmatprep.mubr.msk.f32.mxu1 %vm151_vm1, %v22825_v38  ;;  %v12278_v38 = vld [vmem:[#allocation2 + $0x16a] sm:$0xff] }
 0x8bb   :  { %17864 = vmatmul.mubr.msk.f32.gmra.mrb[44].mxu1 %vm151_vm1, %v22829_v36  ;;  %v12279_v36 = vld [vmem:[#allocation2 + $0x172] sm:$0xff] }
 0x8bc   :  { %17866 = vmatprep.mubr.msk.f32.mxu1 %vm151_vm1, %v22833_v33  ;;  %v12282_v33 = vld [vmem:[#allocation2 + $0x19a] sm:$0xff] }
 0x8bf   :  { %17867 = vmatmul.mubr.msk.f32.gmra.mrb[46].mxu1 %vm151_vm1, %v22837_v39  ;;  %v24270_v39 = vld [vmem:[#allocation9_spill] sm:$0xff] }
 0x8c0   :  { %17869 = vmatprep.mubr.msk.f32.mxu1 %vm151_vm1, %v24256_v54  ;;  %v12299_v54 = vld [vmem:[#allocation2 + $0x292] sm:$0xff] }
 0x8c3   :  { %17870 = vmatmul.mubr.msk.f32.gmra.mrb[48].mxu1 %vm151_vm1, %v24257_v56  ;;  %v12300_v56 = vld [vmem:[#allocation2 + $0x2a2] sm:$0xff] }
 0x8c4   :  { %17872 = vmatprep.mubr.msk.f32.mxu1 %vm151_vm1, %v24258_v57  ;;  %v12301_v57 = vld [vmem:[#allocation2 + $0x2aa] sm:$0xff] }
 0x8c7   :  { %17873 = vmatmul.mubr.msk.f32.gmra.mrb[50].mxu1 %vm151_vm1, %v24259_v58  ;;  %v12302_v58 = vld [vmem:[#allocation2 + $0x2ba] sm:$0xff] }
 0x8c8   :  { %17875 = vmatprep.mubr.msk.f32.mxu1 %vm151_vm1, %v24260_v60  ;;  %v12303_v60 = vld [vmem:[#allocation2 + $0x2c2] sm:$0xff] }
 0x8cb   :  { %17876 = vmatmul.mubr.msk.f32.gmra.mrb[52].mxu1 %vm151_vm1, %v24261_v61  ;;  %v12304_v61 = vld [vmem:[#allocation2 + $0x2d2] sm:$0xff] }
 0x8cc   :  { %17878 = vmatprep.mubr.msk.f32.mxu1 %vm151_vm1, %v24262_v62  ;;  %v12305_v62 = vld [vmem:[#allocation2 + $0x2da] sm:$0xff] }
 0x8cf   :  { %17879 = vmatmul.mubr.msk.f32.gmra.mrb[54].mxu1 %vm151_vm1, %v24263_v63  ;;  %v12306_v63 = vld [vmem:[#allocation2 + $0x2ea] sm:$0xff] }
 0x8d0   :  { %17881 = vmatprep.mubr.msk.f32.mxu1 %vm151_vm1, %v24264_v0  ;;  %v12307_v0 = vld [vmem:[#allocation2 + $0x2f2] sm:$0xff] }
 0x8d3   :  { %17882 = vmatmul.mubr.msk.f32.gmra.mrb[56].mxu1 %vm151_vm1, %v24265_v1  ;;  %v12308_v1 = vld [vmem:[#allocation2 + $0x302] sm:$0xff] }
 0x8d4   :  { %17884 = vmatprep.mubr.msk.f32.mxu1 %vm151_vm1, %v24266_v6  ;;  %v12309_v6 = vld [vmem:[#allocation2 + $0x30a] sm:$0xff] }
 0x8d7   :  { %17885 = vmatmul.mubr.msk.f32.gmra.mrb[58].mxu1 %vm151_vm1, %v24267_v37  ;;  %v12310_v37 = vld [vmem:[#allocation2 + $0x31a] sm:$0xff] }
 0x8d8   :  { %17887 = vmatprep.mubr.msk.f32.mxu1 %vm151_vm1, %v24268_v4  ;;  %v12311_v4 = vld [vmem:[#allocation2 + $0x322] sm:$0xff] }
 0x8db   :  { %17888 = vmatmul.mubr.msk.f32.gmra.mrb[60].mxu1 %vm151_vm1, %v24269_v8  ;;  %v12315_v8 = vld [vmem:[#allocation2 + $0x352] sm:$0xff] }
 0x8dc   :  { %17890 = vmatprep.mubr.msk.f32.mxu1 %vm151_vm1, %v11604_v47  ;;  %v12314_v47 = vld [vmem:[#allocation2 + $0x34a] sm:$0xff] }
 0x8df   :  { %17891 = vmatmul.mubr.msk.f32.gmra.mrb[62].mxu1 %vm151_vm1, %v11605_v5  ;;  %v23316_v5 = vld [vmem:[%s23834_s4] ss:$0 sm:$0xff] }
 0x8e0   :  { %17895 = vmatprep.mubr.msk.f32.mxu1 %vm151_vm1, %v12252_v7 }
 0x8e3   :  { %17896 = vmatmul.mubr.msk.f32.vlgmr.msra.gmra.mrb[0].mxu1 %vm151_vm1, %v12253_v3  ;;  %v14994_v3 = vld [vmem:[%s23831_s0 + $0x21] sm:$0xff] }
 0x8e4   :  { %17898 = vmatprep.mubr.msk.f32.mxu1 %vm151_vm1, %v12254_v46 }
 0x8e7   :  { %17899 = vmatmul.mubr.msk.f32.gmra.mrb[2].mxu1 %vm151_vm1, %v12255_v12 }
 0x8e8   :  { %17901 = vmatprep.mubr.msk.f32.mxu1 %vm151_vm1, %v12256_v9 }
 0x8eb   :  { %17902 = vmatmul.mubr.msk.f32.gmra.mrb[4].mxu1 %vm151_vm1, %v12257_v10 }
 0x8ec   :  { %17904 = vmatprep.mubr.msk.f32.mxu1 %vm151_vm1, %v12258_v13 }
 0x8ef   :  { %17905 = vmatmul.mubr.msk.f32.gmra.mrb[6].mxu1 %vm151_vm1, %v12259_v15  ;;  %v14996_v15 = vld [vmem:[%s23831_s0 + $0x39] sm:$0xff] }
 0x8f0   :  { %17907 = vmatprep.mubr.msk.f32.mxu1 %vm151_vm1, %v12260_v16 }
 0x8f3   :  { %17908 = vmatmul.mubr.msk.f32.gmra.mrb[8].mxu1 %vm151_vm1, %v12261_v17 }
 0x8f4   :  { %17910 = vmatprep.mubr.msk.f32.mxu1 %vm151_vm1, %v12262_v18 }
 0x8f7   :  { %17911 = vmatmul.mubr.msk.f32.gmra.mrb[10].mxu1 %vm151_vm1, %v12263_v19  ;;  %v14995_v19 = vld [vmem:[%s23831_s0 + $0x31] sm:$0xff] }
 0x8f8   :  { %17913 = vmatprep.mubr.msk.f32.mxu1 %vm151_vm1, %v12264_v20 }
 0x8fb   :  { %17914 = vmatmul.mubr.msk.f32.gmra.mrb[12].mxu1 %vm151_vm1, %v12265_v21 }
 0x8fc   :  { %17916 = vmatprep.mubr.msk.f32.mxu1 %vm151_vm1, %v12266_v24 }
 0x8ff   :  { %17917 = vmatmul.mubr.msk.f32.gmra.mrb[14].mxu1 %vm151_vm1, %v12267_v25 }
 0x900   :  { %17919 = vmatprep.mubr.msk.f32.mxu1 %vm151_vm1, %v12268_v26 }
 0x903   :  { %17920 = vmatmul.mubr.msk.f32.gmra.mrb[16].mxu1 %vm151_vm1, %v12269_v27 }
 0x904   :  { %17922 = vmatprep.mubr.msk.f32.mxu1 %vm151_vm1, %v12270_v28 }
 0x907   :  { %17923 = vmatmul.mubr.msk.f32.gmra.mrb[18].mxu1 %vm151_vm1, %v12271_v29  ;;  %v14998_v29 = vld [vmem:[%s23831_s0 + $0x51] sm:$0xff] }
 0x908   :  { %17925 = vmatprep.mubr.msk.f32.mxu1 %vm151_vm1, %v12272_v30 }
 0x90b   :  { %17926 = vmatmul.mubr.msk.f32.gmra.mrb[20].mxu1 %vm151_vm1, %v12273_v31 }
 0x90c   :  { %17928 = vmatprep.mubr.msk.f32.mxu1 %vm151_vm1, %v12274_v32 }
 0x90f   :  { %17929 = vmatmul.mubr.msk.f32.gmra.mrb[22].mxu1 %vm151_vm1, %v12275_v11  ;;  %v14997_v11 = vld [vmem:[%s23831_s0 + $0x49] sm:$0xff] }
 0x910   :  { %17931 = vmatprep.mubr.msk.f32.mxu1 %vm151_vm1, %v12276_v34 }
 0x913   :  { %17932 = vmatmul.mubr.msk.f32.gmra.mrb[24].mxu1 %vm151_vm1, %v12277_v35 }
 0x914   :  { %17934 = vmatprep.mubr.msk.f32.mxu1 %vm151_vm1, %v12278_v38 }
 0x917   :  { %17935 = vmatmul.mubr.msk.f32.gmra.mrb[26].mxu1 %vm151_vm1, %v12279_v36 }
 0x918   :  { %17937 = vmatprep.mubr.msk.f32.mxu1 %vm151_vm1, %v22966_v23  ;;  %v12288_v23 = vld [vmem:[#allocation2 + $0x212] sm:$0xff] }
 0x91b   :  { %17938 = vmatmul.mubr.msk.f32.gmra.mrb[28].mxu1 %vm151_vm1, %v24270_v39 }
 0x91c   :  { %17940 = vmatprep.mubr.msk.f32.mxu1 %vm151_vm1, %v12282_v33 }
 0x91f   :  { %17941 = vmatmul.mubr.msk.f32.gmra.mrb[30].mxu1 %vm151_vm1, %v12283_v2 }
 0x920   :  { %17943 = vmatprep.mubr.msk.f32.mxu1 %vm151_vm1, %v12284_v52  ;;  %v15000_v52 = vld [vmem:[%s23831_s0 + $0x69] sm:$0xff] }
 0x923   :  { %17944 = vmatmul.mubr.msk.f32.gmra.mrb[32].mxu1 %vm151_vm1, %v12285_v49 }
 0x924   :  { %17946 = vmatprep.mubr.msk.f32.mxu1 %vm151_vm1, %v12286_v48 }
 0x927   :  { %17947 = vmatmul.mubr.msk.f32.gmra.mrb[34].mxu1 %vm151_vm1, %v12287_v41 }
 0x928   :  { %17949 = vmatprep.mubr.msk.f32.mxu1 %vm151_vm1, %v12288_v23  ;;  %v14999_v23 = vld [vmem:[%s23831_s0 + $0x61] sm:$0xff] }
 0x92b   :  { %17950 = vmatmul.mubr.msk.f32.gmra.mrb[36].mxu1 %vm151_vm1, %v12289_v53 }
 0x92c   :  { %17952 = vmatprep.mubr.msk.f32.mxu1 %vm151_vm1, %v12290_v22 }
 0x92f   :  { %17953 = vmatmul.mubr.msk.f32.gmra.mrb[38].mxu1 %vm151_vm1, %v12291_v14 }
 0x930   :  { %17955 = vmatprep.mubr.msk.f32.mxu1 %vm151_vm1, %v12292_v44 }
 0x933   :  { %17956 = vmatmul.mubr.msk.f32.gmra.mrb[40].mxu1 %vm151_vm1, %v12293_v40 }
 0x934   :  { %17958 = vmatprep.mubr.msk.f32.mxu1 %vm151_vm1, %v12294_v50 }
 0x937   :  { %17959 = vmatmul.mubr.msk.f32.gmra.mrb[42].mxu1 %vm151_vm1, %v12295_v43 }
 0x938   :  { %17961 = vmatprep.mubr.msk.f32.mxu1 %vm151_vm1, %v12296_v45  ;;  %v15002_v45 = vld [vmem:[%s23831_s0 + $0x81] sm:$0xff] }
 0x93b   :  { %17962 = vmatmul.mubr.msk.f32.gmra.mrb[44].mxu1 %vm151_vm1, %v12297_v59 }
 0x93c   :  { %17964 = vmatprep.mubr.msk.f32.mxu1 %vm151_vm1, %v12298_v51 }
 0x93f   :  { %17965 = vmatmul.mubr.msk.f32.gmra.mrb[46].mxu1 %vm151_vm1, %v12299_v54 }
 0x940   :  { %17967 = vmatprep.mubr.msk.f32.mxu1 %vm151_vm1, %v12300_v56  ;;  %v15001_v56 = vld [vmem:[%s23831_s0 + $0x79] sm:$0xff] }
 0x943   :  { %17968 = vmatmul.mubr.msk.f32.gmra.mrb[48].mxu1 %vm151_vm1, %v12301_v57 }
 0x944   :  { %17970 = vmatprep.mubr.msk.f32.mxu1 %vm151_vm1, %v12302_v58 }
 0x947   :  { %17971 = vmatmul.mubr.msk.f32.gmra.mrb[50].mxu1 %vm151_vm1, %v12303_v60 }
 0x948   :  { %17973 = vmatprep.mubr.msk.f32.mxu1 %vm151_vm1, %v12304_v61 }
 0x94b   :  { %17974 = vmatmul.mubr.msk.f32.gmra.mrb[52].mxu1 %vm151_vm1, %v12305_v62 }
 0x94c   :  { %17976 = vmatprep.mubr.msk.f32.mxu1 %vm151_vm1, %v12306_v63 }
 0x94f   :  { %17977 = vmatmul.mubr.msk.f32.gmra.mrb[54].mxu1 %vm151_vm1, %v12307_v0 }
 0x950   :  { %17979 = vmatprep.mubr.msk.f32.mxu1 %vm151_vm1, %v12308_v1  ;;  %v15004_v1 = vld [vmem:[%s23831_s0 + $0x99] sm:$0xff] }
 0x953   :  { %17980 = vmatmul.mubr.msk.f32.gmra.mrb[56].mxu1 %vm151_vm1, %v12309_v6 }
 0x954   :  { %17982 = vmatprep.mubr.msk.f32.mxu1 %vm151_vm1, %v12310_v37 }
 0x957   :  { %17983 = vmatmul.mubr.msk.f32.gmra.mrb[58].mxu1 %vm151_vm1, %v12311_v4 }
 0x958   :  { %17985 = vmatprep.mubr.msk.f32.mxu1 %vm151_vm1, %v23034_v55 }
 0x95b   :  { %17986 = vmatmul.mubr.msk.f32.gmra.mrb[60].mxu1 %vm151_vm1, %v23038_v42  ;;  %v14993_v42 = vld [vmem:[%s23831_s0 + $0x19] sm:$0xff] }
 0x95c   :  { %17988 = vmatprep.mubr.msk.f32.mxu1 %vm151_vm1, %v12314_v47  ;;  %v15003_v47 = vld [vmem:[%s23831_s0 + $0x91] sm:$0xff] }
 0x95f   :  { %17989 = vmatmul.mubr.msk.f32.gmra.mrb[62].mxu1 %vm151_vm1, %v12315_v8 }
 0x9b6   :  { %v17897_v7 = vpop.f32.mrb[0].mxu1 }
 0x9b7   :  { %v12970_v55 = vadd.f32 %v17897_v7, %v23316_v5  ;;  %v12579_v46 = vpop.f32.mrb[1].mxu1 }
 0x9b8   :  { %v12969_v12 = vadd.f32 %v23316_v5, %v12579_v46 }
 0x9b9   :  { %v13098_v9 = vadd.f32 %v14994_v3, %v12970_v55 }
 0x9ba   :  { %v13097_v10 = vadd.f32 %v14993_v42, %v12969_v12  ;;  %v17900_v13 = vpop.f32.mrb[2].mxu1 }
 0x9bb   :  { %vm13162_vm0 = vcmp.gt.f32.partialorder %v13098_v9, 0.0  ;;  %v13226_v16 = vmul.f32 0.1, %v13098_v9  ;;  %v12972_v17 = vadd.f32 %v17900_v13, %v23316_v5  ;;  %v12589_v18 = vpop.f32.mrb[3].mxu1 }
 0x9bc   :  { %vm13161_vm12 = vcmp.gt.f32.partialorder %v13097_v10, 0.0  ;;  %v13225_v20 = vmul.f32 0.1, %v13097_v10  ;;  %v12971_v21 = vadd.f32 %v23316_v5, %v12589_v18 }
 0x9bd   :  { %v13290_v24 = vsel %vm13162_vm0, %v13098_v9, %v13226_v16  ;;  %v13100_v25 = vadd.f32 %v14996_v15, %v12972_v17  ;;  %v15006_v9 = vld [vmem:[%s23831_s0 + $0xb1] sm:$0xff]  ;;  %v15005_v16 = vld [vmem:[%s23831_s0 + $0xa9] sm:$0xff] }
 0x9be   :  { %13354 = vst.msk [vmem:[%s23835_s5 + $0x8] sm:$0xff] %vm151_vm1, %v13290_v24  ;;  %v13289_v26 = vsel %vm13161_vm12, %v13097_v10, %v13225_v20  ;;  %v13099_v27 = vadd.f32 %v14995_v19, %v12971_v21  ;;  %v17903_v28 = vpop.f32.mrb[4].mxu1 }
 0x9bf   :  { %13353 = vst.msk [vmem:[%s23835_s5] sm:$0xff] %vm151_vm1, %v13289_v26  ;;  %vm13164_vm13 = vcmp.gt.f32.partialorder %v13100_v25, 0.0  ;;  %v13228_v30 = vmul.f32 0.1, %v13100_v25  ;;  %v12974_v31 = vadd.f32 %v17903_v28, %v23316_v5  ;;  %v12599_v32 = vpop.f32.mrb[5].mxu1  ;;  %v15008_v26 = vld [vmem:[%s23831_s0 + $0xc9] sm:$0xff] }
 0x9c0   :  { %vm13163_vm14 = vcmp.gt.f32.partialorder %v13099_v27, 0.0  ;;  %v13227_v34 = vmul.f32 0.1, %v13099_v27  ;;  %v12973_v35 = vadd.f32 %v23316_v5, %v12599_v32 }
 0x9c1   :  { %v13292_v38 = vsel %vm13164_vm13, %v13100_v25, %v13228_v30  ;;  %v13102_v36 = vadd.f32 %v14998_v29, %v12974_v31  ;;  %v15007_v30 = vld [vmem:[%s23831_s0 + $0xc1] sm:$0xff] }
 0x9c2   :  { %13356 = vst.msk [vmem:[%s23835_s5 + $0x18] sm:$0xff] %vm151_vm1, %v13292_v38  ;;  %v13291_v33 = vsel %vm13163_vm14, %v13099_v27, %v13227_v34  ;;  %v13101_v39 = vadd.f32 %v14997_v11, %v12973_v35  ;;  %v17906_v2 = vpop.f32.mrb[6].mxu1 }
 0x9c3   :  { %13355 = vst.msk [vmem:[%s23835_s5 + $0x10] sm:$0xff] %vm151_vm1, %v13291_v33  ;;  %vm13166_vm15 = vcmp.gt.f32.partialorder %v13102_v36, 0.0  ;;  %v13230_v49 = vmul.f32 0.1, %v13102_v36  ;;  %v12976_v48 = vadd.f32 %v17906_v2, %v23316_v5  ;;  %v12609_v41 = vpop.f32.mrb[7].mxu1  ;;  %v15010_v33 = vld [vmem:[%s23831_s0 + $0xe1] sm:$0xff] }
 0x9c4   :  { %vm13165_vm2 = vcmp.gt.f32.partialorder %v13101_v39, 0.0  ;;  %v13229_v53 = vmul.f32 0.1, %v13101_v39  ;;  %v12975_v22 = vadd.f32 %v23316_v5, %v12609_v41 }
 0x9c5   :  { %v13294_v14 = vsel %vm13166_vm15, %v13102_v36, %v13230_v49  ;;  %v13104_v44 = vadd.f32 %v15000_v52, %v12976_v48  ;;  %v15009_v49 = vld [vmem:[%s23831_s0 + $0xd9] sm:$0xff] }
 0x9c6   :  { %13358 = vst.msk [vmem:[%s23835_s5 + $0x28] sm:$0xff] %vm151_vm1, %v13294_v14  ;;  %v13293_v40 = vsel %vm13165_vm2, %v13101_v39, %v13229_v53  ;;  %v13103_v50 = vadd.f32 %v14999_v23, %v12975_v22  ;;  %v17909_v43 = vpop.f32.mrb[8].mxu1 }
 0x9c7   :  { %13357 = vst.msk [vmem:[%s23835_s5 + $0x20] sm:$0xff] %vm151_vm1, %v13293_v40  ;;  %vm13168_vm3 = vcmp.gt.f32.partialorder %v13104_v44, 0.0  ;;  %v13232_v59 = vmul.f32 0.1, %v13104_v44  ;;  %v12978_v51 = vadd.f32 %v17909_v43, %v23316_v5  ;;  %v12619_v54 = vpop.f32.mrb[9].mxu1  ;;  %v15012_v40 = vld [vmem:[%s23831_s0 + $0xf9] sm:$0xff] }
 0x9c8   :  { %vm13167_vm4 = vcmp.gt.f32.partialorder %v13103_v50, 0.0  ;;  %v13231_v57 = vmul.f32 0.1, %v13103_v50  ;;  %v12977_v58 = vadd.f32 %v23316_v5, %v12619_v54 }
 0x9c9   :  { %v13296_v60 = vsel %vm13168_vm3, %v13104_v44, %v13232_v59  ;;  %v13106_v61 = vadd.f32 %v15002_v45, %v12978_v51  ;;  %v15011_v59 = vld [vmem:[%s23831_s0 + $0xf1] sm:$0xff] }
 0x9ca   :  { %13360 = vst.msk [vmem:[%s23835_s5 + $0x38] sm:$0xff] %vm151_vm1, %v13296_v60  ;;  %v13295_v62 = vsel %vm13167_vm4, %v13103_v50, %v13231_v57  ;;  %v13105_v63 = vadd.f32 %v15001_v56, %v12977_v58  ;;  %v17912_v0 = vpop.f32.mrb[10].mxu1 }
 0x9cb   :  { %13359 = vst.msk [vmem:[%s23835_s5 + $0x30] sm:$0xff] %vm151_vm1, %v13295_v62  ;;  %vm13170_vm5 = vcmp.gt.f32.partialorder %v13106_v61, 0.0  ;;  %v13234_v6 = vmul.f32 0.1, %v13106_v61  ;;  %v12980_v37 = vadd.f32 %v17912_v0, %v23316_v5  ;;  %v12629_v4 = vpop.f32.mrb[11].mxu1  ;;  %v15014_v62 = vld [vmem:[%s23831_s0 + $0x111] sm:$0xff] }
 0x9cc   :  { %vm13169_vm6 = vcmp.gt.f32.partialorder %v13105_v63, 0.0  ;;  %v13233_v8 = vmul.f32 0.1, %v13105_v63  ;;  %v12979_v7 = vadd.f32 %v23316_v5, %v12629_v4 }
 0x9cd   :  { %v13298_v3 = vsel %vm13170_vm5, %v13106_v61, %v13234_v6  ;;  %v13108_v55 = vadd.f32 %v15004_v1, %v12980_v37  ;;  %v15013_v6 = vld [vmem:[%s23831_s0 + $0x109] sm:$0xff] }
 0x9ce   :  { %13362 = vst.msk [vmem:[%s23835_s5 + $0x48] sm:$0xff] %vm151_vm1, %v13298_v3  ;;  %v13297_v46 = vsel %vm13169_vm6, %v13105_v63, %v13233_v8  ;;  %v13107_v42 = vadd.f32 %v15003_v47, %v12979_v7  ;;  %v17915_v12 = vpop.f32.mrb[12].mxu1 }
 0x9cf   :  { %13361 = vst.msk [vmem:[%s23835_s5 + $0x40] sm:$0xff] %vm151_vm1, %v13297_v46  ;;  %vm13172_vm7 = vcmp.gt.f32.partialorder %v13108_v55, 0.0  ;;  %v13236_v10 = vmul.f32 0.1, %v13108_v55  ;;  %v12982_v13 = vadd.f32 %v17915_v12, %v23316_v5  ;;  %v12639_v15 = vpop.f32.mrb[13].mxu1  ;;  %v15016_v46 = vld [vmem:[%s23831_s0 + $0x129] sm:$0xff] }
 0x9d0   :  { %vm13171_vm8 = vcmp.gt.f32.partialorder %v13107_v42, 0.0  ;;  %v13235_v17 = vmul.f32 0.1, %v13107_v42  ;;  %v12981_v18 = vadd.f32 %v23316_v5, %v12639_v15 }
 0x9d1   :  { %v13300_v19 = vsel %vm13172_vm7, %v13108_v55, %v13236_v10  ;;  %v13110_v20 = vadd.f32 %v15006_v9, %v12982_v13  ;;  %v15015_v10 = vld [vmem:[%s23831_s0 + $0x121] sm:$0xff] }
 0x9d2   :  { %13364 = vst.msk [vmem:[%s23835_s5 + $0x58] sm:$0xff] %vm151_vm1, %v13300_v19  ;;  %v13299_v21 = vsel %vm13171_vm8, %v13107_v42, %v13235_v17  ;;  %v13109_v24 = vadd.f32 %v15005_v16, %v12981_v18  ;;  %v17918_v25 = vpop.f32.mrb[14].mxu1 }
 0x9d3   :  { %13363 = vst.msk [vmem:[%s23835_s5 + $0x50] sm:$0xff] %vm151_vm1, %v13299_v21  ;;  %vm13174_vm9 = vcmp.gt.f32.partialorder %v13110_v20, 0.0  ;;  %v13238_v27 = vmul.f32 0.1, %v13110_v20  ;;  %v12984_v28 = vadd.f32 %v17918_v25, %v23316_v5  ;;  %v12649_v29 = vpop.f32.mrb[15].mxu1  ;;  %v15018_v21 = vld [vmem:[%s23831_s0 + $0x141] sm:$0xff] }
 0x9d4   :  { %vm13173_vm10 = vcmp.gt.f32.partialorder %v13109_v24, 0.0  ;;  %v13237_v31 = vmul.f32 0.1, %v13109_v24  ;;  %v12983_v32 = vadd.f32 %v23316_v5, %v12649_v29 }
 0x9d5   :  { %v13302_v11 = vsel %vm13174_vm9, %v13110_v20, %v13238_v27  ;;  %v13112_v34 = vadd.f32 %v15008_v26, %v12984_v28  ;;  %v15017_v27 = vld [vmem:[%s23831_s0 + $0x139] sm:$0xff] }
 0x9d6   :  { %13366 = vst.msk [vmem:[%s23835_s5 + $0x68] sm:$0xff] %vm151_vm1, %v13302_v11  ;;  %v13301_v35 = vsel %vm13173_vm10, %v13109_v24, %v13237_v31  ;;  %v13111_v38 = vadd.f32 %v15007_v30, %v12983_v32  ;;  %v17921_v36 = vpop.f32.mrb[16].mxu1 }
 0x9d7   :  { %13365 = vst.msk [vmem:[%s23835_s5 + $0x60] sm:$0xff] %vm151_vm1, %v13301_v35  ;;  %vm13176_vm11 = vcmp.gt.f32.partialorder %v13112_v34, 0.0  ;;  %v13240_v39 = vmul.f32 0.1, %v13112_v34  ;;  %v12986_v2 = vadd.f32 %v17921_v36, %v23316_v5  ;;  %v12659_v52 = vpop.f32.mrb[17].mxu1  ;;  %v15020_v35 = vld [vmem:[%s23831_s0 + $0x159] sm:$0xff] }
 0x9d8   :  { %vm13175_vm0 = vcmp.gt.f32.partialorder %v13111_v38, 0.0  ;;  %v13239_v48 = vmul.f32 0.1, %v13111_v38  ;;  %v12985_v41 = vadd.f32 %v23316_v5, %v12659_v52 }
 0x9d9   :  { %v13304_v23 = vsel %vm13176_vm11, %v13112_v34, %v13240_v39  ;;  %v13114_v53 = vadd.f32 %v15010_v33, %v12986_v2  ;;  %v15019_v39 = vld [vmem:[%s23831_s0 + $0x151] sm:$0xff] }
 0x9da   :  { %13368 = vst.msk [vmem:[%s23835_s5 + $0x78] sm:$0xff] %vm151_vm1, %v13304_v23  ;;  %v13303_v22 = vsel %vm13175_vm0, %v13111_v38, %v13239_v48  ;;  %v13113_v14 = vadd.f32 %v15009_v49, %v12985_v41  ;;  %v17924_v44 = vpop.f32.mrb[18].mxu1 }
 0x9db   :  { %13367 = vst.msk [vmem:[%s23835_s5 + $0x70] sm:$0xff] %vm151_vm1, %v13303_v22  ;;  %vm13178_vm12 = vcmp.gt.f32.partialorder %v13114_v53, 0.0  ;;  %v13242_v50 = vmul.f32 0.1, %v13114_v53  ;;  %v12988_v43 = vadd.f32 %v17924_v44, %v23316_v5  ;;  %v12669_v45 = vpop.f32.mrb[19].mxu1  ;;  %v15022_v22 = vld [vmem:[%s23831_s0 + $0x171] sm:$0xff] }
 0x9dc   :  { %vm13177_vm13 = vcmp.gt.f32.partialorder %v13113_v14, 0.0  ;;  %v13241_v51 = vmul.f32 0.1, %v13113_v14  ;;  %v12987_v54 = vadd.f32 %v23316_v5, %v12669_v45 }
 0x9dd   :  { %v13306_v56 = vsel %vm13178_vm12, %v13114_v53, %v13242_v50  ;;  %v13116_v57 = vadd.f32 %v15012_v40, %v12988_v43  ;;  %v15021_v50 = vld [vmem:[%s23831_s0 + $0x169] sm:$0xff] }
 0x9de   :  { %13370 = vst.msk [vmem:[%s23835_s5 + $0x88] sm:$0xff] %vm151_vm1, %v13306_v56  ;;  %v13305_v58 = vsel %vm13177_vm13, %v13113_v14, %v13241_v51  ;;  %v13115_v60 = vadd.f32 %v15011_v59, %v12987_v54  ;;  %v17927_v61 = vpop.f32.mrb[20].mxu1 }
 0x9df   :  { %13369 = vst.msk [vmem:[%s23835_s5 + $0x80] sm:$0xff] %vm151_vm1, %v13305_v58  ;;  %vm13180_vm14 = vcmp.gt.f32.partialorder %v13116_v57, 0.0  ;;  %v13244_v63 = vmul.f32 0.1, %v13116_v57  ;;  %v12990_v0 = vadd.f32 %v17927_v61, %v23316_v5  ;;  %v12679_v1 = vpop.f32.mrb[21].mxu1  ;;  %v15024_v58 = vld [vmem:[%s23831_s0 + $0x189] sm:$0xff] }
 0x9e0   :  { %vm13179_vm15 = vcmp.gt.f32.partialorder %v13115_v60, 0.0  ;;  %v13243_v37 = vmul.f32 0.1, %v13115_v60  ;;  %v12989_v4 = vadd.f32 %v23316_v5, %v12679_v1 }
 0x9e1   :  { %v13308_v47 = vsel %vm13180_vm14, %v13116_v57, %v13244_v63  ;;  %v13118_v8 = vadd.f32 %v15014_v62, %v12990_v0  ;;  %v15023_v63 = vld [vmem:[%s23831_s0 + $0x181] sm:$0xff] }
 0x9e2   :  { %13372 = vst.msk [vmem:[%s23835_s5 + $0x98] sm:$0xff] %vm151_vm1, %v13308_v47  ;;  %v13307_v7 = vsel %vm13179_vm15, %v13115_v60, %v13243_v37  ;;  %v13117_v3 = vadd.f32 %v15013_v6, %v12989_v4  ;;  %v17930_v55 = vpop.f32.mrb[22].mxu1 }
 0x9e3   :  { %13371 = vst.msk [vmem:[%s23835_s5 + $0x90] sm:$0xff] %vm151_vm1, %v13307_v7  ;;  %vm13182_vm2 = vcmp.gt.f32.partialorder %v13118_v8, 0.0  ;;  %v13246_v42 = vmul.f32 0.1, %v13118_v8  ;;  %v12992_v12 = vadd.f32 %v17930_v55, %v23316_v5  ;;  %v12689_v9 = vpop.f32.mrb[23].mxu1  ;;  %v15026_v7 = vld [vmem:[%s23831_s0 + $0x1d1] sm:$0xff] }
 0x9e4   :  { %vm13181_vm3 = vcmp.gt.f32.partialorder %v13117_v3, 0.0  ;;  %v13245_v13 = vmul.f32 0.1, %v13117_v3  ;;  %v12991_v15 = vadd.f32 %v23316_v5, %v12689_v9 }
 0x9e5   :  { %v13310_v16 = vsel %vm13182_vm2, %v13118_v8, %v13246_v42  ;;  %v13120_v17 = vadd.f32 %v15016_v46, %v12992_v12  ;;  %v15025_v42 = vld [vmem:[%s23831_s0 + $0x1c9] sm:$0xff] }
 0x9e6   :  { %13374 = vst.msk [vmem:[%s23835_s5 + $0xa8] sm:$0xff] %vm151_vm1, %v13310_v16  ;;  %v13309_v18 = vsel %vm13181_vm3, %v13117_v3, %v13245_v13  ;;  %v13119_v19 = vadd.f32 %v15015_v10, %v12991_v15  ;;  %v17933_v20 = vpop.f32.mrb[24].mxu1 }
 0x9e7   :  { %13373 = vst.msk [vmem:[%s23835_s5 + $0xa0] sm:$0xff] %vm151_vm1, %v13309_v18  ;;  %vm13184_vm4 = vcmp.gt.f32.partialorder %v13120_v17, 0.0  ;;  %v13248_v24 = vmul.f32 0.1, %v13120_v17  ;;  %v12994_v25 = vadd.f32 %v17933_v20, %v23316_v5  ;;  %v12699_v26 = vpop.f32.mrb[25].mxu1  ;;  %v15028_v18 = vld [vmem:[%s23831_s0 + $0x1e9] sm:$0xff] }
 0x9e8   :  { %vm13183_vm5 = vcmp.gt.f32.partialorder %v13119_v19, 0.0  ;;  %v13247_v28 = vmul.f32 0.1, %v13119_v19  ;;  %v12993_v29 = vadd.f32 %v23316_v5, %v12699_v26 }
 0x9e9   :  { %v13312_v30 = vsel %vm13184_vm4, %v13120_v17, %v13248_v24  ;;  %v13122_v31 = vadd.f32 %v15018_v21, %v12994_v25  ;;  %v15027_v24 = vld [vmem:[%s23831_s0 + $0x1e1] sm:$0xff] }
 0x9ea   :  { %13376 = vst.msk [vmem:[%s23835_s5 + $0xb8] sm:$0xff] %vm151_vm1, %v13312_v30  ;;  %v13311_v32 = vsel %vm13183_vm5, %v13119_v19, %v13247_v28  ;;  %v13121_v11 = vadd.f32 %v15017_v27, %v12993_v29  ;;  %v17936_v34 = vpop.f32.mrb[26].mxu1 }
 0x9eb   :  { %13375 = vst.msk [vmem:[%s23835_s5 + $0xb0] sm:$0xff] %vm151_vm1, %v13311_v32  ;;  %vm13186_vm6 = vcmp.gt.f32.partialorder %v13122_v31, 0.0  ;;  %v13250_v38 = vmul.f32 0.1, %v13122_v31  ;;  %v12996_v36 = vadd.f32 %v17936_v34, %v23316_v5  ;;  %v12709_v33 = vpop.f32.mrb[27].mxu1  ;;  %v15030_v32 = vld [vmem:[%s23831_s0 + $0x201] sm:$0xff] }
 0x9ec   :  { %vm13185_vm7 = vcmp.gt.f32.partialorder %v13121_v11, 0.0  ;;  %v13249_v2 = vmul.f32 0.1, %v13121_v11  ;;  %v12995_v52 = vadd.f32 %v23316_v5, %v12709_v33 }
 0x9ed   :  { %v13314_v49 = vsel %vm13186_vm6, %v13122_v31, %v13250_v38  ;;  %v13124_v48 = vadd.f32 %v15020_v35, %v12996_v36  ;;  %v15029_v38 = vld [vmem:[%s23831_s0 + $0x1f9] sm:$0xff] }
 0x9ee   :  { %13378 = vst.msk [vmem:[%s23835_s5 + $0xc8] sm:$0xff] %vm151_vm1, %v13314_v49  ;;  %v13313_v41 = vsel %vm13185_vm7, %v13121_v11, %v13249_v2  ;;  %v13123_v23 = vadd.f32 %v15019_v39, %v12995_v52  ;;  %v17939_v53 = vpop.f32.mrb[28].mxu1 }
 0x9ef   :  { %13377 = vst.msk [vmem:[%s23835_s5 + $0xc0] sm:$0xff] %vm151_vm1, %v13313_v41  ;;  %vm13188_vm8 = vcmp.gt.f32.partialorder %v13124_v48, 0.0  ;;  %v13252_v14 = vmul.f32 0.1, %v13124_v48  ;;  %v12998_v44 = vadd.f32 %v17939_v53, %v23316_v5  ;;  %v12719_v40 = vpop.f32.mrb[29].mxu1  ;;  %v15032_v41 = vld [vmem:[%s23831_s0 + $0x219] sm:$0xff] }
 0x9f0   :  { %vm13187_vm9 = vcmp.gt.f32.partialorder %v13123_v23, 0.0  ;;  %v13251_v43 = vmul.f32 0.1, %v13123_v23  ;;  %v12997_v45 = vadd.f32 %v23316_v5, %v12719_v40 }
 0x9f1   :  { %v13316_v59 = vsel %vm13188_vm8, %v13124_v48, %v13252_v14  ;;  %v13126_v51 = vadd.f32 %v15022_v22, %v12998_v44  ;;  %v15031_v14 = vld [vmem:[%s23831_s0 + $0x211] sm:$0xff] }
 0x9f2   :  { %13380 = vst.msk [vmem:[%s23835_s5 + $0xd8] sm:$0xff] %vm151_vm1, %v13316_v59  ;;  %v13315_v54 = vsel %vm13187_vm9, %v13123_v23, %v13251_v43  ;;  %v13125_v56 = vadd.f32 %v15021_v50, %v12997_v45  ;;  %v17942_v57 = vpop.f32.mrb[30].mxu1 }
 0x9f3   :  { %13379 = vst.msk [vmem:[%s23835_s5 + $0xd0] sm:$0xff] %vm151_vm1, %v13315_v54  ;;  %vm13190_vm10 = vcmp.gt.f32.partialorder %v13126_v51, 0.0  ;;  %v13254_v60 = vmul.f32 0.1, %v13126_v51  ;;  %v13000_v61 = vadd.f32 %v17942_v57, %v23316_v5  ;;  %v12729_v62 = vpop.f32.mrb[31].mxu1  ;;  %v15034_v54 = vld [vmem:[%s23831_s0 + $0x231] sm:$0xff] }
 0x9f4   :  { %vm13189_vm11 = vcmp.gt.f32.partialorder %v13125_v56, 0.0  ;;  %v13253_v0 = vmul.f32 0.1, %v13125_v56  ;;  %v12999_v1 = vadd.f32 %v23316_v5, %v12729_v62 }
 0x9f5   :  { %v13318_v6 = vsel %vm13190_vm10, %v13126_v51, %v13254_v60  ;;  %v13128_v37 = vadd.f32 %v15024_v58, %v13000_v61  ;;  %v15033_v60 = vld [vmem:[%s23831_s0 + $0x229] sm:$0xff] }
 0x9f6   :  { %13382 = vst.msk [vmem:[%s23835_s5 + $0xe8] sm:$0xff] %vm151_vm1, %v13318_v6  ;;  %v13317_v4 = vsel %vm13189_vm11, %v13125_v56, %v13253_v0  ;;  %v13127_v47 = vadd.f32 %v15023_v63, %v12999_v1  ;;  %v17945_v8 = vpop.f32.mrb[32].mxu1 }
 0x9f7   :  { %13381 = vst.msk [vmem:[%s23835_s5 + $0xe0] sm:$0xff] %vm151_vm1, %v13317_v4  ;;  %vm13192_vm0 = vcmp.gt.f32.partialorder %v13128_v37, 0.0  ;;  %v13256_v3 = vmul.f32 0.1, %v13128_v37  ;;  %v13002_v55 = vadd.f32 %v17945_v8, %v23316_v5  ;;  %v12739_v46 = vpop.f32.mrb[33].mxu1  ;;  %v15036_v4 = vld [vmem:[%s23831_s0 + $0x249] sm:$0xff] }
 0x9f8   :  { %vm13191_vm12 = vcmp.gt.f32.partialorder %v13127_v47, 0.0  ;;  %v13255_v12 = vmul.f32 0.1, %v13127_v47  ;;  %v13001_v9 = vadd.f32 %v23316_v5, %v12739_v46 }
 0x9f9   :  { %v13320_v10 = vsel %vm13192_vm0, %v13128_v37, %v13256_v3  ;;  %v13130_v13 = vadd.f32 %v15026_v7, %v13002_v55  ;;  %v15035_v3 = vld [vmem:[%s23831_s0 + $0x241] sm:$0xff] }
 0x9fa   :  { %13384 = vst.msk [vmem:[%s23835_s5 + $0xf8] sm:$0xff] %vm151_vm1, %v13320_v10  ;;  %v13319_v15 = vsel %vm13191_vm12, %v13127_v47, %v13255_v12  ;;  %v13129_v16 = vadd.f32 %v15025_v42, %v13001_v9  ;;  %v17948_v17 = vpop.f32.mrb[34].mxu1 }
 0x9fb   :  { %13383 = vst.msk [vmem:[%s23835_s5 + $0xf0] sm:$0xff] %vm151_vm1, %v13319_v15  ;;  %vm13194_vm13 = vcmp.gt.f32.partialorder %v13130_v13, 0.0  ;;  %v13258_v19 = vmul.f32 0.1, %v13130_v13  ;;  %v13004_v20 = vadd.f32 %v17948_v17, %v23316_v5  ;;  %v12749_v21 = vpop.f32.mrb[35].mxu1  ;;  %v15038_v15 = vld [vmem:[%s23831_s0 + $0x261] sm:$0xff] }
 0x9fc   :  { %vm13193_vm14 = vcmp.gt.f32.partialorder %v13129_v16, 0.0  ;;  %v13257_v25 = vmul.f32 0.1, %v13129_v16  ;;  %v13003_v26 = vadd.f32 %v23316_v5, %v12749_v21 }
 0x9fd   :  { %v13322_v27 = vsel %vm13194_vm13, %v13130_v13, %v13258_v19  ;;  %v13132_v28 = vadd.f32 %v15028_v18, %v13004_v20  ;;  %v15037_v19 = vld [vmem:[%s23831_s0 + $0x259] sm:$0xff] }
 0x9fe   :  { %13386 = vst.msk [vmem:[%s23835_s5 + $0x108] sm:$0xff] %vm151_vm1, %v13322_v27  ;;  %v13321_v29 = vsel %vm13193_vm14, %v13129_v16, %v13257_v25  ;;  %v13131_v30 = vadd.f32 %v15027_v24, %v13003_v26  ;;  %v17951_v31 = vpop.f32.mrb[36].mxu1 }
 0x9ff   :  { %13385 = vst.msk [vmem:[%s23835_s5 + $0x100] sm:$0xff] %vm151_vm1, %v13321_v29  ;;  %vm13196_vm15 = vcmp.gt.f32.partialorder %v13132_v28, 0.0  ;;  %v13260_v11 = vmul.f32 0.1, %v13132_v28  ;;  %v13006_v34 = vadd.f32 %v17951_v31, %v23316_v5  ;;  %v12759_v35 = vpop.f32.mrb[37].mxu1  ;;  %v15040_v29 = vld [vmem:[%s23831_s0 + $0x279] sm:$0xff] }
 0xa00   :  { %vm13195_vm2 = vcmp.gt.f32.partialorder %v13131_v30, 0.0  ;;  %v13259_v36 = vmul.f32 0.1, %v13131_v30  ;;  %v13005_v33 = vadd.f32 %v23316_v5, %v12759_v35 }
 0xa01   :  { %v13324_v39 = vsel %vm13196_vm15, %v13132_v28, %v13260_v11  ;;  %v13134_v2 = vadd.f32 %v15030_v32, %v13006_v34  ;;  %v15039_v11 = vld [vmem:[%s23831_s0 + $0x271] sm:$0xff] }
 0xa02   :  { %13388 = vst.msk [vmem:[%s23835_s5 + $0x118] sm:$0xff] %vm151_vm1, %v13324_v39  ;;  %v13323_v52 = vsel %vm13195_vm2, %v13131_v30, %v13259_v36  ;;  %v13133_v49 = vadd.f32 %v15029_v38, %v13005_v33  ;;  %v17954_v48 = vpop.f32.mrb[38].mxu1 }
 0xa03   :  { %13387 = vst.msk [vmem:[%s23835_s5 + $0x110] sm:$0xff] %vm151_vm1, %v13323_v52  ;;  %vm13198_vm3 = vcmp.gt.f32.partialorder %v13134_v2, 0.0  ;;  %v13262_v23 = vmul.f32 0.1, %v13134_v2  ;;  %v13008_v53 = vadd.f32 %v17954_v48, %v23316_v5  ;;  %v12769_v22 = vpop.f32.mrb[39].mxu1  ;;  %v15042_v52 = vld [vmem:[%s23831_s0 + $0x291] sm:$0xff] }
 0xa04   :  { %vm13197_vm4 = vcmp.gt.f32.partialorder %v13133_v49, 0.0  ;;  %v13261_v44 = vmul.f32 0.1, %v13133_v49  ;;  %v13007_v40 = vadd.f32 %v23316_v5, %v12769_v22 }
 0xa05   :  { %v13326_v50 = vsel %vm13198_vm3, %v13134_v2, %v13262_v23  ;;  %v13136_v43 = vadd.f32 %v15032_v41, %v13008_v53  ;;  %v15041_v23 = vld [vmem:[%s23831_s0 + $0x289] sm:$0xff] }
 0xa06   :  { %13390 = vst.msk [vmem:[%s23835_s5 + $0x128] sm:$0xff] %vm151_vm1, %v13326_v50  ;;  %v13325_v45 = vsel %vm13197_vm4, %v13133_v49, %v13261_v44  ;;  %v13135_v59 = vadd.f32 %v15031_v14, %v13007_v40  ;;  %v17957_v51 = vpop.f32.mrb[40].mxu1 }
 0xa07   :  { %13389 = vst.msk [vmem:[%s23835_s5 + $0x120] sm:$0xff] %vm151_vm1, %v13325_v45  ;;  %vm13200_vm5 = vcmp.gt.f32.partialorder %v13136_v43, 0.0  ;;  %v13264_v56 = vmul.f32 0.1, %v13136_v43  ;;  %v13010_v57 = vadd.f32 %v17957_v51, %v23316_v5  ;;  %v12779_v58 = vpop.f32.mrb[41].mxu1  ;;  %v15044_v45 = vld [vmem:[%s23831_s0 + $0x2a9] sm:$0xff] }
 0xa08   :  { %vm13199_vm6 = vcmp.gt.f32.partialorder %v13135_v59, 0.0  ;;  %v13263_v61 = vmul.f32 0.1, %v13135_v59  ;;  %v13009_v62 = vadd.f32 %v23316_v5, %v12779_v58 }
 0xa09   :  { %v13328_v63 = vsel %vm13200_vm5, %v13136_v43, %v13264_v56  ;;  %v13138_v0 = vadd.f32 %v15034_v54, %v13010_v57  ;;  %v15043_v56 = vld [vmem:[%s23831_s0 + $0x2a1] sm:$0xff] }
 0xa0a   :  { %13392 = vst.msk [vmem:[%s23835_s5 + $0x138] sm:$0xff] %vm151_vm1, %v13328_v63  ;;  %v13327_v1 = vsel %vm13199_vm6, %v13135_v59, %v13263_v61  ;;  %v13137_v6 = vadd.f32 %v15033_v60, %v13009_v62  ;;  %v17960_v37 = vpop.f32.mrb[42].mxu1 }
 0xa0b   :  { %13391 = vst.msk [vmem:[%s23835_s5 + $0x130] sm:$0xff] %vm151_vm1, %v13327_v1  ;;  %vm13202_vm7 = vcmp.gt.f32.partialorder %v13138_v0, 0.0  ;;  %v13266_v47 = vmul.f32 0.1, %v13138_v0  ;;  %v13012_v8 = vadd.f32 %v17960_v37, %v23316_v5  ;;  %v12789_v7 = vpop.f32.mrb[43].mxu1  ;;  %v15046_v1 = vld [vmem:[%s23831_s0 + $0x2c1] sm:$0xff] }
 0xa0c   :  { %vm13201_vm8 = vcmp.gt.f32.partialorder %v13137_v6, 0.0  ;;  %v13265_v55 = vmul.f32 0.1, %v13137_v6  ;;  %v13011_v46 = vadd.f32 %v23316_v5, %v12789_v7 }
 0xa0d   :  { %v13330_v42 = vsel %vm13202_vm7, %v13138_v0, %v13266_v47  ;;  %v13140_v12 = vadd.f32 %v15036_v4, %v13012_v8  ;;  %v15045_v47 = vld [vmem:[%s23831_s0 + $0x2b9] sm:$0xff] }
 0xa0e   :  { %13394 = vst.msk [vmem:[%s23835_s5 + $0x148] sm:$0xff] %vm151_vm1, %v13330_v42  ;;  %v13329_v9 = vsel %vm13201_vm8, %v13137_v6, %v13265_v55  ;;  %v13139_v10 = vadd.f32 %v15035_v3, %v13011_v46  ;;  %v17963_v13 = vpop.f32.mrb[44].mxu1 }
 0xa0f   :  { %13393 = vst.msk [vmem:[%s23835_s5 + $0x140] sm:$0xff] %vm151_vm1, %v13329_v9  ;;  %vm13204_vm9 = vcmp.gt.f32.partialorder %v13140_v12, 0.0  ;;  %v13268_v16 = vmul.f32 0.1, %v13140_v12  ;;  %v13014_v17 = vadd.f32 %v17963_v13, %v23316_v5  ;;  %v12799_v18 = vpop.f32.mrb[45].mxu1  ;;  %v15048_v9 = vld [vmem:[%s23831_s0 + $0x2d9] sm:$0xff] }
 0xa10   :  { %vm13203_vm10 = vcmp.gt.f32.partialorder %v13139_v10, 0.0  ;;  %v13267_v20 = vmul.f32 0.1, %v13139_v10  ;;  %v13013_v21 = vadd.f32 %v23316_v5, %v12799_v18 }
 0xa11   :  { %v13332_v24 = vsel %vm13204_vm9, %v13140_v12, %v13268_v16  ;;  %v13142_v25 = vadd.f32 %v15038_v15, %v13014_v17  ;;  %v15047_v16 = vld [vmem:[%s23831_s0 + $0x2d1] sm:$0xff] }
 0xa12   :  { %13396 = vst.msk [vmem:[%s23835_s5 + $0x158] sm:$0xff] %vm151_vm1, %v13332_v24  ;;  %v13331_v26 = vsel %vm13203_vm10, %v13139_v10, %v13267_v20  ;;  %v13141_v27 = vadd.f32 %v15037_v19, %v13013_v21  ;;  %v17966_v28 = vpop.f32.mrb[46].mxu1 }
 0xa13   :  { %13395 = vst.msk [vmem:[%s23835_s5 + $0x150] sm:$0xff] %vm151_vm1, %v13331_v26  ;;  %vm13206_vm11 = vcmp.gt.f32.partialorder %v13142_v25, 0.0  ;;  %v13270_v30 = vmul.f32 0.1, %v13142_v25  ;;  %v13016_v31 = vadd.f32 %v17966_v28, %v23316_v5  ;;  %v12809_v32 = vpop.f32.mrb[47].mxu1  ;;  %v15050_v26 = vld [vmem:[%s23831_s0 + $0x2f1] sm:$0xff] }
 0xa14   :  { %vm13205_vm0 = vcmp.gt.f32.partialorder %v13141_v27, 0.0  ;;  %v13269_v34 = vmul.f32 0.1, %v13141_v27  ;;  %v13015_v35 = vadd.f32 %v23316_v5, %v12809_v32 }
 0xa15   :  { %v13334_v38 = vsel %vm13206_vm11, %v13142_v25, %v13270_v30  ;;  %v13144_v36 = vadd.f32 %v15040_v29, %v13016_v31  ;;  %v15049_v30 = vld [vmem:[%s23831_s0 + $0x2e9] sm:$0xff] }
 0xa16   :  { %13398 = vst.msk [vmem:[%s23835_s5 + $0x168] sm:$0xff] %vm151_vm1, %v13334_v38  ;;  %v13333_v33 = vsel %vm13205_vm0, %v13141_v27, %v13269_v34  ;;  %v13143_v39 = vadd.f32 %v15039_v11, %v13015_v35  ;;  %v17969_v2 = vpop.f32.mrb[48].mxu1 }
 0xa17   :  { %13397 = vst.msk [vmem:[%s23835_s5 + $0x160] sm:$0xff] %vm151_vm1, %v13333_v33  ;;  %vm13208_vm12 = vcmp.gt.f32.partialorder %v13144_v36, 0.0  ;;  %v13272_v49 = vmul.f32 0.1, %v13144_v36  ;;  %v13018_v48 = vadd.f32 %v17969_v2, %v23316_v5  ;;  %v12819_v41 = vpop.f32.mrb[49].mxu1  ;;  %v15052_v33 = vld [vmem:[%s23831_s0 + $0x309] sm:$0xff] }
 0xa18   :  { %vm13207_vm13 = vcmp.gt.f32.partialorder %v13143_v39, 0.0  ;;  %v13271_v53 = vmul.f32 0.1, %v13143_v39  ;;  %v13017_v22 = vadd.f32 %v23316_v5, %v12819_v41 }
 0xa19   :  { %v13336_v14 = vsel %vm13208_vm12, %v13144_v36, %v13272_v49  ;;  %v13146_v44 = vadd.f32 %v15042_v52, %v13018_v48  ;;  %v15051_v49 = vld [vmem:[%s23831_s0 + $0x301] sm:$0xff] }
 0xa1a   :  { %13400 = vst.msk [vmem:[%s23835_s5 + $0x178] sm:$0xff] %vm151_vm1, %v13336_v14  ;;  %v13335_v40 = vsel %vm13207_vm13, %v13143_v39, %v13271_v53  ;;  %v13145_v50 = vadd.f32 %v15041_v23, %v13017_v22  ;;  %v17972_v43 = vpop.f32.mrb[50].mxu1 }
 0xa1b   :  { %13399 = vst.msk [vmem:[%s23835_s5 + $0x170] sm:$0xff] %vm151_vm1, %v13335_v40  ;;  %vm13210_vm14 = vcmp.gt.f32.partialorder %v13146_v44, 0.0  ;;  %v13274_v59 = vmul.f32 0.1, %v13146_v44  ;;  %v13020_v51 = vadd.f32 %v17972_v43, %v23316_v5  ;;  %v12829_v54 = vpop.f32.mrb[51].mxu1  ;;  %v15054_v40 = vld [vmem:[%s23831_s0 + $0x321] sm:$0xff] }
 0xa1c   :  { %vm13209_vm15 = vcmp.gt.f32.partialorder %v13145_v50, 0.0  ;;  %v13273_v57 = vmul.f32 0.1, %v13145_v50  ;;  %v13019_v58 = vadd.f32 %v23316_v5, %v12829_v54 }
 0xa1d   :  { %v13338_v60 = vsel %vm13210_vm14, %v13146_v44, %v13274_v59  ;;  %v13148_v61 = vadd.f32 %v15044_v45, %v13020_v51  ;;  %v15053_v59 = vld [vmem:[%s23831_s0 + $0x319] sm:$0xff] }
 0xa1e   :  { %13402 = vst.msk [vmem:[%s23835_s5 + $0x188] sm:$0xff] %vm151_vm1, %v13338_v60  ;;  %v13337_v62 = vsel %vm13209_vm15, %v13145_v50, %v13273_v57  ;;  %v13147_v63 = vadd.f32 %v15043_v56, %v13019_v58  ;;  %v17975_v0 = vpop.f32.mrb[52].mxu1 }
 0xa1f   :  { %13401 = vst.msk [vmem:[%s23835_s5 + $0x180] sm:$0xff] %vm151_vm1, %v13337_v62  ;;  %vm13212_vm2 = vcmp.gt.f32.partialorder %v13148_v61, 0.0  ;;  %v13276_v6 = vmul.f32 0.1, %v13148_v61  ;;  %v13022_v37 = vadd.f32 %v17975_v0, %v23316_v5  ;;  %v12839_v4 = vpop.f32.mrb[53].mxu1  ;;  %v15056_v62 = vld [vmem:[%s23831_s0 + $0x339] sm:$0xff] }
 0xa20   :  { %vm13211_vm3 = vcmp.gt.f32.partialorder %v13147_v63, 0.0  ;;  %v13275_v8 = vmul.f32 0.1, %v13147_v63  ;;  %v13021_v7 = vadd.f32 %v23316_v5, %v12839_v4 }
 0xa21   :  { %v13340_v3 = vsel %vm13212_vm2, %v13148_v61, %v13276_v6  ;;  %v13150_v55 = vadd.f32 %v15046_v1, %v13022_v37  ;;  %v15055_v6 = vld [vmem:[%s23831_s0 + $0x331] sm:$0xff] }
 0xa22   :  { %13404 = vst.msk [vmem:[%s23835_s5 + $0x198] sm:$0xff] %vm151_vm1, %v13340_v3  ;;  %v13339_v46 = vsel %vm13211_vm3, %v13147_v63, %v13275_v8  ;;  %v13149_v42 = vadd.f32 %v15045_v47, %v13021_v7  ;;  %v17978_v12 = vpop.f32.mrb[54].mxu1 }
 0xa23   :  { %13403 = vst.msk [vmem:[%s23835_s5 + $0x190] sm:$0xff] %vm151_vm1, %v13339_v46  ;;  %vm13214_vm4 = vcmp.gt.f32.partialorder %v13150_v55, 0.0  ;;  %v13278_v10 = vmul.f32 0.1, %v13150_v55  ;;  %v13024_v13 = vadd.f32 %v17978_v12, %v23316_v5  ;;  %v12849_v15 = vpop.f32.mrb[55].mxu1 }
 0xa24   :  { %vm13213_vm5 = vcmp.gt.f32.partialorder %v13149_v42, 0.0  ;;  %v13277_v17 = vmul.f32 0.1, %v13149_v42  ;;  %v13023_v18 = vadd.f32 %v23316_v5, %v12849_v15 }
 0xa25   :  { %v13342_v19 = vsel %vm13214_vm4, %v13150_v55, %v13278_v10  ;;  %v13152_v20 = vadd.f32 %v15048_v9, %v13024_v13 }
 0xa26   :  { %13406 = vst.msk [vmem:[%s23835_s5 + $0x1a8] sm:$0xff] %vm151_vm1, %v13342_v19  ;;  %v13341_v21 = vsel %vm13213_vm5, %v13149_v42, %v13277_v17  ;;  %v13151_v24 = vadd.f32 %v15047_v16, %v13023_v18  ;;  %v17981_v25 = vpop.f32.mrb[56].mxu1 }
 0xa27   :  { %13405 = vst.msk [vmem:[%s23835_s5 + $0x1a0] sm:$0xff] %vm151_vm1, %v13341_v21  ;;  %vm13216_vm6 = vcmp.gt.f32.partialorder %v13152_v20, 0.0  ;;  %v13280_v27 = vmul.f32 0.1, %v13152_v20  ;;  %v13026_v28 = vadd.f32 %v17981_v25, %v23316_v5  ;;  %v12859_v29 = vpop.f32.mrb[57].mxu1 }
 0xa28   :  { %vm13215_vm7 = vcmp.gt.f32.partialorder %v13151_v24, 0.0  ;;  %v13279_v31 = vmul.f32 0.1, %v13151_v24  ;;  %v13025_v32 = vadd.f32 %v23316_v5, %v12859_v29 }
 0xa29   :  { %v13344_v11 = vsel %vm13216_vm6, %v13152_v20, %v13280_v27  ;;  %v13154_v34 = vadd.f32 %v15050_v26, %v13026_v28 }
 0xa2a   :  { %13408 = vst.msk [vmem:[%s23835_s5 + $0x1b8] sm:$0xff] %vm151_vm1, %v13344_v11  ;;  %v13343_v35 = vsel %vm13215_vm7, %v13151_v24, %v13279_v31  ;;  %v13153_v38 = vadd.f32 %v15049_v30, %v13025_v32  ;;  %v17984_v36 = vpop.f32.mrb[58].mxu1 }
 0xa2b   :  { %13407 = vst.msk [vmem:[%s23835_s5 + $0x1b0] sm:$0xff] %vm151_vm1, %v13343_v35  ;;  %vm13218_vm8 = vcmp.gt.f32.partialorder %v13154_v34, 0.0  ;;  %v13282_v39 = vmul.f32 0.1, %v13154_v34  ;;  %v13028_v2 = vadd.f32 %v17984_v36, %v23316_v5  ;;  %v12869_v52 = vpop.f32.mrb[59].mxu1 }
 0xa2c   :  { %vm13217_vm9 = vcmp.gt.f32.partialorder %v13153_v38, 0.0  ;;  %v13281_v48 = vmul.f32 0.1, %v13153_v38  ;;  %v13027_v41 = vadd.f32 %v23316_v5, %v12869_v52 }
 0xa2d   :  { %v13346_v23 = vsel %vm13218_vm8, %v13154_v34, %v13282_v39  ;;  %v13156_v53 = vadd.f32 %v15052_v33, %v13028_v2 }
 0xa2e   :  { %13410 = vst.msk [vmem:[%s23835_s5 + $0x1c8] sm:$0xff] %vm151_vm1, %v13346_v23  ;;  %v13345_v22 = vsel %vm13217_vm9, %v13153_v38, %v13281_v48  ;;  %v13155_v14 = vadd.f32 %v15051_v49, %v13027_v41  ;;  %v17987_v44 = vpop.f32.mrb[60].mxu1 }
 0xa2f   :  { %13409 = vst.msk [vmem:[%s23835_s5 + $0x1c0] sm:$0xff] %vm151_vm1, %v13345_v22  ;;  %vm13220_vm10 = vcmp.gt.f32.partialorder %v13156_v53, 0.0  ;;  %v13284_v50 = vmul.f32 0.1, %v13156_v53  ;;  %v13030_v43 = vadd.f32 %v17987_v44, %v23316_v5  ;;  %v12879_v45 = vpop.f32.mrb[61].mxu1 }
 0xa30   :  { %vm13219_vm11 = vcmp.gt.f32.partialorder %v13155_v14, 0.0  ;;  %v13283_v51 = vmul.f32 0.1, %v13155_v14  ;;  %v13029_v54 = vadd.f32 %v23316_v5, %v12879_v45 }
 0xa31   :  { %v13348_v56 = vsel %vm13220_vm10, %v13156_v53, %v13284_v50  ;;  %v13158_v57 = vadd.f32 %v15054_v40, %v13030_v43 }
 0xa32   :  { %13412 = vst.msk [vmem:[%s23835_s5 + $0x1d8] sm:$0xff] %vm151_vm1, %v13348_v56  ;;  %v13347_v58 = vsel %vm13219_vm11, %v13155_v14, %v13283_v51  ;;  %v13157_v60 = vadd.f32 %v15053_v59, %v13029_v54  ;;  %v17990_v61 = vpop.f32.mrb[62].mxu1 }
 0xa33   :  { %13411 = vst.msk [vmem:[%s23835_s5 + $0x1d0] sm:$0xff] %vm151_vm1, %v13347_v58  ;;  %vm13222_vm0 = vcmp.gt.f32.partialorder %v13158_v57, 0.0  ;;  %v13286_v63 = vmul.f32 0.1, %v13158_v57  ;;  %v13032_v0 = vadd.f32 %v17990_v61, %v23316_v5  ;;  %v12889_v1 = vpop.f32.mrb[63].mxu1 }
 0xa34   :  { %vm13221_vm12 = vcmp.gt.f32.partialorder %v13157_v60, 0.0  ;;  %v13285_v37 = vmul.f32 0.1, %v13157_v60  ;;  %v13031_v4 = vadd.f32 %v23316_v5, %v12889_v1 }
 0xa35   :  { %v13350_v47 = vsel %vm13222_vm0, %v13158_v57, %v13286_v63  ;;  %v13160_v8 = vadd.f32 %v15056_v62, %v13032_v0 }
 0xa36   :  { %13414 = vst.msk [vmem:[%s23835_s5 + $0x1e8] sm:$0xff] %vm151_vm1, %v13350_v47  ;;  %v13349_v7 = vsel %vm13221_vm12, %v13157_v60, %v13285_v37  ;;  %v13159_v3 = vadd.f32 %v15055_v6, %v13031_v4 }
 0xa37   :  { %13413 = vst.msk [vmem:[%s23835_s5 + $0x1e0] sm:$0xff] %vm151_vm1, %v13349_v7  ;;  %vm13224_vm13 = vcmp.gt.f32.partialorder %v13160_v8, 0.0  ;;  %v13288_v55 = vmul.f32 0.1, %v13160_v8 }
 0xa38   :  { %vm13223_vm14 = vcmp.gt.f32.partialorder %v13159_v3, 0.0  ;;  %v13287_v46 = vmul.f32 0.1, %v13159_v3 }
 0xa39   :  { %v13352_v42 = vsel %vm13224_vm13, %v13160_v8, %v13288_v55 }
 0xa3a   :  { %13416 = vst.msk [vmem:[%s23835_s5 + $0x1f8] sm:$0xff] %vm151_vm1, %v13352_v42  ;;  %v13351_v5 = vsel %vm13223_vm14, %v13159_v3, %v13287_v46 }
 0xa3b   :  { %13415 = vst.msk [vmem:[%s23835_s5 + $0x1f0] sm:$0xff] %vm151_vm1, %v13351_v5 }

</bundles_post_ra>
